<compile_context>
chip_gen: v7x
topology: tpu7x:2x2x1
jax: 0.10.0
libtpu: 0.0.40
codegen_flags: <defaults>
</compile_context>

<pallas_src>
import jax
import jax.numpy as jnp
from jax import lax
from jax.experimental import pallas as pl
from jax.experimental.pallas import tpu as pltpu

TQ = 256     # query rows per grid step (sublane axis)
TQS = 32     # query rows per register-blocked sub-block
TF = 512     # faces per grid step (lane axis, reduction grid axis)
LANE = 128   # faces per register-blocked lane chunk
NROW = 16    # rows of the per-face data slab (12 used, padded to 2 sublane tiles)


# ----------------------------------------------------------------------------
# Pallas kernel: closest point on a triangle soup (Ericson), running min over
# face tiles (grid axis 1 is the reduction axis, outputs written at the end).
# ----------------------------------------------------------------------------
def _cps_kernel(q_ref, fd_ref, w_ref, idx_ref,
                bd_ref, bidx_ref, bv_ref, bw_ref):
    fb = pl.program_id(1)

    @pl.when(fb == 0)
    def _():
        bd_ref[...] = jnp.full(bd_ref.shape, jnp.inf, bd_ref.dtype)
        bidx_ref[...] = jnp.zeros(bidx_ref.shape, bidx_ref.dtype)
        bv_ref[...] = jnp.zeros(bv_ref.shape, bv_ref.dtype)
        bw_ref[...] = jnp.zeros(bw_ref.shape, bw_ref.dtype)

    eps = jnp.float32(1e-12)
    big_i32 = jnp.int32(2 ** 30)
    face_base = fb * TF

    def rsafe(x):
        # Every denominator is >= 0 on the branch whose result is actually
        # kept (interior: |ab x ac|^2 >= 0; edge regions: their own conds
        # imply non-negativity), so max() is a sufficient guard.  Approx
        # reciprocal runs on the otherwise idle EUP slot.
        return pl.reciprocal(jnp.maximum(x, eps), approx=True)

    def qs_body(qs, carry_unused):
        row = pl.multiple_of(qs * TQS, TQS)
        q_sub = q_ref[pl.ds(row, TQS), :]              # [TQS, 3]
        px = q_sub[:, 0:1]
        py = q_sub[:, 1:2]
        pz = q_sub[:, 2:3]

        # Best-so-far for this query sub-block (persists across face tiles).
        bd = bd_ref[pl.ds(row, TQS), :]                # [TQS, 1] squared dist
        bi = bidx_ref[pl.ds(row, TQS), :]              # [TQS, 1] face index
        bv = bv_ref[pl.ds(row, TQS), :]                # [TQS, 1] barycentric v
        bw = bw_ref[pl.ds(row, TQS), :]                # [TQS, 1] barycentric w

        # Statically unrolled loop over the lane chunks of this face tile.
        # Every [TQS, LANE] intermediate below fits in a handful of vregs.
        for c in range(TF // LANE):
            fd = fd_ref[:, c * LANE:(c + 1) * LANE]    # [NROW, LANE]
            ax, ay, az = fd[0:1, :], fd[1:2, :], fd[2:3, :]
            abx, aby, abz = fd[3:4, :], fd[4:5, :], fd[5:6, :]
            acx, acy, acz = fd[6:7, :], fd[7:8, :], fd[8:9, :]
            ab_ab, ab_ac, ac_ac = fd[9:10, :], fd[10:11, :], fd[11:12, :]

            pax = px - ax                              # [TQS, LANE]
            pay = py - ay
            paz = pz - az

            # Ericson dot products; d3..d6 fold the per-face constants.
            d1 = abx * pax + aby * pay + abz * paz     # ab . (p - a)
            d2 = acx * pax + acy * pay + acz * paz     # ac . (p - a)
            d3 = d1 - ab_ab                            # ab . (p - b)
            d4 = d2 - ab_ac                            # ac . (p - b)
            d5 = d1 - ab_ac                            # ab . (p - c)
            d6 = d2 - ac_ac                            # ac . (p - c)

            va = d3 * d6 - d5 * d4
            vb = d5 * d2 - d1 * d6
            vc = d1 * d4 - d3 * d2

            # Base case: triangle interior.  Track only (v, w); u = 1 - v - w.
            rden = rsafe(va + vb + vc)
            v = vb * rden
            w = vc * rden

            def override(cond, vv, ww, v, w):
                return jnp.where(cond, vv, v), jnp.where(cond, ww, w)

            # Overrides in reverse Ericson order so the earliest matching
            # region wins: edge BC, edge AC, vertex C, edge AB, vertex B, A.
            e1 = d4 - d3
            e2 = d5 - d6
            t = e1 * rsafe(e1 + e2)
            cond = (va <= 0.0) & (e1 >= 0.0) & (e2 >= 0.0)
            v, w = override(cond, 1.0 - t, t, v, w)

            t = d2 * rsafe(d2 - d6)
            cond = (vb <= 0.0) & (d2 >= 0.0) & (d6 <= 0.0)
            v, w = override(cond, 0.0, t, v, w)

            cond = (d6 >= 0.0) & (d5 <= d6)
            v, w = override(cond, 0.0, 1.0, v, w)

            t = d1 * rsafe(d1 - d3)
            cond = (vc <= 0.0) & (d1 >= 0.0) & (d3 <= 0.0)
            v, w = override(cond, t, 0.0, v, w)

            cond = (d3 >= 0.0) & (d4 <= d3)
            v, w = override(cond, 1.0, 0.0, v, w)

            cond = (d1 <= 0.0) & (d2 <= 0.0)
            v, w = override(cond, 0.0, 0.0, v, w)

            # p - closest = (p - a) - v*ab - w*ac; squared distance.
            dx = pax - v * abx - w * acx
            dy = pay - v * aby - w * acy
            dz = paz - v * abz - w * acz
            dist = dx * dx + dy * dy + dz * dz         # [TQS, LANE]

            # Min / argmin over the 128 faces of this chunk (XLU reductions).
            dmin = jnp.min(dist, axis=1, keepdims=True)            # [TQS, 1]
            lane = lax.broadcasted_iota(jnp.int32, dist.shape, 1)
            amin = jnp.min(jnp.where(dist <= dmin, lane, big_i32),
                           axis=1, keepdims=True)                  # [TQS, 1]
            sel = lane == amin
            v_b = jnp.sum(jnp.where(sel, v, 0.0), axis=1, keepdims=True)
            w_b = jnp.sum(jnp.where(sel, w, 0.0), axis=1, keepdims=True)
            gidx = face_base + c * LANE + amin

            # Strict '<' keeps the lowest global face index on exact ties, so
            # padded duplicates of face 0 can never win over real faces.
            better = dmin < bd
            bd = jnp.where(better, dmin, bd)
            bi = jnp.where(better, gidx, bi)
            bv = jnp.where(better, v_b, bv)
            bw = jnp.where(better, w_b, bw)

        bd_ref[pl.ds(row, TQS), :] = bd
        bidx_ref[pl.ds(row, TQS), :] = bi
        bv_ref[pl.ds(row, TQS), :] = bv
        bw_ref[pl.ds(row, TQS), :] = bw
        return carry_unused

    lax.fori_loop(0, TQ // TQS, qs_body, jnp.int32(0))

    # Write the outputs once per query tile, at the last face step.
    @pl.when(fb == pl.num_programs(1) - 1)
    def _():
        vbest = bv_ref[...]
        wbest = bw_ref[...]
        w_ref[:, 0:1] = 1.0 - vbest - wbest            # w1
        w_ref[:, 1:2] = vbest                          # w2
        w_ref[:, 2:3] = wbest                          # w3
        w_ref[:, 3:4] = bd_ref[...]                    # best squared distance
        idx_ref[...] = bidx_ref[...]


def closest_point_on_surface(q, f1, f2, f3):
    """Pallas equivalent of closestPointonSurface.forward.

    q : [Nq, 3] query points
    f1, f2, f3 : [Nf, 3] triangle vertices
    returns (indexes[Nq] int32, w1[Nq], w2[Nq], w3[Nq]) with
    closest = w1*f1[idx] + w2*f2[idx] + w3*f3[idx].
    """
    q = q.astype(jnp.float32)
    f1 = f1.astype(jnp.float32)
    f2 = f2.astype(jnp.float32)
    f3 = f3.astype(jnp.float32)

    nq, nf = q.shape[0], f1.shape[0]
    nq_pad = pl.cdiv(nq, TQ) * TQ
    nf_pad = pl.cdiv(nf, TF) * TF

    qp = jnp.zeros((nq_pad, 3), jnp.float32).at[:nq].set(q)

    # Pad faces by replicating face 0 (a real face -> always a safe candidate;
    # exact ties resolve to the lowest index, i.e. the real face 0).
    def pad_faces(f):
        return jnp.concatenate(
            [f, jnp.broadcast_to(f[0:1], (nf_pad - nf, 3))], axis=0)

    a = pad_faces(f1)          # [nf_pad, 3]
    b = pad_faces(f2)
    c = pad_faces(f3)
    ab = b - a
    ac = c - a

    # One per-face data slab, face axis on lanes:
    # rows 0-2: a, 3-5: ab, 6-8: ac, 9: ab.ab, 10: ab.ac, 11: ac.ac, 12-15: 0.
    fd = jnp.zeros((NROW, nf_pad), jnp.float32)
    fd = fd.at[0:3].set(a.T)
    fd = fd.at[3:6].set(ab.T)
    fd = fd.at[6:9].set(ac.T)
    fd = fd.at[9].set(jnp.sum(ab * ab, axis=1))
    fd = fd.at[10].set(jnp.sum(ab * ac, axis=1))
    fd = fd.at[11].set(jnp.sum(ac * ac, axis=1))

    grid = (nq_pad // TQ, nf_pad // TF)

    out_shape = (
        jax.ShapeDtypeStruct((nq_pad, 4), jnp.float32),   # (w1, w2, w3, d^2)
        jax.ShapeDtypeStruct((nq_pad, 1), jnp.int32),     # face index
    )
    grid_spec = pltpu.PrefetchScalarGridSpec(
        num_scalar_prefetch=0,
        grid=grid,
        in_specs=[
            pl.BlockSpec((TQ, 3), lambda qi, fi: (qi, 0)),
            pl.BlockSpec((NROW, TF), lambda qi, fi: (0, fi)),
        ],
        out_specs=[
            pl.BlockSpec((TQ, 4), lambda qi, fi: (qi, 0)),
            pl.BlockSpec((TQ, 1), lambda qi, fi: (qi, 0)),
        ],
        scratch_shapes=[
            pltpu.VMEM((TQ, 1), jnp.float32),   # best squared distance
            pltpu.VMEM((TQ, 1), jnp.int32),     # best face index
            pltpu.VMEM((TQ, 1), jnp.float32),   # best v
            pltpu.VMEM((TQ, 1), jnp.float32),   # best w
        ],
    )
    # NOTE(v7x): for the tiny-query / large-mesh case (single query tile) a
    # leading size-2 parallel axis splitting the face range per TensorCore
    # plus a 4-op host-side combine would keep the second core busy; with the
    # production num_query (~20000) the parallel query axis already does.
    wout, idx = pl.pallas_call(
        _cps_kernel,
        out_shape=out_shape,
        grid_spec=grid_spec,
        compiler_params=pltpu.CompilerParams(
            dimension_semantics=("parallel", "arbitrary")),
    )(qp, fd)

    return idx[:nq, 0], wout[:nq, 0], wout[:nq, 1], wout[:nq, 2]


# ----------------------------------------------------------------------------
# Plain-JAX glue: surface sampling (sampl_surface) and the DDM_M2M forward.
# ----------------------------------------------------------------------------
def sample_surface(key, faces, vs, count):
    """JAX port of sampl_surface (unbatched; the torch version uses batch=1)."""
    v0 = vs[faces[:, 0]]
    v1 = vs[faces[:, 1]]
    v2 = vs[faces[:, 2]]
    fn = jnp.cross(v1 - v0, v2 - v0)
    areas = jnp.linalg.norm(fn, axis=1)
    normals = fn / areas[:, None]
    areas = 0.5 * areas
    probs = areas / jnp.sum(areas)

    k1, k2 = jax.random.split(key)
    face_index = jax.random.choice(k1, faces.shape[0], shape=(count,), p=probs)

    tri_origins = v0[face_index]
    vec1 = (v1 - v0)[face_index]
    vec2 = (v2 - v0)[face_index]

    rl = jax.random.uniform(k2, (count, 2), dtype=vs.dtype)
    over = jnp.sum(rl, axis=1) > 1.0
    rl = jnp.abs(jnp.where(over[:, None], rl - 1.0, rl))

    samples = tri_origins + rl[:, 0:1] * vec1 + rl[:, 1:2] * vec2
    return samples, normals[face_index]


def ddm_m2m_forward(key, src_v, src_f, tgt_v, tgt_f, num_query=64, std=0.05):
    k_sample, k_noise = jax.random.split(key)

    query_points, _ = sample_surface(k_sample, tgt_f, tgt_v, num_query)
    noise = jax.random.normal(k_noise, query_points.shape, query_points.dtype) * std
    query_points = query_points + noise

    src_f1 = src_v[src_f[:, 0]]
    src_f2 = src_v[src_f[:, 1]]
    src_f3 = src_v[src_f[:, 2]]
    tgt_f1 = tgt_v[tgt_f[:, 0]]
    tgt_f2 = tgt_v[tgt_f[:, 1]]
    tgt_f3 = tgt_v[tgt_f[:, 2]]

    src_center = (src_f1 + src_f2 + src_f3) / 3.0
    query_points = jnp.concatenate([query_points, src_center], axis=0)

    src_idx, sw1, sw2, sw3 = closest_point_on_surface(query_points, src_f1, src_f2, src_f3)
    tgt_idx, tw1, tw2, tw3 = closest_point_on_surface(query_points, tgt_f1, tgt_f2, tgt_f3)

    closest_src = (sw1[:, None] * src_f1[src_idx]
                   + sw2[:, None] * src_f2[src_idx]
                   + sw3[:, None] * src_f3[src_idx])
    closest_tgt = (tw1[:, None] * tgt_f1[tgt_idx]
                   + tw2[:, None] * tgt_f2[tgt_idx]
                   + tw3[:, None] * tgt_f3[tgt_idx])

    # Matches torch: norm(dir + 1e-10) adds the epsilon per component.
    dir_src = query_points - closest_src
    udf_src = jnp.sqrt(jnp.sum((dir_src + 1e-10) ** 2, axis=-1, keepdims=True))
    geo_src = jnp.concatenate([dir_src, udf_src], axis=1)

    dir_tgt = query_points - closest_tgt
    udf_tgt = jnp.sqrt(jnp.sum((dir_tgt + 1e-10) ** 2, axis=-1, keepdims=True))
    geo_tgt = jnp.concatenate([dir_tgt, udf_tgt], axis=1)

    return jnp.mean(jnp.abs(geo_src - geo_tgt)) * 4.0


# ----------------------------------------------------------------------------
# Main: deterministic synthetic meshes, run once, print KERNEL_OK.
# ----------------------------------------------------------------------------
if __name__ == "__main__":
    key = jax.random.PRNGKey(0)
    k_sv, k_tv, k_sf, k_tf, k_fwd = jax.random.split(key, 5)

    n_src_v, n_src_f = 12, 20
    n_tgt_v, n_tgt_f = 10, 16

    src_v = jax.random.normal(k_sv, (n_src_v, 3), jnp.float32)
    tgt_v = jax.random.normal(k_tv, (n_tgt_v, 3), jnp.float32)

    # Faces with three distinct vertex indices (avoids degenerate triangles).
    src_base = jax.random.randint(k_sf, (n_src_f,), 0, n_src_v - 2)
    src_f = jnp.stack([src_base, src_base + 1, src_base + 2], axis=1)
    tgt_base = jax.random.randint(k_tf, (n_tgt_f,), 0, n_tgt_v - 2)
    tgt_f = jnp.stack([tgt_base, tgt_base + 1, tgt_base + 2], axis=1)

    loss = ddm_m2m_forward(k_fwd, src_v, src_f, tgt_v, tgt_f,
                           num_query=64, std=0.05)
    loss = jax.block_until_ready(loss)
    assert bool(jnp.isfinite(loss)), "non-finite loss"
    print("KERNEL_OK")
</pallas_src>

<mosaic_0001>
module attributes {stable_mosaic.version = 11 : i64} {
  func.func @_cps_kernel(%arg0: i32, %arg1: i32, %arg2: memref<256x3xf32, #tpu.memory_space<vmem>>, %arg3: memref<16x512xf32, #tpu.memory_space<vmem>>, %arg4: memref<256x4xf32, #tpu.memory_space<vmem>>, %arg5: memref<256x1xi32, #tpu.memory_space<vmem>>, %arg6: memref<256x1xf32, #tpu.memory_space<vmem>>, %arg7: memref<256x1xi32, #tpu.memory_space<vmem>>, %arg8: memref<256x1xf32, #tpu.memory_space<vmem>>, %arg9: memref<256x1xf32, #tpu.memory_space<vmem>>) attributes {dimension_semantics = [#tpu.dimension_semantics<parallel>, #tpu.dimension_semantics<arbitrary>], iteration_bounds = array<i64: 1, 1>, scalar_prefetch = 0 : i64, scratch_operands = 4 : i64, tpu.core_type = #tpu.core_type<tc>, window_params = [{transform_indices = @transform_0, window_bounds = array<i64: 256, 3>}, {transform_indices = @transform_1, window_bounds = array<i64: 16, 512>}, {transform_indices = @transform_2, window_bounds = array<i64: 256, 4>}, {transform_indices = @transform_3, window_bounds = array<i64: 256, 1>}]} {
    %c0_i32 = arith.constant 0 : i32
    %0 = arith.cmpi eq, %arg1, %c0_i32 : i32
    %1 = arith.extui %0 : i1 to i32
    %c0_i32_0 = arith.constant 0 : i32
    %2 = arith.cmpi ne, %1, %c0_i32_0 : i32
    scf.if %2 {
      %cst_5 = arith.constant 0x7F800000 : f32
      %8 = vector.broadcast %cst_5 : f32 to vector<256x1xf32>
      %c0 = arith.constant 0 : index
      %c0_6 = arith.constant 0 : index
      %9 = vector.load %arg6[%c0, %c0_6] : memref<256x1xf32, #tpu.memory_space<vmem>>, vector<256x1xf32>
      tpu.vector_store %arg6[%c0, %c0_6], %8 {strides = array<i32>} : memref<256x1xf32, #tpu.memory_space<vmem>>, vector<256x1xf32>,
      %c0_i32_7 = arith.constant 0 : i32
      %10 = vector.broadcast %c0_i32_7 : i32 to vector<256x1xi32>
      %c0_8 = arith.constant 0 : index
      %c0_9 = arith.constant 0 : index
      %11 = vector.load %arg7[%c0_8, %c0_9] : memref<256x1xi32, #tpu.memory_space<vmem>>, vector<256x1xi32>
      tpu.vector_store %arg7[%c0_8, %c0_9], %10 {strides = array<i32>} : memref<256x1xi32, #tpu.memory_space<vmem>>, vector<256x1xi32>,
      %cst_10 = arith.constant 0.000000e+00 : f32
      %12 = vector.broadcast %cst_10 : f32 to vector<256x1xf32>
      %c0_11 = arith.constant 0 : index
      %c0_12 = arith.constant 0 : index
      %13 = vector.load %arg8[%c0_11, %c0_12] : memref<256x1xf32, #tpu.memory_space<vmem>>, vector<256x1xf32>
      tpu.vector_store %arg8[%c0_11, %c0_12], %12 {strides = array<i32>} : memref<256x1xf32, #tpu.memory_space<vmem>>, vector<256x1xf32>,
      %cst_13 = arith.constant 0.000000e+00 : f32
      %14 = vector.broadcast %cst_13 : f32 to vector<256x1xf32>
      %c0_14 = arith.constant 0 : index
      %c0_15 = arith.constant 0 : index
      %15 = vector.load %arg9[%c0_14, %c0_15] : memref<256x1xf32, #tpu.memory_space<vmem>>, vector<256x1xf32>
      tpu.vector_store %arg9[%c0_14, %c0_15], %14 {strides = array<i32>} : memref<256x1xf32, #tpu.memory_space<vmem>>, vector<256x1xf32>,
    } else {
    }
    %c512_i32 = arith.constant 512 : i32
    %3 = arith.muli %arg1, %c512_i32 : i32
    %cst = arith.constant 9.99999996E-13 : f32
    %c1073741824_i32 = arith.constant 1073741824 : i32
    %c0_i32_1 = arith.constant 0 : i32
    %c8_i32 = arith.constant 8 : i32
    %4 = arith.addi %c0_i32_1, %c8_i32 : i32
    %c1_i32 = arith.constant 1 : i32
    scf.for %arg10 = %c0_i32_1 to %4 step %c1_i32  : i32 {
      %c32_i32 = arith.constant 32 : i32
      %8 = arith.muli %arg10, %c32_i32 : i32
      %9 = tpu.assume_multiple %8, 32 : i32
      %10 = arith.index_cast %9 : i32 to index
      %c0 = arith.constant 0 : index
      %11 = vector.load %arg2[%10, %c0] : memref<256x3xf32, #tpu.memory_space<vmem>>, vector<32x3xf32>
      %12 = vector.extract_strided_slice %11 {offsets = [0, 0], sizes = [32, 1], strides = [1, 1]} : vector<32x3xf32> to vector<32x1xf32>
      %13 = vector.extract_strided_slice %11 {offsets = [0, 1], sizes = [32, 1], strides = [1, 1]} : vector<32x3xf32> to vector<32x1xf32>
      %14 = vector.extract_strided_slice %11 {offsets = [0, 2], sizes = [32, 1], strides = [1, 1]} : vector<32x3xf32> to vector<32x1xf32>
      %15 = arith.index_cast %9 : i32 to index
      %c0_5 = arith.constant 0 : index
      %16 = vector.load %arg6[%15, %c0_5] : memref<256x1xf32, #tpu.memory_space<vmem>>, vector<32x1xf32>
      %17 = arith.index_cast %9 : i32 to index
      %c0_6 = arith.constant 0 : index
      %18 = vector.load %arg7[%17, %c0_6] : memref<256x1xi32, #tpu.memory_space<vmem>>, vector<32x1xi32>
      %19 = arith.index_cast %9 : i32 to index
      %c0_7 = arith.constant 0 : index
      %20 = vector.load %arg8[%19, %c0_7] : memref<256x1xf32, #tpu.memory_space<vmem>>, vector<32x1xf32>
      %21 = arith.index_cast %9 : i32 to index
      %c0_8 = arith.constant 0 : index
      %22 = vector.load %arg9[%21, %c0_8] : memref<256x1xf32, #tpu.memory_space<vmem>>, vector<32x1xf32>
      %c0_9 = arith.constant 0 : index
      %c0_10 = arith.constant 0 : index
      %23 = vector.load %arg3[%c0_9, %c0_10] : memref<16x512xf32, #tpu.memory_space<vmem>>, vector<16x128xf32>
      %24 = vector.extract_strided_slice %23 {offsets = [0, 0], sizes = [1, 128], strides = [1, 1]} : vector<16x128xf32> to vector<1x128xf32>
      %25 = vector.extract_strided_slice %23 {offsets = [1, 0], sizes = [1, 128], strides = [1, 1]} : vector<16x128xf32> to vector<1x128xf32>
      %26 = vector.extract_strided_slice %23 {offsets = [2, 0], sizes = [1, 128], strides = [1, 1]} : vector<16x128xf32> to vector<1x128xf32>
      %27 = vector.extract_strided_slice %23 {offsets = [3, 0], sizes = [1, 128], strides = [1, 1]} : vector<16x128xf32> to vector<1x128xf32>
      %28 = vector.extract_strided_slice %23 {offsets = [4, 0], sizes = [1, 128], strides = [1, 1]} : vector<16x128xf32> to vector<1x128xf32>
      %29 = vector.extract_strided_slice %23 {offsets = [5, 0], sizes = [1, 128], strides = [1, 1]} : vector<16x128xf32> to vector<1x128xf32>
      %30 = vector.extract_strided_slice %23 {offsets = [6, 0], sizes = [1, 128], strides = [1, 1]} : vector<16x128xf32> to vector<1x128xf32>
      %31 = vector.extract_strided_slice %23 {offsets = [7, 0], sizes = [1, 128], strides = [1, 1]} : vector<16x128xf32> to vector<1x128xf32>
      %32 = vector.extract_strided_slice %23 {offsets = [8, 0], sizes = [1, 128], strides = [1, 1]} : vector<16x128xf32> to vector<1x128xf32>
      %33 = vector.extract_strided_slice %23 {offsets = [9, 0], sizes = [1, 128], strides = [1, 1]} : vector<16x128xf32> to vector<1x128xf32>
      %34 = vector.extract_strided_slice %23 {offsets = [10, 0], sizes = [1, 128], strides = [1, 1]} : vector<16x128xf32> to vector<1x128xf32>
      %35 = vector.extract_strided_slice %23 {offsets = [11, 0], sizes = [1, 128], strides = [1, 1]} : vector<16x128xf32> to vector<1x128xf32>
      %36 = vector.broadcast %12 : vector<32x1xf32> to vector<32x128xf32>
      %37 = vector.broadcast %24 : vector<1x128xf32> to vector<32x128xf32>
      %38 = arith.subf %36, %37 : vector<32x128xf32>
      %39 = vector.broadcast %13 : vector<32x1xf32> to vector<32x128xf32>
      %40 = vector.broadcast %25 : vector<1x128xf32> to vector<32x128xf32>
      %41 = arith.subf %39, %40 : vector<32x128xf32>
      %42 = vector.broadcast %14 : vector<32x1xf32> to vector<32x128xf32>
      %43 = vector.broadcast %26 : vector<1x128xf32> to vector<32x128xf32>
      %44 = arith.subf %42, %43 : vector<32x128xf32>
      %45 = vector.broadcast %27 : vector<1x128xf32> to vector<32x128xf32>
      %46 = arith.mulf %45, %38 : vector<32x128xf32>
      %47 = vector.broadcast %28 : vector<1x128xf32> to vector<32x128xf32>
      %48 = arith.mulf %47, %41 : vector<32x128xf32>
      %49 = arith.addf %46, %48 : vector<32x128xf32>
      %50 = vector.broadcast %29 : vector<1x128xf32> to vector<32x128xf32>
      %51 = arith.mulf %50, %44 : vector<32x128xf32>
      %52 = arith.addf %49, %51 : vector<32x128xf32>
      %53 = vector.broadcast %30 : vector<1x128xf32> to vector<32x128xf32>
      %54 = arith.mulf %53, %38 : vector<32x128xf32>
      %55 = vector.broadcast %31 : vector<1x128xf32> to vector<32x128xf32>
      %56 = arith.mulf %55, %41 : vector<32x128xf32>
      %57 = arith.addf %54, %56 : vector<32x128xf32>
      %58 = vector.broadcast %32 : vector<1x128xf32> to vector<32x128xf32>
      %59 = arith.mulf %58, %44 : vector<32x128xf32>
      %60 = arith.addf %57, %59 : vector<32x128xf32>
      %61 = vector.broadcast %33 : vector<1x128xf32> to vector<32x128xf32>
      %62 = arith.subf %52, %61 : vector<32x128xf32>
      %63 = vector.broadcast %34 : vector<1x128xf32> to vector<32x128xf32>
      %64 = arith.subf %60, %63 : vector<32x128xf32>
      %65 = vector.broadcast %34 : vector<1x128xf32> to vector<32x128xf32>
      %66 = arith.subf %52, %65 : vector<32x128xf32>
      %67 = vector.broadcast %35 : vector<1x128xf32> to vector<32x128xf32>
      %68 = arith.subf %60, %67 : vector<32x128xf32>
      %69 = arith.mulf %62, %68 : vector<32x128xf32>
      %70 = arith.mulf %66, %64 : vector<32x128xf32>
      %71 = arith.subf %69, %70 : vector<32x128xf32>
      %72 = arith.mulf %66, %60 : vector<32x128xf32>
      %73 = arith.mulf %52, %68 : vector<32x128xf32>
      %74 = arith.subf %72, %73 : vector<32x128xf32>
      %75 = arith.mulf %52, %64 : vector<32x128xf32>
      %76 = arith.mulf %62, %60 : vector<32x128xf32>
      %77 = arith.subf %75, %76 : vector<32x128xf32>
      %78 = arith.addf %71, %74 : vector<32x128xf32>
      %79 = arith.addf %78, %77 : vector<32x128xf32>
      %80 = vector.broadcast %cst : f32 to vector<32x128xf32>
      %81 = arith.maximumf %79, %80 : vector<32x128xf32>
      %82 = tpu.reciprocal %81 {approx = true} : vector<32x128xf32> -> vector<32x128xf32>
      %83 = arith.mulf %74, %82 : vector<32x128xf32>
      %84 = arith.mulf %77, %82 : vector<32x128xf32>
      %85 = arith.subf %64, %62 : vector<32x128xf32>
      %86 = arith.subf %66, %68 : vector<32x128xf32>
      %87 = arith.addf %85, %86 : vector<32x128xf32>
      %88 = vector.broadcast %cst : f32 to vector<32x128xf32>
      %89 = arith.maximumf %87, %88 : vector<32x128xf32>
      %90 = tpu.reciprocal %89 {approx = true} : vector<32x128xf32> -> vector<32x128xf32>
      %91 = arith.mulf %85, %90 : vector<32x128xf32>
      %cst_11 = arith.constant 0.000000e+00 : f32
      %92 = vector.broadcast %cst_11 : f32 to vector<32x128xf32>
      %93 = arith.cmpf ole, %71, %92 : vector<32x128xf32>
      %cst_12 = arith.constant 0.000000e+00 : f32
      %94 = vector.broadcast %cst_12 : f32 to vector<32x128xf32>
      %95 = arith.cmpf oge, %85, %94 : vector<32x128xf32>
      %96 = arith.andi %93, %95 : vector<32x128xi1>
      %cst_13 = arith.constant 0.000000e+00 : f32
      %97 = vector.broadcast %cst_13 : f32 to vector<32x128xf32>
      %98 = arith.cmpf oge, %86, %97 : vector<32x128xf32>
      %99 = arith.andi %96, %98 : vector<32x128xi1>
      %cst_14 = arith.constant 1.000000e+00 : f32
      %100 = vector.broadcast %cst_14 : f32 to vector<32x128xf32>
      %101 = arith.subf %100, %91 : vector<32x128xf32>
      %102 = arith.select %99, %101, %83 : vector<32x128xi1>, vector<32x128xf32>
      %103 = arith.select %99, %91, %84 : vector<32x128xi1>, vector<32x128xf32>
      %104 = arith.subf %60, %68 : vector<32x128xf32>
      %105 = vector.broadcast %cst : f32 to vector<32x128xf32>
      %106 = arith.maximumf %104, %105 : vector<32x128xf32>
      %107 = tpu.reciprocal %106 {approx = true} : vector<32x128xf32> -> vector<32x128xf32>
      %108 = arith.mulf %60, %107 : vector<32x128xf32>
      %cst_15 = arith.constant 0.000000e+00 : f32
      %109 = vector.broadcast %cst_15 : f32 to vector<32x128xf32>
      %110 = arith.cmpf ole, %74, %109 : vector<32x128xf32>
      %cst_16 = arith.constant 0.000000e+00 : f32
      %111 = vector.broadcast %cst_16 : f32 to vector<32x128xf32>
      %112 = arith.cmpf oge, %60, %111 : vector<32x128xf32>
      %113 = arith.andi %110, %112 : vector<32x128xi1>
      %cst_17 = arith.constant 0.000000e+00 : f32
      %114 = vector.broadcast %cst_17 : f32 to vector<32x128xf32>
      %115 = arith.cmpf ole, %68, %114 : vector<32x128xf32>
      %116 = arith.andi %113, %115 : vector<32x128xi1>
      %cst_18 = arith.constant 0.000000e+00 : f32
      %117 = vector.broadcast %cst_18 : f32 to vector<32x128xf32>
      %118 = arith.select %116, %117, %102 : vector<32x128xi1>, vector<32x128xf32>
      %119 = arith.select %116, %108, %103 : vector<32x128xi1>, vector<32x128xf32>
      %cst_19 = arith.constant 0.000000e+00 : f32
      %120 = vector.broadcast %cst_19 : f32 to vector<32x128xf32>
      %121 = arith.cmpf oge, %68, %120 : vector<32x128xf32>
      %122 = arith.cmpf ole, %66, %68 : vector<32x128xf32>
      %123 = arith.andi %121, %122 : vector<32x128xi1>
      %cst_20 = arith.constant 0.000000e+00 : f32
      %124 = vector.broadcast %cst_20 : f32 to vector<32x128xf32>
      %125 = arith.select %123, %124, %118 : vector<32x128xi1>, vector<32x128xf32>
      %cst_21 = arith.constant 1.000000e+00 : f32
      %126 = vector.broadcast %cst_21 : f32 to vector<32x128xf32>
      %127 = arith.select %123, %126, %119 : vector<32x128xi1>, vector<32x128xf32>
      %128 = arith.subf %52, %62 : vector<32x128xf32>
      %129 = vector.broadcast %cst : f32 to vector<32x128xf32>
      %130 = arith.maximumf %128, %129 : vector<32x128xf32>
      %131 = tpu.reciprocal %130 {approx = true} : vector<32x128xf32> -> vector<32x128xf32>
      %132 = arith.mulf %52, %131 : vector<32x128xf32>
      %cst_22 = arith.constant 0.000000e+00 : f32
      %133 = vector.broadcast %cst_22 : f32 to vector<32x128xf32>
      %134 = arith.cmpf ole, %77, %133 : vector<32x128xf32>
      %cst_23 = arith.constant 0.000000e+00 : f32
      %135 = vector.broadcast %cst_23 : f32 to vector<32x128xf32>
      %136 = arith.cmpf oge, %52, %135 : vector<32x128xf32>
      %137 = arith.andi %134, %136 : vector<32x128xi1>
      %cst_24 = arith.constant 0.000000e+00 : f32
      %138 = vector.broadcast %cst_24 : f32 to vector<32x128xf32>
      %139 = arith.cmpf ole, %62, %138 : vector<32x128xf32>
      %140 = arith.andi %137, %139 : vector<32x128xi1>
      %141 = arith.select %140, %132, %125 : vector<32x128xi1>, vector<32x128xf32>
      %cst_25 = arith.constant 0.000000e+00 : f32
      %142 = vector.broadcast %cst_25 : f32 to vector<32x128xf32>
      %143 = arith.select %140, %142, %127 : vector<32x128xi1>, vector<32x128xf32>
      %cst_26 = arith.constant 0.000000e+00 : f32
      %144 = vector.broadcast %cst_26 : f32 to vector<32x128xf32>
      %145 = arith.cmpf oge, %62, %144 : vector<32x128xf32>
      %146 = arith.cmpf ole, %64, %62 : vector<32x128xf32>
      %147 = arith.andi %145, %146 : vector<32x128xi1>
      %cst_27 = arith.constant 1.000000e+00 : f32
      %148 = vector.broadcast %cst_27 : f32 to vector<32x128xf32>
      %149 = arith.select %147, %148, %141 : vector<32x128xi1>, vector<32x128xf32>
      %cst_28 = arith.constant 0.000000e+00 : f32
      %150 = vector.broadcast %cst_28 : f32 to vector<32x128xf32>
      %151 = arith.select %147, %150, %143 : vector<32x128xi1>, vector<32x128xf32>
      %cst_29 = arith.constant 0.000000e+00 : f32
      %152 = vector.broadcast %cst_29 : f32 to vector<32x128xf32>
      %153 = arith.cmpf ole, %52, %152 : vector<32x128xf32>
      %cst_30 = arith.constant 0.000000e+00 : f32
      %154 = vector.broadcast %cst_30 : f32 to vector<32x128xf32>
      %155 = arith.cmpf ole, %60, %154 : vector<32x128xf32>
      %156 = arith.andi %153, %155 : vector<32x128xi1>
      %cst_31 = arith.constant 0.000000e+00 : f32
      %157 = vector.broadcast %cst_31 : f32 to vector<32x128xf32>
      %158 = arith.select %156, %157, %149 : vector<32x128xi1>, vector<32x128xf32>
      %cst_32 = arith.constant 0.000000e+00 : f32
      %159 = vector.broadcast %cst_32 : f32 to vector<32x128xf32>
      %160 = arith.select %156, %159, %151 : vector<32x128xi1>, vector<32x128xf32>
      %161 = vector.broadcast %27 : vector<1x128xf32> to vector<32x128xf32>
      %162 = arith.mulf %158, %161 : vector<32x128xf32>
      %163 = arith.subf %38, %162 : vector<32x128xf32>
      %164 = vector.broadcast %30 : vector<1x128xf32> to vector<32x128xf32>
      %165 = arith.mulf %160, %164 : vector<32x128xf32>
      %166 = arith.subf %163, %165 : vector<32x128xf32>
      %167 = vector.broadcast %28 : vector<1x128xf32> to vector<32x128xf32>
      %168 = arith.mulf %158, %167 : vector<32x128xf32>
      %169 = arith.subf %41, %168 : vector<32x128xf32>
      %170 = vector.broadcast %31 : vector<1x128xf32> to vector<32x128xf32>
      %171 = arith.mulf %160, %170 : vector<32x128xf32>
      %172 = arith.subf %169, %171 : vector<32x128xf32>
      %173 = vector.broadcast %29 : vector<1x128xf32> to vector<32x128xf32>
      %174 = arith.mulf %158, %173 : vector<32x128xf32>
      %175 = arith.subf %44, %174 : vector<32x128xf32>
      %176 = vector.broadcast %32 : vector<1x128xf32> to vector<32x128xf32>
      %177 = arith.mulf %160, %176 : vector<32x128xf32>
      %178 = arith.subf %175, %177 : vector<32x128xf32>
      %179 = arith.mulf %166, %166 : vector<32x128xf32>
      %180 = arith.mulf %172, %172 : vector<32x128xf32>
      %181 = arith.addf %179, %180 : vector<32x128xf32>
      %182 = arith.mulf %178, %178 : vector<32x128xf32>
      %183 = arith.addf %181, %182 : vector<32x128xf32>
      %cst_33 = arith.constant dense<0x7F800000> : vector<32xf32>
      %184 = vector.multi_reduction <minimumf>, %183, %cst_33 [1] : vector<32x128xf32> to vector<32xf32>
      %185 = vector.shape_cast %184 : vector<32xf32> to vector<32x1xf32>
      %186 = tpu.iota {dimensions = array<i32: 1>} : vector<32x128xi32>
      %187 = vector.broadcast %185 : vector<32x1xf32> to vector<32x128xf32>
      %188 = arith.cmpf ole, %183, %187 : vector<32x128xf32>
      %189 = vector.broadcast %c1073741824_i32 : i32 to vector<32x128xi32>
      %190 = arith.select %188, %186, %189 : vector<32x128xi1>, vector<32x128xi32>
      %cst_34 = arith.constant dense<2147483647> : vector<32xi32>
      %191 = vector.multi_reduction <minsi>, %190, %cst_34 [1] : vector<32x128xi32> to vector<32xi32>
      %192 = vector.shape_cast %191 : vector<32xi32> to vector<32x1xi32>
      %193 = vector.broadcast %192 : vector<32x1xi32> to vector<32x128xi32>
      %194 = arith.cmpi eq, %186, %193 : vector<32x128xi32>
      %cst_35 = arith.constant 0.000000e+00 : f32
      %195 = vector.broadcast %cst_35 : f32 to vector<32x128xf32>
      %196 = arith.select %194, %158, %195 : vector<32x128xi1>, vector<32x128xf32>
      %cst_36 = arith.constant dense<0.000000e+00> : vector<32xf32>
      %197 = vector.multi_reduction <add>, %196, %cst_36 [1] : vector<32x128xf32> to vector<32xf32>
      %198 = vector.shape_cast %197 : vector<32xf32> to vector<32x1xf32>
      %cst_37 = arith.constant 0.000000e+00 : f32
      %199 = vector.broadcast %cst_37 : f32 to vector<32x128xf32>
      %200 = arith.select %194, %160, %199 : vector<32x128xi1>, vector<32x128xf32>
      %cst_38 = arith.constant dense<0.000000e+00> : vector<32xf32>
      %201 = vector.multi_reduction <add>, %200, %cst_38 [1] : vector<32x128xf32> to vector<32xf32>
      %202 = vector.shape_cast %201 : vector<32xf32> to vector<32x1xf32>
      %c0_i32_39 = arith.constant 0 : i32
      %203 = arith.addi %3, %c0_i32_39 : i32
      %204 = vector.broadcast %203 : i32 to vector<32x1xi32>
      %205 = arith.addi %204, %192 : vector<32x1xi32>
      %206 = arith.cmpf olt, %185, %16 : vector<32x1xf32>
      %207 = arith.select %206, %185, %16 : vector<32x1xi1>, vector<32x1xf32>
      %208 = arith.select %206, %205, %18 : vector<32x1xi1>, vector<32x1xi32>
      %209 = arith.select %206, %198, %20 : vector<32x1xi1>, vector<32x1xf32>
      %210 = arith.select %206, %202, %22 : vector<32x1xi1>, vector<32x1xf32>
      %c0_40 = arith.constant 0 : index
      %c128 = arith.constant 128 : index
      %211 = vector.load %arg3[%c0_40, %c128] : memref<16x512xf32, #tpu.memory_space<vmem>>, vector<16x128xf32>
      %212 = vector.extract_strided_slice %211 {offsets = [0, 0], sizes = [1, 128], strides = [1, 1]} : vector<16x128xf32> to vector<1x128xf32>
      %213 = vector.extract_strided_slice %211 {offsets = [1, 0], sizes = [1, 128], strides = [1, 1]} : vector<16x128xf32> to vector<1x128xf32>
      %214 = vector.extract_strided_slice %211 {offsets = [2, 0], sizes = [1, 128], strides = [1, 1]} : vector<16x128xf32> to vector<1x128xf32>
      %215 = vector.extract_strided_slice %211 {offsets = [3, 0], sizes = [1, 128], strides = [1, 1]} : vector<16x128xf32> to vector<1x128xf32>
      %216 = vector.extract_strided_slice %211 {offsets = [4, 0], sizes = [1, 128], strides = [1, 1]} : vector<16x128xf32> to vector<1x128xf32>
      %217 = vector.extract_strided_slice %211 {offsets = [5, 0], sizes = [1, 128], strides = [1, 1]} : vector<16x128xf32> to vector<1x128xf32>
      %218 = vector.extract_strided_slice %211 {offsets = [6, 0], sizes = [1, 128], strides = [1, 1]} : vector<16x128xf32> to vector<1x128xf32>
      %219 = vector.extract_strided_slice %211 {offsets = [7, 0], sizes = [1, 128], strides = [1, 1]} : vector<16x128xf32> to vector<1x128xf32>
      %220 = vector.extract_strided_slice %211 {offsets = [8, 0], sizes = [1, 128], strides = [1, 1]} : vector<16x128xf32> to vector<1x128xf32>
      %221 = vector.extract_strided_slice %211 {offsets = [9, 0], sizes = [1, 128], strides = [1, 1]} : vector<16x128xf32> to vector<1x128xf32>
      %222 = vector.extract_strided_slice %211 {offsets = [10, 0], sizes = [1, 128], strides = [1, 1]} : vector<16x128xf32> to vector<1x128xf32>
      %223 = vector.extract_strided_slice %211 {offsets = [11, 0], sizes = [1, 128], strides = [1, 1]} : vector<16x128xf32> to vector<1x128xf32>
      %224 = vector.broadcast %12 : vector<32x1xf32> to vector<32x128xf32>
      %225 = vector.broadcast %212 : vector<1x128xf32> to vector<32x128xf32>
      %226 = arith.subf %224, %225 : vector<32x128xf32>
      %227 = vector.broadcast %13 : vector<32x1xf32> to vector<32x128xf32>
      %228 = vector.broadcast %213 : vector<1x128xf32> to vector<32x128xf32>
      %229 = arith.subf %227, %228 : vector<32x128xf32>
      %230 = vector.broadcast %14 : vector<32x1xf32> to vector<32x128xf32>
      %231 = vector.broadcast %214 : vector<1x128xf32> to vector<32x128xf32>
      %232 = arith.subf %230, %231 : vector<32x128xf32>
      %233 = vector.broadcast %215 : vector<1x128xf32> to vector<32x128xf32>
      %234 = arith.mulf %233, %226 : vector<32x128xf32>
      %235 = vector.broadcast %216 : vector<1x128xf32> to vector<32x128xf32>
      %236 = arith.mulf %235, %229 : vector<32x128xf32>
      %237 = arith.addf %234, %236 : vector<32x128xf32>
      %238 = vector.broadcast %217 : vector<1x128xf32> to vector<32x128xf32>
      %239 = arith.mulf %238, %232 : vector<32x128xf32>
      %240 = arith.addf %237, %239 : vector<32x128xf32>
      %241 = vector.broadcast %218 : vector<1x128xf32> to vector<32x128xf32>
      %242 = arith.mulf %241, %226 : vector<32x128xf32>
      %243 = vector.broadcast %219 : vector<1x128xf32> to vector<32x128xf32>
      %244 = arith.mulf %243, %229 : vector<32x128xf32>
      %245 = arith.addf %242, %244 : vector<32x128xf32>
      %246 = vector.broadcast %220 : vector<1x128xf32> to vector<32x128xf32>
      %247 = arith.mulf %246, %232 : vector<32x128xf32>
      %248 = arith.addf %245, %247 : vector<32x128xf32>
      %249 = vector.broadcast %221 : vector<1x128xf32> to vector<32x128xf32>
      %250 = arith.subf %240, %249 : vector<32x128xf32>
      %251 = vector.broadcast %222 : vector<1x128xf32> to vector<32x128xf32>
      %252 = arith.subf %248, %251 : vector<32x128xf32>
      %253 = vector.broadcast %222 : vector<1x128xf32> to vector<32x128xf32>
      %254 = arith.subf %240, %253 : vector<32x128xf32>
      %255 = vector.broadcast %223 : vector<1x128xf32> to vector<32x128xf32>
      %256 = arith.subf %248, %255 : vector<32x128xf32>
      %257 = arith.mulf %250, %256 : vector<32x128xf32>
      %258 = arith.mulf %254, %252 : vector<32x128xf32>
      %259 = arith.subf %257, %258 : vector<32x128xf32>
      %260 = arith.mulf %254, %248 : vector<32x128xf32>
      %261 = arith.mulf %240, %256 : vector<32x128xf32>
      %262 = arith.subf %260, %261 : vector<32x128xf32>
      %263 = arith.mulf %240, %252 : vector<32x128xf32>
      %264 = arith.mulf %250, %248 : vector<32x128xf32>
      %265 = arith.subf %263, %264 : vector<32x128xf32>
      %266 = arith.addf %259, %262 : vector<32x128xf32>
      %267 = arith.addf %266, %265 : vector<32x128xf32>
      %268 = vector.broadcast %cst : f32 to vector<32x128xf32>
      %269 = arith.maximumf %267, %268 : vector<32x128xf32>
      %270 = tpu.reciprocal %269 {approx = true} : vector<32x128xf32> -> vector<32x128xf32>
      %271 = arith.mulf %262, %270 : vector<32x128xf32>
      %272 = arith.mulf %265, %270 : vector<32x128xf32>
      %273 = arith.subf %252, %250 : vector<32x128xf32>
      %274 = arith.subf %254, %256 : vector<32x128xf32>
      %275 = arith.addf %273, %274 : vector<32x128xf32>
      %276 = vector.broadcast %cst : f32 to vector<32x128xf32>
      %277 = arith.maximumf %275, %276 : vector<32x128xf32>
      %278 = tpu.reciprocal %277 {approx = true} : vector<32x128xf32> -> vector<32x128xf32>
      %279 = arith.mulf %273, %278 : vector<32x128xf32>
      %cst_41 = arith.constant 0.000000e+00 : f32
      %280 = vector.broadcast %cst_41 : f32 to vector<32x128xf32>
      %281 = arith.cmpf ole, %259, %280 : vector<32x128xf32>
      %cst_42 = arith.constant 0.000000e+00 : f32
      %282 = vector.broadcast %cst_42 : f32 to vector<32x128xf32>
      %283 = arith.cmpf oge, %273, %282 : vector<32x128xf32>
      %284 = arith.andi %281, %283 : vector<32x128xi1>
      %cst_43 = arith.constant 0.000000e+00 : f32
      %285 = vector.broadcast %cst_43 : f32 to vector<32x128xf32>
      %286 = arith.cmpf oge, %274, %285 : vector<32x128xf32>
      %287 = arith.andi %284, %286 : vector<32x128xi1>
      %cst_44 = arith.constant 1.000000e+00 : f32
      %288 = vector.broadcast %cst_44 : f32 to vector<32x128xf32>
      %289 = arith.subf %288, %279 : vector<32x128xf32>
      %290 = arith.select %287, %289, %271 : vector<32x128xi1>, vector<32x128xf32>
      %291 = arith.select %287, %279, %272 : vector<32x128xi1>, vector<32x128xf32>
      %292 = arith.subf %248, %256 : vector<32x128xf32>
      %293 = vector.broadcast %cst : f32 to vector<32x128xf32>
      %294 = arith.maximumf %292, %293 : vector<32x128xf32>
      %295 = tpu.reciprocal %294 {approx = true} : vector<32x128xf32> -> vector<32x128xf32>
      %296 = arith.mulf %248, %295 : vector<32x128xf32>
      %cst_45 = arith.constant 0.000000e+00 : f32
      %297 = vector.broadcast %cst_45 : f32 to vector<32x128xf32>
      %298 = arith.cmpf ole, %262, %297 : vector<32x128xf32>
      %cst_46 = arith.constant 0.000000e+00 : f32
      %299 = vector.broadcast %cst_46 : f32 to vector<32x128xf32>
      %300 = arith.cmpf oge, %248, %299 : vector<32x128xf32>
      %301 = arith.andi %298, %300 : vector<32x128xi1>
      %cst_47 = arith.constant 0.000000e+00 : f32
      %302 = vector.broadcast %cst_47 : f32 to vector<32x128xf32>
      %303 = arith.cmpf ole, %256, %302 : vector<32x128xf32>
      %304 = arith.andi %301, %303 : vector<32x128xi1>
      %cst_48 = arith.constant 0.000000e+00 : f32
      %305 = vector.broadcast %cst_48 : f32 to vector<32x128xf32>
      %306 = arith.select %304, %305, %290 : vector<32x128xi1>, vector<32x128xf32>
      %307 = arith.select %304, %296, %291 : vector<32x128xi1>, vector<32x128xf32>
      %cst_49 = arith.constant 0.000000e+00 : f32
      %308 = vector.broadcast %cst_49 : f32 to vector<32x128xf32>
      %309 = arith.cmpf oge, %256, %308 : vector<32x128xf32>
      %310 = arith.cmpf ole, %254, %256 : vector<32x128xf32>
      %311 = arith.andi %309, %310 : vector<32x128xi1>
      %cst_50 = arith.constant 0.000000e+00 : f32
      %312 = vector.broadcast %cst_50 : f32 to vector<32x128xf32>
      %313 = arith.select %311, %312, %306 : vector<32x128xi1>, vector<32x128xf32>
      %cst_51 = arith.constant 1.000000e+00 : f32
      %314 = vector.broadcast %cst_51 : f32 to vector<32x128xf32>
      %315 = arith.select %311, %314, %307 : vector<32x128xi1>, vector<32x128xf32>
      %316 = arith.subf %240, %250 : vector<32x128xf32>
      %317 = vector.broadcast %cst : f32 to vector<32x128xf32>
      %318 = arith.maximumf %316, %317 : vector<32x128xf32>
      %319 = tpu.reciprocal %318 {approx = true} : vector<32x128xf32> -> vector<32x128xf32>
      %320 = arith.mulf %240, %319 : vector<32x128xf32>
      %cst_52 = arith.constant 0.000000e+00 : f32
      %321 = vector.broadcast %cst_52 : f32 to vector<32x128xf32>
      %322 = arith.cmpf ole, %265, %321 : vector<32x128xf32>
      %cst_53 = arith.constant 0.000000e+00 : f32
      %323 = vector.broadcast %cst_53 : f32 to vector<32x128xf32>
      %324 = arith.cmpf oge, %240, %323 : vector<32x128xf32>
      %325 = arith.andi %322, %324 : vector<32x128xi1>
      %cst_54 = arith.constant 0.000000e+00 : f32
      %326 = vector.broadcast %cst_54 : f32 to vector<32x128xf32>
      %327 = arith.cmpf ole, %250, %326 : vector<32x128xf32>
      %328 = arith.andi %325, %327 : vector<32x128xi1>
      %329 = arith.select %328, %320, %313 : vector<32x128xi1>, vector<32x128xf32>
      %cst_55 = arith.constant 0.000000e+00 : f32
      %330 = vector.broadcast %cst_55 : f32 to vector<32x128xf32>
      %331 = arith.select %328, %330, %315 : vector<32x128xi1>, vector<32x128xf32>
      %cst_56 = arith.constant 0.000000e+00 : f32
      %332 = vector.broadcast %cst_56 : f32 to vector<32x128xf32>
      %333 = arith.cmpf oge, %250, %332 : vector<32x128xf32>
      %334 = arith.cmpf ole, %252, %250 : vector<32x128xf32>
      %335 = arith.andi %333, %334 : vector<32x128xi1>
      %cst_57 = arith.constant 1.000000e+00 : f32
      %336 = vector.broadcast %cst_57 : f32 to vector<32x128xf32>
      %337 = arith.select %335, %336, %329 : vector<32x128xi1>, vector<32x128xf32>
      %cst_58 = arith.constant 0.000000e+00 : f32
      %338 = vector.broadcast %cst_58 : f32 to vector<32x128xf32>
      %339 = arith.select %335, %338, %331 : vector<32x128xi1>, vector<32x128xf32>
      %cst_59 = arith.constant 0.000000e+00 : f32
      %340 = vector.broadcast %cst_59 : f32 to vector<32x128xf32>
      %341 = arith.cmpf ole, %240, %340 : vector<32x128xf32>
      %cst_60 = arith.constant 0.000000e+00 : f32
      %342 = vector.broadcast %cst_60 : f32 to vector<32x128xf32>
      %343 = arith.cmpf ole, %248, %342 : vector<32x128xf32>
      %344 = arith.andi %341, %343 : vector<32x128xi1>
      %cst_61 = arith.constant 0.000000e+00 : f32
      %345 = vector.broadcast %cst_61 : f32 to vector<32x128xf32>
      %346 = arith.select %344, %345, %337 : vector<32x128xi1>, vector<32x128xf32>
      %cst_62 = arith.constant 0.000000e+00 : f32
      %347 = vector.broadcast %cst_62 : f32 to vector<32x128xf32>
      %348 = arith.select %344, %347, %339 : vector<32x128xi1>, vector<32x128xf32>
      %349 = vector.broadcast %215 : vector<1x128xf32> to vector<32x128xf32>
      %350 = arith.mulf %346, %349 : vector<32x128xf32>
      %351 = arith.subf %226, %350 : vector<32x128xf32>
      %352 = vector.broadcast %218 : vector<1x128xf32> to vector<32x128xf32>
      %353 = arith.mulf %348, %352 : vector<32x128xf32>
      %354 = arith.subf %351, %353 : vector<32x128xf32>
      %355 = vector.broadcast %216 : vector<1x128xf32> to vector<32x128xf32>
      %356 = arith.mulf %346, %355 : vector<32x128xf32>
      %357 = arith.subf %229, %356 : vector<32x128xf32>
      %358 = vector.broadcast %219 : vector<1x128xf32> to vector<32x128xf32>
      %359 = arith.mulf %348, %358 : vector<32x128xf32>
      %360 = arith.subf %357, %359 : vector<32x128xf32>
      %361 = vector.broadcast %217 : vector<1x128xf32> to vector<32x128xf32>
      %362 = arith.mulf %346, %361 : vector<32x128xf32>
      %363 = arith.subf %232, %362 : vector<32x128xf32>
      %364 = vector.broadcast %220 : vector<1x128xf32> to vector<32x128xf32>
      %365 = arith.mulf %348, %364 : vector<32x128xf32>
      %366 = arith.subf %363, %365 : vector<32x128xf32>
      %367 = arith.mulf %354, %354 : vector<32x128xf32>
      %368 = arith.mulf %360, %360 : vector<32x128xf32>
      %369 = arith.addf %367, %368 : vector<32x128xf32>
      %370 = arith.mulf %366, %366 : vector<32x128xf32>
      %371 = arith.addf %369, %370 : vector<32x128xf32>
      %cst_63 = arith.constant dense<0x7F800000> : vector<32xf32>
      %372 = vector.multi_reduction <minimumf>, %371, %cst_63 [1] : vector<32x128xf32> to vector<32xf32>
      %373 = vector.shape_cast %372 : vector<32xf32> to vector<32x1xf32>
      %374 = tpu.iota {dimensions = array<i32: 1>} : vector<32x128xi32>
      %375 = vector.broadcast %373 : vector<32x1xf32> to vector<32x128xf32>
      %376 = arith.cmpf ole, %371, %375 : vector<32x128xf32>
      %377 = vector.broadcast %c1073741824_i32 : i32 to vector<32x128xi32>
      %378 = arith.select %376, %374, %377 : vector<32x128xi1>, vector<32x128xi32>
      %cst_64 = arith.constant dense<2147483647> : vector<32xi32>
      %379 = vector.multi_reduction <minsi>, %378, %cst_64 [1] : vector<32x128xi32> to vector<32xi32>
      %380 = vector.shape_cast %379 : vector<32xi32> to vector<32x1xi32>
      %381 = vector.broadcast %380 : vector<32x1xi32> to vector<32x128xi32>
      %382 = arith.cmpi eq, %374, %381 : vector<32x128xi32>
      %cst_65 = arith.constant 0.000000e+00 : f32
      %383 = vector.broadcast %cst_65 : f32 to vector<32x128xf32>
      %384 = arith.select %382, %346, %383 : vector<32x128xi1>, vector<32x128xf32>
      %cst_66 = arith.constant dense<0.000000e+00> : vector<32xf32>
      %385 = vector.multi_reduction <add>, %384, %cst_66 [1] : vector<32x128xf32> to vector<32xf32>
      %386 = vector.shape_cast %385 : vector<32xf32> to vector<32x1xf32>
      %cst_67 = arith.constant 0.000000e+00 : f32
      %387 = vector.broadcast %cst_67 : f32 to vector<32x128xf32>
      %388 = arith.select %382, %348, %387 : vector<32x128xi1>, vector<32x128xf32>
      %cst_68 = arith.constant dense<0.000000e+00> : vector<32xf32>
      %389 = vector.multi_reduction <add>, %388, %cst_68 [1] : vector<32x128xf32> to vector<32xf32>
      %390 = vector.shape_cast %389 : vector<32xf32> to vector<32x1xf32>
      %c128_i32 = arith.constant 128 : i32
      %391 = arith.addi %3, %c128_i32 : i32
      %392 = vector.broadcast %391 : i32 to vector<32x1xi32>
      %393 = arith.addi %392, %380 : vector<32x1xi32>
      %394 = arith.cmpf olt, %373, %207 : vector<32x1xf32>
      %395 = arith.select %394, %373, %207 : vector<32x1xi1>, vector<32x1xf32>
      %396 = arith.select %394, %393, %208 : vector<32x1xi1>, vector<32x1xi32>
      %397 = arith.select %394, %386, %209 : vector<32x1xi1>, vector<32x1xf32>
      %398 = arith.select %394, %390, %210 : vector<32x1xi1>, vector<32x1xf32>
      %c0_69 = arith.constant 0 : index
      %c256 = arith.constant 256 : index
      %399 = vector.load %arg3[%c0_69, %c256] : memref<16x512xf32, #tpu.memory_space<vmem>>, vector<16x128xf32>
      %400 = vector.extract_strided_slice %399 {offsets = [0, 0], sizes = [1, 128], strides = [1, 1]} : vector<16x128xf32> to vector<1x128xf32>
      %401 = vector.extract_strided_slice %399 {offsets = [1, 0], sizes = [1, 128], strides = [1, 1]} : vector<16x128xf32> to vector<1x128xf32>
      %402 = vector.extract_strided_slice %399 {offsets = [2, 0], sizes = [1, 128], strides = [1, 1]} : vector<16x128xf32> to vector<1x128xf32>
      %403 = vector.extract_strided_slice %399 {offsets = [3, 0], sizes = [1, 128], strides = [1, 1]} : vector<16x128xf32> to vector<1x128xf32>
      %404 = vector.extract_strided_slice %399 {offsets = [4, 0], sizes = [1, 128], strides = [1, 1]} : vector<16x128xf32> to vector<1x128xf32>
      %405 = vector.extract_strided_slice %399 {offsets = [5, 0], sizes = [1, 128], strides = [1, 1]} : vector<16x128xf32> to vector<1x128xf32>
      %406 = vector.extract_strided_slice %399 {offsets = [6, 0], sizes = [1, 128], strides = [1, 1]} : vector<16x128xf32> to vector<1x128xf32>
      %407 = vector.extract_strided_slice %399 {offsets = [7, 0], sizes = [1, 128], strides = [1, 1]} : vector<16x128xf32> to vector<1x128xf32>
      %408 = vector.extract_strided_slice %399 {offsets = [8, 0], sizes = [1, 128], strides = [1, 1]} : vector<16x128xf32> to vector<1x128xf32>
      %409 = vector.extract_strided_slice %399 {offsets = [9, 0], sizes = [1, 128], strides = [1, 1]} : vector<16x128xf32> to vector<1x128xf32>
      %410 = vector.extract_strided_slice %399 {offsets = [10, 0], sizes = [1, 128], strides = [1, 1]} : vector<16x128xf32> to vector<1x128xf32>
      %411 = vector.extract_strided_slice %399 {offsets = [11, 0], sizes = [1, 128], strides = [1, 1]} : vector<16x128xf32> to vector<1x128xf32>
      %412 = vector.broadcast %12 : vector<32x1xf32> to vector<32x128xf32>
      %413 = vector.broadcast %400 : vector<1x128xf32> to vector<32x128xf32>
      %414 = arith.subf %412, %413 : vector<32x128xf32>
      %415 = vector.broadcast %13 : vector<32x1xf32> to vector<32x128xf32>
      %416 = vector.broadcast %401 : vector<1x128xf32> to vector<32x128xf32>
      %417 = arith.subf %415, %416 : vector<32x128xf32>
      %418 = vector.broadcast %14 : vector<32x1xf32> to vector<32x128xf32>
      %419 = vector.broadcast %402 : vector<1x128xf32> to vector<32x128xf32>
      %420 = arith.subf %418, %419 : vector<32x128xf32>
      %421 = vector.broadcast %403 : vector<1x128xf32> to vector<32x128xf32>
      %422 = arith.mulf %421, %414 : vector<32x128xf32>
      %423 = vector.broadcast %404 : vector<1x128xf32> to vector<32x128xf32>
      %424 = arith.mulf %423, %417 : vector<32x128xf32>
      %425 = arith.addf %422, %424 : vector<32x128xf32>
      %426 = vector.broadcast %405 : vector<1x128xf32> to vector<32x128xf32>
      %427 = arith.mulf %426, %420 : vector<32x128xf32>
      %428 = arith.addf %425, %427 : vector<32x128xf32>
      %429 = vector.broadcast %406 : vector<1x128xf32> to vector<32x128xf32>
      %430 = arith.mulf %429, %414 : vector<32x128xf32>
      %431 = vector.broadcast %407 : vector<1x128xf32> to vector<32x128xf32>
      %432 = arith.mulf %431, %417 : vector<32x128xf32>
      %433 = arith.addf %430, %432 : vector<32x128xf32>
      %434 = vector.broadcast %408 : vector<1x128xf32> to vector<32x128xf32>
      %435 = arith.mulf %434, %420 : vector<32x128xf32>
      %436 = arith.addf %433, %435 : vector<32x128xf32>
      %437 = vector.broadcast %409 : vector<1x128xf32> to vector<32x128xf32>
      %438 = arith.subf %428, %437 : vector<32x128xf32>
      %439 = vector.broadcast %410 : vector<1x128xf32> to vector<32x128xf32>
      %440 = arith.subf %436, %439 : vector<32x128xf32>
      %441 = vector.broadcast %410 : vector<1x128xf32> to vector<32x128xf32>
      %442 = arith.subf %428, %441 : vector<32x128xf32>
      %443 = vector.broadcast %411 : vector<1x128xf32> to vector<32x128xf32>
      %444 = arith.subf %436, %443 : vector<32x128xf32>
      %445 = arith.mulf %438, %444 : vector<32x128xf32>
      %446 = arith.mulf %442, %440 : vector<32x128xf32>
      %447 = arith.subf %445, %446 : vector<32x128xf32>
      %448 = arith.mulf %442, %436 : vector<32x128xf32>
      %449 = arith.mulf %428, %444 : vector<32x128xf32>
      %450 = arith.subf %448, %449 : vector<32x128xf32>
      %451 = arith.mulf %428, %440 : vector<32x128xf32>
      %452 = arith.mulf %438, %436 : vector<32x128xf32>
      %453 = arith.subf %451, %452 : vector<32x128xf32>
      %454 = arith.addf %447, %450 : vector<32x128xf32>
      %455 = arith.addf %454, %453 : vector<32x128xf32>
      %456 = vector.broadcast %cst : f32 to vector<32x128xf32>
      %457 = arith.maximumf %455, %456 : vector<32x128xf32>
      %458 = tpu.reciprocal %457 {approx = true} : vector<32x128xf32> -> vector<32x128xf32>
      %459 = arith.mulf %450, %458 : vector<32x128xf32>
      %460 = arith.mulf %453, %458 : vector<32x128xf32>
      %461 = arith.subf %440, %438 : vector<32x128xf32>
      %462 = arith.subf %442, %444 : vector<32x128xf32>
      %463 = arith.addf %461, %462 : vector<32x128xf32>
      %464 = vector.broadcast %cst : f32 to vector<32x128xf32>
      %465 = arith.maximumf %463, %464 : vector<32x128xf32>
      %466 = tpu.reciprocal %465 {approx = true} : vector<32x128xf32> -> vector<32x128xf32>
      %467 = arith.mulf %461, %466 : vector<32x128xf32>
      %cst_70 = arith.constant 0.000000e+00 : f32
      %468 = vector.broadcast %cst_70 : f32 to vector<32x128xf32>
      %469 = arith.cmpf ole, %447, %468 : vector<32x128xf32>
      %cst_71 = arith.constant 0.000000e+00 : f32
      %470 = vector.broadcast %cst_71 : f32 to vector<32x128xf32>
      %471 = arith.cmpf oge, %461, %470 : vector<32x128xf32>
      %472 = arith.andi %469, %471 : vector<32x128xi1>
      %cst_72 = arith.constant 0.000000e+00 : f32
      %473 = vector.broadcast %cst_72 : f32 to vector<32x128xf32>
      %474 = arith.cmpf oge, %462, %473 : vector<32x128xf32>
      %475 = arith.andi %472, %474 : vector<32x128xi1>
      %cst_73 = arith.constant 1.000000e+00 : f32
      %476 = vector.broadcast %cst_73 : f32 to vector<32x128xf32>
      %477 = arith.subf %476, %467 : vector<32x128xf32>
      %478 = arith.select %475, %477, %459 : vector<32x128xi1>, vector<32x128xf32>
      %479 = arith.select %475, %467, %460 : vector<32x128xi1>, vector<32x128xf32>
      %480 = arith.subf %436, %444 : vector<32x128xf32>
      %481 = vector.broadcast %cst : f32 to vector<32x128xf32>
      %482 = arith.maximumf %480, %481 : vector<32x128xf32>
      %483 = tpu.reciprocal %482 {approx = true} : vector<32x128xf32> -> vector<32x128xf32>
      %484 = arith.mulf %436, %483 : vector<32x128xf32>
      %cst_74 = arith.constant 0.000000e+00 : f32
      %485 = vector.broadcast %cst_74 : f32 to vector<32x128xf32>
      %486 = arith.cmpf ole, %450, %485 : vector<32x128xf32>
      %cst_75 = arith.constant 0.000000e+00 : f32
      %487 = vector.broadcast %cst_75 : f32 to vector<32x128xf32>
      %488 = arith.cmpf oge, %436, %487 : vector<32x128xf32>
      %489 = arith.andi %486, %488 : vector<32x128xi1>
      %cst_76 = arith.constant 0.000000e+00 : f32
      %490 = vector.broadcast %cst_76 : f32 to vector<32x128xf32>
      %491 = arith.cmpf ole, %444, %490 : vector<32x128xf32>
      %492 = arith.andi %489, %491 : vector<32x128xi1>
      %cst_77 = arith.constant 0.000000e+00 : f32
      %493 = vector.broadcast %cst_77 : f32 to vector<32x128xf32>
      %494 = arith.select %492, %493, %478 : vector<32x128xi1>, vector<32x128xf32>
      %495 = arith.select %492, %484, %479 : vector<32x128xi1>, vector<32x128xf32>
      %cst_78 = arith.constant 0.000000e+00 : f32
      %496 = vector.broadcast %cst_78 : f32 to vector<32x128xf32>
      %497 = arith.cmpf oge, %444, %496 : vector<32x128xf32>
      %498 = arith.cmpf ole, %442, %444 : vector<32x128xf32>
      %499 = arith.andi %497, %498 : vector<32x128xi1>
      %cst_79 = arith.constant 0.000000e+00 : f32
      %500 = vector.broadcast %cst_79 : f32 to vector<32x128xf32>
      %501 = arith.select %499, %500, %494 : vector<32x128xi1>, vector<32x128xf32>
      %cst_80 = arith.constant 1.000000e+00 : f32
      %502 = vector.broadcast %cst_80 : f32 to vector<32x128xf32>
      %503 = arith.select %499, %502, %495 : vector<32x128xi1>, vector<32x128xf32>
      %504 = arith.subf %428, %438 : vector<32x128xf32>
      %505 = vector.broadcast %cst : f32 to vector<32x128xf32>
      %506 = arith.maximumf %504, %505 : vector<32x128xf32>
      %507 = tpu.reciprocal %506 {approx = true} : vector<32x128xf32> -> vector<32x128xf32>
      %508 = arith.mulf %428, %507 : vector<32x128xf32>
      %cst_81 = arith.constant 0.000000e+00 : f32
      %509 = vector.broadcast %cst_81 : f32 to vector<32x128xf32>
      %510 = arith.cmpf ole, %453, %509 : vector<32x128xf32>
      %cst_82 = arith.constant 0.000000e+00 : f32
      %511 = vector.broadcast %cst_82 : f32 to vector<32x128xf32>
      %512 = arith.cmpf oge, %428, %511 : vector<32x128xf32>
      %513 = arith.andi %510, %512 : vector<32x128xi1>
      %cst_83 = arith.constant 0.000000e+00 : f32
      %514 = vector.broadcast %cst_83 : f32 to vector<32x128xf32>
      %515 = arith.cmpf ole, %438, %514 : vector<32x128xf32>
      %516 = arith.andi %513, %515 : vector<32x128xi1>
      %517 = arith.select %516, %508, %501 : vector<32x128xi1>, vector<32x128xf32>
      %cst_84 = arith.constant 0.000000e+00 : f32
      %518 = vector.broadcast %cst_84 : f32 to vector<32x128xf32>
      %519 = arith.select %516, %518, %503 : vector<32x128xi1>, vector<32x128xf32>
      %cst_85 = arith.constant 0.000000e+00 : f32
      %520 = vector.broadcast %cst_85 : f32 to vector<32x128xf32>
      %521 = arith.cmpf oge, %438, %520 : vector<32x128xf32>
      %522 = arith.cmpf ole, %440, %438 : vector<32x128xf32>
      %523 = arith.andi %521, %522 : vector<32x128xi1>
      %cst_86 = arith.constant 1.000000e+00 : f32
      %524 = vector.broadcast %cst_86 : f32 to vector<32x128xf32>
      %525 = arith.select %523, %524, %517 : vector<32x128xi1>, vector<32x128xf32>
      %cst_87 = arith.constant 0.000000e+00 : f32
      %526 = vector.broadcast %cst_87 : f32 to vector<32x128xf32>
      %527 = arith.select %523, %526, %519 : vector<32x128xi1>, vector<32x128xf32>
      %cst_88 = arith.constant 0.000000e+00 : f32
      %528 = vector.broadcast %cst_88 : f32 to vector<32x128xf32>
      %529 = arith.cmpf ole, %428, %528 : vector<32x128xf32>
      %cst_89 = arith.constant 0.000000e+00 : f32
      %530 = vector.broadcast %cst_89 : f32 to vector<32x128xf32>
      %531 = arith.cmpf ole, %436, %530 : vector<32x128xf32>
      %532 = arith.andi %529, %531 : vector<32x128xi1>
      %cst_90 = arith.constant 0.000000e+00 : f32
      %533 = vector.broadcast %cst_90 : f32 to vector<32x128xf32>
      %534 = arith.select %532, %533, %525 : vector<32x128xi1>, vector<32x128xf32>
      %cst_91 = arith.constant 0.000000e+00 : f32
      %535 = vector.broadcast %cst_91 : f32 to vector<32x128xf32>
      %536 = arith.select %532, %535, %527 : vector<32x128xi1>, vector<32x128xf32>
      %537 = vector.broadcast %403 : vector<1x128xf32> to vector<32x128xf32>
      %538 = arith.mulf %534, %537 : vector<32x128xf32>
      %539 = arith.subf %414, %538 : vector<32x128xf32>
      %540 = vector.broadcast %406 : vector<1x128xf32> to vector<32x128xf32>
      %541 = arith.mulf %536, %540 : vector<32x128xf32>
      %542 = arith.subf %539, %541 : vector<32x128xf32>
      %543 = vector.broadcast %404 : vector<1x128xf32> to vector<32x128xf32>
      %544 = arith.mulf %534, %543 : vector<32x128xf32>
      %545 = arith.subf %417, %544 : vector<32x128xf32>
      %546 = vector.broadcast %407 : vector<1x128xf32> to vector<32x128xf32>
      %547 = arith.mulf %536, %546 : vector<32x128xf32>
      %548 = arith.subf %545, %547 : vector<32x128xf32>
      %549 = vector.broadcast %405 : vector<1x128xf32> to vector<32x128xf32>
      %550 = arith.mulf %534, %549 : vector<32x128xf32>
      %551 = arith.subf %420, %550 : vector<32x128xf32>
      %552 = vector.broadcast %408 : vector<1x128xf32> to vector<32x128xf32>
      %553 = arith.mulf %536, %552 : vector<32x128xf32>
      %554 = arith.subf %551, %553 : vector<32x128xf32>
      %555 = arith.mulf %542, %542 : vector<32x128xf32>
      %556 = arith.mulf %548, %548 : vector<32x128xf32>
      %557 = arith.addf %555, %556 : vector<32x128xf32>
      %558 = arith.mulf %554, %554 : vector<32x128xf32>
      %559 = arith.addf %557, %558 : vector<32x128xf32>
      %cst_92 = arith.constant dense<0x7F800000> : vector<32xf32>
      %560 = vector.multi_reduction <minimumf>, %559, %cst_92 [1] : vector<32x128xf32> to vector<32xf32>
      %561 = vector.shape_cast %560 : vector<32xf32> to vector<32x1xf32>
      %562 = tpu.iota {dimensions = array<i32: 1>} : vector<32x128xi32>
      %563 = vector.broadcast %561 : vector<32x1xf32> to vector<32x128xf32>
      %564 = arith.cmpf ole, %559, %563 : vector<32x128xf32>
      %565 = vector.broadcast %c1073741824_i32 : i32 to vector<32x128xi32>
      %566 = arith.select %564, %562, %565 : vector<32x128xi1>, vector<32x128xi32>
      %cst_93 = arith.constant dense<2147483647> : vector<32xi32>
      %567 = vector.multi_reduction <minsi>, %566, %cst_93 [1] : vector<32x128xi32> to vector<32xi32>
      %568 = vector.shape_cast %567 : vector<32xi32> to vector<32x1xi32>
      %569 = vector.broadcast %568 : vector<32x1xi32> to vector<32x128xi32>
      %570 = arith.cmpi eq, %562, %569 : vector<32x128xi32>
      %cst_94 = arith.constant 0.000000e+00 : f32
      %571 = vector.broadcast %cst_94 : f32 to vector<32x128xf32>
      %572 = arith.select %570, %534, %571 : vector<32x128xi1>, vector<32x128xf32>
      %cst_95 = arith.constant dense<0.000000e+00> : vector<32xf32>
      %573 = vector.multi_reduction <add>, %572, %cst_95 [1] : vector<32x128xf32> to vector<32xf32>
      %574 = vector.shape_cast %573 : vector<32xf32> to vector<32x1xf32>
      %cst_96 = arith.constant 0.000000e+00 : f32
      %575 = vector.broadcast %cst_96 : f32 to vector<32x128xf32>
      %576 = arith.select %570, %536, %575 : vector<32x128xi1>, vector<32x128xf32>
      %cst_97 = arith.constant dense<0.000000e+00> : vector<32xf32>
      %577 = vector.multi_reduction <add>, %576, %cst_97 [1] : vector<32x128xf32> to vector<32xf32>
      %578 = vector.shape_cast %577 : vector<32xf32> to vector<32x1xf32>
      %c256_i32 = arith.constant 256 : i32
      %579 = arith.addi %3, %c256_i32 : i32
      %580 = vector.broadcast %579 : i32 to vector<32x1xi32>
      %581 = arith.addi %580, %568 : vector<32x1xi32>
      %582 = arith.cmpf olt, %561, %395 : vector<32x1xf32>
      %583 = arith.select %582, %561, %395 : vector<32x1xi1>, vector<32x1xf32>
      %584 = arith.select %582, %581, %396 : vector<32x1xi1>, vector<32x1xi32>
      %585 = arith.select %582, %574, %397 : vector<32x1xi1>, vector<32x1xf32>
      %586 = arith.select %582, %578, %398 : vector<32x1xi1>, vector<32x1xf32>
      %c0_98 = arith.constant 0 : index
      %c384 = arith.constant 384 : index
      %587 = vector.load %arg3[%c0_98, %c384] : memref<16x512xf32, #tpu.memory_space<vmem>>, vector<16x128xf32>
      %588 = vector.extract_strided_slice %587 {offsets = [0, 0], sizes = [1, 128], strides = [1, 1]} : vector<16x128xf32> to vector<1x128xf32>
      %589 = vector.extract_strided_slice %587 {offsets = [1, 0], sizes = [1, 128], strides = [1, 1]} : vector<16x128xf32> to vector<1x128xf32>
      %590 = vector.extract_strided_slice %587 {offsets = [2, 0], sizes = [1, 128], strides = [1, 1]} : vector<16x128xf32> to vector<1x128xf32>
      %591 = vector.extract_strided_slice %587 {offsets = [3, 0], sizes = [1, 128], strides = [1, 1]} : vector<16x128xf32> to vector<1x128xf32>
      %592 = vector.extract_strided_slice %587 {offsets = [4, 0], sizes = [1, 128], strides = [1, 1]} : vector<16x128xf32> to vector<1x128xf32>
      %593 = vector.extract_strided_slice %587 {offsets = [5, 0], sizes = [1, 128], strides = [1, 1]} : vector<16x128xf32> to vector<1x128xf32>
      %594 = vector.extract_strided_slice %587 {offsets = [6, 0], sizes = [1, 128], strides = [1, 1]} : vector<16x128xf32> to vector<1x128xf32>
      %595 = vector.extract_strided_slice %587 {offsets = [7, 0], sizes = [1, 128], strides = [1, 1]} : vector<16x128xf32> to vector<1x128xf32>
      %596 = vector.extract_strided_slice %587 {offsets = [8, 0], sizes = [1, 128], strides = [1, 1]} : vector<16x128xf32> to vector<1x128xf32>
      %597 = vector.extract_strided_slice %587 {offsets = [9, 0], sizes = [1, 128], strides = [1, 1]} : vector<16x128xf32> to vector<1x128xf32>
      %598 = vector.extract_strided_slice %587 {offsets = [10, 0], sizes = [1, 128], strides = [1, 1]} : vector<16x128xf32> to vector<1x128xf32>
      %599 = vector.extract_strided_slice %587 {offsets = [11, 0], sizes = [1, 128], strides = [1, 1]} : vector<16x128xf32> to vector<1x128xf32>
      %600 = vector.broadcast %12 : vector<32x1xf32> to vector<32x128xf32>
      %601 = vector.broadcast %588 : vector<1x128xf32> to vector<32x128xf32>
      %602 = arith.subf %600, %601 : vector<32x128xf32>
      %603 = vector.broadcast %13 : vector<32x1xf32> to vector<32x128xf32>
      %604 = vector.broadcast %589 : vector<1x128xf32> to vector<32x128xf32>
      %605 = arith.subf %603, %604 : vector<32x128xf32>
      %606 = vector.broadcast %14 : vector<32x1xf32> to vector<32x128xf32>
      %607 = vector.broadcast %590 : vector<1x128xf32> to vector<32x128xf32>
      %608 = arith.subf %606, %607 : vector<32x128xf32>
      %609 = vector.broadcast %591 : vector<1x128xf32> to vector<32x128xf32>
      %610 = arith.mulf %609, %602 : vector<32x128xf32>
      %611 = vector.broadcast %592 : vector<1x128xf32> to vector<32x128xf32>
      %612 = arith.mulf %611, %605 : vector<32x128xf32>
      %613 = arith.addf %610, %612 : vector<32x128xf32>
      %614 = vector.broadcast %593 : vector<1x128xf32> to vector<32x128xf32>
      %615 = arith.mulf %614, %608 : vector<32x128xf32>
      %616 = arith.addf %613, %615 : vector<32x128xf32>
      %617 = vector.broadcast %594 : vector<1x128xf32> to vector<32x128xf32>
      %618 = arith.mulf %617, %602 : vector<32x128xf32>
      %619 = vector.broadcast %595 : vector<1x128xf32> to vector<32x128xf32>
      %620 = arith.mulf %619, %605 : vector<32x128xf32>
      %621 = arith.addf %618, %620 : vector<32x128xf32>
      %622 = vector.broadcast %596 : vector<1x128xf32> to vector<32x128xf32>
      %623 = arith.mulf %622, %608 : vector<32x128xf32>
      %624 = arith.addf %621, %623 : vector<32x128xf32>
      %625 = vector.broadcast %597 : vector<1x128xf32> to vector<32x128xf32>
      %626 = arith.subf %616, %625 : vector<32x128xf32>
      %627 = vector.broadcast %598 : vector<1x128xf32> to vector<32x128xf32>
      %628 = arith.subf %624, %627 : vector<32x128xf32>
      %629 = vector.broadcast %598 : vector<1x128xf32> to vector<32x128xf32>
      %630 = arith.subf %616, %629 : vector<32x128xf32>
      %631 = vector.broadcast %599 : vector<1x128xf32> to vector<32x128xf32>
      %632 = arith.subf %624, %631 : vector<32x128xf32>
      %633 = arith.mulf %626, %632 : vector<32x128xf32>
      %634 = arith.mulf %630, %628 : vector<32x128xf32>
      %635 = arith.subf %633, %634 : vector<32x128xf32>
      %636 = arith.mulf %630, %624 : vector<32x128xf32>
      %637 = arith.mulf %616, %632 : vector<32x128xf32>
      %638 = arith.subf %636, %637 : vector<32x128xf32>
      %639 = arith.mulf %616, %628 : vector<32x128xf32>
      %640 = arith.mulf %626, %624 : vector<32x128xf32>
      %641 = arith.subf %639, %640 : vector<32x128xf32>
      %642 = arith.addf %635, %638 : vector<32x128xf32>
      %643 = arith.addf %642, %641 : vector<32x128xf32>
      %644 = vector.broadcast %cst : f32 to vector<32x128xf32>
      %645 = arith.maximumf %643, %644 : vector<32x128xf32>
      %646 = tpu.reciprocal %645 {approx = true} : vector<32x128xf32> -> vector<32x128xf32>
      %647 = arith.mulf %638, %646 : vector<32x128xf32>
      %648 = arith.mulf %641, %646 : vector<32x128xf32>
      %649 = arith.subf %628, %626 : vector<32x128xf32>
      %650 = arith.subf %630, %632 : vector<32x128xf32>
      %651 = arith.addf %649, %650 : vector<32x128xf32>
      %652 = vector.broadcast %cst : f32 to vector<32x128xf32>
      %653 = arith.maximumf %651, %652 : vector<32x128xf32>
      %654 = tpu.reciprocal %653 {approx = true} : vector<32x128xf32> -> vector<32x128xf32>
      %655 = arith.mulf %649, %654 : vector<32x128xf32>
      %cst_99 = arith.constant 0.000000e+00 : f32
      %656 = vector.broadcast %cst_99 : f32 to vector<32x128xf32>
      %657 = arith.cmpf ole, %635, %656 : vector<32x128xf32>
      %cst_100 = arith.constant 0.000000e+00 : f32
      %658 = vector.broadcast %cst_100 : f32 to vector<32x128xf32>
      %659 = arith.cmpf oge, %649, %658 : vector<32x128xf32>
      %660 = arith.andi %657, %659 : vector<32x128xi1>
      %cst_101 = arith.constant 0.000000e+00 : f32
      %661 = vector.broadcast %cst_101 : f32 to vector<32x128xf32>
      %662 = arith.cmpf oge, %650, %661 : vector<32x128xf32>
      %663 = arith.andi %660, %662 : vector<32x128xi1>
      %cst_102 = arith.constant 1.000000e+00 : f32
      %664 = vector.broadcast %cst_102 : f32 to vector<32x128xf32>
      %665 = arith.subf %664, %655 : vector<32x128xf32>
      %666 = arith.select %663, %665, %647 : vector<32x128xi1>, vector<32x128xf32>
      %667 = arith.select %663, %655, %648 : vector<32x128xi1>, vector<32x128xf32>
      %668 = arith.subf %624, %632 : vector<32x128xf32>
      %669 = vector.broadcast %cst : f32 to vector<32x128xf32>
      %670 = arith.maximumf %668, %669 : vector<32x128xf32>
      %671 = tpu.reciprocal %670 {approx = true} : vector<32x128xf32> -> vector<32x128xf32>
      %672 = arith.mulf %624, %671 : vector<32x128xf32>
      %cst_103 = arith.constant 0.000000e+00 : f32
      %673 = vector.broadcast %cst_103 : f32 to vector<32x128xf32>
      %674 = arith.cmpf ole, %638, %673 : vector<32x128xf32>
      %cst_104 = arith.constant 0.000000e+00 : f32
      %675 = vector.broadcast %cst_104 : f32 to vector<32x128xf32>
      %676 = arith.cmpf oge, %624, %675 : vector<32x128xf32>
      %677 = arith.andi %674, %676 : vector<32x128xi1>
      %cst_105 = arith.constant 0.000000e+00 : f32
      %678 = vector.broadcast %cst_105 : f32 to vector<32x128xf32>
      %679 = arith.cmpf ole, %632, %678 : vector<32x128xf32>
      %680 = arith.andi %677, %679 : vector<32x128xi1>
      %cst_106 = arith.constant 0.000000e+00 : f32
      %681 = vector.broadcast %cst_106 : f32 to vector<32x128xf32>
      %682 = arith.select %680, %681, %666 : vector<32x128xi1>, vector<32x128xf32>
      %683 = arith.select %680, %672, %667 : vector<32x128xi1>, vector<32x128xf32>
      %cst_107 = arith.constant 0.000000e+00 : f32
      %684 = vector.broadcast %cst_107 : f32 to vector<32x128xf32>
      %685 = arith.cmpf oge, %632, %684 : vector<32x128xf32>
      %686 = arith.cmpf ole, %630, %632 : vector<32x128xf32>
      %687 = arith.andi %685, %686 : vector<32x128xi1>
      %cst_108 = arith.constant 0.000000e+00 : f32
      %688 = vector.broadcast %cst_108 : f32 to vector<32x128xf32>
      %689 = arith.select %687, %688, %682 : vector<32x128xi1>, vector<32x128xf32>
      %cst_109 = arith.constant 1.000000e+00 : f32
      %690 = vector.broadcast %cst_109 : f32 to vector<32x128xf32>
      %691 = arith.select %687, %690, %683 : vector<32x128xi1>, vector<32x128xf32>
      %692 = arith.subf %616, %626 : vector<32x128xf32>
      %693 = vector.broadcast %cst : f32 to vector<32x128xf32>
      %694 = arith.maximumf %692, %693 : vector<32x128xf32>
      %695 = tpu.reciprocal %694 {approx = true} : vector<32x128xf32> -> vector<32x128xf32>
      %696 = arith.mulf %616, %695 : vector<32x128xf32>
      %cst_110 = arith.constant 0.000000e+00 : f32
      %697 = vector.broadcast %cst_110 : f32 to vector<32x128xf32>
      %698 = arith.cmpf ole, %641, %697 : vector<32x128xf32>
      %cst_111 = arith.constant 0.000000e+00 : f32
      %699 = vector.broadcast %cst_111 : f32 to vector<32x128xf32>
      %700 = arith.cmpf oge, %616, %699 : vector<32x128xf32>
      %701 = arith.andi %698, %700 : vector<32x128xi1>
      %cst_112 = arith.constant 0.000000e+00 : f32
      %702 = vector.broadcast %cst_112 : f32 to vector<32x128xf32>
      %703 = arith.cmpf ole, %626, %702 : vector<32x128xf32>
      %704 = arith.andi %701, %703 : vector<32x128xi1>
      %705 = arith.select %704, %696, %689 : vector<32x128xi1>, vector<32x128xf32>
      %cst_113 = arith.constant 0.000000e+00 : f32
      %706 = vector.broadcast %cst_113 : f32 to vector<32x128xf32>
      %707 = arith.select %704, %706, %691 : vector<32x128xi1>, vector<32x128xf32>
      %cst_114 = arith.constant 0.000000e+00 : f32
      %708 = vector.broadcast %cst_114 : f32 to vector<32x128xf32>
      %709 = arith.cmpf oge, %626, %708 : vector<32x128xf32>
      %710 = arith.cmpf ole, %628, %626 : vector<32x128xf32>
      %711 = arith.andi %709, %710 : vector<32x128xi1>
      %cst_115 = arith.constant 1.000000e+00 : f32
      %712 = vector.broadcast %cst_115 : f32 to vector<32x128xf32>
      %713 = arith.select %711, %712, %705 : vector<32x128xi1>, vector<32x128xf32>
      %cst_116 = arith.constant 0.000000e+00 : f32
      %714 = vector.broadcast %cst_116 : f32 to vector<32x128xf32>
      %715 = arith.select %711, %714, %707 : vector<32x128xi1>, vector<32x128xf32>
      %cst_117 = arith.constant 0.000000e+00 : f32
      %716 = vector.broadcast %cst_117 : f32 to vector<32x128xf32>
      %717 = arith.cmpf ole, %616, %716 : vector<32x128xf32>
      %cst_118 = arith.constant 0.000000e+00 : f32
      %718 = vector.broadcast %cst_118 : f32 to vector<32x128xf32>
      %719 = arith.cmpf ole, %624, %718 : vector<32x128xf32>
      %720 = arith.andi %717, %719 : vector<32x128xi1>
      %cst_119 = arith.constant 0.000000e+00 : f32
      %721 = vector.broadcast %cst_119 : f32 to vector<32x128xf32>
      %722 = arith.select %720, %721, %713 : vector<32x128xi1>, vector<32x128xf32>
      %cst_120 = arith.constant 0.000000e+00 : f32
      %723 = vector.broadcast %cst_120 : f32 to vector<32x128xf32>
      %724 = arith.select %720, %723, %715 : vector<32x128xi1>, vector<32x128xf32>
      %725 = vector.broadcast %591 : vector<1x128xf32> to vector<32x128xf32>
      %726 = arith.mulf %722, %725 : vector<32x128xf32>
      %727 = arith.subf %602, %726 : vector<32x128xf32>
      %728 = vector.broadcast %594 : vector<1x128xf32> to vector<32x128xf32>
      %729 = arith.mulf %724, %728 : vector<32x128xf32>
      %730 = arith.subf %727, %729 : vector<32x128xf32>
      %731 = vector.broadcast %592 : vector<1x128xf32> to vector<32x128xf32>
      %732 = arith.mulf %722, %731 : vector<32x128xf32>
      %733 = arith.subf %605, %732 : vector<32x128xf32>
      %734 = vector.broadcast %595 : vector<1x128xf32> to vector<32x128xf32>
      %735 = arith.mulf %724, %734 : vector<32x128xf32>
      %736 = arith.subf %733, %735 : vector<32x128xf32>
      %737 = vector.broadcast %593 : vector<1x128xf32> to vector<32x128xf32>
      %738 = arith.mulf %722, %737 : vector<32x128xf32>
      %739 = arith.subf %608, %738 : vector<32x128xf32>
      %740 = vector.broadcast %596 : vector<1x128xf32> to vector<32x128xf32>
      %741 = arith.mulf %724, %740 : vector<32x128xf32>
      %742 = arith.subf %739, %741 : vector<32x128xf32>
      %743 = arith.mulf %730, %730 : vector<32x128xf32>
      %744 = arith.mulf %736, %736 : vector<32x128xf32>
      %745 = arith.addf %743, %744 : vector<32x128xf32>
      %746 = arith.mulf %742, %742 : vector<32x128xf32>
      %747 = arith.addf %745, %746 : vector<32x128xf32>
      %cst_121 = arith.constant dense<0x7F800000> : vector<32xf32>
      %748 = vector.multi_reduction <minimumf>, %747, %cst_121 [1] : vector<32x128xf32> to vector<32xf32>
      %749 = vector.shape_cast %748 : vector<32xf32> to vector<32x1xf32>
      %750 = tpu.iota {dimensions = array<i32: 1>} : vector<32x128xi32>
      %751 = vector.broadcast %749 : vector<32x1xf32> to vector<32x128xf32>
      %752 = arith.cmpf ole, %747, %751 : vector<32x128xf32>
      %753 = vector.broadcast %c1073741824_i32 : i32 to vector<32x128xi32>
      %754 = arith.select %752, %750, %753 : vector<32x128xi1>, vector<32x128xi32>
      %cst_122 = arith.constant dense<2147483647> : vector<32xi32>
      %755 = vector.multi_reduction <minsi>, %754, %cst_122 [1] : vector<32x128xi32> to vector<32xi32>
      %756 = vector.shape_cast %755 : vector<32xi32> to vector<32x1xi32>
      %757 = vector.broadcast %756 : vector<32x1xi32> to vector<32x128xi32>
      %758 = arith.cmpi eq, %750, %757 : vector<32x128xi32>
      %cst_123 = arith.constant 0.000000e+00 : f32
      %759 = vector.broadcast %cst_123 : f32 to vector<32x128xf32>
      %760 = arith.select %758, %722, %759 : vector<32x128xi1>, vector<32x128xf32>
      %cst_124 = arith.constant dense<0.000000e+00> : vector<32xf32>
      %761 = vector.multi_reduction <add>, %760, %cst_124 [1] : vector<32x128xf32> to vector<32xf32>
      %762 = vector.shape_cast %761 : vector<32xf32> to vector<32x1xf32>
      %cst_125 = arith.constant 0.000000e+00 : f32
      %763 = vector.broadcast %cst_125 : f32 to vector<32x128xf32>
      %764 = arith.select %758, %724, %763 : vector<32x128xi1>, vector<32x128xf32>
      %cst_126 = arith.constant dense<0.000000e+00> : vector<32xf32>
      %765 = vector.multi_reduction <add>, %764, %cst_126 [1] : vector<32x128xf32> to vector<32xf32>
      %766 = vector.shape_cast %765 : vector<32xf32> to vector<32x1xf32>
      %c384_i32 = arith.constant 384 : i32
      %767 = arith.addi %3, %c384_i32 : i32
      %768 = vector.broadcast %767 : i32 to vector<32x1xi32>
      %769 = arith.addi %768, %756 : vector<32x1xi32>
      %770 = arith.cmpf olt, %749, %583 : vector<32x1xf32>
      %771 = arith.select %770, %749, %583 : vector<32x1xi1>, vector<32x1xf32>
      %772 = arith.select %770, %769, %584 : vector<32x1xi1>, vector<32x1xi32>
      %773 = arith.select %770, %762, %585 : vector<32x1xi1>, vector<32x1xf32>
      %774 = arith.select %770, %766, %586 : vector<32x1xi1>, vector<32x1xf32>
      %775 = arith.index_cast %9 : i32 to index
      %c0_127 = arith.constant 0 : index
      %776 = vector.load %arg6[%775, %c0_127] : memref<256x1xf32, #tpu.memory_space<vmem>>, vector<32x1xf32>
      tpu.vector_store %arg6[%775, %c0_127], %771 {strides = array<i32>} : memref<256x1xf32, #tpu.memory_space<vmem>>, vector<32x1xf32>,
      %777 = arith.index_cast %9 : i32 to index
      %c0_128 = arith.constant 0 : index
      %778 = vector.load %arg7[%777, %c0_128] : memref<256x1xi32, #tpu.memory_space<vmem>>, vector<32x1xi32>
      tpu.vector_store %arg7[%777, %c0_128], %772 {strides = array<i32>} : memref<256x1xi32, #tpu.memory_space<vmem>>, vector<32x1xi32>,
      %779 = arith.index_cast %9 : i32 to index
      %c0_129 = arith.constant 0 : index
      %780 = vector.load %arg8[%779, %c0_129] : memref<256x1xf32, #tpu.memory_space<vmem>>, vector<32x1xf32>
      tpu.vector_store %arg8[%779, %c0_129], %773 {strides = array<i32>} : memref<256x1xf32, #tpu.memory_space<vmem>>, vector<32x1xf32>,
      %781 = arith.index_cast %9 : i32 to index
      %c0_130 = arith.constant 0 : index
      %782 = vector.load %arg9[%781, %c0_130] : memref<256x1xf32, #tpu.memory_space<vmem>>, vector<32x1xf32>
      tpu.vector_store %arg9[%781, %c0_130], %774 {strides = array<i32>} : memref<256x1xf32, #tpu.memory_space<vmem>>, vector<32x1xf32>,
    }
    %c8_i32_2 = arith.constant 8 : i32
    %c0_i32_3 = arith.constant 0 : i32
    %5 = arith.cmpi eq, %arg1, %c0_i32_3 : i32
    %6 = arith.extui %5 : i1 to i32
    %c0_i32_4 = arith.constant 0 : i32
    %7 = arith.cmpi ne, %6, %c0_i32_4 : i32
    scf.if %7 {
      %c0 = arith.constant 0 : index
      %c0_5 = arith.constant 0 : index
      %8 = vector.load %arg8[%c0, %c0_5] : memref<256x1xf32, #tpu.memory_space<vmem>>, vector<256x1xf32>
      %c0_6 = arith.constant 0 : index
      %c0_7 = arith.constant 0 : index
      %9 = vector.load %arg9[%c0_6, %c0_7] : memref<256x1xf32, #tpu.memory_space<vmem>>, vector<256x1xf32>
      %cst_8 = arith.constant 1.000000e+00 : f32
      %10 = vector.broadcast %cst_8 : f32 to vector<256x1xf32>
      %11 = arith.subf %10, %8 : vector<256x1xf32>
      %12 = arith.subf %11, %9 : vector<256x1xf32>
      %c0_9 = arith.constant 0 : index
      %c0_10 = arith.constant 0 : index
      %13 = vector.load %arg4[%c0_9, %c0_10] : memref<256x4xf32, #tpu.memory_space<vmem>>, vector<256x1xf32>
      tpu.vector_store %arg4[%c0_9, %c0_10], %12 {strides = array<i32>} : memref<256x4xf32, #tpu.memory_space<vmem>>, vector<256x1xf32>,
      %c0_11 = arith.constant 0 : index
      %c1 = arith.constant 1 : index
      %14 = vector.load %arg4[%c0_11, %c1] : memref<256x4xf32, #tpu.memory_space<vmem>>, vector<256x1xf32>
      tpu.vector_store %arg4[%c0_11, %c1], %8 {strides = array<i32>} : memref<256x4xf32, #tpu.memory_space<vmem>>, vector<256x1xf32>,
      %c0_12 = arith.constant 0 : index
      %c2 = arith.constant 2 : index
      %15 = vector.load %arg4[%c0_12, %c2] : memref<256x4xf32, #tpu.memory_space<vmem>>, vector<256x1xf32>
      tpu.vector_store %arg4[%c0_12, %c2], %9 {strides = array<i32>} : memref<256x4xf32, #tpu.memory_space<vmem>>, vector<256x1xf32>,
      %c0_13 = arith.constant 0 : index
      %c0_14 = arith.constant 0 : index
      %16 = vector.load %arg6[%c0_13, %c0_14] : memref<256x1xf32, #tpu.memory_space<vmem>>, vector<256x1xf32>
      %c0_15 = arith.constant 0 : index
      %c3 = arith.constant 3 : index
      %17 = vector.load %arg4[%c0_15, %c3] : memref<256x4xf32, #tpu.memory_space<vmem>>, vector<256x1xf32>
      tpu.vector_store %arg4[%c0_15, %c3], %16 {strides = array<i32>} : memref<256x4xf32, #tpu.memory_space<vmem>>, vector<256x1xf32>,
      %c0_16 = arith.constant 0 : index
      %c0_17 = arith.constant 0 : index
      %18 = vector.load %arg7[%c0_16, %c0_17] : memref<256x1xi32, #tpu.memory_space<vmem>>, vector<256x1xi32>
      %c0_18 = arith.constant 0 : index
      %c0_19 = arith.constant 0 : index
      %19 = vector.load %arg5[%c0_18, %c0_19] : memref<256x1xi32, #tpu.memory_space<vmem>>, vector<256x1xi32>
      tpu.vector_store %arg5[%c0_18, %c0_19], %18 {strides = array<i32>} : memref<256x1xi32, #tpu.memory_space<vmem>>, vector<256x1xi32>,
    } else {
    }
    return
  }
  func.func @transform_0(%arg0: i32, %arg1: i32) -> (i32, i32) {
    %c0_i32 = arith.constant 0 : i32
    %c0_i32_0 = arith.constant 0 : i32
    return %arg0, %c0_i32 : i32, i32
  }
  func.func @transform_1(%arg0: i32, %arg1: i32) -> (i32, i32) {
    %c0_i32 = arith.constant 0 : i32
    %c0_i32_0 = arith.constant 0 : i32
    return %c0_i32, %arg1 : i32, i32
  }
  func.func @transform_2(%arg0: i32, %arg1: i32) -> (i32, i32) {
    %c0_i32 = arith.constant 0 : i32
    %c0_i32_0 = arith.constant 0 : i32
    return %arg0, %c0_i32 : i32, i32
  }
  func.func @transform_3(%arg0: i32, %arg1: i32) -> (i32, i32) {
    %c0_i32 = arith.constant 0 : i32
    %c0_i32_0 = arith.constant 0 : i32
    return %arg0, %c0_i32 : i32, i32
  }
}

</mosaic_0001>

<bundles_post_ra>
// kernel: tpu_custom_call.1
= control target key start
LH: loop header
LB: loop body
LE: loop exit
PB: predicated region body
PF: predicated region fallthrough
CT: control target
= control target key end

     0   :  { %vm8575_vm0 = vcmask 7168   ;;  %v3481_v0 = vmov inf   ;;  %v3482_v1 = vmov 0   ;;  %v3483_v2 = vmov 0.0   ;;  %s3702_s12 = smov 0   ;;  %s8467_s0 = inlined_call_operand.vmem [shape: f32[256,3], index: 0, kind: input, shape index: {}]   ;;  %s8468_s1 = inlined_call_operand.vmem [shape: f32[16,512], index: 1, kind: input, shape index: {}]   ;;  %s8469_s2 = inlined_call_operand.vmem [shape: f32[256,4], index: 2, kind: output, shape index: {0}]   ;;  %s8470_s3 = inlined_call_operand.vmem [shape: s32[256,1], index: 3, kind: output, shape index: {1}]  }
   0x1   :  { %18 = vst.msk [vmem:[#allocation2] sm:$0xff] %vm8575_vm0, %v3481_v0  ;;  %19 = vst.msk [vmem:[#allocation2 + $0x8] sm:$0xff] %vm8575_vm0, %v3481_v0 }
   0x2   :  { %20 = vst.msk [vmem:[#allocation2 + $0x10] sm:$0xff] %vm8575_vm0, %v3481_v0  ;;  %21 = vst.msk [vmem:[#allocation2 + $0x18] sm:$0xff] %vm8575_vm0, %v3481_v0 }
   0x3   :  { %22 = vst.msk [vmem:[#allocation2 + $0x20] sm:$0xff] %vm8575_vm0, %v3481_v0  ;;  %23 = vst.msk [vmem:[#allocation2 + $0x28] sm:$0xff] %vm8575_vm0, %v3481_v0 }
   0x4   :  { %24 = vst.msk [vmem:[#allocation2 + $0x30] sm:$0xff] %vm8575_vm0, %v3481_v0  ;;  %25 = vst.msk [vmem:[#allocation2 + $0x38] sm:$0xff] %vm8575_vm0, %v3481_v0 }
   0x5   :  { %26 = vst.msk [vmem:[#allocation2 + $0x40] sm:$0xff] %vm8575_vm0, %v3481_v0  ;;  %27 = vst.msk [vmem:[#allocation2 + $0x48] sm:$0xff] %vm8575_vm0, %v3481_v0 }
   0x6   :  { %28 = vst.msk [vmem:[#allocation2 + $0x50] sm:$0xff] %vm8575_vm0, %v3481_v0  ;;  %29 = vst.msk [vmem:[#allocation2 + $0x58] sm:$0xff] %vm8575_vm0, %v3481_v0 }
   0x7   :  { %30 = vst.msk [vmem:[#allocation2 + $0x60] sm:$0xff] %vm8575_vm0, %v3481_v0  ;;  %31 = vst.msk [vmem:[#allocation2 + $0x68] sm:$0xff] %vm8575_vm0, %v3481_v0 }
   0x8   :  { %32 = vst.msk [vmem:[#allocation2 + $0x70] sm:$0xff] %vm8575_vm0, %v3481_v0  ;;  %33 = vst.msk [vmem:[#allocation2 + $0x78] sm:$0xff] %vm8575_vm0, %v3481_v0 }
   0x9   :  { %34 = vst.msk [vmem:[#allocation2 + $0x80] sm:$0xff] %vm8575_vm0, %v3481_v0  ;;  %35 = vst.msk [vmem:[#allocation2 + $0x88] sm:$0xff] %vm8575_vm0, %v3481_v0 }
   0xa   :  { %36 = vst.msk [vmem:[#allocation2 + $0x90] sm:$0xff] %vm8575_vm0, %v3481_v0  ;;  %37 = vst.msk [vmem:[#allocation2 + $0x98] sm:$0xff] %vm8575_vm0, %v3481_v0 }
   0xb   :  { %38 = vst.msk [vmem:[#allocation2 + $0xa0] sm:$0xff] %vm8575_vm0, %v3481_v0  ;;  %39 = vst.msk [vmem:[#allocation2 + $0xa8] sm:$0xff] %vm8575_vm0, %v3481_v0 }
   0xc   :  { %40 = vst.msk [vmem:[#allocation2 + $0xb0] sm:$0xff] %vm8575_vm0, %v3481_v0  ;;  %41 = vst.msk [vmem:[#allocation2 + $0xb8] sm:$0xff] %vm8575_vm0, %v3481_v0 }
   0xd   :  { %42 = vst.msk [vmem:[#allocation2 + $0xc0] sm:$0xff] %vm8575_vm0, %v3481_v0  ;;  %43 = vst.msk [vmem:[#allocation2 + $0xc8] sm:$0xff] %vm8575_vm0, %v3481_v0 }
   0xe   :  { %44 = vst.msk [vmem:[#allocation2 + $0xd0] sm:$0xff] %vm8575_vm0, %v3481_v0  ;;  %45 = vst.msk [vmem:[#allocation2 + $0xd8] sm:$0xff] %vm8575_vm0, %v3481_v0 }
   0xf   :  { %46 = vst.msk [vmem:[#allocation2 + $0xe0] sm:$0xff] %vm8575_vm0, %v3481_v0  ;;  %47 = vst.msk [vmem:[#allocation2 + $0xe8] sm:$0xff] %vm8575_vm0, %v3481_v0 }
  0x10   :  { %48 = vst.msk [vmem:[#allocation2 + $0xf0] sm:$0xff] %vm8575_vm0, %v3481_v0  ;;  %49 = vst.msk [vmem:[#allocation2 + $0xf8] sm:$0xff] %vm8575_vm0, %v3481_v0 }
  0x11   :  { %50 = vst.msk [vmem:[#allocation3] sm:$0xff] %vm8575_vm0, %v3482_v1  ;;  %51 = vst.msk [vmem:[#allocation3 + $0x8] sm:$0xff] %vm8575_vm0, %v3482_v1 }
  0x12   :  { %52 = vst.msk [vmem:[#allocation3 + $0x10] sm:$0xff] %vm8575_vm0, %v3482_v1  ;;  %53 = vst.msk [vmem:[#allocation3 + $0x18] sm:$0xff] %vm8575_vm0, %v3482_v1 }
  0x13   :  { %54 = vst.msk [vmem:[#allocation3 + $0x20] sm:$0xff] %vm8575_vm0, %v3482_v1  ;;  %55 = vst.msk [vmem:[#allocation3 + $0x28] sm:$0xff] %vm8575_vm0, %v3482_v1 }
  0x14   :  { %56 = vst.msk [vmem:[#allocation3 + $0x30] sm:$0xff] %vm8575_vm0, %v3482_v1  ;;  %57 = vst.msk [vmem:[#allocation3 + $0x38] sm:$0xff] %vm8575_vm0, %v3482_v1 }
  0x15   :  { %58 = vst.msk [vmem:[#allocation3 + $0x40] sm:$0xff] %vm8575_vm0, %v3482_v1  ;;  %59 = vst.msk [vmem:[#allocation3 + $0x48] sm:$0xff] %vm8575_vm0, %v3482_v1 }
  0x16   :  { %60 = vst.msk [vmem:[#allocation3 + $0x50] sm:$0xff] %vm8575_vm0, %v3482_v1  ;;  %61 = vst.msk [vmem:[#allocation3 + $0x58] sm:$0xff] %vm8575_vm0, %v3482_v1 }
  0x17   :  { %62 = vst.msk [vmem:[#allocation3 + $0x60] sm:$0xff] %vm8575_vm0, %v3482_v1  ;;  %63 = vst.msk [vmem:[#allocation3 + $0x68] sm:$0xff] %vm8575_vm0, %v3482_v1 }
  0x18   :  { %64 = vst.msk [vmem:[#allocation3 + $0x70] sm:$0xff] %vm8575_vm0, %v3482_v1  ;;  %65 = vst.msk [vmem:[#allocation3 + $0x78] sm:$0xff] %vm8575_vm0, %v3482_v1 }
  0x19   :  { %66 = vst.msk [vmem:[#allocation3 + $0x80] sm:$0xff] %vm8575_vm0, %v3482_v1  ;;  %67 = vst.msk [vmem:[#allocation3 + $0x88] sm:$0xff] %vm8575_vm0, %v3482_v1 }
  0x1a   :  { %68 = vst.msk [vmem:[#allocation3 + $0x90] sm:$0xff] %vm8575_vm0, %v3482_v1  ;;  %69 = vst.msk [vmem:[#allocation3 + $0x98] sm:$0xff] %vm8575_vm0, %v3482_v1 }
  0x1b   :  { %70 = vst.msk [vmem:[#allocation3 + $0xa0] sm:$0xff] %vm8575_vm0, %v3482_v1  ;;  %71 = vst.msk [vmem:[#allocation3 + $0xa8] sm:$0xff] %vm8575_vm0, %v3482_v1 }
  0x1c   :  { %72 = vst.msk [vmem:[#allocation3 + $0xb0] sm:$0xff] %vm8575_vm0, %v3482_v1  ;;  %73 = vst.msk [vmem:[#allocation3 + $0xb8] sm:$0xff] %vm8575_vm0, %v3482_v1 }
  0x1d   :  { %74 = vst.msk [vmem:[#allocation3 + $0xc0] sm:$0xff] %vm8575_vm0, %v3482_v1  ;;  %75 = vst.msk [vmem:[#allocation3 + $0xc8] sm:$0xff] %vm8575_vm0, %v3482_v1 }
  0x1e   :  { %76 = vst.msk [vmem:[#allocation3 + $0xd0] sm:$0xff] %vm8575_vm0, %v3482_v1  ;;  %77 = vst.msk [vmem:[#allocation3 + $0xd8] sm:$0xff] %vm8575_vm0, %v3482_v1 }
  0x1f   :  { %78 = vst.msk [vmem:[#allocation3 + $0xe0] sm:$0xff] %vm8575_vm0, %v3482_v1  ;;  %79 = vst.msk [vmem:[#allocation3 + $0xe8] sm:$0xff] %vm8575_vm0, %v3482_v1 }
  0x20   :  { %80 = vst.msk [vmem:[#allocation3 + $0xf0] sm:$0xff] %vm8575_vm0, %v3482_v1  ;;  %81 = vst.msk [vmem:[#allocation3 + $0xf8] sm:$0xff] %vm8575_vm0, %v3482_v1 }
  0x21   :  { %82 = vst.msk [vmem:[#allocation4] sm:$0xff] %vm8575_vm0, %v3483_v2  ;;  %83 = vst.msk [vmem:[#allocation4 + $0x8] sm:$0xff] %vm8575_vm0, %v3483_v2 }
  0x22   :  { %84 = vst.msk [vmem:[#allocation4 + $0x10] sm:$0xff] %vm8575_vm0, %v3483_v2  ;;  %85 = vst.msk [vmem:[#allocation4 + $0x18] sm:$0xff] %vm8575_vm0, %v3483_v2 }
  0x23   :  { %86 = vst.msk [vmem:[#allocation4 + $0x20] sm:$0xff] %vm8575_vm0, %v3483_v2  ;;  %87 = vst.msk [vmem:[#allocation4 + $0x28] sm:$0xff] %vm8575_vm0, %v3483_v2 }
  0x24   :  { %88 = vst.msk [vmem:[#allocation4 + $0x30] sm:$0xff] %vm8575_vm0, %v3483_v2  ;;  %89 = vst.msk [vmem:[#allocation4 + $0x38] sm:$0xff] %vm8575_vm0, %v3483_v2 }
  0x25   :  { %90 = vst.msk [vmem:[#allocation4 + $0x40] sm:$0xff] %vm8575_vm0, %v3483_v2  ;;  %91 = vst.msk [vmem:[#allocation4 + $0x48] sm:$0xff] %vm8575_vm0, %v3483_v2 }
  0x26   :  { %92 = vst.msk [vmem:[#allocation4 + $0x50] sm:$0xff] %vm8575_vm0, %v3483_v2  ;;  %93 = vst.msk [vmem:[#allocation4 + $0x58] sm:$0xff] %vm8575_vm0, %v3483_v2 }
  0x27   :  { %94 = vst.msk [vmem:[#allocation4 + $0x60] sm:$0xff] %vm8575_vm0, %v3483_v2  ;;  %95 = vst.msk [vmem:[#allocation4 + $0x68] sm:$0xff] %vm8575_vm0, %v3483_v2 }
  0x28   :  { %96 = vst.msk [vmem:[#allocation4 + $0x70] sm:$0xff] %vm8575_vm0, %v3483_v2  ;;  %97 = vst.msk [vmem:[#allocation4 + $0x78] sm:$0xff] %vm8575_vm0, %v3483_v2 }
  0x29   :  { %98 = vst.msk [vmem:[#allocation4 + $0x80] sm:$0xff] %vm8575_vm0, %v3483_v2  ;;  %99 = vst.msk [vmem:[#allocation4 + $0x88] sm:$0xff] %vm8575_vm0, %v3483_v2 }
  0x2a   :  { %100 = vst.msk [vmem:[#allocation4 + $0x90] sm:$0xff] %vm8575_vm0, %v3483_v2  ;;  %101 = vst.msk [vmem:[#allocation4 + $0x98] sm:$0xff] %vm8575_vm0, %v3483_v2 }
  0x2b   :  { %102 = vst.msk [vmem:[#allocation4 + $0xa0] sm:$0xff] %vm8575_vm0, %v3483_v2  ;;  %103 = vst.msk [vmem:[#allocation4 + $0xa8] sm:$0xff] %vm8575_vm0, %v3483_v2 }
  0x2c   :  { %104 = vst.msk [vmem:[#allocation4 + $0xb0] sm:$0xff] %vm8575_vm0, %v3483_v2  ;;  %105 = vst.msk [vmem:[#allocation4 + $0xb8] sm:$0xff] %vm8575_vm0, %v3483_v2 }
  0x2d   :  { %106 = vst.msk [vmem:[#allocation4 + $0xc0] sm:$0xff] %vm8575_vm0, %v3483_v2  ;;  %107 = vst.msk [vmem:[#allocation4 + $0xc8] sm:$0xff] %vm8575_vm0, %v3483_v2 }
  0x2e   :  { %108 = vst.msk [vmem:[#allocation4 + $0xd0] sm:$0xff] %vm8575_vm0, %v3483_v2  ;;  %109 = vst.msk [vmem:[#allocation4 + $0xd8] sm:$0xff] %vm8575_vm0, %v3483_v2 }
  0x2f   :  { %110 = vst.msk [vmem:[#allocation4 + $0xe0] sm:$0xff] %vm8575_vm0, %v3483_v2  ;;  %111 = vst.msk [vmem:[#allocation4 + $0xe8] sm:$0xff] %vm8575_vm0, %v3483_v2 }
  0x30   :  { %112 = vst.msk [vmem:[#allocation4 + $0xf0] sm:$0xff] %vm8575_vm0, %v3483_v2  ;;  %113 = vst.msk [vmem:[#allocation4 + $0xf8] sm:$0xff] %vm8575_vm0, %v3483_v2 }
  0x31   :  { %114 = vst.msk [vmem:[#allocation5] sm:$0xff] %vm8575_vm0, %v3483_v2  ;;  %115 = vst.msk [vmem:[#allocation5 + $0x8] sm:$0xff] %vm8575_vm0, %v3483_v2 }
  0x32   :  { %116 = vst.msk [vmem:[#allocation5 + $0x10] sm:$0xff] %vm8575_vm0, %v3483_v2  ;;  %117 = vst.msk [vmem:[#allocation5 + $0x18] sm:$0xff] %vm8575_vm0, %v3483_v2 }
  0x33   :  { %118 = vst.msk [vmem:[#allocation5 + $0x20] sm:$0xff] %vm8575_vm0, %v3483_v2  ;;  %119 = vst.msk [vmem:[#allocation5 + $0x28] sm:$0xff] %vm8575_vm0, %v3483_v2 }
  0x34   :  { %120 = vst.msk [vmem:[#allocation5 + $0x30] sm:$0xff] %vm8575_vm0, %v3483_v2  ;;  %121 = vst.msk [vmem:[#allocation5 + $0x38] sm:$0xff] %vm8575_vm0, %v3483_v2 }
  0x35   :  { %122 = vst.msk [vmem:[#allocation5 + $0x40] sm:$0xff] %vm8575_vm0, %v3483_v2  ;;  %123 = vst.msk [vmem:[#allocation5 + $0x48] sm:$0xff] %vm8575_vm0, %v3483_v2 }
  0x36   :  { %124 = vst.msk [vmem:[#allocation5 + $0x50] sm:$0xff] %vm8575_vm0, %v3483_v2  ;;  %125 = vst.msk [vmem:[#allocation5 + $0x58] sm:$0xff] %vm8575_vm0, %v3483_v2 }
  0x37   :  { %126 = vst.msk [vmem:[#allocation5 + $0x60] sm:$0xff] %vm8575_vm0, %v3483_v2  ;;  %127 = vst.msk [vmem:[#allocation5 + $0x68] sm:$0xff] %vm8575_vm0, %v3483_v2 }
  0x38   :  { %128 = vst.msk [vmem:[#allocation5 + $0x70] sm:$0xff] %vm8575_vm0, %v3483_v2  ;;  %129 = vst.msk [vmem:[#allocation5 + $0x78] sm:$0xff] %vm8575_vm0, %v3483_v2 }
  0x39   :  { %130 = vst.msk [vmem:[#allocation5 + $0x80] sm:$0xff] %vm8575_vm0, %v3483_v2  ;;  %131 = vst.msk [vmem:[#allocation5 + $0x88] sm:$0xff] %vm8575_vm0, %v3483_v2 }
  0x3a   :  { %132 = vst.msk [vmem:[#allocation5 + $0x90] sm:$0xff] %vm8575_vm0, %v3483_v2  ;;  %133 = vst.msk [vmem:[#allocation5 + $0x98] sm:$0xff] %vm8575_vm0, %v3483_v2 }
  0x3b   :  { %134 = vst.msk [vmem:[#allocation5 + $0xa0] sm:$0xff] %vm8575_vm0, %v3483_v2  ;;  %135 = vst.msk [vmem:[#allocation5 + $0xa8] sm:$0xff] %vm8575_vm0, %v3483_v2 }
  0x3c   :  { %136 = vst.msk [vmem:[#allocation5 + $0xb0] sm:$0xff] %vm8575_vm0, %v3483_v2  ;;  %137 = vst.msk [vmem:[#allocation5 + $0xb8] sm:$0xff] %vm8575_vm0, %v3483_v2 }
  0x3d   :  { %138 = vst.msk [vmem:[#allocation5 + $0xc0] sm:$0xff] %vm8575_vm0, %v3483_v2  ;;  %139 = vst.msk [vmem:[#allocation5 + $0xc8] sm:$0xff] %vm8575_vm0, %v3483_v2 }
  0x3e   :  { %140 = vst.msk [vmem:[#allocation5 + $0xd0] sm:$0xff] %vm8575_vm0, %v3483_v2  ;;  %141 = vst.msk [vmem:[#allocation5 + $0xd8] sm:$0xff] %vm8575_vm0, %v3483_v2 }
  0x3f   :  { %142 = vst.msk [vmem:[#allocation5 + $0xe0] sm:$0xff] %vm8575_vm0, %v3483_v2  ;;  %143 = vst.msk [vmem:[#allocation5 + $0xe8] sm:$0xff] %vm8575_vm0, %v3483_v2 }
  0x40   :  { %144 = vst.msk [vmem:[#allocation5 + $0xf0] sm:$0xff] %vm8575_vm0, %v3483_v2  ;;  %145 = vst.msk [vmem:[#allocation5 + $0xf8] sm:$0xff] %vm8575_vm0, %v3483_v2 }
  0x41 LB: > { %v3484_v3 = vmov 0   ;;  %s3708_s13 = sshll.u32 %s3479_s12, 5  ;;  %v3485_v8 = vmov 1   ;;  %v3486_v9 = vmov 2   ;;  %v8471_v10 = vlaneseq  ;;  %v179_v15 = vld [vmem:[%s8468_s1] sm:$0xff]  ;;  %v808_v16 = vld [vmem:[%s8468_s1 + $0x8] sm:$0xff]  ;;  %s3479_s12 = sphi %s3702_s12, %s152_s12  }
  0x42   : > { %3338 = vset.pattern.permute.xlu1 %v3484_v3  ;;  %3337 = vset.pattern.permute.xlu0 %v3484_v3  ;;  %s154_s16 = scalar_lea.vmem %s8467_s0, %s3708_s13  ;;  %v1384_v17 = vld [vmem:[%s8468_s1 + $0x10] sm:$0xff]  ;;  %v1960_v18 = vld [vmem:[%s8468_s1 + $0x18] sm:$0xff]  ;;  %v180_v49 = vld [vmem:[%s8468_s1 + $0x20] sm:$0xff]  ;;  %s6645_s10 = scalar_lea.vmem [#allocation2], %s3708_s13 }
  0x43   : > { %v157_v4 = vld [vmem:[%s154_s16 + $0x10] sm:$0xff]  ;;  %v155_v5 = vld [vmem:[%s154_s16] sm:$0xff]  ;;  %v158_v6 = vld [vmem:[%s154_s16 + $0x18] sm:$0xff]  ;;  %v202_v11 = vshrl.u32 %v8471_v10, 7  ;;  %s7125_s11 = scalar_lea.vmem [#allocation3], %s3708_s13  ;;  %s7296_s14 = scalar_lea.vmem [#allocation4], %s3708_s13 }
  0x44   : > { %193 = vperm.xlu1 %3338, %v157_v4   ;;  %183 = vperm.xlu0 %3337, %v155_v5   ;;  %v156_v7 = vld [vmem:[%s154_s16 + $0x8] sm:$0xff]  ;;  %v1385_v58 = vld [vmem:[%s8468_s1 + $0x30] sm:$0xff]  ;;  %s7304_s15 = scalar_lea.vmem [#allocation5], %s3708_s13  ;;  %s152_s12 = sadd.s32 1, %s3479_s12  }
  0x45   : > { %v3715_v12 = vsub.s32 0, %v202_v11  ;;  %v3717_v13 = vsub.s32 3, %v202_v11  ;;  %v291_v14 = vsub.s32 6, %v202_v11  ;;  %v3731_v19 = vsub.s32 1, %v202_v11  ;;  %v809_v54 = vld [vmem:[%s8468_s1 + $0x28] sm:$0xff]  ;;  %p149_p0 = scmp.ge.s32.totalorder %s152_s12, 8  }
  0x46   : > { %v267_v25 = vsub.s32 4, %v202_v11  ;;  %v299_v26 = vsub.s32 7, %v202_v11  ;;  %v3773_v38 = vsub.s32 2, %v202_v11  ;;  %v279_v44 = vsub.s32 5, %v202_v11  ;;  %s3487_s13 = smov (%p149_p0), 1   ;;  %s3488_s21 = smov (%p149_p0), 2  }
  0x47   : > { %8638 = vst [vmem:[#allocation6_spill] sm:$0xff] %v3717_v13  ;;  %8639 = vst [vmem:[#allocation7_spill] sm:$0xff] %v3731_v19  ;;  %v3734_v20 = vrot.slane %v179_v15, %v3715_v12  ;;  %v3737_v21 = vrot.slane %v179_v15, %v3717_v13  ;;  %v3739_v22 = vrot.slane %v179_v15, %v291_v14 }
  0x48   : > { %198 = vperm.xlu1 %3338, %v158_v6   ;;  %188 = vperm.xlu0 %3337, %v156_v7   ;;  %v3742_v23 = vrot.slane %v808_v16, %v3715_v12  ;;  %v3745_v24 = vrot.slane %v808_v16, %v3717_v13  ;;  %v3747_v27 = vrot.slane %v808_v16, %v291_v14 }
  0x49   : > { %v1389_v28 = vrot.slane %v1384_v17, %v3715_v12  ;;  %v3751_v29 = vrot.slane %v1384_v17, %v3717_v13  ;;  %v1965_v30 = vrot.slane %v1960_v18, %v3715_v12  ;;  %v3754_v31 = vrot.slane %v1384_v17, %v291_v14  ;;  %8646 = vst [vmem:[#allocation14_spill] sm:$0xff] %v3773_v38 }
  0x4a   : > { %8640 = vst [vmem:[#allocation8_spill] sm:$0xff] %v3745_v24  ;;  %8641 = vst [vmem:[#allocation9_spill] sm:$0xff] %v3747_v27  ;;  %v3757_v32 = vrot.slane %v1960_v18, %v3717_v13  ;;  %v3759_v33 = vrot.slane %v1960_v18, %v291_v14  ;;  %v3762_v34 = vrot.slane %v179_v15, %v3731_v19 }
  0x4b   : > { %8642 = vst [vmem:[#allocation10_spill] sm:$0xff] %v3751_v29  ;;  %8643 = vst [vmem:[#allocation11_spill] sm:$0xff] %v3754_v31  ;;  %v3765_v35 = vrot.slane %v808_v16, %v3731_v19  ;;  %v3768_v36 = vrot.slane %v1384_v17, %v3731_v19  ;;  %v3771_v37 = vrot.slane %v1960_v18, %v3731_v19 }
  0x4c   : > { %3340 = vset.pattern.permute.xlu1 %v3485_v8  ;;  %3339 = vset.pattern.permute.xlu0 %v3485_v8  ;;  %8644 = vst [vmem:[#allocation12_spill] sm:$0xff] %v3757_v32  ;;  %8645 = vst [vmem:[#allocation13_spill] sm:$0xff] %v3759_v33  ;;  %v3775_v41 = vrot.slane %v179_v15, %v267_v25  ;;  %v3777_v42 = vrot.slane %v179_v15, %v299_v26 }
  0x4d   : > { %214 = vperm.xlu1 %3340, %v156_v7   ;;  %210 = vperm.xlu0 %3339, %v155_v5   ;;  %v3779_v43 = vrot.slane %v808_v16, %v267_v25  ;;  %v3785_v47 = vrot.slane %v808_v16, %v299_v26  ;;  %v3787_v48 = vrot.slane %v1384_v17, %v267_v25 }
  0x4e   : > { %v3796_v52 = vrot.slane %v1384_v17, %v299_v26  ;;  %v3798_v53 = vrot.slane %v1960_v18, %v267_v25  ;;  %v3803_v55 = vrot.slane %v1960_v18, %v299_v26  ;;  %v3806_v56 = vrot.slane %v179_v15, %v3773_v38 }
  0x4f   : > { %8647 = vst [vmem:[#allocation15_spill] sm:$0xff] %v3779_v43  ;;  %8650 = vst [vmem:[#allocation18_spill] sm:$0xff] %v3785_v47  ;;  %v3809_v57 = vrot.slane %v808_v16, %v3773_v38  ;;  %v3815_v59 = vrot.slane %v1384_v17, %v3773_v38  ;;  %v3817_v61 = vrot.slane %v179_v15, %v279_v44 }
  0x50   : > { %8651 = vst [vmem:[#allocation19_spill] sm:$0xff] %v3787_v48  ;;  %8654 = vst [vmem:[#allocation22_spill] sm:$0xff] %v3796_v52  ;;  %v3820_v62 = vrot.slane %v180_v49, %v3715_v12  ;;  %v3823_v63 = vrot.slane %v180_v49, %v3773_v38  ;;  %v3826_v0 = vrot.slane %v1960_v18, %v3773_v38 }
  0x51   : > { %218 = vperm.xlu1 %3340, %v157_v4   ;;  %222 = vperm.xlu0 %3339, %v158_v6   ;;  %8655 = vst [vmem:[#allocation23_spill] sm:$0xff] %v3798_v53  ;;  %8656 = vst [vmem:[#allocation24_spill] sm:$0xff] %v3803_v55  ;;  %v3830_v2 = vrot.slane %v808_v16, %v279_v44  ;;  %v3833_v3 = vrot.slane %v809_v54, %v3715_v12 }
  0x52   : > { %8657 = vst [vmem:[#allocation25_spill] sm:$0xff] %v3806_v56  ;;  %8658 = vst [vmem:[#allocation26_spill] sm:$0xff] %v3809_v57  ;;  %v3847_v8 = vrot.slane %v1385_v58, %v3715_v12  ;;  %v3852_v11 = vrot.slane %v1960_v18, %v279_v44  ;;  %v3881_v58 = vrot.slane %v180_v49, %v3731_v19 }
  0x53   : > { %8659 = vst [vmem:[#allocation27_spill] sm:$0xff] %v3817_v61  ;;  %8660 = vst [vmem:[#allocation28_spill] sm:$0xff] %v3820_v62  ;;  %v3887_v10 = vrot.slane %v809_v54, %v3731_v19 }
  0x54   : > { %8661 = vst [vmem:[#allocation29_spill] sm:$0xff] %v3823_v63  ;;  %8662 = vst [vmem:[#allocation30_spill] sm:$0xff] %v3830_v2 }
  0x55   : > { %3341 = vset.pattern.permute.xlu1 %v3486_v9  ;;  %3342 = vset.pattern.permute.xlu0 %v3486_v9  ;;  %8663 = vst [vmem:[#allocation31_spill] sm:$0xff] %v3833_v3  ;;  %8668 = vst [vmem:[#allocation36_spill] sm:$0xff] %v3847_v8  ;;  %v1961_v9 = vld [vmem:[%s8468_s1 + $0x38] sm:$0xff] }
  0x56   : > { %234 = vperm.xlu1 %3341, %v155_v5   ;;  %238 = vperm.xlu0 %3342, %v156_v7   ;;  %v3838_v5 = vrot.slane %v1384_v17, %v279_v44  ;;  %8669 = vst [vmem:[#allocation37_spill] sm:$0xff] %v3852_v11  ;;  %v3878_v44 = vrot.slane %v1961_v9, %v3715_v12  ;;  %8679 = vst [vmem:[#allocation47_spill] sm:$0xff] %v3881_v58 }
  0x57   : > { %8681 = vst [vmem:[#allocation49_spill] sm:$0xff] %v3887_v10  ;;  %v3903_v9 = vrot.slane %v809_v54, %v3717_v13 }
  0x58   : > { %8665 = vst [vmem:[#allocation33_spill] sm:$0xff] %v3838_v5  ;;  %8678 = vst [vmem:[#allocation46_spill] sm:$0xff] %v3878_v44 }
  0x59   : > { %8685 = vst [vmem:[#allocation53_spill] sm:$0xff] %v3903_v9 }
  0x5a   : > { %242 = vperm.xlu1 %3341, %v157_v4   ;;  %v3836_v4 = vrot.slane %v809_v54, %v3773_v38 }
  0x5c   : > { %8664 = vst [vmem:[#allocation32_spill] sm:$0xff] %v3836_v4 }
  0x5e   : > { %246 = vperm.xlu1 %3341, %v158_v6  }
  0xc3   : > { %v194_v39 = vpop.permute.xlu1 %193  ;;  %v184_v40 = vpop.permute.xlu0 %183 }
  0xc4   : > { %v3781_v45 = vsub.f32 %v194_v39, %v1389_v28  ;;  %v3783_v46 = vsub.f32 %v194_v39, %v1965_v30  ;;  %v3792_v50 = vsub.f32 %v184_v40, %v1389_v28  ;;  %v3794_v51 = vsub.f32 %v184_v40, %v1965_v30 }
  0xc5   : > { %v3841_v6 = vsub.f32 %v194_v39, %v3734_v20  ;;  %v3844_v7 = vsub.f32 %v194_v39, %v3742_v23  ;;  %v3865_v25 = vsub.f32 %v184_v40, %v3734_v20  ;;  %v3898_v12 = vsub.f32 %v184_v40, %v3742_v23 }
  0xc6   : > { %8648 = vst [vmem:[#allocation16_spill] sm:$0xff] %v3781_v45  ;;  %8649 = vst [vmem:[#allocation17_spill] sm:$0xff] %v3783_v46  ;;  %v3923_v40 = vmul.f32 %v3757_v32, %v3783_v46  ;;  %v3927_v54 = vmul.f32 %v3759_v33, %v3783_v46  ;;  %v1414_v61 = vmul.f32 %v3751_v29, %v3792_v50 }
  0xc7   : > { %8652 = vst [vmem:[#allocation20_spill] sm:$0xff] %v3792_v50  ;;  %8653 = vst [vmem:[#allocation21_spill] sm:$0xff] %v3794_v51  ;;  %v199_v60 = vpop.permute.xlu1 %198  ;;  %v3828_v1 = vpop.permute.xlu0 %188  ;;  %v3891_v38 = vmul.f32 %v3737_v21, %v3841_v6  ;;  %v3911_v19 = vmul.f32 %v3747_v27, %v3844_v7  ;;  %v3981_v62 = vmul.f32 %v3739_v22, %v3865_v25 }
  0xc8   : > { %8666 = vst [vmem:[#allocation34_spill] sm:$0xff] %v3841_v6  ;;  %8667 = vst [vmem:[#allocation35_spill] sm:$0xff] %v3844_v7  ;;  %v3855_v14 = vsub.f32 %v199_v60, %v3734_v20  ;;  %v3858_v15 = vsub.f32 %v199_v60, %v3742_v23  ;;  %v3860_v16 = vsub.f32 %v199_v60, %v1389_v28 }
  0xc9   : > { %v3862_v17 = vsub.f32 %v199_v60, %v1965_v30  ;;  %8674 = vst [vmem:[#allocation42_spill] sm:$0xff] %v3865_v25  ;;  %v3869_v26 = vsub.f32 %v3828_v1, %v3742_v23  ;;  %v3872_v18 = vsub.f32 %v3828_v1, %v1389_v28  ;;  %v3875_v39 = vsub.f32 %v3828_v1, %v1965_v30 }
  0xca   : > { %8670 = vst [vmem:[#allocation38_spill] sm:$0xff] %v3855_v14  ;;  %8671 = vst [vmem:[#allocation39_spill] sm:$0xff] %v3858_v15  ;;  %v3884_v60 = vrot.slane %v180_v49, %v3717_v13  ;;  %v3895_v28 = vmul.f32 %v3739_v22, %v3841_v6  ;;  %v3907_v49 = vmul.f32 %v3745_v24, %v3844_v7 }
  0xcb   : > { %8672 = vst [vmem:[#allocation40_spill] sm:$0xff] %v3860_v16  ;;  %8673 = vst [vmem:[#allocation41_spill] sm:$0xff] %v3862_v17  ;;  %v3915_v6 = vmul.f32 %v3751_v29, %v3781_v45  ;;  %v3919_v23 = vmul.f32 %v3754_v31, %v3781_v45  ;;  %v3931_v13 = vmul.f32 %v3737_v21, %v3865_v25 }
  0xcc   : > { %8675 = vst [vmem:[#allocation43_spill] sm:$0xff] %v3869_v26  ;;  %8676 = vst [vmem:[#allocation44_spill] sm:$0xff] %v3872_v18  ;;  %v3900_v30 = vpop.permute.xlu1 %214  ;;  %v839_v7 = vmul.f32 %v3745_v24, %v3869_v26  ;;  %v3935_v9 = vpop.permute.xlu0 %210  ;;  %v871_v45 = vmul.f32 %v3747_v27, %v3869_v26  ;;  %v1991_v26 = vmul.f32 %v3757_v32, %v3875_v39 }
  0xcd   : > { %8677 = vst [vmem:[#allocation45_spill] sm:$0xff] %v3875_v39  ;;  %8680 = vst [vmem:[#allocation48_spill] sm:$0xff] %v3884_v60  ;;  %v3941_v4 = vsub.f32 %v3900_v30, %v3765_v35  ;;  %v3945_v46 = vsub.f32 %v3900_v30, %v3768_v36  ;;  %v3949_v10 = vsub.f32 %v3900_v30, %v3771_v37 }
  0xce   : > { %8682 = vst [vmem:[#allocation50_spill] sm:$0xff] %v3891_v38  ;;  %8683 = vst [vmem:[#allocation51_spill] sm:$0xff] %v3895_v28  ;;  %v1415_v28 = vmul.f32 %v3751_v29, %v3872_v18  ;;  %v1447_v60 = vmul.f32 %v3754_v31, %v3872_v18  ;;  %v2023_v63 = vmul.f32 %v3759_v33, %v3875_v39 }
  0xcf   : > { %8684 = vst [vmem:[#allocation52_spill] sm:$0xff] %v3898_v12  ;;  %8686 = vst [vmem:[#allocation54_spill] sm:$0xff] %v3931_v13  ;;  %v847_v58 = vmul.f32 %v3779_v43, %v3941_v4  ;;  %v879_v3 = vmul.f32 %v3785_v47, %v3941_v4  ;;  %v3965_v2 = vsub.f32 %v3935_v9, %v3768_v36 }
  0xd0   : > { %8687 = vst [vmem:[#allocation55_spill] sm:$0xff] %v3941_v4  ;;  %8688 = vst [vmem:[#allocation56_spill] sm:$0xff] %v3945_v46  ;;  %v3969_v57 = vsub.f32 %v3935_v9, %v3771_v37  ;;  %v1423_v18 = vmul.f32 %v3787_v48, %v3945_v46  ;;  %v1455_v39 = vmul.f32 %v3796_v52, %v3945_v46 }
  0xd1   : > { %8689 = vst [vmem:[#allocation57_spill] sm:$0xff] %v3949_v10  ;;  %8690 = vst [vmem:[#allocation58_spill] sm:$0xff] %v3965_v2  ;;  %v1999_v38 = vmul.f32 %v3798_v53, %v3949_v10  ;;  %v2031_v4 = vmul.f32 %v3803_v55, %v3949_v10  ;;  %v3985_v13 = vadd.f32 %v847_v58, %v839_v7  ;;  %v223_v58 = vpop.permute.xlu0 %222 }
  0xd2   : > { %8691 = vst [vmem:[#allocation59_spill] sm:$0xff] %v3969_v57  ;;  %v3987_v56 = vadd.f32 %v879_v3, %v871_v45  ;;  %v3989_v44 = vadd.f32 %v1423_v18, %v1415_v28  ;;  %v3991_v46 = vadd.f32 %v1455_v39, %v1447_v60  ;;  %v1446_v10 = vmul.f32 %v3754_v31, %v3792_v50 }
  0xd3   : > { %v3993_v11 = vadd.f32 %v1999_v38, %v1991_v26  ;;  %v3995_v8 = vadd.f32 %v2031_v4, %v2023_v63  ;;  %v1990_v25 = vmul.f32 %v3757_v32, %v3794_v51  ;;  %v2022_v7 = vmul.f32 %v3759_v33, %v3794_v51  ;;  %v219_v26 = vpop.permute.xlu1 %218 }
  0xd4   : > { %8692 = vst [vmem:[#allocation60_spill] sm:$0xff] %v3987_v56  ;;  %v4005_v45 = vsub.f32 %v3828_v1, %v3734_v20  ;;  %v1422_v3 = vmul.f32 %v3787_v48, %v3965_v2  ;;  %v1454_v38 = vmul.f32 %v3796_v52, %v3965_v2  ;;  %v1998_v63 = vmul.f32 %v3798_v53, %v3969_v57 }
  0xd5   : > { %v2030_v4 = vmul.f32 %v3803_v55, %v3969_v57  ;;  %v264_v18 = vmul.f32 %v3737_v21, %v3855_v14  ;;  %v296_v20 = vmul.f32 %v3739_v22, %v3855_v14  ;;  %v841_v1 = vmul.f32 %v3745_v24, %v3858_v15 }
  0xd6   : > { %v873_v39 = vmul.f32 %v3747_v27, %v3858_v15  ;;  %v4023_v60 = vadd.f32 %v1422_v3, %v1414_v61  ;;  %v4025_v28 = vadd.f32 %v1454_v38, %v1446_v10  ;;  %v4027_v51 = vadd.f32 %v1998_v63, %v1990_v25 }
  0xd7   : > { %v4029_v57 = vadd.f32 %v2030_v4, %v2022_v7  ;;  %v1417_v2 = vmul.f32 %v3751_v29, %v3860_v16  ;;  %v4034_v50 = vsub.f32 %v219_v26, %v3765_v35  ;;  %v4037_v14 = vsub.f32 %v219_v26, %v3768_v36 }
  0xd8   : > { %v4040_v15 = vsub.f32 %v219_v26, %v3771_v37  ;;  %v1449_v10 = vmul.f32 %v3754_v31, %v3860_v16  ;;  %v4045_v61 = vsub.f32 %v223_v58, %v3765_v35  ;;  %v4048_v25 = vsub.f32 %v223_v58, %v3768_v36 }
  0xd9   : > { %8693 = vst [vmem:[#allocation61_spill] sm:$0xff] %v4034_v50  ;;  %8694 = vst [vmem:[#allocation62_spill] sm:$0xff] %v4037_v14  ;;  %v4051_v7 = vsub.f32 %v223_v58, %v3771_v37  ;;  %v1993_v3 = vmul.f32 %v3757_v32, %v3862_v17  ;;  %v848_v38 = vmul.f32 %v3779_v43, %v4034_v50 }
  0xda   : > { %8695 = vst [vmem:[#allocation63_spill] sm:$0xff] %v4040_v15  ;;  %8696 = vst [vmem:[#allocation64_spill] sm:$0xff] %v4045_v61  ;;  %v880_v63 = vmul.f32 %v3785_v47, %v4034_v50  ;;  %v4060_v4 = vsub.f32 %v223_v58, %v3762_v34  ;;  %v1424_v16 = vmul.f32 %v3787_v48, %v4037_v14 }
  0xdb   : > { %8697 = vst [vmem:[#allocation65_spill] sm:$0xff] %v4048_v25  ;;  %8698 = vst [vmem:[#allocation66_spill] sm:$0xff] %v4051_v7  ;;  %v1456_v36 = vmul.f32 %v3796_v52, %v4037_v14  ;;  %v2000_v37 = vmul.f32 %v3798_v53, %v4040_v15  ;;  %v2032_v32 = vmul.f32 %v3803_v55, %v4040_v15 }
  0xdc   : > { %8699 = vst [vmem:[#allocation67_spill] sm:$0xff] %v4060_v4  ;;  %v2025_v29 = vmul.f32 %v3759_v33, %v3862_v17  ;;  %v4074_v31 = vsub.f32 %v3900_v30, %v3762_v34  ;;  %v4077_v58 = vadd.f32 %v848_v38, %v3907_v49  ;;  %v4080_v50 = vadd.f32 %v880_v63, %v3911_v19 }
  0xdd   : > { %v4083_v14 = vadd.f32 %v1424_v16, %v3915_v6  ;;  %v4086_v56 = vadd.f32 %v1456_v36, %v3919_v23  ;;  %v4089_v15 = vadd.f32 %v2000_v37, %v3923_v40  ;;  %v4092_v17 = vadd.f32 %v2032_v32, %v3927_v54  ;;  %v235_v54 = vpop.permute.xlu1 %234 }
  0xde   : > { %8700 = vst [vmem:[#allocation68_spill] sm:$0xff] %v4077_v58  ;;  %8701 = vst [vmem:[#allocation69_spill] sm:$0xff] %v4080_v50  ;;  %v272_v30 = vmul.f32 %v3775_v41, %v4060_v4  ;;  %v304_v49 = vmul.f32 %v3777_v42, %v4060_v4  ;;  %v849_v19 = vmul.f32 %v3779_v43, %v4045_v61  ;;  %v8714_v58 = vld [vmem:[#allocation25_spill] sm:$0xff] }
  0xdf   : > { %v881_v6 = vmul.f32 %v3785_v47, %v4045_v61  ;;  %v1425_v16 = vmul.f32 %v3787_v48, %v4048_v25  ;;  %v1457_v23 = vmul.f32 %v3796_v52, %v4048_v25  ;;  %v2001_v32 = vmul.f32 %v3798_v53, %v4051_v7  ;;  %v239_v53 = vpop.permute.xlu0 %238 }
  0xe0   : > { %v2033_v40 = vmul.f32 %v3803_v55, %v4051_v7  ;;  %v4110_v38 = vadd.f32 %v272_v30, %v264_v18  ;;  %v4112_v63 = vadd.f32 %v304_v49, %v296_v20  ;;  %v4114_v36 = vadd.f32 %v849_v19, %v841_v1  ;;  %v8707_v19 = vld [vmem:[#allocation36_spill] sm:$0xff] }
  0xe1   : > { %v4116_v37 = vadd.f32 %v881_v6, %v873_v39  ;;  %v4118_v33 = vadd.f32 %v1425_v16, %v1417_v2  ;;  %v4120_v61 = vadd.f32 %v1457_v23, %v1449_v10  ;;  %v4122_v25 = vadd.f32 %v2001_v32, %v1993_v3  ;;  %v8708_v16 = vld [vmem:[#allocation37_spill] sm:$0xff]  ;;  %v8709_v32 = vld [vmem:[#allocation46_spill] sm:$0xff] }
  0xe2   : > { %v4124_v48 = vadd.f32 %v2033_v40, %v2025_v29  ;;  %v4128_v7 = vsub.f32 %v3935_v9, %v3762_v34  ;;  %v4132_v18 = vsub.f32 %v3935_v9, %v3765_v35  ;;  %v4135_v20 = vsub.f32 %v235_v54, %v3815_v59 }
  0xe3   : > { %v4138_v2 = vsub.f32 %v235_v54, %v3826_v0  ;;  %v838_v1 = vmul.f32 %v3745_v24, %v3898_v12  ;;  %v870_v29 = vmul.f32 %v3747_v27, %v3898_v12  ;;  %v262_v39 = vmul.f32 %v3737_v21, %v4005_v45 }
  0xe4   : > { %8702 = vst [vmem:[#allocation70_spill] sm:$0xff] %v4132_v18  ;;  %8703 = vst [vmem:[#allocation71_spill] sm:$0xff] %v4135_v20  ;;  %v294_v10 = vmul.f32 %v3739_v22, %v4005_v45  ;;  %v270_v35 = vmul.f32 %v3775_v41, %v4074_v31  ;;  %v4151_v9 = vsub.f32 %v219_v26, %v3762_v34  ;;  %v4167_v34 = vpop.permute.xlu1 %242 }
  0xe5   : > { %8704 = vst [vmem:[#allocation72_spill] sm:$0xff] %v4138_v2  ;;  %v4154_v3 = vsub.f32 %v239_v53, %v3815_v59  ;;  %v4157_v30 = vsub.f32 %v239_v53, %v3826_v0  ;;  %v1434_v49 = vmul.f32 %v3838_v5, %v4135_v20  ;;  %v1466_v6 = vmul.f32 %v8707_v19, %v4135_v20 }
  0xe6   : > { %v2010_v23 = vmul.f32 %v8708_v16, %v4138_v2  ;;  %v2042_v40 = vmul.f32 %v8709_v32, %v4138_v2  ;;  %v302_v26 = vmul.f32 %v3777_v42, %v4074_v31  ;;  %v269_v55 = vmul.f32 %v3775_v41, %v4128_v7 }
  0xe7   : > { %8705 = vst [vmem:[#allocation73_spill] sm:$0xff] %v4154_v3  ;;  %8706 = vst [vmem:[#allocation74_spill] sm:$0xff] %v4157_v30  ;;  %v301_v52 = vmul.f32 %v3777_v42, %v4128_v7  ;;  %v846_v20 = vmul.f32 %v3779_v43, %v4132_v18  ;;  %v4178_v4 = vadd.f32 %v1434_v49, %v4023_v60  ;;  %v8715_v49 = vld [vmem:[#allocation54_spill] sm:$0xff] }
  0xe8   : > { %v4181_v12 = vadd.f32 %v1466_v6, %v4025_v28  ;;  %v4184_v2 = vadd.f32 %v2010_v23, %v4027_v51  ;;  %v4187_v27 = vadd.f32 %v2042_v40, %v4029_v57  ;;  %v4189_v24 = vadd.f32 %v270_v35, %v262_v39 }
  0xe9   : > { %8710 = vst [vmem:[#allocation75_spill] sm:$0xff] %v4178_v4  ;;  %v878_v50 = vmul.f32 %v3785_v47, %v4132_v18  ;;  %v271_v43 = vmul.f32 %v3775_v41, %v4151_v9  ;;  %v4196_v60 = vsub.f32 %v235_v54, %v8714_v58  ;;  %v1435_v28 = vmul.f32 %v3838_v5, %v4154_v3 }
  0xea   : > { %8711 = vst [vmem:[#allocation76_spill] sm:$0xff] %v4181_v12  ;;  %8712 = vst [vmem:[#allocation77_spill] sm:$0xff] %v4184_v2  ;;  %v1467_v51 = vmul.f32 %v8707_v19, %v4154_v3  ;;  %v2011_v57 = vmul.f32 %v8708_v16, %v4157_v30  ;;  %v2043_v39 = vmul.f32 %v8709_v32, %v4157_v30 }
  0xeb   : > { %8713 = vst [vmem:[#allocation78_spill] sm:$0xff] %v4187_v27  ;;  %v4206_v35 = vadd.f32 %v302_v26, %v294_v10  ;;  %v273_v6 = vadd.f32 %v269_v55, %v8715_v49  ;;  %v305_v23 = vadd.f32 %v301_v52, %v3981_v62  ;;  %v4210_v40 = vadd.f32 %v846_v20, %v838_v1  ;;  %v247_v10 = vpop.permute.xlu1 %246  ;;  %v8720_v26 = vld [vmem:[#allocation27_spill] sm:$0xff]  ;;  %v8721_v52 = vld [vmem:[#allocation28_spill] sm:$0xff]  ;;  %v8724_v20 = vld [vmem:[#allocation50_spill] sm:$0xff] }
  0xec   : > { %v4213_v27 = vadd.f32 %v1435_v28, %v3989_v44  ;;  %v4216_v2 = vadd.f32 %v1467_v51, %v3991_v46  ;;  %v4219_v3 = vadd.f32 %v2011_v57, %v3993_v11  ;;  %v4222_v4 = vadd.f32 %v2043_v39, %v3995_v8  ;;  %v8725_v28 = vld [vmem:[#allocation26_spill] sm:$0xff] }
  0xed   : > { %v281_v55 = vmul.f32 %v8720_v26, %v4196_v60  ;;  %v313_v62 = vmul.f32 %v8721_v52, %v4196_v60  ;;  %v4230_v44 = vsub.f32 %v4167_v34, %v3815_v59  ;;  %v4234_v46 = vsub.f32 %v4167_v34, %v3826_v0 }
  0xee   : > { %8716 = vst [vmem:[#allocation25_spill] sm:$0xff] %v4213_v27  ;;  %8717 = vst [vmem:[#allocation54_spill] sm:$0xff] %v4216_v2  ;;  %v4236_v11 = vadd.f32 %v878_v50, %v870_v29  ;;  %v4239_v8 = vadd.f32 %v271_v43, %v8724_v20  ;;  %v303_v1 = vmul.f32 %v3777_v42, %v4151_v9  ;;  %v8747_v27 = vld [vmem:[#allocation51_spill] sm:$0xff] }
  0xef   : > { %8718 = vst [vmem:[#allocation79_spill] sm:$0xff] %v4219_v3  ;;  %8719 = vst [vmem:[#allocation80_spill] sm:$0xff] %v4222_v4  ;;  %v4244_v51 = vsub.f32 %v235_v54, %v8725_v28  ;;  %v4247_v57 = vsub.f32 %v247_v10, %v8714_v58  ;;  %v4250_v39 = vsub.f32 %v247_v10, %v8725_v28 }
  0xf0   : > { %8722 = vst [vmem:[#allocation27_spill] sm:$0xff] %v4230_v44  ;;  %8723 = vst [vmem:[#allocation28_spill] sm:$0xff] %v4234_v46  ;;  %v4253_v49 = vsub.f32 %v247_v10, %v3815_v59  ;;  %v4256_v50 = vsub.f32 %v247_v10, %v3826_v0  ;;  %v1436_v43 = vmul.f32 %v3838_v5, %v4230_v44 }
  0xf1   : > { %8726 = vst [vmem:[#allocation50_spill] sm:$0xff] %v4244_v51  ;;  %8727 = vst [vmem:[#allocation26_spill] sm:$0xff] %v4247_v57  ;;  %v1468_v29 = vmul.f32 %v8707_v19, %v4230_v44  ;;  %v2012_v54 = vmul.f32 %v8708_v16, %v4234_v46  ;;  %v2044_v20 = vmul.f32 %v8709_v32, %v4234_v46 }
  0xf2   : > { %8728 = vst [vmem:[#allocation81_spill] sm:$0xff] %v4250_v39  ;;  %8729 = vst [vmem:[#allocation82_spill] sm:$0xff] %v4253_v49  ;;  %v4266_v30 = vadd.f32 %v281_v55, %v273_v6  ;;  %v4268_v4 = vadd.f32 %v313_v62, %v305_v23  ;;  %v4271_v59 = vsub.f32 %v239_v53, %v8714_v58 }
  0xf3   : > { %8730 = vst [vmem:[#allocation83_spill] sm:$0xff] %v4256_v50  ;;  %v4274_v0 = vsub.f32 %v239_v53, %v8725_v28  ;;  %v4277_v10 = vadd.f32 %v1436_v43, %v4083_v14  ;;  %v4280_v3 = vadd.f32 %v1468_v29, %v4086_v56  ;;  %v4283_v44 = vadd.f32 %v2012_v54, %v4089_v15  ;;  %v8736_v53 = vld [vmem:[#allocation30_spill] sm:$0xff]  ;;  %v8737_v14 = vld [vmem:[#allocation31_spill] sm:$0xff] }
  0xf4   : > { %v4286_v6 = vadd.f32 %v2044_v20, %v4092_v17  ;;  %v284_v23 = vmul.f32 %v8720_v26, %v4247_v57  ;;  %v316_v55 = vmul.f32 %v8721_v52, %v4247_v57  ;;  %v861_v62 = vmul.f32 %v8736_v53, %v4250_v39 }
  0xf5   : > { %8731 = vst [vmem:[#allocation84_spill] sm:$0xff] %v4274_v0  ;;  %8732 = vst [vmem:[#allocation85_spill] sm:$0xff] %v4277_v10  ;;  %v893_v43 = vmul.f32 %v8737_v14, %v4250_v39  ;;  %v1437_v56 = vmul.f32 %v3838_v5, %v4253_v49  ;;  %v1469_v15 = vmul.f32 %v8707_v19, %v4253_v49  ;;  %vm485_vm1 = vcmp.ge.f32.partialorder %v4268_v4, 0.0 }
  0xf6   : > { %8733 = vst [vmem:[#allocation86_spill] sm:$0xff] %v4280_v3  ;;  %8734 = vst [vmem:[#allocation87_spill] sm:$0xff] %v4283_v44  ;;  %v2013_v17 = vmul.f32 %v8708_v16, %v4256_v50  ;;  %v2045_v29 = vmul.f32 %v8709_v32, %v4256_v50  ;;  %v4305_v54 = vadd.f32 %v284_v23, %v4110_v38  ;;  %vm549_vm3 = vcmp.ge.f32.partialorder %v4266_v30, 0.0 }
  0xf7   : > { %8735 = vst [vmem:[#allocation88_spill] sm:$0xff] %v4286_v6  ;;  %v4308_v20 = vadd.f32 %v316_v55, %v4112_v63  ;;  %v4311_v46 = vadd.f32 %v861_v62, %v4114_v36  ;;  %v4314_v6 = vadd.f32 %v893_v43, %v4116_v37  ;;  %v4317_v49 = vadd.f32 %v1437_v56, %v4118_v33  ;;  %v8744_v63 = vld [vmem:[#allocation47_spill] sm:$0xff]  ;;  %v8745_v36 = vld [vmem:[#allocation29_spill] sm:$0xff] }
  0xf8   : > { %v4320_v44 = vadd.f32 %v1469_v15, %v4120_v61  ;;  %v4323_v50 = vadd.f32 %v2013_v17, %v4122_v25  ;;  %v4326_v38 = vadd.f32 %v2045_v29, %v4124_v48  ;;  %v4330_v23 = vsub.f32 %v4266_v30, %v8744_v63  ;;  %v8746_v61 = vld [vmem:[#allocation48_spill] sm:$0xff] }
  0xf9   : > { %8738 = vst [vmem:[#allocation30_spill] sm:$0xff] %v4311_v46  ;;  %8739 = vst [vmem:[#allocation31_spill] sm:$0xff] %v4314_v6  ;;  %v4334_v37 = vsub.f32 %v4268_v4, %v8745_v36  ;;  %v4338_v33 = vsub.f32 %v4266_v30, %v8745_v36  ;;  %v4342_v55 = vsub.f32 %v4268_v4, %v8746_v61 }
  0xfa   : > { %8740 = vst [vmem:[#allocation89_spill] sm:$0xff] %v4317_v49  ;;  %8741 = vst [vmem:[#allocation90_spill] sm:$0xff] %v4320_v44  ;;  %v858_v48 = vmul.f32 %v8736_v53, %v4244_v51  ;;  %v282_v25 = vmul.f32 %v8720_v26, %v4271_v59  ;;  %v314_v62 = vmul.f32 %v8721_v52, %v4271_v59  ;;  %vm557_vm13 = vcmp.le.f32.partialorder %v4330_v23, 0.0 }
  0xfb   : > { %8742 = vst [vmem:[#allocation91_spill] sm:$0xff] %v4323_v50  ;;  %8743 = vst [vmem:[#allocation92_spill] sm:$0xff] %v4326_v38  ;;  %v4352_v43 = vsub.f32 %v4167_v34, %v8714_v58  ;;  %v349_v56 = vmul.f32 %v4342_v55, %v4330_v23  ;;  %v353_v15 = vmul.f32 %v4338_v33, %v4334_v37  ;;  %vm493_vm6 = vcmp.le.f32.partialorder %v4342_v55, 0.0 }
  0xfc   : > { %v361_v17 = vmul.f32 %v4338_v33, %v4268_v4  ;;  %v365_v29 = vmul.f32 %v4342_v55, %v4266_v30  ;;  %v373_v38 = vmul.f32 %v4334_v37, %v4266_v30  ;;  %v377_v50 = vmul.f32 %v4330_v23, %v4268_v4 }
  0xfd   : > { %v4368_v58 = vsub.f32 %v4334_v37, %v4330_v23  ;;  %v4372_v32 = vsub.f32 %v4338_v33, %v4342_v55  ;;  %v890_v16 = vmul.f32 %v8737_v14, %v4244_v51  ;;  %v4376_v44 = vsub.f32 %v349_v56, %v353_v15 }
  0xfe   : > { %v4378_v49 = vsub.f32 %v361_v17, %v365_v29  ;;  %v465_v2 = vsub.f32 %v4268_v4, %v4342_v55  ;;  %v307_v39 = vadd.f32 %v303_v1, %v8747_v27  ;;  %v4384_v3 = vadd.f32 %v282_v25, %v4189_v24 }
  0xff   : > { %v859_v10 = vmul.f32 %v8736_v53, %v4274_v0  ;;  %v417_v5 = vadd.f32 %v4372_v32, %v4368_v58  ;;  %v4391_v19 = vadd.f32 %v314_v62, %v4206_v35  ;;  %v4393_v56 = vsub.f32 %v373_v38, %v377_v50 }
 0x100   : > { %v385_v15 = vadd.f32 %v4378_v49, %v4376_v44  ;;  %v469_v17 = vmax.f32 %v465_v2, 1e-12  ;;  %v4398_v27 = vadd.f32 %v858_v48, %v4210_v40  ;;  %v283_v24 = vmul.f32 %v8720_v26, %v4352_v43 }
 0x101   : > { %v421_v1 = vmax.f32 %v417_v5, 1e-12  ;;  %v529_v25 = vsub.f32 %v4266_v30, %v4330_v23  ;;  %v4405_v29 = vadd.f32 %v890_v16, %v4236_v11  ;;  %v4409_v35 = vmul.f32 %v8737_v14, %v4274_v0 }
 0x102   : > { %v389_v50 = vadd.f32 %v385_v15, %v4393_v56  ;;  %3343 = vrcp.f32 %v469_v17  ;;  %v4413_v2 = vadd.f32 %v859_v10, %v3985_v13  ;;  %v315_v40 = vmul.f32 %v8721_v52, %v4352_v43 }
 0x103   : > { %8748 = vst [vmem:[#allocation47_spill] sm:$0xff] %v4409_v35  ;;  %3345 = vrcp.f32 %v421_v1  ;;  %v533_v5 = vmax.f32 %v529_v25, 1e-12  ;;  %v4419_v16 = vsub.f32 %v4384_v3, %v8744_v63  ;;  %v4423_v11 = vsub.f32 %v4391_v19, %v8745_v36 }
 0x104   : > { %8749 = vst [vmem:[#allocation29_spill] sm:$0xff] %v4413_v2  ;;  %v393_v38 = vmax.f32 %v389_v50, 1e-12  ;;  %v4427_v48 = vsub.f32 %v4384_v3, %v8745_v36  ;;  %v4430_v13 = vadd.f32 %v283_v24, %v4239_v8  ;;  %v4434_v10 = vsub.f32 %v4167_v34, %v8725_v28 }
 0x105   : > { %3347 = vrcp.f32 %v533_v5  ;;  %v4438_v62 = vsub.f32 %v4391_v19, %v8746_v61  ;;  %v374_v8 = vmul.f32 %v4423_v11, %v4384_v3  ;;  %v378_v28 = vmul.f32 %v4419_v16, %v4391_v19 }
 0x106   : > { %3349 = vrcp.f32 %v393_v38  ;;  %v354_v15 = vmul.f32 %v4427_v48, %v4423_v11  ;;  %v362_v17 = vmul.f32 %v4427_v48, %v4391_v19  ;;  %v4454_v1 = vsub.f32 %v4423_v11, %v4419_v16 }
 0x107   : > { %v350_v24 = vmul.f32 %v4438_v62, %v4419_v16  ;;  %v366_v34 = vmul.f32 %v4438_v62, %v4384_v3  ;;  %v4456_v25 = vadd.f32 %v315_v40, %v307_v39  ;;  %v4461_v50 = vsub.f32 %v4427_v48, %v4438_v62 }
 0x108   : > { %v466_v5 = vsub.f32 %v4391_v19, %v4438_v62  ;;  %vm437_vm2 = vcmp.ge.f32.partialorder %v4368_v58, 0.0  ;;  %vm433_vm4 = vcmp.le.f32.partialorder %v4376_v44, 0.0  ;;  %vm445_vm5 = vcmp.ge.f32.partialorder %v4372_v32, 0.0 }
 0x109   : > { %v4467_v38 = vsub.f32 %v350_v24, %v354_v15  ;;  %v4469_v6 = vsub.f32 %v362_v17, %v366_v34  ;;  %v418_v39 = vadd.f32 %v4461_v50, %v4454_v1  ;;  %vm481_vm7 = vcmp.le.f32.partialorder %v4378_v49, 0.0  ;;  %vm4496_vm14 = vmand %vm433_vm4, %vm437_vm2 }
 0x10a   : > { %v470_v40 = vmax.f32 %v466_v5, 1e-12  ;;  %v4477_v46 = vsub.f32 %v374_v8, %v378_v28  ;;  %v530_v17 = vsub.f32 %v4384_v3, %v4419_v16  ;;  %vm509_vm8 = vcmp.ge.f32.partialorder %v4342_v55, 0.0  ;;  %vm4513_vm2 = vmand %vm481_vm7, %vm485_vm1 }
 0x10b   : > { %v386_v15 = vadd.f32 %v4469_v6, %v4467_v38  ;;  %vm513_vm9 = vcmp.le.f32.partialorder %v4338_v33, %v4342_v55  ;;  %v422_v34 = vmax.f32 %v418_v39, 1e-12  ;;  %vm545_vm12 = vcmp.le.f32.partialorder %v4393_v56, 0.0  ;;  %vm4533_vm1 = vmand %vm4496_vm14, %vm445_vm5 }
 0x10c   : > { %v3344_v24 = vpop.eup %3343  ;;  %3351 = vrcp.f32 %v470_v40  ;;  %v534_v5 = vmax.f32 %v530_v17, 1e-12  ;;  %vm573_vm15 = vcmp.ge.f32.partialorder %v4330_v23, 0.0  ;;  %vm577_vm0 = vcmp.le.f32.partialorder %v4334_v37, %v4330_v23  ;;  %vm4546_vm7 = vmand %vm545_vm12, %vm549_vm3 }
 0x10d   : > { %v3346_v8 = vpop.eup %3345  ;;  %v390_v28 = vadd.f32 %v386_v15, %v4477_v46  ;;  %3353 = vrcp.f32 %v422_v34  ;;  %v477_v40 = vmul.f32 %v3344_v24, %v4268_v4  ;;  %vm434_vm10 = vcmp.le.f32.partialorder %v4467_v38, 0.0  ;;  %vm497_vm3 = vmand %vm4513_vm2, %vm493_vm6  ;;  %v8764_v38 = vld [vmem:[#allocation42_spill] sm:$0xff] }
 0x10e   : > { %v429_v0 = vmul.f32 %v3346_v8, %v4368_v58  ;;  %v4507_v58 = vsub.f32 %v4430_v13, %v8744_v63  ;;  %vm438_vm4 = vcmp.ge.f32.partialorder %v4454_v1, 0.0  ;;  %vm482_vm11 = vcmp.le.f32.partialorder %v4469_v6, 0.0 }
 0x10f   : > { %v3348_v39 = vpop.eup %3347  ;;  %v394_v15 = vmax.f32 %v390_v28, 1e-12  ;;  %3355 = vrcp.f32 %v534_v5  ;;  %v4521_v24 = vsub.f32 %v4456_v25, %v8745_v36  ;;  %v4525_v34 = vsub.f32 %v4430_v13, %v8745_v36 }
 0x110   : > { %v3350_v44 = vpop.eup %3349  ;;  %v453_v17 = vsub.f32 1.0, %v429_v0  ;;  %v4539_v5 = vsub.f32 %v4456_v25, %v8746_v61  ;;  %v541_v35 = vmul.f32 %v3348_v39, %v4266_v30  ;;  %vm486_vm5 = vcmp.ge.f32.partialorder %v4391_v19, 0.0 }
 0x111   : > { %v401_v28 = vmul.f32 %v3350_v44, %v4378_v49  ;;  %v405_v2 = vmul.f32 %v3350_v44, %v4393_v56  ;;  %3357 = vrcp.f32 %v394_v15  ;;  %v355_v12 = vmul.f32 %v4525_v34, %v4521_v24 }
 0x112   : > { %v363_v32 = vmul.f32 %v4525_v34, %v4456_v25  ;;  %v375_v39 = vmul.f32 %v4521_v24, %v4430_v13  ;;  %vm446_vm12 = vcmp.ge.f32.partialorder %v4461_v50, 0.0  ;;  %v351_v44 = vmul.f32 %v4539_v5, %v4507_v58 }
 0x113   : > { %v457_v56 = vsel %vm4533_vm1, %v453_v17, %v401_v28  ;;  %v461_v15 = vsel %vm4533_vm1, %v429_v0, %v405_v2  ;;  %v367_v51 = vmul.f32 %v4539_v5, %v4430_v13  ;;  %vm517_vm1 = vmand %vm509_vm8, %vm513_vm9  ;;  %vm550_vm2 = vcmp.ge.f32.partialorder %v4384_v3, 0.0 }
 0x114   : > { %v501_v18 = vsel %vm497_vm3, 0.0, %v457_v56  ;;  %v505_v47 = vsel %vm497_vm3, %v477_v40, %v461_v15  ;;  %v379_v57 = vmul.f32 %v4507_v58, %v4456_v25  ;;  %v4584_v0 = vsub.f32 %v4521_v24, %v4507_v58  ;;  %vm561_vm8 = vmand %vm4546_vm7, %vm557_vm13 }
 0x115   : > { %v521_v2 = vsel %vm517_vm1, 0.0, %v501_v18  ;;  %v525_v40 = vsel %vm517_vm1, 1.0, %v505_v47  ;;  %vm494_vm9 = vcmp.le.f32.partialorder %v4438_v62, 0.0  ;;  %v4591_v33 = vsub.f32 %v351_v44, %v355_v12  ;;  %vm581_vm3 = vmand %vm573_vm15, %vm577_vm0 }
 0x116   : > { %v4593_v55 = vsub.f32 %v363_v32, %v367_v51  ;;  %v3352_v17 = vpop.eup %3351  ;;  %v565_v8 = vsel %vm561_vm8, %v541_v35, %v521_v2  ;;  %v569_v28 = vsel %vm561_vm8, 0.0, %v525_v40  ;;  %vm574_vm1 = vcmp.ge.f32.partialorder %v4419_v16, 0.0 }
 0x117   : > { %vm578_vm13 = vcmp.le.f32.partialorder %v4423_v11, %v4419_v16  ;;  %v4605_v47 = vsub.f32 %v4525_v34, %v4539_v5  ;;  %v585_v18 = vsel %vm581_vm3, 1.0, %v565_v8  ;;  %v589_v51 = vsel %vm581_vm3, 0.0, %v569_v28  ;;  %v3354_v37 = vpop.eup %3353 }
 0x118   : > { %vm8758_vm7 = vcmp.le.f32.partialorder %v4268_v4, 0.0  ;;  %vm8759_vm8 = vcmp.le.f32.partialorder %v4266_v30, 0.0  ;;  %vm558_vm6 = vcmp.le.f32.partialorder %v4419_v16, 0.0  ;;  %vm594_vm0 = vcmp.le.f32.partialorder %v4384_v3, 0.0 }
 0x119   : > { %vm601_vm14 = vmand %vm8759_vm8, %vm8758_vm7  ;;  %vm598_vm15 = vcmp.le.f32.partialorder %v4391_v19, 0.0  ;;  %v387_v23 = vadd.f32 %v4593_v55, %v4591_v33  ;;  %v4620_v12 = vsub.f32 %v375_v39, %v379_v57  ;;  %v419_v4 = vadd.f32 %v4605_v47, %v4584_v0  ;;  %v3356_v44 = vpop.eup %3355 }
 0x11a   : > { %v4616_v35 = vsel %vm601_vm14, 0.0, %v585_v18  ;;  %v4618_v49 = vsel %vm601_vm14, 0.0, %v589_v51  ;;  %vm4634_vm14 = vmand %vm434_vm10, %vm438_vm4  ;;  %v478_v39 = vmul.f32 %v3352_v17, %v4391_v19  ;;  %v430_v8 = vmul.f32 %v3354_v37, %v4454_v1 }
 0x11b   : > { %8760 = vst [vmem:[#allocation51_spill] sm:$0xff] %v4616_v35  ;;  %8761 = vst [vmem:[#allocation93_spill] sm:$0xff] %v4618_v49  ;;  %v613_v30 = vmul.f32 %v4616_v35, %v3737_v21  ;;  %v621_v32 = vmul.f32 %v4618_v49, %v3739_v22  ;;  %v629_v56 = vmul.f32 %v4616_v35, %v3775_v41  ;;  %v3358_v28 = vpop.eup %3357  ;;  %v423_v61 = vmax.f32 %v419_v4, 1e-12 }
 0x11c   : > { %v637_v57 = vmul.f32 %v4618_v49, %v3777_v42  ;;  %v645_v2 = vmul.f32 %v4616_v35, %v8720_v26  ;;  %v653_v40 = vmul.f32 %v4618_v49, %v8721_v52  ;;  %vm4652_vm10 = vmand %vm482_vm11, %vm486_vm5  ;;  %v391_v35 = vadd.f32 %v387_v23, %v4620_v12 }
 0x11d   : > { %v617_v18 = vsub.f32 %v8764_v38, %v613_v30  ;;  %v633_v51 = vsub.f32 %v4128_v7, %v629_v56  ;;  %v402_v1 = vmul.f32 %v3358_v28, %v4469_v6  ;;  %v406_v37 = vmul.f32 %v3358_v28, %v4477_v46  ;;  %vm4664_vm4 = vmand %vm4634_vm14, %vm446_vm12 }
 0x11e   : > { %v649_v49 = vsub.f32 %v4196_v60, %v645_v2  ;;  %v454_v30 = vsub.f32 1.0, %v430_v8  ;;  %vm8769_vm11 = vcmp.le.f32.partialorder %v4477_v46, 0.0  ;;  %v395_v6 = vmax.f32 %v391_v35, 1e-12  ;;  %vm498_vm12 = vmand %vm4652_vm10, %vm494_vm9 }
 0x11f   : > { %v625_v56 = vsub.f32 %v617_v18, %v621_v32  ;;  %v641_v38 = vsub.f32 %v633_v51, %v637_v57  ;;  %vm4672_vm5 = vmand %vm8769_vm11, %vm550_vm2  ;;  %3359 = vrcp.f32 %v423_v61  ;;  %v462_v4 = vsel %vm4664_vm4, %v430_v8, %v406_v37 }
 0x120   : > { %v657_v50 = vsub.f32 %v649_v49, %v653_v40  ;;  %v458_v23 = vsel %vm4664_vm4, %v454_v30, %v402_v1  ;;  %v542_v46 = vmul.f32 %v3356_v44, %v4384_v3  ;;  %v506_v2 = vsel %vm498_vm12, %v478_v39, %v462_v4  ;;  %vm562_vm9 = vmand %vm4672_vm5, %vm558_vm6 }
 0x121   : > { %v661_v32 = vmul.f32 %v625_v56, %v625_v56  ;;  %v665_v15 = vmul.f32 %v641_v38, %v641_v38  ;;  %v502_v57 = vsel %vm498_vm12, 0.0, %v458_v23  ;;  %vm8772_vm2 = vcmp.le.f32.partialorder %v4427_v48, %v4438_v62  ;;  %vm582_vm8 = vmand %vm574_vm1, %vm578_vm13 }
 0x122   : > { %vm8773_vm3 = vcmp.ge.f32.partialorder %v4438_v62, 0.0  ;;  %v673_v61 = vmul.f32 %v657_v50, %v657_v50  ;;  %3361 = vrcp.f32 %v395_v6  ;;  %v467_v48 = vsub.f32 %v4456_v25, %v4539_v5  ;;  %vm602_vm6 = vmand %vm594_vm0, %vm598_vm15 }
 0x123   : > { %vm518_vm7 = vmand %vm8773_vm3, %vm8772_vm2  ;;  %v669_v44 = vadd.f32 %v665_v15, %v661_v32  ;;  %v4703_v62 = vmul.f32 %v8736_v53, %v4434_v10  ;;  %v4707_v39 = vmul.f32 %v8737_v14, %v4434_v10  ;;  %vm435_vm1 = vcmp.le.f32.partialorder %v4591_v33, 0.0 }
 0x124   : > { %v522_v35 = vsel %vm518_vm7, 0.0, %v502_v57  ;;  %v526_v49 = vsel %vm518_vm7, 1.0, %v506_v2  ;;  %v471_v17 = vmax.f32 %v467_v48, 1e-12  ;;  %vm439_vm13 = vcmp.ge.f32.partialorder %v4584_v0, 0.0 }
 0x125   : > { %v566_v40 = vsel %vm562_vm9, %v542_v46, %v522_v35  ;;  %v570_v8 = vsel %vm562_vm9, 0.0, %v526_v49  ;;  %v4713_v16 = vadd.f32 %v673_v61, %v669_v44  ;;  %vm447_vm0 = vcmp.ge.f32.partialorder %v4605_v47, 0.0  ;;  %vm443_vm5 = vmand %vm435_vm1, %vm439_vm13  ;;  %v8776_v44 = vld [vmem:[#allocation49_spill] sm:$0xff] }
 0x126   : > { %v586_v28 = vsel %vm582_vm8, 1.0, %v566_v40  ;;  %v590_v18 = vsel %vm582_vm8, 0.0, %v570_v8  ;;  %3363 = vrcp.f32 %v471_v17  ;;  %vm483_vm15 = vcmp.le.f32.partialorder %v4593_v55, 0.0  ;;  %vm4765_vm3 = vmand %vm443_vm5, %vm447_vm0 }
 0x127   : > { %v4715_v11 = vsel %vm602_vm6, 0.0, %v586_v28  ;;  %v4717_v51 = vsel %vm602_vm6, 0.0, %v590_v18  ;;  %681 = vmin.xlane.f32.xlu0 %v4713_v16  ;;  %vm487_vm14 = vcmp.ge.f32.partialorder %v4456_v25, 0.0  ;;  %v531_v50 = vsub.f32 %v4430_v13, %v4507_v58  ;;  %v8780_v28 = vld [vmem:[#allocation53_spill] sm:$0xff] }
 0x128   : > { %8774 = vst [vmem:[#allocation42_spill] sm:$0xff] %v4715_v11  ;;  %8775 = vst [vmem:[#allocation94_spill] sm:$0xff] %v4717_v51  ;;  %v614_v1 = vmul.f32 %v4715_v11, %v3737_v21  ;;  %v630_v37 = vmul.f32 %v4715_v11, %v3775_v41  ;;  %v646_v3 = vmul.f32 %v4715_v11, %v8720_v26  ;;  %vm495_vm10 = vcmp.le.f32.partialorder %v4539_v5, 0.0 }
 0x129   : > { %v622_v7 = vmul.f32 %v4717_v51, %v3739_v22  ;;  %v638_v56 = vmul.f32 %v4717_v51, %v3777_v42  ;;  %v3360_v38 = vpop.eup %3359  ;;  %v654_v6 = vmul.f32 %v4717_v51, %v8721_v52  ;;  %vm511_vm4 = vcmp.ge.f32.partialorder %v4539_v5, 0.0  ;;  %vm491_vm8 = vmand %vm483_vm15, %vm487_vm14 }
 0x12a   : > { %v618_v19 = vsub.f32 %v4005_v45, %v614_v1  ;;  %v634_v30 = vsub.f32 %v4074_v31, %v630_v37  ;;  %v650_v60 = vsub.f32 %v4271_v59, %v646_v3  ;;  %v431_v4 = vmul.f32 %v3360_v38, %v4584_v0  ;;  %v8777_v0 = vld [vmem:[#allocation32_spill] sm:$0xff]  ;;  %vm4819_vm13 = vmand %vm491_vm8, %vm495_vm10 }
 0x12b   : > { %vm515_vm11 = vcmp.le.f32.partialorder %v4525_v34, %v4539_v5  ;;  %v535_v59 = vmax.f32 %v531_v50, 1e-12  ;;  %vm547_vm12 = vcmp.le.f32.partialorder %v4620_v12, 0.0  ;;  %vm551_vm2 = vcmp.ge.f32.partialorder %v4430_v13, 0.0 }
 0x12c   : > { %v626_v45 = vsub.f32 %v618_v19, %v622_v7  ;;  %v642_v23 = vsub.f32 %v634_v30, %v638_v56  ;;  %v658_v31 = vsub.f32 %v650_v60, %v654_v6  ;;  %v3362_v46 = vpop.eup %3361  ;;  %v455_v61 = vsub.f32 1.0, %v431_v4  ;;  %vm4805_vm1 = vmand %vm547_vm12, %vm551_vm2 }
 0x12d   : > { %v403_v57 = vmul.f32 %v3362_v46, %v4593_v55  ;;  %v407_v2 = vmul.f32 %v3362_v46, %v4620_v12  ;;  %3365 = vrcp.f32 %v535_v59  ;;  %v4757_v40 = vsub.f32 %v4398_v27, %v8776_v44  ;;  %vm519_vm15 = vmand %vm511_vm4, %vm515_vm11  ;;  %v8785_v46 = vld [vmem:[#allocation68_spill] sm:$0xff] }
 0x12e   : > { %v662_v32 = vmul.f32 %v626_v45, %v626_v45  ;;  %v666_v15 = vmul.f32 %v642_v23, %v642_v23  ;;  %v674_v49 = vmul.f32 %v658_v31, %v658_v31  ;;  %v4761_v33 = vsub.f32 %v4405_v29, %v8777_v0 }
 0x12f   : > { %vm559_vm7 = vcmp.le.f32.partialorder %v4507_v58, 0.0  ;;  %vm575_vm9 = vcmp.ge.f32.partialorder %v4507_v58, 0.0  ;;  %v4773_v48 = vsub.f32 %v4398_v27, %v8777_v0  ;;  %v4777_v18 = vsub.f32 %v4405_v29, %v8780_v28 }
 0x130   : > { %v670_v35 = vadd.f32 %v666_v15, %v662_v32  ;;  %v459_v47 = vsel %vm4765_vm3, %v455_v61, %v403_v57  ;;  %v463_v1 = vsel %vm4765_vm3, %v431_v4, %v407_v2  ;;  %vm579_vm6 = vcmp.le.f32.partialorder %v4521_v24, %v4507_v58  ;;  %v3364_v37 = vpop.eup %3363  ;;  %v8786_v15 = vld [vmem:[#allocation69_spill] sm:$0xff]  ;;  %vm4854_vm10 = vmand %vm4805_vm1, %vm559_vm7 }
 0x131   : > { %v926_v3 = vmul.f32 %v4777_v18, %v4757_v40  ;;  %v930_v19 = vmul.f32 %v4773_v48, %v4761_v33  ;;  %v938_v7 = vmul.f32 %v4773_v48, %v4405_v29  ;;  %v950_v30 = vmul.f32 %v4761_v33, %v4398_v27  ;;  %vm4867_vm4 = vmand %vm575_vm9, %vm579_vm6 }
 0x132   : > { %v4779_v17 = vadd.f32 %v674_v49, %v670_v35  ;;  %v479_v55 = vmul.f32 %v3364_v37, %v4456_v25  ;;  %v942_v38 = vmul.f32 %v4777_v18, %v4398_v27  ;;  %v954_v60 = vmul.f32 %v4757_v40, %v4405_v29 }
 0x133   : > { %v4815_v6 = vsub.f32 %v4761_v33, %v4757_v40  ;;  %vm595_vm0 = vcmp.le.f32.partialorder %v4430_v13, 0.0  ;;  %v934_v12 = vsub.f32 %v926_v3, %v930_v19  ;;  %v4826_v45 = vsub.f32 %v4773_v48, %v4777_v18 }
 0x134   : > { %683 = vmin.xlane.f32.xlu1 %v4779_v17  ;;  %v1042_v23 = vsub.f32 %v4405_v29, %v4777_v18  ;;  %v503_v4 = vsel %vm4819_vm13, 0.0, %v459_v47  ;;  %v507_v31 = vsel %vm4819_vm13, %v479_v55, %v463_v1  ;;  %vm599_vm14 = vcmp.le.f32.partialorder %v4456_v25, 0.0 }
 0x135   : > { %v4840_v59 = vsub.f32 %v938_v7, %v942_v38  ;;  %v4844_v32 = vadd.f32 %v4703_v62, %v8785_v46  ;;  %v4848_v57 = vadd.f32 %v4707_v39, %v8786_v15  ;;  %v527_v2 = vsel %vm519_vm15, 1.0, %v507_v31  ;;  %vm4880_vm11 = vmand %vm595_vm0, %vm599_vm14 }
 0x136   : > { %v994_v5 = vadd.f32 %v4826_v45, %v4815_v6  ;;  %v571_v62 = vsel %vm4854_vm10, 0.0, %v527_v2  ;;  %v4871_v61 = vsub.f32 %v950_v30, %v954_v60  ;;  %v1046_v49 = vmax.f32 %v1042_v23, 1e-12  ;;  %v8794_v2 = vld [vmem:[#allocation34_spill] sm:$0xff] }
 0x137   : > { %v962_v35 = vadd.f32 %v4840_v59, %v934_v12  ;;  %v3366_v8 = vpop.eup %3365  ;;  %v523_v47 = vsel %vm519_vm15, 0.0, %v503_v4  ;;  %v591_v1 = vsel %vm4867_vm4, 0.0, %v571_v62  ;;  %vm1014_vm5 = vcmp.ge.f32.partialorder %v4815_v6, 0.0 }
 0x138   : > { %v998_v24 = vmax.f32 %v994_v5, 1e-12  ;;  %v543_v37 = vmul.f32 %v3366_v8, %v4430_v13  ;;  %v4888_v3 = vsel %vm4880_vm11, 0.0, %v591_v1  ;;  %3367 = vrcp.f32 %v1046_v49 }
 0x139   : > { %8793 = vst [vmem:[#allocation49_spill] sm:$0xff] %v4888_v3  ;;  %v966_v19 = vadd.f32 %v962_v35, %v4871_v61  ;;  %vm1062_vm12 = vcmp.ge.f32.partialorder %v4405_v29, 0.0  ;;  %vm1010_vm2 = vcmp.le.f32.partialorder %v934_v12, 0.0  ;;  %vm1022_vm3 = vcmp.ge.f32.partialorder %v4826_v45, 0.0  ;;  %v8797_v35 = vld [vmem:[#allocation48_spill] sm:$0xff] }
 0x13a   : > { %3369 = vrcp.f32 %v998_v24  ;;  %vm1058_vm7 = vcmp.le.f32.partialorder %v4840_v59, 0.0  ;;  %v567_v25 = vsel %vm4854_vm10, %v543_v37, %v523_v47  ;;  %vm1086_vm9 = vcmp.ge.f32.partialorder %v4777_v18, 0.0  ;;  %vm4937_vm15 = vmand %vm1010_vm2, %vm1014_vm5 }
 0x13b   : > { %v970_v7 = vmax.f32 %v966_v19, 1e-12  ;;  %vm1090_vm8 = vcmp.le.f32.partialorder %v4773_v48, %v4777_v18  ;;  %v1106_v13 = vsub.f32 %v4398_v27, %v4757_v40  ;;  %v587_v30 = vsel %vm4867_vm4, 1.0, %v567_v25  ;;  %vm4964_vm4 = vmand %vm1058_vm7, %vm1062_vm12 }
 0x13c   : > { %v623_v55 = vmul.f32 %v4888_v3, %v3739_v22  ;;  %v639_v56 = vmul.f32 %v4888_v3, %v3777_v42  ;;  %v655_v38 = vmul.f32 %v4888_v3, %v8721_v52  ;;  %vm1070_vm6 = vcmp.le.f32.partialorder %v4777_v18, 0.0  ;;  %vm4976_vm2 = vmand %vm4937_vm15, %vm1022_vm3 }
 0x13d   : > { %v4912_v60 = vsel %vm4880_vm11, 0.0, %v587_v30  ;;  %3371 = vrcp.f32 %v970_v7  ;;  %v1110_v50 = vmax.f32 %v1106_v13, 1e-12  ;;  %vm1122_vm1 = vcmp.le.f32.partialorder %v4871_v61, 0.0  ;;  %vm4998_vm3 = vmand %vm4964_vm4, %vm1070_vm6 }
 0x13e   : > { %v615_v23 = vmul.f32 %v4912_v60, %v3737_v21  ;;  %v631_v4 = vmul.f32 %v4912_v60, %v3775_v41  ;;  %v647_v31 = vmul.f32 %v4912_v60, %v8720_v26  ;;  %vm1126_vm13 = vcmp.ge.f32.partialorder %v4398_v27, 0.0  ;;  %vm5011_vm7 = vmand %vm1086_vm9, %vm1090_vm8 }
 0x13f   : > { %3373 = vrcp.f32 %v1110_v50  ;;  %vm1134_vm0 = vcmp.le.f32.partialorder %v4757_v40, 0.0  ;;  %v4925_v46 = vsub.f32 %v4305_v54, %v8744_v63  ;;  %v4929_v15 = vsub.f32 %v4308_v20, %v8745_v36  ;;  %vm1130_vm12 = vmand %vm1122_vm1, %vm1126_vm13 }
 0x140   : > { %v619_v34 = vsub.f32 %v8794_v2, %v615_v23  ;;  %v635_v5 = vsub.f32 %v4151_v9, %v631_v4  ;;  %v651_v62 = vsub.f32 %v4352_v43, %v647_v31  ;;  %v4943_v63 = vsub.f32 %v4305_v54, %v8745_v36  ;;  %vm5021_vm13 = vmand %vm1130_vm12, %vm1134_vm0 }
 0x141   : > { %vm1150_vm14 = vcmp.ge.f32.partialorder %v4757_v40, 0.0  ;;  %vm1154_vm10 = vcmp.le.f32.partialorder %v4761_v33, %v4757_v40  ;;  %v4950_v9 = vsub.f32 %v4308_v20, %v8797_v35  ;;  %v376_v43 = vmul.f32 %v4929_v15, %v4305_v54 }
 0x142   : > { %v380_v12 = vmul.f32 %v4925_v46, %v4308_v20  ;;  %v4958_v49 = vsub.f32 %v4929_v15, %v4925_v46  ;;  %v627_v36 = vsub.f32 %v619_v34, %v623_v55  ;;  %v643_v8 = vsub.f32 %v635_v5, %v639_v56  ;;  %v3368_v24 = vpop.eup %3367 }
 0x143   : > { %v659_v47 = vsub.f32 %v651_v62, %v655_v38  ;;  %vm1170_vm11 = vcmp.le.f32.partialorder %v4398_v27, 0.0  ;;  %vm1174_vm5 = vcmp.le.f32.partialorder %v4405_v29, 0.0  ;;  %v356_v58 = vmul.f32 %v4943_v63, %v4929_v15 }
 0x144   : > { %v352_v19 = vmul.f32 %v4950_v9, %v4925_v46  ;;  %v364_v25 = vmul.f32 %v4943_v63, %v4308_v20  ;;  %v368_v7 = vmul.f32 %v4950_v9, %v4305_v54  ;;  %v4986_v13 = vsub.f32 %v376_v43, %v380_v12  ;;  %v3370_v30 = vpop.eup %3369 }
 0x145   : > { %v663_v55 = vmul.f32 %v627_v36, %v627_v36  ;;  %v667_v45 = vmul.f32 %v643_v8, %v643_v8  ;;  %v675_v56 = vmul.f32 %v659_v47, %v659_v47  ;;  %v1054_v38 = vmul.f32 %v3368_v24, %v4405_v29 }
 0x146   : > { %v1006_v50 = vmul.f32 %v3370_v30, %v4815_v6  ;;  %v360_v4 = vsub.f32 %v352_v19, %v356_v58  ;;  %v5002_v31 = vsub.f32 %v364_v25, %v368_v7  ;;  %v416_v2 = vsub.f32 %v4943_v63, %v4950_v9 }
 0x147   : > { %v671_v34 = vadd.f32 %v667_v45, %v663_v55  ;;  %vm440_vm6 = vcmp.ge.f32.partialorder %v4958_v49, 0.0  ;;  %v468_v5 = vsub.f32 %v4308_v20, %v4950_v9  ;;  %vm488_vm1 = vcmp.ge.f32.partialorder %v4308_v20, 0.0  ;;  %v3372_v62 = vpop.eup %3371 }
 0x148   : > { %v1030_v39 = vsub.f32 1.0, %v1006_v50  ;;  %v388_v48 = vadd.f32 %v5002_v31, %v360_v4  ;;  %v420_v18 = vadd.f32 %v416_v2, %v4958_v49  ;;  %vm436_vm9 = vcmp.le.f32.partialorder %v360_v4, 0.0 }
 0x149   : > { %v5027_v43 = vadd.f32 %v675_v56, %v671_v34  ;;  %v978_v12 = vmul.f32 %v3372_v62, %v4840_v59  ;;  %v982_v36 = vmul.f32 %v3372_v62, %v4871_v61  ;;  %vm444_vm8 = vmand %vm436_vm9, %vm440_vm6  ;;  %vm448_vm15 = vcmp.ge.f32.partialorder %v416_v2, 0.0  ;;  %v3374_v8 = vpop.eup %3373  ;;  %v8818_v34 = vld [vmem:[#allocation15_spill] sm:$0xff] }
 0x14a   : > { %v392_v47 = vadd.f32 %v388_v48, %v4986_v13  ;;  %v424_v1 = vmax.f32 %v420_v18, 1e-12  ;;  %vm5032_vm0 = vmand %vm444_vm8, %vm448_vm15  ;;  %v472_v24 = vmax.f32 %v468_v5, 1e-12  ;;  %vm484_vm4 = vcmp.le.f32.partialorder %v5002_v31, 0.0  ;;  %v8819_v5 = vld [vmem:[#allocation18_spill] sm:$0xff] }
 0x14b   : > { %685 = vmin.xlane.f32.xlu0 %v5027_v43  ;;  %v1034_v59 = vsel %vm4976_vm2, %v1030_v39, %v978_v12  ;;  %v1038_v61 = vsel %vm4976_vm2, %v1006_v50, %v982_v36  ;;  %v1118_v19 = vmul.f32 %v3374_v8, %v4398_v27  ;;  %vm492_vm12 = vmand %vm484_vm4, %vm488_vm1  ;;  %vm496_vm6 = vcmp.le.f32.partialorder %v4950_v9, 0.0  ;;  %v8816_v27 = vld [vmem:[#allocation8_spill] sm:$0xff]  ;;  %v8823_v8 = vld [vmem:[#allocation70_spill] sm:$0xff] }
 0x14c   : > { %v1078_v25 = vsel %vm4998_vm3, 0.0, %v1034_v59  ;;  %v1082_v7 = vsel %vm4998_vm3, %v1054_v38, %v1038_v61  ;;  %v396_v30 = vmax.f32 %v392_v47, 1e-12  ;;  %3375 = vrcp.f32 %v424_v1  ;;  %vm5050_vm9 = vmand %vm492_vm12, %vm496_vm6  ;;  %v8822_v12 = vld [vmem:[#allocation52_spill] sm:$0xff]  ;;  %v8824_v1 = vld [vmem:[#allocation50_spill] sm:$0xff] }
 0x14d   : > { %v1098_v37 = vsel %vm5011_vm7, 0.0, %v1078_v25  ;;  %v1102_v45 = vsel %vm5011_vm7, 1.0, %v1082_v7  ;;  %vm1158_vm2 = vmand %vm1150_vm14, %vm1154_vm10  ;;  %3377 = vrcp.f32 %v472_v24  ;;  %vm512_vm3 = vcmp.ge.f32.partialorder %v4950_v9, 0.0 }
 0x14e   : > { %v1142_v56 = vsel %vm5021_vm13, %v1118_v19, %v1098_v37  ;;  %v1146_v38 = vsel %vm5021_vm13, 0.0, %v1102_v45  ;;  %vm1178_vm7 = vmand %vm1170_vm11, %vm1174_vm5  ;;  %3379 = vrcp.f32 %v396_v30  ;;  %vm516_vm1 = vcmp.le.f32.partialorder %v4943_v63, %v4950_v9  ;;  %v8817_v9 = vld [vmem:[#allocation9_spill] sm:$0xff]  ;;  %v8829_v37 = vld [vmem:[#allocation60_spill] sm:$0xff] }
 0x14f   : > { %v1162_v40 = vsel %vm1158_vm2, 1.0, %v1142_v56  ;;  %v1166_v33 = vsel %vm1158_vm2, 0.0, %v1146_v38  ;;  %vm5074_vm14 = vmand %vm512_vm3, %vm516_vm1  ;;  %v532_v23 = vsub.f32 %v4305_v54, %v4925_v46  ;;  %vm548_vm10 = vcmp.le.f32.partialorder %v4986_v13, 0.0  ;;  %v8830_v45 = vld [vmem:[#allocation47_spill] sm:$0xff] }
 0x150   : > { %v5081_v4 = vsel %vm1178_vm7, 0.0, %v1162_v40  ;;  %v5083_v29 = vsel %vm1178_vm7, 0.0, %v1166_v33  ;;  %vm552_vm11 = vcmp.ge.f32.partialorder %v4305_v54, 0.0  ;;  %vm560_vm5 = vcmp.le.f32.partialorder %v4925_v46, 0.0 }
 0x151   : > { %8814 = vst [vmem:[#allocation32_spill] sm:$0xff] %v5081_v4  ;;  %8815 = vst [vmem:[#allocation53_spill] sm:$0xff] %v5083_v29  ;;  %v1190_v63 = vmul.f32 %v5081_v4, %v8816_v27  ;;  %v1198_v2 = vmul.f32 %v5083_v29, %v8817_v9  ;;  %v1206_v6 = vmul.f32 %v5081_v4, %v8818_v34  ;;  %v536_v48 = vmax.f32 %v532_v23, 1e-12 }
 0x152   : > { %v1214_v62 = vmul.f32 %v5083_v29, %v8819_v5  ;;  %vm556_vm13 = vmand %vm548_vm10, %vm552_vm11  ;;  %v1222_v39 = vmul.f32 %v5081_v4, %v8736_v53  ;;  %v1230_v35 = vmul.f32 %v5083_v29, %v8737_v14  ;;  %vm576_vm15 = vcmp.ge.f32.partialorder %v4925_v46, 0.0 }
 0x153   : > { %vm5099_vm8 = vmand %vm556_vm13, %vm560_vm5  ;;  %v1194_v36 = vsub.f32 %v8822_v12, %v1190_v63  ;;  %v1210_v47 = vsub.f32 %v8823_v8, %v1206_v6  ;;  %vm580_vm4 = vcmp.le.f32.partialorder %v4929_v15, %v4925_v46  ;;  %vm596_vm12 = vcmp.le.f32.partialorder %v4305_v54, 0.0 }
 0x154   : > { %v1226_v24 = vsub.f32 %v8824_v1, %v1222_v39  ;;  %3381 = vrcp.f32 %v536_v48  ;;  %vm5110_vm6 = vmand %vm576_vm15, %vm580_vm4  ;;  %vm600_vm2 = vcmp.le.f32.partialorder %v4308_v20, 0.0  ;;  %v5117_v61 = vsub.f32 %v4844_v32, %v8776_v44 }
 0x155   : > { %v1202_v19 = vsub.f32 %v1194_v36, %v1198_v2  ;;  %v1218_v25 = vsub.f32 %v1210_v47, %v1214_v62  ;;  %vm5119_vm3 = vmand %vm596_vm12, %vm600_vm2  ;;  %v5125_v46 = vsub.f32 %v4848_v57, %v8777_v0  ;;  %v5129_v15 = vsub.f32 %v4844_v32, %v8777_v0 }
 0x156   : > { %v3376_v30 = vpop.eup %3375  ;;  %v5133_v56 = vadd.f32 %v8830_v45, %v8829_v37  ;;  %v1234_v38 = vsub.f32 %v1226_v24, %v1230_v35  ;;  %v5137_v40 = vsub.f32 %v4848_v57, %v8780_v28  ;;  %v956_v33 = vmul.f32 %v5117_v61, %v4848_v57 }
 0x157   : > { %v3378_v23 = vpop.eup %3377  ;;  %v1238_v63 = vmul.f32 %v1202_v19, %v1202_v19  ;;  %v1242_v2 = vmul.f32 %v1218_v25, %v1218_v25  ;;  %v432_v6 = vmul.f32 %v3376_v30, %v4958_v49  ;;  %v932_v62 = vmul.f32 %v5129_v15, %v5125_v46 }
 0x158   : > { %v3380_v39 = vpop.eup %3379  ;;  %v1250_v48 = vmul.f32 %v1234_v38, %v1234_v38  ;;  %v480_v12 = vmul.f32 %v3378_v23, %v4308_v20  ;;  %v928_v35 = vmul.f32 %v5137_v40, %v5117_v61  ;;  %v940_v36 = vmul.f32 %v5129_v15, %v4848_v57 }
 0x159   : > { %vm1064_vm7 = vcmp.ge.f32.partialorder %v4848_v57, 0.0  ;;  %v1246_v8 = vadd.f32 %v1242_v2, %v1238_v63  ;;  %v404_v47 = vmul.f32 %v3380_v39, %v5002_v31  ;;  %v408_v49 = vmul.f32 %v3380_v39, %v4986_v13 }
 0x15a   : > { %v456_v1 = vsub.f32 1.0, %v432_v6  ;;  %v936_v24 = vsub.f32 %v928_v35, %v932_v62  ;;  %v944_v19 = vmul.f32 %v5137_v40, %v4844_v32  ;;  %v952_v20 = vmul.f32 %v5125_v46, %v4844_v32 }
 0x15b   : > { %v5158_v25 = vsub.f32 %v5125_v46, %v5117_v61  ;;  %v5160_v30 = vadd.f32 %v1250_v48, %v1246_v8  ;;  %v464_v13 = vsel %vm5032_vm0, %v432_v6, %v408_v49  ;;  %v992_v31 = vsub.f32 %v5129_v15, %v5137_v40 }
 0x15c   : > { %v460_v37 = vsel %vm5032_vm0, %v456_v1, %v404_v47  ;;  %v508_v38 = vsel %vm5050_vm9, %v480_v12, %v464_v13  ;;  %v5172_v23 = vsub.f32 %v940_v36, %v944_v19  ;;  %v5174_v63 = vsub.f32 %v952_v20, %v956_v33 }
 0x15d   : > { %v504_v45 = vsel %vm5050_vm9, 0.0, %v460_v37  ;;  %1258 = vmin.xlane.f32.xlu1 %v5160_v30  ;;  %v528_v58 = vsel %vm5074_vm14, 1.0, %v508_v38  ;;  %v996_v6 = vadd.f32 %v992_v31, %v5158_v25  ;;  %vm1012_vm0 = vcmp.le.f32.partialorder %v936_v24, 0.0 }
 0x15e   : > { %v524_v2 = vsel %vm5074_vm14, 0.0, %v504_v45  ;;  %v3382_v62 = vpop.eup %3381  ;;  %v572_v55 = vsel %vm5099_vm8, 0.0, %v528_v58  ;;  %v964_v39 = vadd.f32 %v5172_v23, %v936_v24  ;;  %vm1016_vm9 = vcmp.ge.f32.partialorder %v5158_v25, 0.0  ;;  %v8841_v45 = vld [vmem:[#allocation26_spill] sm:$0xff] }
 0x15f   : > { %vm1024_vm1 = vcmp.ge.f32.partialorder %v992_v31, 0.0  ;;  %v544_v33 = vmul.f32 %v3382_v62, %v4305_v54  ;;  %v592_v48 = vsel %vm5110_vm6, 0.0, %v572_v55  ;;  %v1000_v12 = vmax.f32 %v996_v6, 1e-12  ;;  %vm1020_vm10 = vmand %vm1012_vm0, %vm1016_vm9  ;;  %v8848_v55 = vld [vmem:[#allocation29_spill] sm:$0xff] }
 0x160   : > { %v1044_v50 = vsub.f32 %v4848_v57, %v5137_v40  ;;  %v5193_v35 = vsel %vm5119_vm3, 0.0, %v592_v48  ;;  %v968_v36 = vadd.f32 %v964_v39, %v5174_v63  ;;  %vm5196_vm14 = vmand %vm1020_vm10, %vm1024_vm1  ;;  %vm1060_vm11 = vcmp.le.f32.partialorder %v5172_v23, 0.0  ;;  %v5279_v48 = vld [vmem:[%s8468_s1 + $0x30] sm:$0xff] }
 0x161   : > { %8831 = vst [vmem:[#allocation68_spill] sm:$0xff] %v5193_v35  ;;  %vm1072_vm5 = vcmp.le.f32.partialorder %v5137_v40, 0.0  ;;  %v568_v54 = vsel %vm5099_vm8, %v544_v33, %v524_v2  ;;  %v624_v47 = vmul.f32 %v5193_v35, %v3739_v22  ;;  %v640_v49 = vmul.f32 %v5193_v35, %v3777_v42  ;;  %vm1068_vm13 = vmand %vm1060_vm11, %vm1064_vm7 }
 0x162   : > { %v656_v1 = vmul.f32 %v5193_v35, %v8721_v52  ;;  %v588_v24 = vsel %vm5110_vm6, 1.0, %v568_v54  ;;  %v972_v19 = vmax.f32 %v968_v36, 1e-12  ;;  %3383 = vrcp.f32 %v1000_v12  ;;  %vm5214_vm15 = vmand %vm1068_vm13, %vm1072_vm5  ;;  %v8849_v12 = vld [vmem:[#allocation14_spill] sm:$0xff] }
 0x163   : > { %v1048_v20 = vmax.f32 %v1044_v50, 1e-12  ;;  %v5220_v22 = vsel %vm5119_vm3, 0.0, %v588_v24  ;;  %vm1088_vm8 = vcmp.ge.f32.partialorder %v5137_v40, 0.0  ;;  %vm1092_vm4 = vcmp.le.f32.partialorder %v5129_v15, %v5137_v40  ;;  %v8839_v15 = vld [vmem:[#allocation38_spill] sm:$0xff] }
 0x164   : > { %8836 = vst [vmem:[#allocation69_spill] sm:$0xff] %v5220_v22  ;;  %v1108_v42 = vsub.f32 %v4844_v32, %v5117_v61  ;;  %v616_v52 = vmul.f32 %v5220_v22, %v3737_v21  ;;  %v632_v59 = vmul.f32 %v5220_v22, %v3775_v41  ;;  %v648_v37 = vmul.f32 %v5220_v22, %v8720_v26  ;;  %vm5233_vm12 = vmand %vm1088_vm8, %vm1092_vm4  ;;  %v8840_v21 = vld [vmem:[#allocation67_spill] sm:$0xff] }
 0x165   : > { %3385 = vrcp.f32 %v972_v19  ;;  %vm1124_vm6 = vcmp.le.f32.partialorder %v5174_v63, 0.0  ;;  %vm1128_vm2 = vcmp.ge.f32.partialorder %v4844_v32, 0.0  ;;  %vm1136_vm7 = vcmp.le.f32.partialorder %v5117_v61, 0.0 }
 0x166   : > { %3387 = vrcp.f32 %v1048_v20  ;;  %v1112_v13 = vmax.f32 %v1108_v42, 1e-12  ;;  %v620_v40 = vsub.f32 %v8839_v15, %v616_v52  ;;  %v636_v31 = vsub.f32 %v8840_v21, %v632_v59  ;;  %vm1132_vm3 = vmand %vm1124_vm6, %vm1128_vm2 }
 0x167   : > { %v652_v41 = vsub.f32 %v8841_v45, %v648_v37  ;;  %vm5243_vm0 = vmand %vm1132_vm3, %vm1136_vm7  ;;  %vm1152_vm9 = vcmp.ge.f32.partialorder %v5117_v61, 0.0  ;;  %vm1156_vm1 = vcmp.le.f32.partialorder %v5125_v46, %v5117_v61  ;;  %vm1172_vm10 = vcmp.le.f32.partialorder %v4844_v32, 0.0 }
 0x168   : > { %3389 = vrcp.f32 %v1112_v13  ;;  %v628_v38 = vsub.f32 %v620_v40, %v624_v47  ;;  %v644_v2 = vsub.f32 %v636_v31, %v640_v49  ;;  %vm5251_vm11 = vmand %vm1152_vm9, %vm1156_vm1  ;;  %vm1176_vm5 = vcmp.le.f32.partialorder %v4848_v57, 0.0 }
 0x169   : > { %v660_v58 = vsub.f32 %v652_v41, %v656_v1  ;;  %vm5256_vm13 = vmand %vm1172_vm10, %vm1176_vm5  ;;  %v5262_v39 = vsub.f32 %v8848_v55, %v8776_v44  ;;  %v5266_v61 = vsub.f32 %v5133_v56, %v8777_v0  ;;  %v5270_v46 = vsub.f32 %v8848_v55, %v8777_v0 }
 0x16a   : > { %v5274_v33 = vsub.f32 %v5133_v56, %v8780_v28  ;;  %v5283_v50 = vrot.slane %v5279_v48, %v8849_v12  ;;  %v664_v36 = vmul.f32 %v628_v38, %v628_v38  ;;  %v668_v54 = vmul.f32 %v644_v2, %v644_v2 }
 0x16b   : > { %v676_v47 = vmul.f32 %v660_v58, %v660_v58  ;;  %v931_v1 = vmul.f32 %v5270_v46, %v5266_v61  ;;  %v939_v24 = vmul.f32 %v5270_v46, %v5133_v56  ;;  %v951_v52 = vmul.f32 %v5266_v61, %v8848_v55 }
 0x16c   : > { %v927_v49 = vmul.f32 %v5274_v33, %v5262_v39  ;;  %v943_v19 = vmul.f32 %v5274_v33, %v8848_v55  ;;  %v3384_v20 = vpop.eup %3383  ;;  %v672_v42 = vadd.f32 %v668_v54, %v664_v36  ;;  %v955_v59 = vmul.f32 %v5262_v39, %v5133_v56 }
 0x16d   : > { %v5299_v37 = vsub.f32 %v5266_v61, %v5262_v39  ;;  %vm1063_vm8 = vcmp.ge.f32.partialorder %v5133_v56, 0.0  ;;  %v1008_v13 = vmul.f32 %v3384_v20, %v5158_v25  ;;  %v991_v21 = vsub.f32 %v5270_v46, %v5274_v33 }
 0x16e   : > { %v935_v15 = vsub.f32 %v927_v49, %v931_v1  ;;  %v5303_v40 = vsub.f32 %v939_v24, %v943_v19  ;;  %v5307_v45 = vadd.f32 %v676_v47, %v672_v42  ;;  %v5309_v41 = vsub.f32 %v951_v52, %v955_v59 }
 0x16f   : > { %v3386_v31 = vpop.eup %3385  ;;  %vm1015_vm4 = vcmp.ge.f32.partialorder %v5299_v37, 0.0  ;;  %v1043_v38 = vsub.f32 %v5133_v56, %v5274_v33  ;;  %v1032_v36 = vsub.f32 1.0, %v1008_v13  ;;  %v995_v49 = vadd.f32 %v991_v21, %v5299_v37 }
 0x170   : > { %v3388_v2 = vpop.eup %3387  ;;  %v980_v58 = vmul.f32 %v3386_v31, %v5172_v23  ;;  %v984_v25 = vmul.f32 %v3386_v31, %v5174_v63  ;;  %v963_v54 = vadd.f32 %v5303_v40, %v935_v15  ;;  %687 = vmin.xlane.f32.xlu0 %v5307_v45  ;;  %vm1011_vm6 = vcmp.le.f32.partialorder %v935_v15, 0.0 }
 0x171   : > { %v1056_v47 = vmul.f32 %v3388_v2, %v4848_v57  ;;  %vm1023_vm2 = vcmp.ge.f32.partialorder %v991_v21, 0.0  ;;  %vm1019_vm3 = vmand %vm1011_vm6, %vm1015_vm4  ;;  %v1047_v19 = vmax.f32 %v1043_v38, 1e-12  ;;  %v999_v52 = vmax.f32 %v995_v49, 1e-12  ;;  %v8859_v49 = vld [vmem:[#allocation61_spill] sm:$0xff] }
 0x172   : > { %v3390_v1 = vpop.eup %3389  ;;  %v1036_v24 = vsel %vm5196_vm14, %v1032_v36, %v980_v58  ;;  %v1040_v23 = vsel %vm5196_vm14, %v1008_v13, %v984_v25  ;;  %v967_v63 = vadd.f32 %v963_v54, %v5309_v41  ;;  %vm5332_vm7 = vmand %vm1019_vm3, %vm1023_vm2  ;;  %vm1059_vm14 = vcmp.le.f32.partialorder %v5303_v40, 0.0  ;;  %v8858_v54 = vld [vmem:[#allocation35_spill] sm:$0xff] }
 0x173   : > { %v1080_v57 = vsel %vm5214_vm15, 0.0, %v1036_v24  ;;  %v1084_v20 = vsel %vm5214_vm15, %v1056_v47, %v1040_v23  ;;  %v1120_v42 = vmul.f32 %v3390_v1, %v4844_v32  ;;  %3391 = vrcp.f32 %v1047_v19  ;;  %vm1067_vm15 = vmand %vm1059_vm14, %vm1063_vm8 }
 0x174   : > { %v1100_v8 = vsel %vm5233_vm12, 0.0, %v1080_v57  ;;  %v1104_v13 = vsel %vm5233_vm12, 1.0, %v1084_v20  ;;  %v971_v15 = vmax.f32 %v967_v63, 1e-12  ;;  %3393 = vrcp.f32 %v999_v52 }
 0x175   : > { %v1144_v21 = vsel %vm5243_vm0, %v1120_v42, %v1100_v8  ;;  %v1148_v18 = vsel %vm5243_vm0, 0.0, %v1104_v13  ;;  %vm1071_vm12 = vcmp.le.f32.partialorder %v5274_v33, 0.0  ;;  %vm1087_vm9 = vcmp.ge.f32.partialorder %v5274_v33, 0.0  ;;  %v8864_v42 = vld [vmem:[#allocation7_spill] sm:$0xff] }
 0x176   : > { %v1164_v32 = vsel %vm5251_vm11, 1.0, %v1144_v21  ;;  %v1168_v31 = vsel %vm5251_vm11, 0.0, %v1148_v18  ;;  %3395 = vrcp.f32 %v971_v15  ;;  %vm5360_vm0 = vmand %vm1067_vm15, %vm1071_vm12  ;;  %vm1091_vm1 = vcmp.le.f32.partialorder %v5270_v46, %v5274_v33  ;;  %v8868_v18 = vld [vmem:[#allocation75_spill] sm:$0xff] }
 0x177   : > { %v5354_v7 = vsel %vm5256_vm13, 0.0, %v1164_v32  ;;  %v5358_v26 = vsel %vm5256_vm13, 0.0, %v1168_v31  ;;  %vm5375_vm10 = vmand %vm1087_vm9, %vm1091_vm1  ;;  %v1107_v33 = vsub.f32 %v8848_v55, %v5262_v39  ;;  %vm1123_vm11 = vcmp.le.f32.partialorder %v5309_v41, 0.0  ;;  %v8869_v31 = vld [vmem:[#allocation6_spill] sm:$0xff] }
 0x178   : > { %8852 = vst [vmem:[#allocation34_spill] sm:$0xff] %v5354_v7  ;;  %8853 = vst [vmem:[#allocation48_spill] sm:$0xff] %v5358_v26  ;;  %v1192_v6 = vmul.f32 %v5354_v7, %v8816_v27  ;;  %v1200_v2 = vmul.f32 %v5358_v26, %v8817_v9  ;;  %v1208_v62 = vmul.f32 %v5354_v7, %v8818_v34  ;;  %vm1127_vm5 = vcmp.ge.f32.partialorder %v8848_v55, 0.0 }
 0x179   : > { %v1216_v58 = vmul.f32 %v5358_v26, %v8819_v5  ;;  %v1224_v36 = vmul.f32 %v5354_v7, %v8736_v53  ;;  %v1232_v46 = vmul.f32 %v5358_v26, %v8737_v14  ;;  %vm1135_vm13 = vcmp.le.f32.partialorder %v5262_v39, 0.0  ;;  %vm1131_vm8 = vmand %vm1123_vm11, %vm1127_vm5 }
 0x17a   : > { %v1196_v47 = vsub.f32 %v8858_v54, %v1192_v6  ;;  %v1212_v1 = vsub.f32 %v8859_v49, %v1208_v62  ;;  %v1111_v23 = vmax.f32 %v1107_v33, 1e-12  ;;  %vm1151_vm4 = vcmp.ge.f32.partialorder %v5262_v39, 0.0  ;;  %vm5394_vm2 = vmand %vm1131_vm8, %vm1135_vm13 }
 0x17b   : > { %v1228_v24 = vsub.f32 %v4434_v10, %v1224_v36  ;;  %vm1155_vm6 = vcmp.le.f32.partialorder %v5266_v61, %v5262_v39  ;;  %vm1171_vm3 = vcmp.le.f32.partialorder %v8848_v55, 0.0  ;;  %vm1175_vm14 = vcmp.le.f32.partialorder %v5133_v56, 0.0  ;;  %v8865_v39 = vld [vmem:[#allocation76_spill] sm:$0xff] }
 0x17c   : > { %v1204_v63 = vsub.f32 %v1196_v47, %v1200_v2  ;;  %v1220_v19 = vsub.f32 %v1212_v1, %v1216_v58  ;;  %3397 = vrcp.f32 %v1111_v23  ;;  %vm5400_vm15 = vmand %vm1151_vm4, %vm1155_vm6  ;;  %v5406_v52 = vrot.slane %v5279_v48, %v8864_v42 }
 0x17d   : > { %v1236_v20 = vsub.f32 %v1228_v24, %v1232_v46  ;;  %v5410_v61 = vsub.f32 %v8865_v39, %v5283_v50  ;;  %v3392_v8 = vpop.eup %3391  ;;  %vm5412_vm12 = vmand %vm1171_vm3, %vm1175_vm14  ;;  %v5418_v32 = vsub.f32 %v8868_v18, %v5283_v50  ;;  %v5422_v6 = vrot.slane %v5279_v48, %v8869_v31 }
 0x17e   : > { %v1240_v13 = vmul.f32 %v1204_v63, %v1204_v63  ;;  %v1244_v15 = vmul.f32 %v1220_v19, %v1220_v19  ;;  %v3394_v2 = vpop.eup %3393  ;;  %v1055_v58 = vmul.f32 %v3392_v8, %v5133_v56  ;;  %v5427_v36 = vsub.f32 %v8868_v18, %v5406_v52 }
 0x17f   : > { %v1252_v62 = vmul.f32 %v1236_v20, %v1236_v20  ;;  %v1526_v46 = vmul.f32 %v5410_v61, %v8868_v18  ;;  %v1007_v47 = vmul.f32 %v3394_v2, %v5299_v37  ;;  %v1498_v49 = vsub.f32 %v8865_v39, %v5422_v6 }
 0x180   : > { %v3396_v33 = vpop.eup %3395  ;;  %v1248_v54 = vadd.f32 %v1244_v15, %v1240_v13  ;;  %v1506_v48 = vmul.f32 %v5418_v32, %v5410_v61  ;;  %v1514_v24 = vmul.f32 %v5418_v32, %v8865_v39  ;;  %v1530_v23 = vmul.f32 %v5427_v36, %v8865_v39 }
 0x181   : > { %v979_v1 = vmul.f32 %v3396_v33, %v5303_v40  ;;  %v983_v56 = vmul.f32 %v3396_v33, %v5309_v41  ;;  %v1031_v19 = vsub.f32 1.0, %v1007_v47  ;;  %v1502_v37 = vmul.f32 %v1498_v49, %v5427_v36 }
 0x182   : > { %v5442_v63 = vadd.f32 %v1252_v62, %v1248_v54  ;;  %v1518_v20 = vmul.f32 %v1498_v49, %v8868_v18  ;;  %v5448_v13 = vsub.f32 %v1526_v46, %v1530_v23  ;;  %v5452_v40 = vsub.f32 %v5410_v61, %v5427_v36 }
 0x183   : > { %v1039_v8 = vsel %vm5332_vm7, %v1007_v47, %v983_v56  ;;  %v1566_v41 = vsub.f32 %v5418_v32, %v1498_v49  ;;  %v1035_v15 = vsel %vm5332_vm7, %v1031_v19, %v979_v1  ;;  %v1510_v62 = vsub.f32 %v1502_v37, %v1506_v48 }
 0x184   : > { %1262 = vmin.xlane.f32.xlu1 %v5442_v63  ;;  %v1083_v2 = vsel %vm5360_vm0, %v1055_v58, %v1039_v8  ;;  %v5460_v33 = vsub.f32 %v1514_v24, %v1518_v20  ;;  %v1079_v46 = vsel %vm5360_vm0, 0.0, %v1035_v15  ;;  %vm1590_vm9 = vcmp.ge.f32.partialorder %v5452_v40, 0.0 }
 0x185   : > { %v1103_v54 = vsel %vm5375_vm10, 1.0, %v1083_v2  ;;  %v1570_v47 = vadd.f32 %v1566_v41, %v5452_v40  ;;  %v1099_v59 = vsel %vm5375_vm10, 0.0, %v1079_v46  ;;  %vm1586_vm7 = vcmp.le.f32.partialorder %v1510_v62, 0.0 }
 0x186   : > { %v1147_v1 = vsel %vm5394_vm2, 0.0, %v1103_v54  ;;  %v1538_v58 = vadd.f32 %v5460_v33, %v1510_v62  ;;  %v3398_v48 = vpop.eup %3397  ;;  %vm1594_vm0 = vmand %vm1586_vm7, %vm1590_vm9  ;;  %vm1598_vm1 = vcmp.ge.f32.partialorder %v1566_v41, 0.0  ;;  %v1618_v24 = vsub.f32 %v8865_v39, %v1498_v49 }
 0x187   : > { %v1167_v38 = vsel %vm5400_vm15, 0.0, %v1147_v1  ;;  %v1574_v56 = vmax.f32 %v1570_v47, 1e-12  ;;  %v1119_v23 = vmul.f32 %v3398_v48, %v8848_v55  ;;  %vm5482_vm10 = vmand %vm1594_vm0, %vm1598_vm1  ;;  %vm1634_vm11 = vcmp.le.f32.partialorder %v5460_v33, 0.0 }
 0x188   : > { %v5479_v25 = vsel %vm5412_vm12, 0.0, %v1167_v38  ;;  %v1542_v19 = vadd.f32 %v1538_v58, %v5448_v13  ;;  %v1622_v2 = vmax.f32 %v1618_v24, 1e-12  ;;  %vm1638_vm5 = vcmp.ge.f32.partialorder %v8865_v39, 0.0  ;;  %v8879_v58 = vld [vmem:[#allocation55_spill] sm:$0xff]  ;;  %v8880_v38 = vld [vmem:[#allocation84_spill] sm:$0xff] }
 0x189   : > { %8870 = vst [vmem:[#allocation8_spill] sm:$0xff] %v5479_v25  ;;  %v1199_v20 = vmul.f32 %v5479_v25, %v8817_v9  ;;  %v1215_v8 = vmul.f32 %v5479_v25, %v8819_v5  ;;  %v1231_v55 = vmul.f32 %v5479_v25, %v8737_v14  ;;  %3399 = vrcp.f32 %v1574_v56  ;;  %vm1642_vm13 = vmand %vm1634_vm11, %vm1638_vm5 }
 0x18a   : > { %v1143_v41 = vsel %vm5394_vm2, %v1119_v23, %v1099_v59  ;;  %v1546_v15 = vmax.f32 %v1542_v19, 1e-12  ;;  %vm1646_vm8 = vcmp.le.f32.partialorder %v1498_v49, 0.0  ;;  %vm1662_vm4 = vcmp.ge.f32.partialorder %v1498_v49, 0.0  ;;  %v8878_v59 = vld [vmem:[#allocation43_spill] sm:$0xff]  ;;  %v8883_v23 = vld [vmem:[#allocation30_spill] sm:$0xff] }
 0x18b   : > { %v1163_v62 = vsel %vm5400_vm15, 1.0, %v1143_v41  ;;  %vm1666_vm6 = vcmp.le.f32.partialorder %v5418_v32, %v1498_v49  ;;  %vm5503_vm3 = vmand %vm1642_vm13, %vm1646_vm8  ;;  %v1682_v54 = vsub.f32 %v8868_v18, %v5427_v36  ;;  %vm1698_vm2 = vcmp.le.f32.partialorder %v5448_v13, 0.0 }
 0x18c   : > { %v5501_v46 = vsel %vm5412_vm12, 0.0, %v1163_v62  ;;  %3401 = vrcp.f32 %v1546_v15  ;;  %vm5516_vm14 = vmand %vm1662_vm4, %vm1666_vm6  ;;  %vm1702_vm15 = vcmp.ge.f32.partialorder %v8868_v18, 0.0  ;;  %vm1710_vm12 = vcmp.le.f32.partialorder %v5427_v36, 0.0 }
 0x18d   : > { %8873 = vst [vmem:[#allocation9_spill] sm:$0xff] %v5501_v46  ;;  %v1191_v10 = vmul.f32 %v5501_v46, %v8816_v27  ;;  %v1207_v32 = vmul.f32 %v5501_v46, %v8818_v34  ;;  %v1223_v21 = vmul.f32 %v5501_v46, %v8736_v53  ;;  %3403 = vrcp.f32 %v1622_v2  ;;  %vm1706_vm7 = vmand %vm1698_vm2, %vm1702_vm15 }
 0x18e   : > { %v1686_v47 = vmax.f32 %v1682_v54, 1e-12  ;;  %vm1726_vm9 = vcmp.ge.f32.partialorder %v5427_v36, 0.0  ;;  %vm1730_vm0 = vcmp.le.f32.partialorder %v5410_v61, %v5427_v36  ;;  %vm5528_vm1 = vmand %vm1706_vm7, %vm1710_vm12  ;;  %vm1746_vm11 = vcmp.le.f32.partialorder %v8868_v18, 0.0  ;;  %v8886_v61 = vld [vmem:[#allocation31_spill] sm:$0xff] }
 0x18f   : > { %v1195_v1 = vsub.f32 %v8878_v59, %v1191_v10  ;;  %v1211_v48 = vsub.f32 %v8879_v58, %v1207_v32  ;;  %v1227_v56 = vsub.f32 %v8880_v38, %v1223_v21  ;;  %vm1750_vm5 = vcmp.le.f32.partialorder %v8865_v39, 0.0  ;;  %vm5538_vm13 = vmand %vm1726_vm9, %vm1730_vm0 }
 0x190   : > { %3405 = vrcp.f32 %v1686_v47  ;;  %v5536_v19 = vsub.f32 %v8883_v23, %v8776_v44  ;;  %v5544_v36 = vsub.f32 %v8886_v61, %v8777_v0  ;;  %vm5546_vm8 = vmand %vm1746_vm11, %vm1750_vm5  ;;  %v5552_v10 = vsub.f32 %v8883_v23, %v8777_v0 }
 0x191   : > { %v1203_v41 = vsub.f32 %v1195_v1, %v1199_v20  ;;  %v1219_v15 = vsub.f32 %v1211_v48, %v1215_v8  ;;  %v1235_v2 = vsub.f32 %v1227_v56, %v1231_v55  ;;  %v5556_v44 = vsub.f32 %v8886_v61, %v8780_v28 }
 0x192   : > { %v957_v20 = vmul.f32 %v5536_v19, %v8886_v61  ;;  %v953_v47 = vmul.f32 %v5544_v36, %v8883_v23  ;;  %v933_v1 = vmul.f32 %v5552_v10, %v5544_v36  ;;  %v941_v28 = vmul.f32 %v5552_v10, %v8886_v61 }
 0x193   : > { %v3400_v8 = vpop.eup %3399  ;;  %v1239_v55 = vmul.f32 %v1203_v41, %v1203_v41  ;;  %v1243_v32 = vmul.f32 %v1219_v15, %v1219_v15  ;;  %v1251_v21 = vmul.f32 %v1235_v2, %v1235_v2  ;;  %v929_v0 = vmul.f32 %v5556_v44, %v5536_v19 }
 0x194   : > { %v1582_v59 = vmul.f32 %v3400_v8, %v5452_v40  ;;  %vm1065_vm4 = vcmp.ge.f32.partialorder %v8886_v61, 0.0  ;;  %v945_v48 = vmul.f32 %v5556_v44, %v8883_v23  ;;  %v5572_v38 = vsub.f32 %v953_v47, %v957_v20 }
 0x195   : > { %v1247_v58 = vadd.f32 %v1243_v32, %v1239_v55  ;;  %v5576_v40 = vsub.f32 %v5544_v36, %v5536_v19  ;;  %v937_v15 = vsub.f32 %v929_v0, %v933_v1  ;;  %v993_v2 = vsub.f32 %v5552_v10, %v5556_v44 }
 0x196   : > { %v3402_v56 = vpop.eup %3401  ;;  %v1606_v41 = vsub.f32 1.0, %v1582_v59  ;;  %v1045_v8 = vsub.f32 %v8886_v61, %v5556_v44  ;;  %v5586_v47 = vsub.f32 %v941_v28, %v945_v48  ;;  %vm1089_vm0 = vcmp.ge.f32.partialorder %v5556_v44, 0.0 }
 0x197   : > { %v3404_v25 = vpop.eup %3403  ;;  %v5582_v55 = vadd.f32 %v1251_v21, %v1247_v58  ;;  %v1554_v32 = vmul.f32 %v3402_v56, %v5460_v33  ;;  %v1558_v20 = vmul.f32 %v3402_v56, %v5448_v13  ;;  %v997_v26 = vadd.f32 %v993_v2, %v5576_v40 }
 0x198   : > { %v1630_v46 = vmul.f32 %v3404_v25, %v8865_v39  ;;  %vm1013_vm6 = vcmp.le.f32.partialorder %v937_v15, 0.0  ;;  %vm1017_vm2 = vcmp.ge.f32.partialorder %v5576_v40, 0.0  ;;  %v965_v33 = vadd.f32 %v5586_v47, %v937_v15 }
 0x199   : > { %1260 = vmin.xlane.f32.xlu0 %v5582_v55  ;;  %v1610_v0 = vsel %vm5482_vm10, %v1606_v41, %v1554_v32  ;;  %v1614_v21 = vsel %vm5482_vm10, %v1582_v59, %v1558_v20  ;;  %vm1021_vm15 = vmand %vm1013_vm6, %vm1017_vm2  ;;  %vm1025_vm12 = vcmp.ge.f32.partialorder %v993_v2, 0.0  ;;  %v1001_v1 = vmax.f32 %v997_v26, 1e-12  ;;  %v8895_v2 = vld [vmem:[#allocation11_spill] sm:$0xff]  ;;  %v8897_v20 = vld [vmem:[#allocation36_spill] sm:$0xff] }
 0x19a   : > { %v3406_v13 = vpop.eup %3405  ;;  %v1654_v39 = vsel %vm5503_vm3, 0.0, %v1610_v0  ;;  %v1658_v25 = vsel %vm5503_vm3, %v1630_v46, %v1614_v21  ;;  %vm5601_vm9 = vmand %vm1021_vm15, %vm1025_vm12  ;;  %v1049_v58 = vmax.f32 %v1045_v8, 1e-12  ;;  %v969_v56 = vadd.f32 %v965_v33, %v5572_v38  ;;  %v8896_v8 = vld [vmem:[#allocation22_spill] sm:$0xff] }
 0x19b   : > { %v1674_v37 = vsel %vm5516_vm14, 0.0, %v1654_v39  ;;  %v1678_v59 = vsel %vm5516_vm14, 1.0, %v1658_v25  ;;  %v1694_v48 = vmul.f32 %v3406_v13, %v8868_v18  ;;  %3407 = vrcp.f32 %v1001_v1  ;;  %v8900_v33 = vld [vmem:[#allocation10_spill] sm:$0xff]  ;;  %v8902_v13 = vld [vmem:[#allocation33_spill] sm:$0xff]  ;;  %v8903_v1 = vld [vmem:[#allocation20_spill] sm:$0xff] }
 0x19c   : > { %v1722_v57 = vsel %vm5528_vm1, 0.0, %v1678_v59  ;;  %vm1061_vm10 = vcmp.le.f32.partialorder %v5586_v47, 0.0  ;;  %vm1073_vm3 = vcmp.le.f32.partialorder %v5556_v44, 0.0  ;;  %v973_v49 = vmax.f32 %v969_v56, 1e-12 }
 0x19d   : > { %v1718_v26 = vsel %vm5528_vm1, %v1694_v48, %v1674_v37  ;;  %v1742_v46 = vsel %vm5538_vm13, 0.0, %v1722_v57  ;;  %3409 = vrcp.f32 %v1049_v58  ;;  %vm1069_vm14 = vmand %vm1061_vm10, %vm1065_vm4  ;;  %vm1093_vm1 = vcmp.le.f32.partialorder %v5552_v10, %v5556_v44  ;;  %v8901_v44 = vld [vmem:[#allocation19_spill] sm:$0xff]  ;;  %v8904_v37 = vld [vmem:[#allocation58_spill] sm:$0xff] }
 0x19e   : > { %v1738_v18 = vsel %vm5538_vm13, 1.0, %v1718_v26  ;;  %v5625_v41 = vsel %vm5546_vm8, 0.0, %v1742_v46  ;;  %vm5627_vm7 = vmand %vm1069_vm14, %vm1073_vm3  ;;  %3411 = vrcp.f32 %v973_v49  ;;  %v1109_v25 = vsub.f32 %v8883_v23, %v5536_v19  ;;  %v8905_v48 = vld [vmem:[#allocation71_spill] sm:$0xff] }
 0x19f   : > { %8891 = vst [vmem:[#allocation15_spill] sm:$0xff] %v5625_v41  ;;  %v5636_v24 = vsel %vm5546_vm8, 0.0, %v1738_v18  ;;  %v1774_v62 = vmul.f32 %v5625_v41, %v8895_v2  ;;  %v1790_v32 = vmul.f32 %v5625_v41, %v8896_v8  ;;  %v1806_v0 = vmul.f32 %v5625_v41, %v8897_v20  ;;  %vm5644_vm11 = vmand %vm1089_vm0, %vm1093_vm1 }
 0x1a0   : > { %8894 = vst [vmem:[#allocation18_spill] sm:$0xff] %v5636_v24  ;;  %v1766_v10 = vmul.f32 %v5636_v24, %v8900_v33  ;;  %v1782_v54 = vmul.f32 %v5636_v24, %v8901_v44  ;;  %v1798_v39 = vmul.f32 %v5636_v24, %v8902_v13  ;;  %vm1125_vm5 = vcmp.le.f32.partialorder %v5572_v38, 0.0 }
 0x1a1   : > { %vm1129_vm13 = vcmp.ge.f32.partialorder %v8883_v23, 0.0  ;;  %vm1137_vm8 = vcmp.le.f32.partialorder %v5536_v19, 0.0  ;;  %vm1153_vm6 = vcmp.ge.f32.partialorder %v5536_v19, 0.0  ;;  %v1113_v57 = vmax.f32 %v1109_v25, 1e-12  ;;  %v8925_v25 = vld [vmem:[#allocation64_spill] sm:$0xff] }
 0x1a2   : > { %v1770_v58 = vsub.f32 %v8903_v1, %v1766_v10  ;;  %v1786_v59 = vsub.f32 %v8904_v37, %v1782_v54  ;;  %v1802_v56 = vsub.f32 %v8905_v48, %v1798_v39  ;;  %vm1133_vm4 = vmand %vm1125_vm5, %vm1129_vm13  ;;  %vm1157_vm15 = vcmp.le.f32.partialorder %v5544_v36, %v5536_v19  ;;  %v8910_v54 = vld [vmem:[#allocation85_spill] sm:$0xff]  ;;  %v8913_v19 = vld [vmem:[#allocation86_spill] sm:$0xff] }
 0x1a3   : > { %vm5663_vm2 = vmand %vm1133_vm4, %vm1137_vm8  ;;  %vm1173_vm12 = vcmp.le.f32.partialorder %v8883_v23, 0.0  ;;  %vm1177_vm10 = vcmp.le.f32.partialorder %v8886_v61, 0.0  ;;  %v5677_v39 = vsub.f32 %v8910_v54, %v5406_v52  ;;  %3413 = vrcp.f32 %v1113_v57 }
 0x1a4   : > { %v1778_v46 = vsub.f32 %v1770_v58, %v1774_v62  ;;  %v1794_v49 = vsub.f32 %v1786_v59, %v1790_v32  ;;  %v1810_v18 = vsub.f32 %v1802_v56, %v1806_v0  ;;  %vm5671_vm3 = vmand %vm1153_vm6, %vm1157_vm15  ;;  %v5685_v36 = vsub.f32 %v8913_v19, %v5283_v50 }
 0x1a5   : > { %vm5679_vm14 = vmand %vm1173_vm12, %vm1177_vm10  ;;  %v1492_v62 = vsub.f32 %v8910_v54, %v5283_v50  ;;  %v1500_v32 = vsub.f32 %v8913_v19, %v5422_v6  ;;  %v3408_v0 = vpop.eup %3407  ;;  %v1532_v59 = vmul.f32 %v5677_v39, %v8913_v19  ;;  %v1684_v21 = vsub.f32 %v8910_v54, %v5677_v39 }
 0x1a6   : > { %v1814_v1 = vmul.f32 %v1778_v46, %v1778_v46  ;;  %v1818_v58 = vmul.f32 %v1794_v49, %v1794_v49  ;;  %v1826_v37 = vmul.f32 %v1810_v18, %v1810_v18  ;;  %v1009_v56 = vmul.f32 %v3408_v0, %v5576_v40 }
 0x1a7   : > { %v3410_v48 = vpop.eup %3409  ;;  %v1504_v57 = vmul.f32 %v1500_v32, %v5677_v39  ;;  %v1508_v41 = vmul.f32 %v1492_v62, %v5685_v36  ;;  %v1516_v24 = vmul.f32 %v1492_v62, %v8913_v19  ;;  %v1520_v22 = vmul.f32 %v1500_v32, %v8910_v54 }
 0x1a8   : > { %v1822_v35 = vadd.f32 %v1818_v58, %v1814_v1  ;;  %v1057_v51 = vmul.f32 %v3410_v48, %v8886_v61  ;;  %v1528_v46 = vmul.f32 %v5685_v36, %v8910_v54  ;;  %v1033_v49 = vsub.f32 1.0, %v1009_v56  ;;  %v3412_v0 = vpop.eup %3411 }
 0x1a9   : > { %v1512_v18 = vsub.f32 %v1504_v57, %v1508_v41  ;;  %v5703_v29 = vsub.f32 %v5685_v36, %v5677_v39  ;;  %v1568_v40 = vsub.f32 %v1492_v62, %v1500_v32  ;;  %v5707_v7 = vsub.f32 %v1516_v24, %v1520_v22 }
 0x1aa   : > { %v5705_v11 = vadd.f32 %v1826_v37, %v1822_v35  ;;  %v5709_v1 = vsub.f32 %v1528_v46, %v1532_v59  ;;  %v1620_v61 = vsub.f32 %v8913_v19, %v1500_v32  ;;  %v981_v58 = vmul.f32 %v3412_v0, %v5586_v47 }
 0x1ab   : > { %v985_v48 = vmul.f32 %v3412_v0, %v5572_v38  ;;  %v1572_v41 = vadd.f32 %v1568_v40, %v5703_v29  ;;  %vm1588_vm0 = vcmp.le.f32.partialorder %v1512_v18, 0.0  ;;  %v1540_v57 = vadd.f32 %v5707_v7, %v1512_v18 }
 0x1ac   : > { %1834 = vmin.xlane.f32.xlu1 %v5705_v11  ;;  %vm1592_vm1 = vcmp.ge.f32.partialorder %v5703_v29, 0.0  ;;  %vm1600_vm5 = vcmp.ge.f32.partialorder %v1568_v40, 0.0  ;;  %v1624_v35 = vmax.f32 %v1620_v61, 1e-12  ;;  %v1037_v22 = vsel %vm5601_vm9, %v1033_v49, %v981_v58 }
 0x1ad   : > { %v1041_v24 = vsel %vm5601_vm9, %v1009_v56, %v985_v48  ;;  %v1576_v47 = vmax.f32 %v1572_v41, 1e-12  ;;  %vm1596_vm13 = vmand %vm1588_vm0, %vm1592_vm1  ;;  %vm1636_vm8 = vcmp.le.f32.partialorder %v5707_v7, 0.0  ;;  %v1081_v38 = vsel %vm5627_vm7, 0.0, %v1037_v22  ;;  %v3414_v49 = vpop.eup %3413 }
 0x1ae   : > { %v1085_v37 = vsel %vm5627_vm7, %v1057_v51, %v1041_v24  ;;  %v1544_v59 = vadd.f32 %v1540_v57, %v5709_v1  ;;  %vm5728_vm4 = vmand %vm1596_vm13, %vm1600_vm5  ;;  %3415 = vrcp.f32 %v1624_v35  ;;  %v1101_v28 = vsel %vm5644_vm11, 0.0, %v1081_v38 }
 0x1af   : > { %v1105_v56 = vsel %vm5644_vm11, 1.0, %v1085_v37  ;;  %3417 = vrcp.f32 %v1576_v47  ;;  %vm1640_vm9 = vcmp.ge.f32.partialorder %v8913_v19, 0.0  ;;  %v1121_v15 = vmul.f32 %v3414_v49, %v8883_v23  ;;  %v8929_v47 = vld [vmem:[#allocation25_spill] sm:$0xff]  ;;  %v8932_v49 = vld [vmem:[#allocation54_spill] sm:$0xff] }
 0x1b0   : > { %v1149_v51 = vsel %vm5663_vm2, 0.0, %v1105_v56  ;;  %v1548_v18 = vmax.f32 %v1544_v59, 1e-12  ;;  %vm1644_vm7 = vmand %vm1636_vm8, %vm1640_vm9  ;;  %vm1648_vm6 = vcmp.le.f32.partialorder %v1500_v32, 0.0  ;;  %vm1664_vm12 = vcmp.ge.f32.partialorder %v1500_v32, 0.0 }
 0x1b1   : > { %v1169_v40 = vsel %vm5671_vm3, 0.0, %v1149_v51  ;;  %vm5742_vm15 = vmand %vm1644_vm7, %vm1648_vm6  ;;  %vm1668_vm11 = vcmp.le.f32.partialorder %v1492_v62, %v1500_v32  ;;  %v1145_v23 = vsel %vm5663_vm2, %v1121_v15, %v1101_v28  ;;  %vm1700_vm0 = vcmp.le.f32.partialorder %v5709_v1, 0.0 }
 0x1b2   : > { %v5752_v61 = vsel %vm5679_vm14, 0.0, %v1169_v40  ;;  %3419 = vrcp.f32 %v1548_v18  ;;  %vm5754_vm10 = vmand %vm1664_vm12, %vm1668_vm11  ;;  %v1165_v62 = vsel %vm5671_vm3, 1.0, %v1145_v23  ;;  %v1688_v57 = vmax.f32 %v1684_v21, 1e-12 }
 0x1b3   : > { %8918 = vst [vmem:[#allocation52_spill] sm:$0xff] %v5752_v61  ;;  %v1201_v32 = vmul.f32 %v5752_v61, %v8817_v9  ;;  %v1217_v26 = vmul.f32 %v5752_v61, %v8819_v5  ;;  %v1233_v48 = vmul.f32 %v5752_v61, %v8737_v14  ;;  %v5769_v41 = vsel %vm5679_vm14, 0.0, %v1165_v62 }
 0x1b4   : > { %8921 = vst [vmem:[#allocation70_spill] sm:$0xff] %v5769_v41  ;;  %vm1704_vm2 = vcmp.ge.f32.partialorder %v8910_v54, 0.0  ;;  %vm1712_vm1 = vcmp.le.f32.partialorder %v5677_v39, 0.0  ;;  %v1193_v10 = vmul.f32 %v5769_v41, %v8816_v27  ;;  %v1209_v9 = vmul.f32 %v5769_v41, %v8818_v34  ;;  %v8924_v27 = vld [vmem:[#allocation39_spill] sm:$0xff] }
 0x1b5   : > { %v1225_v5 = vmul.f32 %v5769_v41, %v8736_v53  ;;  %vm1708_vm3 = vmand %vm1700_vm0, %vm1704_vm2  ;;  %vm1728_vm5 = vcmp.ge.f32.partialorder %v5677_v39, 0.0  ;;  %3421 = vrcp.f32 %v1688_v57  ;;  %vm1732_vm13 = vcmp.le.f32.partialorder %v5685_v36, %v5677_v39  ;;  %v8926_v53 = vld [vmem:[#allocation81_spill] sm:$0xff]  ;;  %v5802_v39 = vld [vmem:[%s8468_s1 + $0x38] sm:$0xff] }
 0x1b6   : > { %vm5780_vm14 = vmand %vm1708_vm3, %vm1712_vm1  ;;  %vm1748_vm8 = vcmp.le.f32.partialorder %v8910_v54, 0.0  ;;  %vm1752_vm9 = vcmp.le.f32.partialorder %v8913_v19, 0.0  ;;  %v1197_v34 = vsub.f32 %v8924_v27, %v1193_v10  ;;  %v1213_v35 = vsub.f32 %v8925_v25, %v1209_v9 }
 0x1b7   : > { %v1229_v22 = vsub.f32 %v8926_v53, %v1225_v5  ;;  %vm5791_vm7 = vmand %vm1728_vm5, %vm1732_vm13  ;;  %v5797_v38 = vsub.f32 %v8929_v47, %v5406_v52  ;;  %v5806_v36 = vrot.slane %v5802_v39, %v8849_v12  ;;  %v5814_v28 = vsub.f32 %v8932_v49, %v5283_v50 }
 0x1b8   : > { %v3416_v37 = vpop.eup %3415  ;;  %vm5808_vm6 = vmand %vm1748_vm8, %vm1752_vm9  ;;  %v5818_v56 = vsub.f32 %v8929_v47, %v5283_v50  ;;  %v5822_v15 = vsub.f32 %v8932_v49, %v5422_v6  ;;  %v1205_v18 = vsub.f32 %v1197_v34, %v1201_v32  ;;  %v1221_v12 = vsub.f32 %v1213_v35, %v1217_v26 }
 0x1b9   : > { %v3418_v51 = vpop.eup %3417  ;;  %v1237_v40 = vsub.f32 %v1229_v22, %v1233_v48  ;;  %v1632_v21 = vmul.f32 %v3416_v37, %v8913_v19  ;;  %vm1639_vm12 = vcmp.ge.f32.partialorder %v8932_v49, 0.0  ;;  %v1527_v48 = vmul.f32 %v5814_v28, %v8929_v47 }
 0x1ba   : > { %v1584_v23 = vmul.f32 %v3418_v51, %v5703_v29  ;;  %v1503_v62 = vmul.f32 %v5822_v15, %v5797_v38  ;;  %v1507_v57 = vmul.f32 %v5818_v56, %v5814_v28  ;;  %v1515_v10 = vmul.f32 %v5818_v56, %v8932_v49 }
 0x1bb   : > { %v1241_v9 = vmul.f32 %v1205_v18, %v1205_v18  ;;  %v1245_v5 = vmul.f32 %v1221_v12, %v1221_v12  ;;  %v1253_v27 = vmul.f32 %v1237_v40, %v1237_v40  ;;  %v1519_v32 = vmul.f32 %v5822_v15, %v8929_v47 }
 0x1bc   : > { %v3420_v19 = vpop.eup %3419  ;;  %v1608_v26 = vsub.f32 1.0, %v1584_v23  ;;  %v1511_v29 = vsub.f32 %v1503_v62, %v1507_v57  ;;  %v1531_v34 = vmul.f32 %v5797_v38, %v8932_v49  ;;  %v5847_v51 = vsub.f32 %v5814_v28, %v5797_v38 }
 0x1bd   : > { %v1249_v25 = vadd.f32 %v1245_v5, %v1241_v9  ;;  %v1556_v35 = vmul.f32 %v3420_v19, %v5707_v7  ;;  %v1560_v53 = vmul.f32 %v3420_v19, %v5709_v1  ;;  %v5841_v22 = vsub.f32 %v1515_v10, %v1519_v32 }
 0x1be   : > { %v5843_v37 = vsub.f32 %v1527_v48, %v1531_v34  ;;  %v1567_v18 = vsub.f32 %v5818_v56, %v5822_v15  ;;  %vm1587_vm11 = vcmp.le.f32.partialorder %v1511_v29, 0.0  ;;  %vm1591_vm0 = vcmp.ge.f32.partialorder %v5847_v51, 0.0 }
 0x1bf   : > { %v5851_v12 = vadd.f32 %v1253_v27, %v1249_v25  ;;  %v1612_v40 = vsel %vm5728_vm4, %v1608_v26, %v1556_v35  ;;  %v1616_v7 = vsel %vm5728_vm4, %v1584_v23, %v1560_v53  ;;  %v1539_v1 = vadd.f32 %v5841_v22, %v1511_v29  ;;  %v3422_v62 = vpop.eup %3421  ;;  %vm1595_vm4 = vmand %vm1587_vm11, %vm1591_vm0 }
 0x1c0   : > { %v1656_v57 = vsel %vm5742_vm15, 0.0, %v1612_v40  ;;  %v1660_v10 = vsel %vm5742_vm15, %v1632_v21, %v1616_v7  ;;  %v1571_v9 = vadd.f32 %v1567_v18, %v5847_v51  ;;  %v1696_v23 = vmul.f32 %v3422_v62, %v8910_v54  ;;  %v8939_v7 = vld [vmem:[#allocation16_spill] sm:$0xff]  ;;  %v8940_v62 = vld [vmem:[#allocation62_spill] sm:$0xff] }
 0x1c1   : > { %1264 = vmin.xlane.f32.xlu0 %v5851_v12  ;;  %v1676_v5 = vsel %vm5754_vm10, 0.0, %v1656_v57  ;;  %v1680_v46 = vsel %vm5754_vm10, 1.0, %v1660_v10  ;;  %v1543_v27 = vadd.f32 %v1539_v1, %v5843_v37  ;;  %vm1599_vm15 = vcmp.ge.f32.partialorder %v1567_v18, 0.0  ;;  %v8941_v10 = vld [vmem:[#allocation27_spill] sm:$0xff] }
 0x1c2   : > { %v1724_v0 = vsel %vm5780_vm14, 0.0, %v1680_v46  ;;  %v1575_v21 = vmax.f32 %v1571_v9, 1e-12  ;;  %v1619_v32 = vsub.f32 %v8932_v49, %v5822_v15  ;;  %v1720_v19 = vsel %vm5780_vm14, %v1696_v23, %v1676_v5  ;;  %vm5880_vm10 = vmand %vm1595_vm4, %vm1599_vm15 }
 0x1c3   : > { %v1744_v58 = vsel %vm5791_vm7, 0.0, %v1724_v0  ;;  %v1547_v26 = vmax.f32 %v1543_v27, 1e-12  ;;  %vm1635_vm2 = vcmp.le.f32.partialorder %v5841_v22, 0.0  ;;  %v1740_v29 = vsel %vm5791_vm7, 1.0, %v1720_v19 }
 0x1c4   : > { %v5889_v48 = vsel %vm5808_vm6, 0.0, %v1744_v58  ;;  %3423 = vrcp.f32 %v1575_v21  ;;  %v1623_v14 = vmax.f32 %v1619_v32, 1e-12  ;;  %vm5893_vm1 = vmand %vm1635_vm2, %vm1639_vm12  ;;  %v5899_v25 = vsel %vm5808_vm6, 0.0, %v1740_v29 }
 0x1c5   : > { %8935 = vst [vmem:[#allocation50_spill] sm:$0xff] %v5889_v48  ;;  %8938 = vst [vmem:[#allocation60_spill] sm:$0xff] %v5899_v25  ;;  %v1776_v24 = vmul.f32 %v5889_v48, %v8895_v2  ;;  %v1792_v35 = vmul.f32 %v5889_v48, %v8896_v8  ;;  %v1808_v53 = vmul.f32 %v5889_v48, %v8897_v20  ;;  %3425 = vrcp.f32 %v1547_v26 }
 0x1c6   : > { %v1768_v18 = vmul.f32 %v5899_v25, %v8900_v33  ;;  %v1784_v40 = vmul.f32 %v5899_v25, %v8901_v44  ;;  %v1800_v59 = vmul.f32 %v5899_v25, %v8902_v13  ;;  %3427 = vrcp.f32 %v1623_v14  ;;  %v8953_v14 = vld [vmem:[#allocation78_spill] sm:$0xff] }
 0x1c7   : > { %vm1647_vm3 = vcmp.le.f32.partialorder %v5822_v15, 0.0  ;;  %vm1663_vm5 = vcmp.ge.f32.partialorder %v5822_v15, 0.0  ;;  %vm1667_vm14 = vcmp.le.f32.partialorder %v5818_v56, %v5822_v15  ;;  %v1683_v46 = vsub.f32 %v8929_v47, %v5797_v38 }
 0x1c8   : > { %v1772_v1 = vsub.f32 %v8939_v7, %v1768_v18  ;;  %v1788_v57 = vsub.f32 %v8940_v62, %v1784_v40  ;;  %v1804_v9 = vsub.f32 %v8941_v10, %v1800_v59  ;;  %vm5922_vm13 = vmand %vm5893_vm1, %vm1647_vm3  ;;  %vm1699_vm9 = vcmp.le.f32.partialorder %v5843_v37, 0.0 }
 0x1c9   : > { %vm5928_vm8 = vmand %vm1663_vm5, %vm1667_vm14  ;;  %vm1703_vm7 = vcmp.ge.f32.partialorder %v8929_v47, 0.0  ;;  %vm1711_vm6 = vcmp.le.f32.partialorder %v5797_v38, 0.0  ;;  %vm1727_vm12 = vcmp.ge.f32.partialorder %v5797_v38, 0.0  ;;  %v1687_v0 = vmax.f32 %v1683_v46, 1e-12 }
 0x1ca   : > { %v1780_v56 = vsub.f32 %v1772_v1, %v1776_v24  ;;  %v1796_v15 = vsub.f32 %v1788_v57, %v1792_v35  ;;  %v1812_v27 = vsub.f32 %v1804_v9, %v1808_v53  ;;  %vm1707_vm11 = vmand %vm1699_vm9, %vm1703_vm7  ;;  %vm1731_vm4 = vcmp.le.f32.partialorder %v5814_v28, %v5797_v38  ;;  %v8952_v38 = vld [vmem:[#allocation77_spill] sm:$0xff] }
 0x1cb   : > { %vm5936_vm0 = vmand %vm1707_vm11, %vm1711_vm6  ;;  %vm1747_vm15 = vcmp.le.f32.partialorder %v8929_v47, 0.0  ;;  %vm1751_vm2 = vcmp.le.f32.partialorder %v8932_v49, 0.0  ;;  %v5946_v32 = vrot.slane %v5802_v39, %v8864_v42  ;;  %3429 = vrcp.f32 %v1687_v0 }
 0x1cc   : > { %v1816_v19 = vmul.f32 %v1780_v56, %v1780_v56  ;;  %v1820_v58 = vmul.f32 %v1796_v15, %v1796_v15  ;;  %vm5948_vm1 = vmand %vm1727_vm12, %vm1731_vm4  ;;  %v5962_v34 = vsub.f32 %v8953_v14, %v5806_v36  ;;  %v5966_v42 = vsub.f32 %v8952_v38, %v5806_v36 }
 0x1cd   : > { %vm5952_vm3 = vmand %vm1747_vm15, %vm1751_vm2  ;;  %v5958_v28 = vsub.f32 %v8952_v38, %v5946_v32  ;;  %v5970_v24 = vrot.slane %v5802_v39, %v8869_v31  ;;  %v1828_v18 = vmul.f32 %v1812_v27, %v1812_v27  ;;  %vm2214_vm5 = vcmp.ge.f32.partialorder %v8953_v14, 0.0 }
 0x1ce   : > { %v3424_v35 = vpop.eup %3423  ;;  %v1824_v53 = vadd.f32 %v1820_v58, %v1816_v19  ;;  %v2082_v7 = vmul.f32 %v5966_v42, %v5962_v34  ;;  %v2090_v1 = vmul.f32 %v5966_v42, %v8953_v14  ;;  %v2102_v39 = vmul.f32 %v5962_v34, %v8952_v38 }
 0x1cf   : > { %v1583_v40 = vmul.f32 %v3424_v35, %v5847_v51  ;;  %v5975_v59 = vsub.f32 %v8953_v14, %v5970_v24  ;;  %v3426_v62 = vpop.eup %3425  ;;  %v2106_v51 = vmul.f32 %v5958_v28, %v8953_v14  ;;  %v5990_v57 = vsub.f32 %v5962_v34, %v5958_v28 }
 0x1d0   : > { %v5982_v31 = vadd.f32 %v1828_v18, %v1824_v53  ;;  %v3428_v10 = vpop.eup %3427  ;;  %v1555_v9 = vmul.f32 %v3426_v62, %v5841_v22  ;;  %v1559_v46 = vmul.f32 %v3426_v62, %v5843_v37  ;;  %vm2278_vm9 = vcmp.ge.f32.partialorder %v8952_v38, 0.0 }
 0x1d1   : > { %v1607_v56 = vsub.f32 1.0, %v1583_v40  ;;  %v2078_v15 = vmul.f32 %v5975_v59, %v5958_v28  ;;  %v1631_v27 = vmul.f32 %v3428_v10, %v8932_v49  ;;  %v2094_v0 = vmul.f32 %v5975_v59, %v8952_v38 }
 0x1d2   : > { %1838 = vmin.xlane.f32.xlu1 %v5982_v31  ;;  %v6000_v19 = vsub.f32 %v2102_v39, %v2106_v51  ;;  %v2142_v58 = vsub.f32 %v5966_v42, %v5975_v59  ;;  %v1615_v37 = vsel %vm5880_vm10, %v1583_v40, %v1559_v46  ;;  %vm2166_vm14 = vcmp.ge.f32.partialorder %v5990_v57, 0.0 }
 0x1d3   : > { %v1611_v22 = vsel %vm5880_vm10, %v1607_v56, %v1555_v9  ;;  %v2086_v35 = vsub.f32 %v2078_v15, %v2082_v7  ;;  %v1659_v53 = vsel %vm5922_vm13, %v1631_v27, %v1615_v37  ;;  %v6013_v18 = vsub.f32 %v2090_v1, %v2094_v0 }
 0x1d4   : > { %v1655_v49 = vsel %vm5922_vm13, 0.0, %v1611_v22  ;;  %v2146_v62 = vadd.f32 %v2142_v58, %v5990_v57  ;;  %v1679_v54 = vsel %vm5928_vm8, 1.0, %v1659_v53  ;;  %vm2174_vm7 = vcmp.ge.f32.partialorder %v2142_v58, 0.0 }
 0x1d5   : > { %v1675_v39 = vsel %vm5928_vm8, 0.0, %v1655_v49  ;;  %vm2162_vm10 = vcmp.le.f32.partialorder %v2086_v35, 0.0  ;;  %vm2322_vm6 = vcmp.le.f32.partialorder %v8952_v38, 0.0  ;;  %v3430_v40 = vpop.eup %3429  ;;  %v1723_v5 = vsel %vm5936_vm0, 0.0, %v1679_v54  ;;  %v8963_v54 = vld [vmem:[#allocation56_spill] sm:$0xff] }
 0x1d6   : > { %v2114_v7 = vadd.f32 %v6013_v18, %v2086_v35  ;;  %v2150_v1 = vmax.f32 %v2146_v62, 1e-12  ;;  %vm2170_vm13 = vmand %vm2162_vm10, %vm2166_vm14  ;;  %v2194_v51 = vsub.f32 %v8953_v14, %v5975_v59  ;;  %v1695_v23 = vmul.f32 %v3430_v40, %v8929_v47 }
 0x1d7   : > { %v1743_v10 = vsel %vm5948_vm1, 0.0, %v1723_v5  ;;  %vm6032_vm8 = vmand %vm2170_vm13, %vm2174_vm7  ;;  %vm2210_vm12 = vcmp.le.f32.partialorder %v6013_v18, 0.0  ;;  %vm2222_vm11 = vcmp.le.f32.partialorder %v5975_v59, 0.0  ;;  %vm2242_vm2 = vcmp.le.f32.partialorder %v5966_v42, %v5975_v59  ;;  %v8964_v5 = vld [vmem:[#allocation73_spill] sm:$0xff] }
 0x1d8   : > { %v6040_v46 = vsel %vm5952_vm3, 0.0, %v1743_v10  ;;  %v2118_v56 = vadd.f32 %v2114_v7, %v6000_v19  ;;  %3431 = vrcp.f32 %v2150_v1  ;;  %v2198_v15 = vmax.f32 %v2194_v51, 1e-12  ;;  %vm2218_vm4 = vmand %vm2210_vm12, %vm2214_vm5  ;;  %v8981_v51 = vld [vmem:[#allocation12_spill] sm:$0xff] }
 0x1d9   : > { %8956 = vst [vmem:[#allocation47_spill] sm:$0xff] %v6040_v46  ;;  %v1719_v47 = vsel %vm5936_vm0, %v1695_v23, %v1675_v39  ;;  %v1775_v27 = vmul.f32 %v6040_v46, %v8895_v2  ;;  %v1791_v0 = vmul.f32 %v6040_v46, %v8896_v8  ;;  %v1807_v58 = vmul.f32 %v6040_v46, %v8897_v20  ;;  %vm6053_vm15 = vmand %vm2218_vm4, %vm2222_vm11  ;;  %v8969_v23 = vld [vmem:[#allocation89_spill] sm:$0xff] }
 0x1da   : > { %v1739_v37 = vsel %vm5948_vm1, 1.0, %v1719_v47  ;;  %v2122_v35 = vmax.f32 %v2118_v56, 1e-12  ;;  %3433 = vrcp.f32 %v2198_v15  ;;  %vm2238_vm0 = vcmp.ge.f32.partialorder %v5975_v59, 0.0  ;;  %v8962_v59 = vld [vmem:[#allocation44_spill] sm:$0xff] }
 0x1db   : > { %v6062_v21 = vsel %vm5952_vm3, 0.0, %v1739_v37  ;;  %v2258_v49 = vsub.f32 %v8952_v38, %v5958_v28  ;;  %vm2274_vm5 = vcmp.le.f32.partialorder %v6000_v19, 0.0  ;;  %vm6075_vm1 = vmand %vm2238_vm0, %vm2242_vm2  ;;  %vm2286_vm14 = vcmp.le.f32.partialorder %v5958_v28, 0.0 }
 0x1dc   : > { %8959 = vst [vmem:[#allocation38_spill] sm:$0xff] %v6062_v21  ;;  %v1767_v26 = vmul.f32 %v6062_v21, %v8900_v33  ;;  %v1783_v53 = vmul.f32 %v6062_v21, %v8901_v44  ;;  %v1799_v62 = vmul.f32 %v6062_v21, %v8902_v13  ;;  %3435 = vrcp.f32 %v2122_v35  ;;  %vm2282_vm3 = vmand %vm2274_vm5, %vm2278_vm9 }
 0x1dd   : > { %v2262_v42 = vmax.f32 %v2258_v49, 1e-12  ;;  %vm2302_vm10 = vcmp.ge.f32.partialorder %v5958_v28, 0.0  ;;  %vm2306_vm7 = vcmp.le.f32.partialorder %v5962_v34, %v5958_v28  ;;  %vm6088_vm13 = vmand %vm2282_vm3, %vm2286_vm14  ;;  %vm2326_vm12 = vcmp.le.f32.partialorder %v8953_v14, 0.0  ;;  %v8970_v34 = vld [vmem:[#allocation90_spill] sm:$0xff] }
 0x1de   : > { %v1771_v39 = vsub.f32 %v8962_v59, %v1767_v26  ;;  %v1787_v40 = vsub.f32 %v8963_v54, %v1783_v53  ;;  %v1803_v7 = vsub.f32 %v8964_v5, %v1799_v62  ;;  %vm6093_vm9 = vmand %vm2302_vm10, %vm2306_vm7  ;;  %v6099_v28 = vsub.f32 %v8969_v23, %v5406_v52 }
 0x1df   : > { %3437 = vrcp.f32 %v2262_v42  ;;  %v6103_v10 = vsub.f32 %v8970_v34, %v5283_v50  ;;  %v6107_v56 = vsub.f32 %v8969_v23, %v5283_v50  ;;  %vm6111_vm11 = vmand %vm2322_vm6, %vm2326_vm12  ;;  %v1501_v52 = vsub.f32 %v8970_v34, %v5422_v6 }
 0x1e0   : > { %v1779_v15 = vsub.f32 %v1771_v39, %v1775_v27  ;;  %v1795_v47 = vsub.f32 %v1787_v40, %v1791_v0  ;;  %v1811_v37 = vsub.f32 %v1803_v7, %v1807_v58  ;;  %v1533_v27 = vmul.f32 %v6099_v28, %v8970_v34 }
 0x1e1   : > { %v1509_v49 = vmul.f32 %v6107_v56, %v6103_v10  ;;  %v1517_v26 = vmul.f32 %v6107_v56, %v8970_v34  ;;  %v1529_v50 = vmul.f32 %v6103_v10, %v8969_v23  ;;  %v1505_v42 = vmul.f32 %v1501_v52, %v6099_v28 }
 0x1e2   : > { %v3432_v0 = vpop.eup %3431  ;;  %v1815_v58 = vmul.f32 %v1779_v15, %v1779_v15  ;;  %v1819_v53 = vmul.f32 %v1795_v47, %v1795_v47  ;;  %v1827_v62 = vmul.f32 %v1811_v37, %v1811_v37  ;;  %v1521_v59 = vmul.f32 %v1501_v52, %v8969_v23 }
 0x1e3   : > { %v2158_v6 = vmul.f32 %v3432_v0, %v5990_v57  ;;  %v6128_v39 = vsub.f32 %v1529_v50, %v1533_v27  ;;  %v6132_v54 = vsub.f32 %v6103_v10, %v6099_v28  ;;  %v1513_v7 = vsub.f32 %v1505_v42, %v1509_v49 }
 0x1e4   : > { %v3434_v40 = vpop.eup %3433  ;;  %v1823_v5 = vadd.f32 %v1819_v53, %v1815_v58  ;;  %v1569_v46 = vsub.f32 %v6107_v56, %v1501_v52  ;;  %v1621_v15 = vsub.f32 %v8970_v34, %v1501_v52  ;;  %v6137_v21 = vsub.f32 %v1517_v26, %v1521_v59 }
 0x1e5   : > { %v2182_v47 = vsub.f32 1.0, %v2158_v6  ;;  %v2206_v37 = vmul.f32 %v3434_v40, %v8953_v14  ;;  %vm1593_vm6 = vcmp.ge.f32.partialorder %v6132_v54, 0.0  ;;  %vm1589_vm4 = vcmp.le.f32.partialorder %v1513_v7, 0.0 }
 0x1e6   : > { %v3436_v57 = vpop.eup %3435  ;;  %v6140_v50 = vadd.f32 %v1827_v62, %v1823_v5  ;;  %v1573_v27 = vadd.f32 %v1569_v46, %v6132_v54  ;;  %vm1601_vm0 = vcmp.ge.f32.partialorder %v1569_v46, 0.0  ;;  %v1541_v58 = vadd.f32 %v6137_v21, %v1513_v7  ;;  %vm1597_vm2 = vmand %vm1589_vm4, %vm1593_vm6 }
 0x1e7   : > { %v2130_v49 = vmul.f32 %v3436_v57, %v6013_v18  ;;  %v2134_v0 = vmul.f32 %v3436_v57, %v6000_v19  ;;  %v1625_v53 = vmax.f32 %v1621_v15, 1e-12  ;;  %vm6147_vm5 = vmand %vm1597_vm2, %vm1601_vm0  ;;  %vm1637_vm3 = vcmp.le.f32.partialorder %v6137_v21, 0.0 }
 0x1e8   : > { %1836 = vmin.xlane.f32.xlu0 %v6140_v50  ;;  %v1577_v14 = vmax.f32 %v1573_v27, 1e-12  ;;  %vm1641_vm14 = vcmp.ge.f32.partialorder %v8970_v34, 0.0  ;;  %vm1649_vm10 = vcmp.le.f32.partialorder %v1501_v52, 0.0  ;;  %v1545_v62 = vadd.f32 %v1541_v58, %v6128_v39  ;;  %v8982_v27 = vld [vmem:[#allocation13_spill] sm:$0xff] }
 0x1e9   : > { %v3438_v46 = vpop.eup %3437  ;;  %v2186_v19 = vsel %vm6032_vm8, %v2182_v47, %v2130_v49  ;;  %v2190_v18 = vsel %vm6032_vm8, %v2158_v6, %v2134_v0  ;;  %3439 = vrcp.f32 %v1625_v53  ;;  %vm1645_vm7 = vmand %vm1637_vm3, %vm1641_vm14  ;;  %vm1665_vm8 = vcmp.ge.f32.partialorder %v1501_v52, 0.0  ;;  %v8983_v0 = vld [vmem:[#allocation23_spill] sm:$0xff]  ;;  %v8984_v53 = vld [vmem:[#allocation24_spill] sm:$0xff] }
 0x1ea   : > { %v2230_v42 = vsel %vm6053_vm15, 0.0, %v2186_v19  ;;  %v2234_v59 = vsel %vm6053_vm15, %v2206_v37, %v2190_v18  ;;  %v2270_v40 = vmul.f32 %v3438_v46, %v8952_v38  ;;  %3441 = vrcp.f32 %v1577_v14  ;;  %vm6163_vm12 = vmand %vm1645_vm7, %vm1649_vm10  ;;  %v8985_v46 = vld [vmem:[#allocation37_spill] sm:$0xff]  ;;  %v8986_v19 = vld [vmem:[#allocation46_spill] sm:$0xff] }
 0x1eb   : > { %v2250_v9 = vsel %vm6075_vm1, 0.0, %v2230_v42  ;;  %v2254_v6 = vsel %vm6075_vm1, 1.0, %v2234_v59  ;;  %v1549_v7 = vmax.f32 %v1545_v62, 1e-12  ;;  %vm1669_vm15 = vcmp.le.f32.partialorder %v6107_v56, %v1501_v52  ;;  %v8987_v62 = vld [vmem:[#allocation21_spill] sm:$0xff]  ;;  %v8988_v59 = vld [vmem:[#allocation59_spill] sm:$0xff] }
 0x1ec   : > { %v2294_v15 = vsel %vm6088_vm13, %v2270_v40, %v2250_v9  ;;  %v2298_v22 = vsel %vm6088_vm13, 0.0, %v2254_v6  ;;  %v1685_v38 = vsub.f32 %v8969_v23, %v6099_v28  ;;  %vm6182_vm1 = vmand %vm1665_vm8, %vm1669_vm15  ;;  %vm1701_vm6 = vcmp.le.f32.partialorder %v6128_v39, 0.0  ;;  %v8991_v6 = vld [vmem:[#allocation72_spill] sm:$0xff] }
 0x1ed   : > { %v2314_v47 = vsel %vm6093_vm9, 1.0, %v2294_v15  ;;  %v2318_v29 = vsel %vm6093_vm9, 0.0, %v2298_v22  ;;  %3443 = vrcp.f32 %v1549_v7  ;;  %vm1705_vm13 = vcmp.ge.f32.partialorder %v8969_v23, 0.0  ;;  %v8994_v22 = vld [vmem:[#allocation87_spill] sm:$0xff] }
 0x1ee   : > { %v6189_v1 = vsel %vm6111_vm11, 0.0, %v2314_v47  ;;  %v6193_v56 = vsel %vm6111_vm11, 0.0, %v2318_v29  ;;  %v1689_v52 = vmax.f32 %v1685_v38, 1e-12  ;;  %vm1709_vm9 = vmand %vm1701_vm6, %vm1705_vm13  ;;  %vm1713_vm11 = vcmp.le.f32.partialorder %v6099_v28, 0.0 }
 0x1ef   : > { %8979 = vst [vmem:[#allocation67_spill] sm:$0xff] %v6189_v1  ;;  %8980 = vst [vmem:[#allocation26_spill] sm:$0xff] %v6193_v56  ;;  %v2342_v57 = vmul.f32 %v6189_v1, %v8981_v51  ;;  %v2350_v49 = vmul.f32 %v6193_v56, %v8982_v27  ;;  %v2358_v58 = vmul.f32 %v6189_v1, %v8983_v0  ;;  %vm1729_vm0 = vcmp.ge.f32.partialorder %v6099_v28, 0.0 }
 0x1f0   : > { %v2366_v14 = vmul.f32 %v6193_v56, %v8984_v53  ;;  %v2374_v35 = vmul.f32 %v6189_v1, %v8985_v46  ;;  %v2382_v18 = vmul.f32 %v6193_v56, %v8986_v19  ;;  %3445 = vrcp.f32 %v1689_v52  ;;  %vm6211_vm4 = vmand %vm1709_vm9, %vm1713_vm11 }
 0x1f1   : > { %v2346_v42 = vsub.f32 %v8987_v62, %v2342_v57  ;;  %v2362_v40 = vsub.f32 %v8988_v59, %v2358_v58  ;;  %vm1733_vm2 = vcmp.le.f32.partialorder %v6103_v10, %v6099_v28  ;;  %vm1749_vm14 = vcmp.le.f32.partialorder %v8969_v23, 0.0  ;;  %v8997_v28 = vld [vmem:[#allocation88_spill] sm:$0xff] }
 0x1f2   : > { %v2378_v7 = vsub.f32 %v8991_v6, %v2374_v35  ;;  %vm6219_vm3 = vmand %vm1729_vm0, %vm1733_vm2  ;;  %vm1753_vm10 = vcmp.le.f32.partialorder %v8970_v34, 0.0  ;;  %v6227_v38 = vsub.f32 %v8994_v22, %v5946_v32  ;;  %v6235_v10 = vsub.f32 %v8997_v28, %v5806_v36 }
 0x1f3   : > { %v3440_v47 = vpop.eup %3439  ;;  %v2354_v29 = vsub.f32 %v2346_v42, %v2350_v49  ;;  %v2370_v52 = vsub.f32 %v2362_v40, %v2366_v14  ;;  %vm6229_vm7 = vmand %vm1749_vm14, %vm1753_vm10  ;;  %v6239_v58 = vsub.f32 %v8994_v22, %v5806_v36  ;;  %v6244_v49 = vsub.f32 %v8997_v28, %v5970_v24 }
 0x1f4   : > { %v3442_v35 = vpop.eup %3441  ;;  %v2386_v62 = vsub.f32 %v2378_v7, %v2382_v18  ;;  %v1633_v59 = vmul.f32 %v3440_v47, %v8970_v34  ;;  %v2108_v14 = vmul.f32 %v6227_v38, %v8997_v28  ;;  %vm2216_vm13 = vcmp.ge.f32.partialorder %v8997_v28, 0.0 }
 0x1f5   : > { %v2390_v42 = vmul.f32 %v2354_v29, %v2354_v29  ;;  %v2394_v40 = vmul.f32 %v2370_v52, %v2370_v52  ;;  %v1585_v6 = vmul.f32 %v3442_v35, %v6132_v54  ;;  %v2084_v56 = vmul.f32 %v6239_v58, %v6235_v10 }
 0x1f6   : > { %v2402_v1 = vmul.f32 %v2386_v62, %v2386_v62  ;;  %v2080_v18 = vmul.f32 %v6244_v49, %v6227_v38  ;;  %v2092_v34 = vmul.f32 %v6239_v58, %v8997_v28  ;;  %v2096_v7 = vmul.f32 %v6244_v49, %v8994_v22 }
 0x1f7   : > { %v3444_v47 = vpop.eup %3443  ;;  %v2398_v48 = vadd.f32 %v2394_v40, %v2390_v42  ;;  %v1609_v61 = vsub.f32 1.0, %v1585_v6  ;;  %v2104_v29 = vmul.f32 %v6235_v10, %v8994_v22  ;;  %v6261_v54 = vsub.f32 %v6235_v10, %v6227_v38 }
 0x1f8   : > { %v1557_v52 = vmul.f32 %v3444_v47, %v6137_v21  ;;  %v1561_v35 = vmul.f32 %v3444_v47, %v6128_v39  ;;  %v2088_v62 = vsub.f32 %v2080_v18, %v2084_v56  ;;  %v6265_v25 = vsub.f32 %v2092_v34, %v2096_v7 }
 0x1f9   : > { %v6267_v41 = vadd.f32 %v2402_v1, %v2398_v48  ;;  %v6269_v4 = vsub.f32 %v2104_v29, %v2108_v14  ;;  %v2144_v42 = vsub.f32 %v6239_v58, %v6244_v49  ;;  %vm2168_vm8 = vcmp.ge.f32.partialorder %v6261_v54, 0.0 }
 0x1fa   : > { %v3446_v40 = vpop.eup %3445  ;;  %v1613_v3 = vsel %vm6147_vm5, %v1609_v61, %v1557_v52  ;;  %v1617_v21 = vsel %vm6147_vm5, %v1585_v6, %v1561_v35  ;;  %v2116_v39 = vadd.f32 %v6265_v25, %v2088_v62  ;;  %vm2164_vm15 = vcmp.le.f32.partialorder %v2088_v62, 0.0 }
 0x1fb   : > { %2410 = vmin.xlane.f32.xlu1 %v6267_v41  ;;  %v1657_v48 = vsel %vm6163_vm12, 0.0, %v1613_v3  ;;  %v1661_v1 = vsel %vm6163_vm12, %v1633_v59, %v1617_v21  ;;  %v1697_v56 = vmul.f32 %v3446_v40, %v8969_v23  ;;  %v2148_v14 = vadd.f32 %v2144_v42, %v6261_v54  ;;  %vm2172_vm6 = vmand %vm2164_vm15, %vm2168_vm8  ;;  %v9002_v40 = vld [vmem:[#allocation40_spill] sm:$0xff]  ;;  %v9003_v21 = vld [vmem:[#allocation65_spill] sm:$0xff] }
 0x1fc   : > { %v1677_v61 = vsel %vm6182_vm1, 0.0, %v1657_v48  ;;  %v1681_v26 = vsel %vm6182_vm1, 1.0, %v1661_v1  ;;  %v2120_v6 = vadd.f32 %v2116_v39, %v6269_v4  ;;  %vm2176_vm5 = vcmp.ge.f32.partialorder %v2144_v42, 0.0 }
 0x1fd   : > { %v1721_v3 = vsel %vm6211_vm4, %v1697_v56, %v1677_v61  ;;  %v1725_v5 = vsel %vm6211_vm4, 0.0, %v1681_v26  ;;  %v2152_v59 = vmax.f32 %v2148_v14, 1e-12  ;;  %vm6295_vm12 = vmand %vm2172_vm6, %vm2176_vm5  ;;  %v2196_v18 = vsub.f32 %v8997_v28, %v6244_v49 }
 0x1fe   : > { %v1741_v37 = vsel %vm6219_vm3, 1.0, %v1721_v3  ;;  %v1745_v34 = vsel %vm6219_vm3, 0.0, %v1725_v5  ;;  %v2124_v7 = vmax.f32 %v2120_v6, 1e-12  ;;  %vm2212_vm1 = vcmp.le.f32.partialorder %v6265_v25, 0.0  ;;  %v9013_v3 = vld [vmem:[#allocation79_spill] sm:$0xff] }
 0x1ff   : > { %v6308_v9 = vsel %vm6229_vm7, 0.0, %v1741_v37  ;;  %v6312_v47 = vsel %vm6229_vm7, 0.0, %v1745_v34  ;;  %3447 = vrcp.f32 %v2152_v59  ;;  %v2200_v29 = vmax.f32 %v2196_v18, 1e-12  ;;  %vm2220_vm9 = vmand %vm2212_vm1, %vm2216_vm13 }
 0x200   : > { %9000 = vst [vmem:[#allocation29_spill] sm:$0xff] %v6308_v9  ;;  %9001 = vst [vmem:[#allocation14_spill] sm:$0xff] %v6312_v47  ;;  %v1769_v52 = vmul.f32 %v6308_v9, %v8900_v33  ;;  %v1777_v15 = vmul.f32 %v6312_v47, %v8895_v2  ;;  %v1785_v35 = vmul.f32 %v6308_v9, %v8901_v44  ;;  %3449 = vrcp.f32 %v2124_v7  ;;  %v9004_v2 = vld [vmem:[#allocation82_spill] sm:$0xff] }
 0x201   : > { %v1793_v62 = vmul.f32 %v6312_v47, %v8896_v8  ;;  %v1801_v42 = vmul.f32 %v6308_v9, %v8902_v13  ;;  %v1809_v57 = vmul.f32 %v6312_v47, %v8897_v20  ;;  %3451 = vrcp.f32 %v2200_v29 }
 0x202   : > { %v1773_v33 = vsub.f32 %v9002_v40, %v1769_v52  ;;  %v1789_v39 = vsub.f32 %v9003_v21, %v1785_v35  ;;  %vm2224_vm11 = vcmp.le.f32.partialorder %v6244_v49, 0.0  ;;  %vm2240_vm0 = vcmp.ge.f32.partialorder %v6244_v49, 0.0 }
 0x203   : > { %v1805_v8 = vsub.f32 %v9004_v2, %v1801_v42  ;;  %vm6333_vm4 = vmand %vm2220_vm9, %vm2224_vm11  ;;  %vm2244_vm2 = vcmp.le.f32.partialorder %v6239_v58, %v6244_v49  ;;  %v2260_v20 = vsub.f32 %v8994_v22, %v6227_v38  ;;  %vm2276_vm14 = vcmp.le.f32.partialorder %v6269_v4, 0.0 }
 0x204   : > { %v1781_v13 = vsub.f32 %v1773_v33, %v1777_v15  ;;  %v1797_v48 = vsub.f32 %v1789_v39, %v1793_v62  ;;  %vm6342_vm3 = vmand %vm2240_vm0, %vm2244_vm2  ;;  %vm2280_vm10 = vcmp.ge.f32.partialorder %v8994_v22, 0.0  ;;  %vm2288_vm8 = vcmp.le.f32.partialorder %v6227_v38, 0.0 }
 0x205   : > { %v1813_v56 = vsub.f32 %v1805_v8, %v1809_v57  ;;  %v2264_v14 = vmax.f32 %v2260_v20, 1e-12  ;;  %vm2284_vm7 = vmand %vm2276_vm14, %vm2280_vm10  ;;  %vm2304_vm15 = vcmp.ge.f32.partialorder %v6227_v38, 0.0  ;;  %vm2308_vm5 = vcmp.le.f32.partialorder %v6235_v10, %v6227_v38  ;;  %v9016_v38 = vld [vmem:[#allocation80_spill] sm:$0xff] }
 0x206   : > { %v1817_v58 = vmul.f32 %v1781_v13, %v1781_v13  ;;  %v1821_v49 = vmul.f32 %v1797_v48, %v1797_v48  ;;  %vm6350_vm6 = vmand %vm2284_vm7, %vm2288_vm8  ;;  %vm2324_vm1 = vcmp.le.f32.partialorder %v8994_v22, 0.0  ;;  %vm2328_vm9 = vcmp.le.f32.partialorder %v8997_v28, 0.0 }
 0x207   : > { %v1829_v26 = vmul.f32 %v1813_v56, %v1813_v56  ;;  %3453 = vrcp.f32 %v2264_v14  ;;  %vm6357_vm13 = vmand %vm2304_vm15, %vm2308_vm5  ;;  %v6364_v5 = vsub.f32 %v9013_v3, %v5946_v32  ;;  %v6372_v10 = vsub.f32 %v9016_v38, %v5806_v36 }
 0x208   : > { %v1825_v59 = vadd.f32 %v1821_v49, %v1817_v58  ;;  %vm6366_vm11 = vmand %vm2324_vm1, %vm2328_vm9  ;;  %v6376_v37 = vsub.f32 %v9013_v3, %v5806_v36  ;;  %v6380_v34 = vsub.f32 %v9016_v38, %v5970_v24  ;;  %vm2215_vm0 = vcmp.ge.f32.partialorder %v9016_v38, 0.0 }
 0x209   : > { %v3448_v7 = vpop.eup %3447  ;;  %v2107_v29 = vmul.f32 %v6364_v5, %v9016_v38  ;;  %v2259_v52 = vsub.f32 %v9013_v3, %v6364_v5  ;;  %v2103_v21 = vmul.f32 %v6372_v10, %v9013_v3  ;;  %v6402_v39 = vsub.f32 %v6372_v10, %v6364_v5 }
 0x20a   : > { %v6387_v15 = vadd.f32 %v1829_v26, %v1825_v59  ;;  %v2160_v35 = vmul.f32 %v3448_v7, %v6261_v54  ;;  %v2079_v62 = vmul.f32 %v6380_v34, %v6364_v5  ;;  %v2083_v42 = vmul.f32 %v6376_v37, %v6372_v10  ;;  %v3450_v57 = vpop.eup %3449 }
 0x20b   : > { %v2091_v40 = vmul.f32 %v6376_v37, %v9016_v38  ;;  %v2095_v33 = vmul.f32 %v6380_v34, %v9013_v3  ;;  %v3452_v54 = vpop.eup %3451  ;;  %v2132_v2 = vmul.f32 %v3450_v57, %v6265_v25  ;;  %v2136_v8 = vmul.f32 %v3450_v57, %v6269_v4 }
 0x20c   : > { %1840 = vmin.xlane.f32.xlu0 %v6387_v15  ;;  %v2184_v20 = vsub.f32 1.0, %v2160_v35  ;;  %v2087_v13 = vsub.f32 %v2079_v62, %v2083_v42  ;;  %v2208_v48 = vmul.f32 %v3452_v54, %v8997_v28  ;;  %v6410_v14 = vsub.f32 %v2103_v21, %v2107_v29 }
 0x20d   : > { %v6408_v56 = vsub.f32 %v2091_v40, %v2095_v33  ;;  %v2143_v58 = vsub.f32 %v6376_v37, %v6380_v34  ;;  %v2192_v26 = vsel %vm6295_vm12, %v2160_v35, %v2136_v8  ;;  %vm2167_vm14 = vcmp.ge.f32.partialorder %v6402_v39, 0.0 }
 0x20e   : > { %v2188_v49 = vsel %vm6295_vm12, %v2184_v20, %v2132_v2  ;;  %vm2163_vm2 = vcmp.le.f32.partialorder %v2087_v13, 0.0  ;;  %vm2279_vm10 = vcmp.ge.f32.partialorder %v9013_v3, 0.0  ;;  %v2236_v25 = vsel %vm6333_vm4, %v2208_v48, %v2192_v26 }
 0x20f   : > { %v2232_v4 = vsel %vm6333_vm4, 0.0, %v2188_v49  ;;  %v2115_v28 = vadd.f32 %v6408_v56, %v2087_v13  ;;  %v2147_v59 = vadd.f32 %v2143_v58, %v6402_v39  ;;  %vm2171_vm7 = vmand %vm2163_vm2, %vm2167_vm14  ;;  %v2256_v7 = vsel %vm6342_vm3, 1.0, %v2236_v25 }
 0x210   : > { %v2252_v23 = vsel %vm6342_vm3, 0.0, %v2232_v4  ;;  %vm2175_vm12 = vcmp.ge.f32.partialorder %v2143_v58, 0.0  ;;  %v2195_v29 = vsub.f32 %v9016_v38, %v6380_v34  ;;  %v2300_v44 = vsel %vm6350_vm6, 0.0, %v2256_v7  ;;  %v9028_v4 = vld [vmem:[#allocation63_spill] sm:$0xff] }
 0x211   : > { %v3454_v35 = vpop.eup %3453  ;;  %v2119_v62 = vadd.f32 %v2115_v28, %v6410_v14  ;;  %v2151_v42 = vmax.f32 %v2147_v59, 1e-12  ;;  %vm6435_vm4 = vmand %vm2171_vm7, %vm2175_vm12  ;;  %vm2211_vm8 = vcmp.le.f32.partialorder %v6408_v56, 0.0  ;;  %v2320_v40 = vsel %vm6357_vm13, 0.0, %v2300_v44  ;;  %v9029_v28 = vld [vmem:[#allocation28_spill] sm:$0xff]  ;;  %v9032_v7 = vld [vmem:[#allocation91_spill] sm:$0xff] }
 0x212   : > { %v2272_v1 = vmul.f32 %v3454_v35, %v8994_v22  ;;  %v2199_v33 = vmax.f32 %v2195_v29, 1e-12  ;;  %vm2219_vm3 = vmand %vm2211_vm8, %vm2215_vm0  ;;  %vm2223_vm15 = vcmp.le.f32.partialorder %v6380_v34, 0.0  ;;  %v6448_v21 = vsel %vm6366_vm11, 0.0, %v2320_v40 }
 0x213   : > { %9019 = vst [vmem:[#allocation35_spill] sm:$0xff] %v6448_v21  ;;  %v2123_v54 = vmax.f32 %v2119_v62, 1e-12  ;;  %3455 = vrcp.f32 %v2151_v42  ;;  %vm6450_vm5 = vmand %vm2219_vm3, %vm2223_vm15  ;;  %vm2239_vm1 = vcmp.ge.f32.partialorder %v6380_v34, 0.0  ;;  %v2352_v8 = vmul.f32 %v6448_v21, %v8982_v27 }
 0x214   : > { %v2296_v22 = vsel %vm6350_vm6, %v2272_v1, %v2252_v23  ;;  %v2368_v20 = vmul.f32 %v6448_v21, %v8984_v53  ;;  %v2384_v13 = vmul.f32 %v6448_v21, %v8986_v19  ;;  %vm2243_vm9 = vcmp.le.f32.partialorder %v6376_v37, %v6380_v34 }
 0x215   : > { %v2316_v48 = vsel %vm6357_vm13, 1.0, %v2296_v22  ;;  %3457 = vrcp.f32 %v2123_v54  ;;  %v2263_v58 = vmax.f32 %v2259_v52, 1e-12  ;;  %vm6471_vm6 = vmand %vm2239_vm1, %vm2243_vm9  ;;  %vm2275_vm0 = vcmp.le.f32.partialorder %v6410_v14, 0.0  ;;  %v9027_v52 = vld [vmem:[#allocation17_spill] sm:$0xff] }
 0x216   : > { %v6469_v61 = vsel %vm6366_vm11, 0.0, %v2316_v48  ;;  %3459 = vrcp.f32 %v2199_v33  ;;  %vm2287_vm2 = vcmp.le.f32.partialorder %v6364_v5, 0.0  ;;  %vm2283_vm13 = vmand %vm2275_vm0, %vm2279_vm10  ;;  %vm2303_vm14 = vcmp.ge.f32.partialorder %v6364_v5, 0.0 }
 0x217   : > { %9022 = vst [vmem:[#allocation61_spill] sm:$0xff] %v6469_v61  ;;  %v2344_v6 = vmul.f32 %v6469_v61, %v8981_v51  ;;  %v2360_v37 = vmul.f32 %v6469_v61, %v8983_v0  ;;  %v2376_v18 = vmul.f32 %v6469_v61, %v8985_v46  ;;  %3461 = vrcp.f32 %v2263_v58  ;;  %vm6485_vm11 = vmand %vm2283_vm13, %vm2287_vm2 }
 0x218   : > { %vm2307_vm7 = vcmp.le.f32.partialorder %v6372_v10, %v6364_v5  ;;  %vm2323_vm12 = vcmp.le.f32.partialorder %v9013_v3, 0.0  ;;  %vm2327_vm8 = vcmp.le.f32.partialorder %v9016_v38, 0.0  ;;  %v6503_v29 = vsub.f32 %v9032_v7, %v5946_v32  ;;  %v9035_v10 = vld [vmem:[#allocation92_spill] sm:$0xff] }
 0x219   : > { %v2348_v26 = vsub.f32 %v9027_v52, %v2344_v6  ;;  %v2364_v25 = vsub.f32 %v9028_v4, %v2360_v37  ;;  %v2380_v59 = vsub.f32 %v9029_v28, %v2376_v18  ;;  %vm6497_vm10 = vmand %vm2303_vm14, %vm2307_vm7  ;;  %v6511_v35 = vsub.f32 %v9035_v10, %v5806_v36 }
 0x21a   : > { %vm6505_vm3 = vmand %vm2323_vm12, %vm2327_vm8  ;;  %v6515_v44 = vsub.f32 %v9032_v7, %v5806_v36  ;;  %v6519_v62 = vsub.f32 %v9035_v10, %v5970_v24  ;;  %v2109_v40 = vmul.f32 %v6503_v29, %v9035_v10  ;;  %vm2217_vm15 = vcmp.ge.f32.partialorder %v9035_v10, 0.0 }
 0x21b   : > { %v2356_v42 = vsub.f32 %v2348_v26, %v2352_v8  ;;  %v2372_v1 = vsub.f32 %v2364_v25, %v2368_v20  ;;  %v2388_v32 = vsub.f32 %v2380_v59, %v2384_v13  ;;  %v2105_v13 = vmul.f32 %v6511_v35, %v9032_v7 }
 0x21c   : > { %v2081_v33 = vmul.f32 %v6519_v62, %v6503_v29  ;;  %v2085_v54 = vmul.f32 %v6515_v44, %v6511_v35  ;;  %v2093_v36 = vmul.f32 %v6515_v44, %v9035_v10  ;;  %v2097_v22 = vmul.f32 %v6519_v62, %v9032_v7 }
 0x21d   : > { %v3456_v24 = vpop.eup %3455  ;;  %v2392_v48 = vmul.f32 %v2356_v42, %v2356_v42  ;;  %v2396_v8 = vmul.f32 %v2372_v1, %v2372_v1  ;;  %v2404_v20 = vmul.f32 %v2388_v32, %v2388_v32  ;;  %v6538_v18 = vsub.f32 %v6511_v35, %v6503_v29 }
 0x21e   : > { %v2159_v58 = vmul.f32 %v3456_v24, %v6402_v39  ;;  %v2089_v6 = vsub.f32 %v2081_v33, %v2085_v54  ;;  %v6534_v37 = vsub.f32 %v2093_v36, %v2097_v22  ;;  %v6541_v4 = vsub.f32 %v2105_v13, %v2109_v40 }
 0x21f   : > { %v3458_v52 = vpop.eup %3457  ;;  %v2400_v26 = vadd.f32 %v2396_v8, %v2392_v48  ;;  %v2145_v25 = vsub.f32 %v6515_v44, %v6519_v62  ;;  %v2197_v28 = vsub.f32 %v9035_v10, %v6519_v62  ;;  %vm2169_vm9 = vcmp.ge.f32.partialorder %v6538_v18, 0.0 }
 0x220   : > { %v3460_v39 = vpop.eup %3459  ;;  %v2131_v59 = vmul.f32 %v3458_v52, %v6408_v56  ;;  %v2135_v42 = vmul.f32 %v3458_v52, %v6410_v14  ;;  %v2183_v1 = vsub.f32 1.0, %v2159_v58  ;;  %v2117_v32 = vadd.f32 %v6534_v37, %v2089_v6 }
 0x221   : > { %v3462_v33 = vpop.eup %3461  ;;  %v6550_v54 = vadd.f32 %v2404_v20, %v2400_v26  ;;  %v2207_v40 = vmul.f32 %v3460_v39, %v9016_v38  ;;  %v2149_v36 = vadd.f32 %v2145_v25, %v6538_v18  ;;  %vm2165_vm1 = vcmp.le.f32.partialorder %v2089_v6, 0.0 }
 0x222   : > { %v2187_v22 = vsel %vm6435_vm4, %v2183_v1, %v2131_v59  ;;  %v2191_v24 = vsel %vm6435_vm4, %v2159_v58, %v2135_v42  ;;  %v2271_v56 = vmul.f32 %v3462_v33, %v9013_v3  ;;  %v2121_v14 = vadd.f32 %v2117_v32, %v6541_v4  ;;  %vm2173_vm4 = vmand %vm2165_vm1, %vm2169_vm9  ;;  %v9042_v32 = vld [vmem:[#allocation45_spill] sm:$0xff] }
 0x223   : > { %2414 = vmin.xlane.f32.xlu1 %v6550_v54  ;;  %v2231_v48 = vsel %vm6450_vm5, 0.0, %v2187_v22  ;;  %v2235_v38 = vsel %vm6450_vm5, %v2207_v40, %v2191_v24  ;;  %v2153_v8 = vmax.f32 %v2149_v36, 1e-12  ;;  %vm2177_vm0 = vcmp.ge.f32.partialorder %v2145_v25, 0.0  ;;  %v6594_v25 = vpop.xlane.xlu1 %683  ;;  %v9043_v40 = vld [vmem:[#allocation57_spill] sm:$0xff] }
 0x224   : > { %v2251_v20 = vsel %vm6471_vm6, 0.0, %v2231_v48  ;;  %v2255_v57 = vsel %vm6471_vm6, 1.0, %v2235_v38  ;;  %v2125_v3 = vmax.f32 %v2121_v14, 1e-12  ;;  %vm6574_vm5 = vmand %vm2173_vm4, %vm2177_vm0  ;;  %v2201_v6 = vmax.f32 %v2197_v28, 1e-12 }
 0x225   : > { %v2295_v13 = vsel %vm6485_vm11, %v2271_v56, %v2251_v20  ;;  %v2299_v58 = vsel %vm6485_vm11, 0.0, %v2255_v57  ;;  %3463 = vrcp.f32 %v2153_v8  ;;  %vm2213_vm6 = vcmp.le.f32.partialorder %v6534_v37, 0.0  ;;  %v6624_v56 = vpop.xlane.xlu0 %681  ;;  %v9046_v14 = vld [vmem:[#allocation74_spill] sm:$0xff] }
 0x226   : > { %v2315_v52 = vsel %vm6497_vm10, 1.0, %v2295_v13  ;;  %v2319_v49 = vsel %vm6497_vm10, 0.0, %v2299_v58  ;;  %3465 = vrcp.f32 %v2125_v3  ;;  %vm2221_vm2 = vmand %vm2213_vm6, %vm2217_vm15  ;;  %vm2225_vm13 = vcmp.le.f32.partialorder %v6519_v62, 0.0 }
 0x227   : > { %v6585_v26 = vsel %vm6505_vm3, 0.0, %v2315_v52  ;;  %v6589_v34 = vsel %vm6505_vm3, 0.0, %v2319_v49  ;;  %3467 = vrcp.f32 %v2201_v6  ;;  %vm6604_vm11 = vmand %vm2221_vm2, %vm2225_vm13  ;;  %vm2241_vm14 = vcmp.ge.f32.partialorder %v6519_v62, 0.0  ;;  %v6638_v57 = vpop.xlane.xlu1 %1258 }
 0x228   : > { %9038 = vst [vmem:[#allocation7_spill] sm:$0xff] %v6585_v26  ;;  %9039 = vst [vmem:[#allocation76_spill] sm:$0xff] %v6589_v34  ;;  %v2343_v23 = vmul.f32 %v6585_v26, %v8981_v51  ;;  %v2351_v28 = vmul.f32 %v6589_v34, %v8982_v27  ;;  %v2359_v39 = vmul.f32 %v6585_v26, %v8983_v0  ;;  %vm2277_vm8 = vcmp.le.f32.partialorder %v6541_v4, 0.0 }
 0x229   : > { %v2367_v5 = vmul.f32 %v6589_v34, %v8984_v53  ;;  %v2375_v42 = vmul.f32 %v6585_v26, %v8985_v46  ;;  %v2383_v1 = vmul.f32 %v6589_v34, %v8986_v19  ;;  %vm2245_vm7 = vcmp.le.f32.partialorder %v6515_v44, %v6519_v62 }
 0x22a   : > { %v2347_v33 = vsub.f32 %v9042_v32, %v2343_v23  ;;  %v2363_v36 = vsub.f32 %v9043_v40, %v2359_v39  ;;  %vm6617_vm12 = vmand %vm2241_vm14, %vm2245_vm7  ;;  %v2261_v24 = vsub.f32 %v9032_v7, %v6503_v29  ;;  %vm2281_vm10 = vcmp.ge.f32.partialorder %v9032_v7, 0.0 }
 0x22b   : > { %v2379_v48 = vsub.f32 %v9046_v14, %v2375_v42  ;;  %vm2289_vm3 = vcmp.le.f32.partialorder %v6503_v29, 0.0  ;;  %vm2305_vm15 = vcmp.ge.f32.partialorder %v6503_v29, 0.0  ;;  %vm2285_vm1 = vmand %vm2277_vm8, %vm2281_vm10  ;;  %vm2309_vm9 = vcmp.le.f32.partialorder %v6511_v35, %v6503_v29  ;;  %v6648_v29 = vld [vmem:[%s6645_s10] sm:$0xff]  ;;  %v6661_v42 = vld [vmem:[%s6645_s10 + $0x10] sm:$0xff] }
 0x22c   : > { %v2355_v44 = vsub.f32 %v2347_v33, %v2351_v28  ;;  %v2371_v62 = vsub.f32 %v2363_v36, %v2367_v5  ;;  %v2265_v38 = vmax.f32 %v2261_v24, 1e-12  ;;  %vm6632_vm4 = vmand %vm2285_vm1, %vm2289_vm3  ;;  %vm2325_vm0 = vcmp.le.f32.partialorder %v9032_v7, 0.0 }
 0x22d   : > { %v2387_v8 = vsub.f32 %v2379_v48, %v2383_v1  ;;  %vm2329_vm6 = vcmp.le.f32.partialorder %v9035_v10, 0.0  ;;  %vm6640_vm2 = vmand %vm2305_vm15, %vm2309_vm9  ;;  %v9051_v6 = vlaneseq  ;;  %vm691_vm14 = vcmp.le.f32.partialorder %v4713_v16, %v6624_v56  ;;  %v6663_v1 = vpop.xlane.xlu0 %685 }
 0x22e   : > { %v2391_v3 = vmul.f32 %v2355_v44, %v2355_v44  ;;  %v2395_v13 = vmul.f32 %v2371_v62, %v2371_v62  ;;  %3469 = vrcp.f32 %v2265_v38  ;;  %vm6653_vm13 = vmand %vm2325_vm0, %vm2329_vm6  ;;  %vm788_vm7 = vcmp.lt.f32.partialorder %v6624_v56, %v6648_v29 }
 0x22f   : > { %v3464_v35 = vpop.eup %3463  ;;  %v6651_v52 = vand.u32 127, %v9051_v6  ;;  %v2403_v39 = vmul.f32 %v2387_v8, %v2387_v8  ;;  %vm790_vm8 = vcmp.lt.f32.partialorder %v6663_v1, %v6661_v42  ;;  %vm693_vm10 = vcmp.le.f32.partialorder %v5027_v43, %v6663_v1 }
 0x230   : > { %v3466_v23 = vpop.eup %3465  ;;  %v2399_v28 = vadd.f32 %v2395_v13, %v2391_v3  ;;  %v2161_v5 = vmul.f32 %v3464_v35, %v6538_v18  ;;  %v6704_v62 = vsel %vm790_vm8, %v6663_v1, %v6661_v42  ;;  %vm692_vm1 = vcmp.le.f32.partialorder %v4779_v17, %v6594_v25 }
 0x231   : > { %v3468_v32 = vpop.eup %3467  ;;  %v2133_v33 = vmul.f32 %v3466_v23, %v6534_v37  ;;  %v2137_v40 = vmul.f32 %v3466_v23, %v6541_v4  ;;  %v6677_v14 = vsel %vm691_vm14, %v6651_v52, 1073741824  ;;  %v6679_v37 = vpop.xlane.xlu1 %1262  ;;  %v6733_v6 = vsel %vm693_vm10, %v6651_v52, 1073741824 }
 0x232   : > { %v6669_v36 = vadd.f32 %v2403_v39, %v2399_v28  ;;  %v2185_v24 = vsub.f32 1.0, %v2161_v5  ;;  %v2209_v18 = vmul.f32 %v3468_v32, %v9035_v10  ;;  %v6691_v10 = vsel %vm788_vm7, %v6624_v56, %v6648_v29 }
 0x233   : > { %v2193_v16 = vsel %vm6574_vm5, %v2161_v5, %v2137_v40  ;;  %v700_v38 = vshra.s32 %v6677_v14, 16  ;;  %vm1268_vm3 = vcmp.le.f32.partialorder %v5442_v63, %v6679_v37 }
 0x234   : > { %2412 = vmin.xlane.f32.xlu0 %v6669_v36  ;;  %v2189_v4 = vsel %vm6574_vm5, %v2185_v24, %v2133_v33  ;;  %v2237_v48 = vsel %vm6604_vm11, %v2209_v18, %v2193_v16  ;;  %vm1364_vm5 = vcmp.lt.f32.partialorder %v6638_v57, %v6691_v10  ;;  %v6775_v24 = vsel %vm1268_vm3, %v6651_v52, 1073741824 }
 0x235   : > { %v2233_v44 = vsel %vm6604_vm11, 0.0, %v2189_v4  ;;  %v2257_v2 = vsel %vm6617_vm12, 1.0, %v2237_v48  ;;  %vm1366_vm11 = vcmp.lt.f32.partialorder %v6679_v37, %v6704_v62  ;;  %v6717_v3 = vcvt.s32.f32 %v700_v38  ;;  %v6792_v48 = vpop.xlane.xlu0 %687 }
 0x236   : > { %v2253_v8 = vsel %vm6617_vm12, 0.0, %v2233_v44  ;;  %v2301_v43 = vsel %vm6632_vm4, 0.0, %v2257_v2  ;;  %v6724_v22 = vsel %vm1366_vm11, %v6679_v37, %v6704_v62  ;;  %vm1266_vm12 = vcmp.le.f32.partialorder %v5160_v30, %v6638_v57  ;;  %v9057_v44 = vld [vmem:[#allocation41_spill] sm:$0xff]  ;;  %v9058_v2 = vld [vmem:[#allocation66_spill] sm:$0xff] }
 0x237   : > { %v2321_v59 = vsel %vm6640_vm2, 0.0, %v2301_v43  ;;  %v6741_v28 = vsel %vm1364_vm5, %v6638_v57, %v6691_v10  ;;  %703 = vmin.xlane.f32.xlu1 %v6717_v3  ;;  %v728_v30 = vshra.s32 %v6733_v6, 16  ;;  %v6761_v32 = vsel %vm1266_vm12, %v6651_v52, 1073741824 }
 0x238   : > { %v3470_v13 = vpop.eup %3469  ;;  %v6728_v35 = vsel %vm6653_vm13, 0.0, %v2321_v59  ;;  %v1275_v40 = vshra.s32 %v6761_v32, 16 }
 0x239   : > { %9054 = vst [vmem:[#allocation75_spill] sm:$0xff] %v6728_v35  ;;  %v2273_v23 = vmul.f32 %v3470_v13, %v9032_v7  ;;  %v6744_v39 = vpop.xlane.xlu1 %1834  ;;  %v6765_v33 = vcvt.s32.f32 %v728_v30  ;;  %v2353_v49 = vmul.f32 %v6728_v35, %v8982_v27  ;;  %v2369_v4 = vmul.f32 %v6728_v35, %v8984_v53 }
 0x23a   : > { %vm1940_vm15 = vcmp.lt.f32.partialorder %v6744_v39, %v6741_v28  ;;  %vm1842_vm9 = vcmp.le.f32.partialorder %v5705_v11, %v6744_v39  ;;  %v1303_v11 = vshra.s32 %v6775_v24, 16 }
 0x23b   : > { %v2297_v7 = vsel %vm6632_vm4, %v2273_v23, %v2253_v8  ;;  %v6758_v5 = vsel %vm1940_vm15, %v6744_v39, %v6741_v28  ;;  %731 = vmin.xlane.f32.xlu1 %v6765_v33  ;;  %v9059_v8 = vld [vmem:[#allocation83_spill] sm:$0xff]  ;;  %v6801_v27 = vsel %vm1842_vm9, %v6651_v52, 1073741824  ;;  %vm694_vm4 = vcmp.le.f32.partialorder %v5307_v45, %v6792_v48 }
 0x23c   : > { %9055 = vst [vmem:[#allocation6_spill] sm:$0xff] %v6758_v5  ;;  %v2317_v63 = vsel %vm6640_vm2, 1.0, %v2297_v7  ;;  %v6812_v7 = vcvt.s32.f32 %v1303_v11  ;;  %v6820_v17 = vsel %vm694_vm4, %v6651_v52, 1073741824  ;;  %v6825_v45 = vld [vmem:[%s6645_s10 + $0x18] sm:$0xff] }
 0x23d   : > { %v6770_v20 = vsel %vm6653_vm13, 0.0, %v2317_v63  ;;  %v1851_v63 = vshra.s32 %v6801_v27, 16  ;;  %vm8635_vm6 = vcmp.lt.f32.partialorder %v6792_v48, %v6825_v45 }
 0x23e   : > { %9056 = vst [vmem:[#allocation43_spill] sm:$0xff] %v6770_v20  ;;  %v2345_v18 = vmul.f32 %v6770_v20, %v8981_v51  ;;  %v2361_v58 = vmul.f32 %v6770_v20, %v8983_v0  ;;  %v2377_v16 = vmul.f32 %v6770_v20, %v8985_v46  ;;  %v2385_v51 = vmul.f32 %v6728_v35, %v8986_v19 }
 0x23f   : > { %v6794_v0 = vcvt.s32.f32 %v1275_v40  ;;  %v6808_v19 = vsel %vm692_vm1, %v6651_v52, 1073741824  ;;  %v6815_v40 = vpop.xlane.xlu0 %1260 }
 0x240   : > { %v2349_v46 = vsub.f32 %v9057_v44, %v2345_v18  ;;  %v2365_v38 = vsub.f32 %v9058_v2, %v2361_v58  ;;  %v2381_v43 = vsub.f32 %v9059_v8, %v2377_v16  ;;  %v714_v16 = vshra.s32 %v6808_v19, 16 }
 0x241   : > { %1278 = vmin.xlane.f32.xlu1 %v6794_v0  ;;  %vm1267_vm0 = vcmp.le.f32.partialorder %v5582_v55, %v6815_v40  ;;  %v742_v44 = vshra.s32 %v6820_v17, 16  ;;  %v6847_v55 = vsel %vm8635_vm6, %v6792_v48, %v6825_v45 }
 0x242   : > { %v2357_v59 = vsub.f32 %v2349_v46, %v2353_v49  ;;  %v2373_v53 = vsub.f32 %v2365_v38, %v2369_v4  ;;  %v2389_v13 = vsub.f32 %v2381_v43, %v2385_v51  ;;  %v6829_v4 = vcvt.s32.f32 %v1851_v63 }
 0x243   : > { %v6832_v51 = vcvt.s32.f32 %v714_v16  ;;  %v6839_v46 = vsel %vm1267_vm0, %v6651_v52, 1073741824  ;;  %v6849_v2 = vcvt.s32.f32 %v742_v44 }
 0x244   : > { %v2393_v23 = vmul.f32 %v2357_v59, %v2357_v59  ;;  %v2397_v30 = vmul.f32 %v2373_v53, %v2373_v53  ;;  %v2405_v58 = vmul.f32 %v2389_v13, %v2389_v13  ;;  %v1289_v8 = vshra.s32 %v6839_v46, 16 }
 0x245   : > { %1306 = vmin.xlane.f32.xlu1 %v6812_v7 }
 0x246   : > { %v2401_v18 = vadd.f32 %v2397_v30, %v2393_v23  ;;  %v6869_v59 = vcvt.s32.f32 %v1289_v8 }
 0x248   : > { %v6822_v49 = vadd.f32 %v2405_v58, %v2401_v18 }
 0x249   : > { %1854 = vmin.xlane.f32.xlu1 %v6829_v4 }
 0x24a   : > { %2416 = vmin.xlane.f32.xlu0 %v6822_v49 }
 0x24e   : > { %717 = vmin.xlane.f32.xlu0 %v6832_v51  ;;  %v6851_v38 = vpop.xlane.xlu0 %1264 }
 0x24f   : > { %vm1269_vm2 = vcmp.le.f32.partialorder %v5851_v12, %v6851_v38  ;;  %vm8634_vm13 = vcmp.lt.f32.partialorder %v6851_v38, %v6847_v55 }
 0x250   : > { %v6863_v43 = vsel %vm8634_vm13, %v6851_v38, %v6847_v55  ;;  %v6866_v11 = vsel %vm1269_vm2, %v6651_v52, 1073741824  ;;  %vm9065_vm2 = vcmask 7168  }
 0x251   : > { %v1317_v12 = vshra.s32 %v6866_v11, 16 }
 0x252   : > { %745 = vmin.xlane.f32.xlu0 %v6849_v2 }
 0x253   : > { %v6873_v53 = vcvt.s32.f32 %v1317_v12 }
 0x256   : > { %1292 = vmin.xlane.f32.xlu0 %v6869_v59 }
 0x25a   : > { %1320 = vmin.xlane.f32.xlu0 %v6873_v53 }
 0x25f   : > { %v6876_v13 = vpop.xlane.xlu1 %1838 }
 0x260   : > { %vm1844_vm14 = vcmp.le.f32.partialorder %v5982_v31, %v6876_v13  ;;  %vm1942_vm10 = vcmp.lt.f32.partialorder %v6876_v13, %v6724_v22  ;;  %v6897_v31 = vld [vmem:[%s6645_s10 + $0x8] sm:$0xff] }
 0x261   : > { %v6887_v23 = vsel %vm1942_vm10, %v6876_v13, %v6724_v22  ;;  %v6890_v30 = vsel %vm1844_vm14, %v6651_v52, 1073741824  ;;  %vm789_vm12 = vcmp.lt.f32.partialorder %v6594_v25, %v6897_v31 }
 0x262   : > { %9060 = vst [vmem:[#allocation55_spill] sm:$0xff] %v6887_v23  ;;  %v1879_v63 = vshra.s32 %v6890_v30, 16  ;;  %v6906_v58 = vsel %vm789_vm12, %v6594_v25, %v6897_v31 }
 0x263   : > { %vm1365_vm3 = vcmp.lt.f32.partialorder %v6815_v40, %v6906_v58 }
 0x264   : > { %v6893_v18 = vcvt.s32.f32 %v1879_v63  ;;  %v6915_v16 = vsel %vm1365_vm3, %v6815_v40, %v6906_v58 }
 0x265   : > { %9061 = vst [vmem:[#allocation84_spill] sm:$0xff] %v6915_v16 }
 0x266   : > { %1882 = vmin.xlane.f32.xlu1 %v6893_v18 }
 0x275   : > { %v6917_v44 = vpop.xlane.xlu0 %1836 }
 0x276   : > { %9062 = vst [vmem:[#allocation30_spill] sm:$0xff] %v6917_v44  ;;  %vm1843_vm1 = vcmp.le.f32.partialorder %v6140_v50, %v6917_v44  ;;  %vm1941_vm9 = vcmp.lt.f32.partialorder %v6917_v44, %v6915_v16 }
 0x277   : > { %v6928_v8 = vsel %vm1941_vm9, %v6917_v44, %v6915_v16  ;;  %v6931_v12 = vsel %vm1843_vm1, %v6651_v52, 1073741824 }
 0x278   : > { %9063 = vst [vmem:[#allocation31_spill] sm:$0xff] %v6928_v8  ;;  %v1865_v63 = vshra.s32 %v6931_v12, 16 }
 0x27a   : > { %v6934_v35 = vcvt.s32.f32 %v1865_v63 }
 0x27c   : > { %1868 = vmin.xlane.f32.xlu0 %v6934_v35 }
 0x288   : > { %v6937_v50 = vpop.xlane.xlu1 %2410 }
 0x289   : > { %9064 = vst [vmem:[#allocation11_spill] sm:$0xff] %v6937_v50  ;;  %vm2418_vm4 = vcmp.le.f32.partialorder %v6267_v41, %v6937_v50  ;;  %vm8614_vm0 = vcmp.lt.f32.partialorder %v6937_v50, %v6758_v5 }
 0x28a   : > { %v2520_v34 = vsel %vm8614_vm0, %v6937_v50, %v6758_v5  ;;  %v6949_v20 = vsel %vm2418_vm4, %v6651_v52, 1073741824 }
 0x28b   : > { %2537 = vst.msk [vmem:[%s6645_s10] sm:$0xff] %vm9065_vm2, %v2520_v34  ;;  %v2427_v63 = vshra.s32 %v6949_v20, 16 }
 0x28d   : > { %v6954_v26 = vcvt.s32.f32 %v2427_v63 }
 0x28f   : > { %2430 = vmin.xlane.f32.xlu1 %v6954_v26 }
 0x299   : > { %v6957_v41 = vpop.xlane.xlu0 %1840 }
 0x29a   : > { %vm1845_vm14 = vcmp.le.f32.partialorder %v6387_v15, %v6957_v41 }
 0x29b   : > { %v6962_v21 = vsel %vm1845_vm14, %v6651_v52, 1073741824 }
 0x29c   : > { %v1893_v61 = vshra.s32 %v6962_v21, 16 }
 0x29e   : > { %v6965_v47 = vcvt.s32.f32 %v1893_v61 }
 0x2a0   : > { %1896 = vmin.xlane.f32.xlu0 %v6965_v47 }
 0x2b0   : > { %v6968_v34 = vpop.xlane.xlu1 %2414 }
 0x2b1   : > { %9066 = vst [vmem:[#allocation22_spill] sm:$0xff] %v6968_v34  ;;  %vm2420_vm1 = vcmp.le.f32.partialorder %v6550_v54, %v6968_v34  ;;  %vm8632_vm4 = vcmp.lt.f32.partialorder %v6968_v34, %v6887_v23 }
 0x2b2   : > { %v2522_v15 = vsel %vm8632_vm4, %v6968_v34, %v6887_v23  ;;  %v6980_v61 = vsel %vm2420_vm1, %v6651_v52, 1073741824  ;;  %v699_v23 = vand.u32 65535, %v6677_v14  ;;  %vm9068_vm1 = vmmov %vm9065_vm2  ;;  %v727_v14 = vand.u32 65535, %v6733_v6 }
 0x2b3   : > { %2539 = vst.msk [vmem:[%s6645_s10 + $0x10] sm:$0xff] %vm9065_vm2, %v2522_v15  ;;  %v2455_v63 = vshra.s32 %v6980_v61, 16  ;;  %vm9069_vm4 = vcmask 7168  }
 0x2b4   : > { %v701_v50 = vcvt.s32.f32 %v699_v23  ;;  %v729_v16 = vcvt.s32.f32 %v727_v14  ;;  %v713_v14 = vand.u32 65535, %v6808_v19 }
 0x2b5   : > { %v6985_v9 = vcvt.s32.f32 %v2455_v63 }
 0x2b7   : > { %2458 = vmin.xlane.f32.xlu1 %v6985_v9 }
 0x2c1   : > { %v6988_v54 = vpop.xlane.xlu0 %2412 }
 0x2c2   : > { %9067 = vst [vmem:[#allocation36_spill] sm:$0xff] %v6988_v54  ;;  %vm2419_vm14 = vcmp.le.f32.partialorder %v6669_v36, %v6988_v54  ;;  %vm8631_vm0 = vcmp.lt.f32.partialorder %v6988_v54, %v6928_v8 }
 0x2c3   : > { %v2521_v15 = vsel %vm8631_vm0, %v6988_v54, %v6928_v8  ;;  %v7001_v63 = vsel %vm2419_vm14, %v6651_v52, 1073741824 }
 0x2c4   : > { %2538 = vst.msk [vmem:[%s6645_s10 + $0x8] sm:$0xff] %vm9068_vm1, %v2521_v15  ;;  %v2441_v34 = vshra.s32 %v7001_v63, 16  ;;  %v7008_v36 = vpop.xlane.xlu1 %703  ;;  %v1274_v15 = vand.u32 65535, %v6761_v32  ;;  %v1850_v32 = vand.u32 65535, %v6801_v27 }
 0x2c5   : > { %vm705_vm2 = vcmp.eq.f32.partialorder %v6717_v3, %v7008_v36  ;;  %v1302_v3 = vand.u32 65535, %v6775_v24 }
 0x2c6   : > { %v7006_v5 = vcvt.s32.f32 %v2441_v34  ;;  %v706_v8 = vsel %vm705_vm2, %v701_v50, inf  ;;  %v1276_v44 = vcvt.s32.f32 %v1274_v15  ;;  %vm8633_vm2 = vcmp.lt.f32.partialorder %v6957_v41, %v6863_v43 }
 0x2c7   : > { %707 = vmin.xlane.f32.xlu1 %v706_v8  ;;  %v1304_v50 = vcvt.s32.f32 %v1302_v3  ;;  %v7036_v24 = vsel %vm8633_vm2, %v6957_v41, %v6863_v43  ;;  %v1852_v27 = vcvt.s32.f32 %v1850_v32  ;;  %v715_v3 = vcvt.s32.f32 %v713_v14 }
 0x2c8   : > { %2444 = vmin.xlane.f32.xlu0 %v7006_v5  ;;  %v7014_v54 = vpop.xlane.xlu1 %731 }
 0x2c9   : > { %vm733_vm14 = vcmp.eq.f32.partialorder %v6765_v33, %v7014_v54 }
 0x2ca   : > { %v734_v34 = vsel %vm733_vm14, %v729_v16, inf }
 0x2cb   : > { %735 = vmin.xlane.f32.xlu1 %v734_v34 }
 0x2ce   : > { %v7019_v23 = vpop.xlane.xlu1 %1278 }
 0x2cf   : > { %vm1280_vm1 = vcmp.eq.f32.partialorder %v6794_v0, %v7019_v23 }
 0x2d0   : > { %v1281_v6 = vsel %vm1280_vm1, %v1276_v44, inf }
 0x2d1   : > { %1282 = vmin.xlane.f32.xlu1 %v1281_v6  ;;  %v741_v6 = vand.u32 65535, %v6820_v17  ;;  %v1316_v17 = vand.u32 65535, %v6866_v11 }
 0x2d2   : > { %v7024_v8 = vpop.xlane.xlu1 %1306 }
 0x2d3   : > { %vm1308_vm14 = vcmp.eq.f32.partialorder %v6812_v7, %v7024_v8  ;;  %v743_v32 = vcvt.s32.f32 %v741_v6 }
 0x2d4   : > { %v1309_v33 = vsel %vm1308_vm14, %v1304_v50, inf }
 0x2d5   : > { %1310 = vmin.xlane.f32.xlu1 %v1309_v33  ;;  %v1288_v33 = vand.u32 65535, %v6839_v46 }
 0x2d6   : > { %v7040_v16 = vpop.xlane.xlu1 %1854 }
 0x2d7   : > { %v7038_v0 = vpop.xlane.xlu0 %2416  ;;  %vm1856_vm14 = vcmp.eq.f32.partialorder %v6829_v4, %v7040_v16 }
 0x2d8   : > { %vm2421_vm1 = vcmp.le.f32.partialorder %v6822_v49, %v7038_v0  ;;  %vm2519_vm0 = vcmp.lt.f32.partialorder %v7038_v0, %v7036_v24  ;;  %v1857_v15 = vsel %vm1856_vm14, %v1852_v27, inf }
 0x2d9   : > { %v2523_v7 = vsel %vm2519_vm0, %v7038_v0, %v7036_v24  ;;  %v7054_v44 = vsel %vm2421_vm1, %v6651_v52, 1073741824  ;;  %1858 = vmin.xlane.f32.xlu1 %v1857_v15 }
 0x2da   : > { %2540 = vst.msk [vmem:[%s6645_s10 + $0x18] sm:$0xff] %vm9069_vm4, %v2523_v7  ;;  %v2469_v49 = vshra.s32 %v7054_v44, 16  ;;  %s3489_s10 = smov (%p149_p0), 3  }
 0x2db   : > { %v7060_v34 = vpop.xlane.xlu0 %717 }
 0x2dc   : > { %v7062_v4 = vcvt.s32.f32 %v2469_v49  ;;  %vm719_vm2 = vcmp.eq.f32.partialorder %v6832_v51, %v7060_v34  ;;  %v1290_v51 = vcvt.s32.f32 %v1288_v33  ;;  %v1878_v49 = vand.u32 65535, %v6890_v30 }
 0x2dd   : > { %v720_v50 = vsel %vm719_vm2, %v715_v3, inf  ;;  %v2426_v30 = vand.u32 65535, %v6949_v20  ;;  %v2454_v20 = vand.u32 65535, %v6980_v61 }
 0x2de   : > { %2472 = vmin.xlane.f32.xlu0 %v7062_v4  ;;  %v1880_v6 = vcvt.s32.f32 %v1878_v49 }
 0x2df   : > { %v7068_v19 = vpop.xlane.xlu0 %745 }
 0x2e0   : > { %vm747_vm4 = vcmp.eq.f32.partialorder %v6849_v2, %v7068_v19  ;;  %v1318_v2 = vcvt.s32.f32 %v1316_v17 }
 0x2e1   : > { %v748_v27 = vsel %vm747_vm4, %v743_v32, inf }
 0x2e2   : > { %721 = vmin.xlane.f32.xlu0 %v720_v50 }
 0x2e3   : > { %v7073_v7 = vpop.xlane.xlu0 %1292 }
 0x2e4   : > { %vm1294_vm1 = vcmp.eq.f32.partialorder %v6869_v59, %v7073_v7  ;;  %v1864_v59 = vand.u32 65535, %v6931_v12  ;;  %v1892_v12 = vand.u32 65535, %v6962_v21  ;;  %v2440_v21 = vand.u32 65535, %v7001_v63 }
 0x2e5   : > { %v1295_v14 = vsel %vm1294_vm1, %v1290_v51, inf }
 0x2e6   : > { %749 = vmin.xlane.f32.xlu0 %v748_v27  ;;  %v1866_v32 = vcvt.s32.f32 %v1864_v59  ;;  %v2428_v27 = vcvt.s32.f32 %v2426_v30  ;;  %v1894_v17 = vcvt.s32.f32 %v1892_v12 }
 0x2e7   : > { %v7078_v15 = vpop.xlane.xlu0 %1320 }
 0x2e8   : > { %vm1322_vm2 = vcmp.eq.f32.partialorder %v6873_v53, %v7078_v15 }
 0x2e9   : > { %v1323_v46 = vsel %vm1322_vm2, %v1318_v2, inf  ;;  %v2456_v2 = vcvt.s32.f32 %v2454_v20 }
 0x2ea   : > { %1296 = vmin.xlane.f32.xlu0 %v1295_v14 }
 0x2ee   : > { %1324 = vmin.xlane.f32.xlu0 %v1323_v46  ;;  %v710_v46 = vcvt.f32.s32 %v7008_v36  ;;  %v1285_v36 = vcvt.f32.s32 %v7019_v23  ;;  %v165_v23 = vld [vmem:[%s7125_s11] sm:$0xff] }
 0x2f0   : > { %v711_v61 = vshll.u32 %v710_v46, 16  ;;  %v1861_v46 = vcvt.f32.s32 %v7040_v16  ;;  %v2468_v16 = vand.u32 65535, %v7054_v44 }
 0x2f3   : > { %v7083_v3 = vpop.xlane.xlu1 %1882 }
 0x2f4   : > { %vm1884_vm14 = vcmp.eq.f32.partialorder %v6893_v18, %v7083_v3 }
 0x2f5   : > { %v1885_v11 = vsel %vm1884_vm14, %v1880_v6, inf  ;;  %v2442_v6 = vcvt.s32.f32 %v2440_v21 }
 0x2f6   : > { %1886 = vmin.xlane.f32.xlu1 %v1885_v11 }
 0x309   : > { %v7088_v50 = vpop.xlane.xlu0 %1868 }
 0x30a   : > { %vm1870_vm4 = vcmp.eq.f32.partialorder %v6934_v35, %v7088_v50 }
 0x30b   : > { %v1871_v53 = vsel %vm1870_vm4, %v1866_v32, inf  ;;  %v738_v32 = vcvt.f32.s32 %v7014_v54  ;;  %v1313_v54 = vcvt.f32.s32 %v7024_v8 }
 0x30c   : > { %1872 = vmin.xlane.f32.xlu0 %v1871_v53 }
 0x30d   : > { %v739_v63 = vshll.u32 %v738_v32, 16  ;;  %v1314_v21 = vshll.u32 %v1313_v54, 16  ;;  %v2470_v54 = vcvt.s32.f32 %v2468_v16 }
 0x31c   : > { %v7093_v33 = vpop.xlane.xlu1 %2430 }
 0x31d   : > { %vm2432_vm1 = vcmp.eq.f32.partialorder %v6954_v26, %v7093_v33 }
 0x31e   : > { %v2433_v18 = vsel %vm2432_vm1, %v2428_v27, inf  ;;  %v9070_v27 = vld [vmem:[#allocation51_spill] sm:$0xff] }
 0x31f   : > { %2434 = vmin.xlane.f32.xlu1 %v2433_v18 }
 0x32d   : > { %v7098_v51 = vpop.xlane.xlu0 %1896 }
 0x32e   : > { %vm1898_vm2 = vcmp.eq.f32.partialorder %v6965_v47, %v7098_v51 }
 0x32f   : > { %v1899_v35 = vsel %vm1898_vm2, %v1894_v17, inf  ;;  %v1286_v17 = vshll.u32 %v1285_v36, 16 }
 0x330   : > { %1900 = vmin.xlane.f32.xlu0 %v1899_v35 }
 0x344   : > { %v7103_v14 = vpop.xlane.xlu1 %2458 }
 0x345   : > { %vm2460_vm14 = vcmp.eq.f32.partialorder %v6985_v9, %v7103_v14 }
 0x346   : > { %v2461_v26 = vsel %vm2460_vm14, %v2456_v2, inf }
 0x347   : > { %2462 = vmin.xlane.f32.xlu1 %v2461_v26 }
 0x354   : > { %v708_v47 = vpop.xlane.xlu1 %707 }
 0x355   : > { %v7109_v49 = vpop.xlane.xlu0 %2444  ;;  %v709_v59 = vcvt.f32.s32 %v708_v47 }
 0x356   : > { %vm2446_vm4 = vcmp.eq.f32.partialorder %v7006_v5, %v7109_v49 }
 0x357   : > { %v2447_v11 = vsel %vm2446_vm4, %v2442_v6, inf  ;;  %v712_v9 = vadd.s32 %v711_v61, %v709_v59  ;;  %v9071_v61 = vld [vmem:[#allocation93_spill] sm:$0xff] }
 0x358   : > { %2448 = vmin.xlane.f32.xlu0 %v2447_v11  ;;  %v736_v53 = vpop.xlane.xlu1 %735  ;;  %v167_v11 = vld [vmem:[%s7125_s11 + $0x10] sm:$0xff] }
 0x359   : > { %vm755_vm1 = vcmp.eq.s32.totalorder %v6651_v52, %v712_v9  ;;  %v737_v30 = vcvt.f32.s32 %v736_v53  ;;  %v796_v47 = vsel %vm788_vm7, %v712_v9, %v165_v23  ;;  %v9073_v23 = vld [vmem:[#allocation32_spill] sm:$0xff] }
 0x35a   : > { %v759_v5 = vsel %vm755_vm1, %v9070_v27, 0.0  ;;  %v9072_v27 = vld [vmem:[#allocation49_spill] sm:$0xff] }
 0x35b   : > { %763 = vadd.xlane.f32.xlu1 %v759_v5  ;;  %v740_v18 = vadd.s32 %v739_v63, %v737_v30  ;;  %v1862_v63 = vshll.u32 %v1861_v46, 16 }
 0x35d   : > { %vm757_vm2 = vcmp.eq.s32.totalorder %v6651_v52, %v740_v18  ;;  %v798_v9 = vsel %vm790_vm8, %v740_v18, %v167_v11 }
 0x35e   : > { %v1283_v12 = vpop.xlane.xlu1 %1282  ;;  %v761_v20 = vsel %vm757_vm2, %v4912_v60, 0.0  ;;  %v771_v60 = vsel %vm755_vm1, %v9071_v61, 0.0  ;;  %v773_v5 = vsel %vm757_vm2, %v9072_v27, 0.0 }
 0x35f   : > { %v1284_v35 = vcvt.f32.s32 %v1283_v12  ;;  %767 = vadd.xlane.f32.xlu1 %v761_v20 }
 0x361   : > { %v1287_v2 = vadd.s32 %v1286_v17, %v1284_v35  ;;  %v724_v35 = vcvt.f32.s32 %v7060_v34 }
 0x362   : > { %v1311_v26 = vpop.xlane.xlu1 %1310 }
 0x363   : > { %v1360_v6 = vadd.s32 128, %v1287_v2  ;;  %v1312_v8 = vcvt.f32.s32 %v1311_v26  ;;  %775 = vadd.xlane.f32.xlu1 %v771_v60  ;;  %vm1330_vm14 = vcmp.eq.s32.totalorder %v6651_v52, %v1287_v2  ;;  %v725_v46 = vshll.u32 %v724_v35, 16 }
 0x364   : > { %v1334_v26 = vsel %vm1330_vm14, %v9073_v23, 0.0 }
 0x365   : > { %v1372_v59 = vsel %vm1364_vm5, %v1360_v6, %v796_v47  ;;  %v7139_v32 = vadd.s32 %v1314_v21, %v1312_v8  ;;  %v9074_v8 = vld [vmem:[#allocation34_spill] sm:$0xff] }
 0x366   : > { %v1859_v53 = vpop.xlane.xlu1 %1858 }
 0x367   : > { %v1362_v36 = vadd.s32 128, %v7139_v32  ;;  %v1860_v30 = vcvt.f32.s32 %v1859_v53  ;;  %779 = vadd.xlane.f32.xlu1 %v773_v5  ;;  %vm1332_vm1 = vcmp.eq.s32.totalorder %v6651_v52, %v7139_v32  ;;  %v9075_v53 = vld [vmem:[#allocation42_spill] sm:$0xff]  ;;  %v1327_v5 = vcvt.f32.s32 %v7078_v15 }
 0x368   : > { %v1336_v47 = vsel %vm1332_vm1, %v9074_v8, 0.0 }
 0x369   : > { %v7152_v12 = vsel %vm1366_vm11, %v1362_v36, %v798_v9  ;;  %v7154_v17 = vadd.s32 %v1862_v63, %v1860_v30  ;;  %v9076_v63 = vld [vmem:[#allocation53_spill] sm:$0xff]  ;;  %v1328_v23 = vshll.u32 %v1327_v5, 16 }
 0x36a   : > { %v1346_v36 = vsel %vm1330_vm14, %v9076_v63, 0.0  ;;  %v9080_v63 = vld [vmem:[#allocation48_spill] sm:$0xff] }
 0x36b   : > { %v7157_v44 = vpop.xlane.xlu0 %2472  ;;  %v1936_v18 = vadd.s32 256, %v7154_v17  ;;  %1338 = vadd.xlane.f32.xlu1 %v1334_v26 }
 0x36c   : > { %vm2474_vm4 = vcmp.eq.f32.partialorder %v7062_v4, %v7157_v44  ;;  %v752_v4 = vcvt.f32.s32 %v7068_v19 }
 0x36d   : > { %v2475_v20 = vsel %vm2474_vm4, %v2470_v54, inf  ;;  %v7169_v21 = vsel %vm1940_vm15, %v1936_v18, %v1372_v59  ;;  %v1299_v59 = vcvt.f32.s32 %v7073_v7  ;;  %v9077_v54 = vld [vmem:[#allocation69_spill] sm:$0xff] }
 0x36e   : > { %2476 = vmin.xlane.f32.xlu0 %v2475_v20  ;;  %v753_v11 = vshll.u32 %v752_v4, 16  ;;  %v166_v18 = vld [vmem:[%s7125_s11 + $0x8] sm:$0xff]  ;;  %v9078_v4 = vld [vmem:[#allocation94_spill] sm:$0xff] }
 0x36f   : > { %v722_v34 = vpop.xlane.xlu0 %721  ;;  %1342 = vadd.xlane.f32.xlu1 %v1336_v47  ;;  %v1300_v27 = vshll.u32 %v1299_v59, 16 }
 0x370   : > { %v723_v6 = vcvt.f32.s32 %v722_v34 }
 0x372   : > { %v726_v61 = vadd.s32 %v725_v46, %v723_v6  ;;  %v168_v6 = vld [vmem:[%s7125_s11 + $0x18] sm:$0xff] }
 0x373   : > { %v750_v60 = vpop.xlane.xlu0 %749  ;;  %1350 = vadd.xlane.f32.xlu1 %v1346_v36 }
 0x374   : > { %vm756_vm2 = vcmp.eq.s32.totalorder %v6651_v52, %v726_v61  ;;  %v751_v16 = vcvt.f32.s32 %v750_v60  ;;  %v797_v46 = vsel %vm789_vm12, %v726_v61, %v166_v18  ;;  %v1889_v60 = vcvt.f32.s32 %v7083_v3 }
 0x375   : > { %v760_v19 = vsel %vm756_vm2, %v9075_v53, 0.0  ;;  %v772_v15 = vsel %vm756_vm2, %v9078_v4, 0.0  ;;  %v1348_v3 = vsel %vm1332_vm1, %v9080_v63, 0.0  ;;  %vm1906_vm2 = vcmp.eq.s32.totalorder %v6651_v52, %v7154_v17  ;;  %v9086_v4 = vld [vmem:[#allocation15_spill] sm:$0xff]  ;;  %v9089_v63 = vld [vmem:[#allocation38_spill] sm:$0xff] }
 0x376   : > { %765 = vadd.xlane.f32.xlu0 %v760_v19  ;;  %v754_v30 = vadd.s32 %v753_v11, %v751_v16  ;;  %v9079_v16 = vld [vmem:[#allocation68_spill] sm:$0xff]  ;;  %v1890_v36 = vshll.u32 %v1889_v60, 16  ;;  %v9088_v60 = vld [vmem:[#allocation50_spill] sm:$0xff] }
 0x377   : > { %v1297_v9 = vpop.xlane.xlu0 %1296  ;;  %1354 = vadd.xlane.f32.xlu1 %v1348_v3 }
 0x378   : > { %v1298_v7 = vcvt.f32.s32 %v1297_v9  ;;  %vm758_vm4 = vcmp.eq.s32.totalorder %v6651_v52, %v754_v30  ;;  %v799_v59 = vsel %vm8635_vm6, %v754_v30, %v168_v6  ;;  %v9081_v30 = vld [vmem:[#allocation9_spill] sm:$0xff]  ;;  %v9087_v6 = vld [vmem:[#allocation52_spill] sm:$0xff]  ;;  %vm9098_vm6 = vcmp.lt.f32.partialorder %v6957_v41, %v6863_v43 }
 0x379   : > { %v762_v35 = vsel %vm758_vm4, %v9077_v54, 0.0  ;;  %v774_v53 = vsel %vm758_vm4, %v9079_v16, 0.0 }
 0x37a   : > { %v1301_v20 = vadd.s32 %v1300_v27, %v1298_v7  ;;  %769 = vadd.xlane.f32.xlu0 %v762_v35  ;;  %v9082_v7 = vld [vmem:[#allocation18_spill] sm:$0xff] }
 0x37b   : > { %v1325_v2 = vpop.xlane.xlu0 %1324  ;;  %v1910_v32 = vsel %vm1906_vm2, %v9082_v7, 0.0  ;;  %v9083_v35 = vld [vmem:[#allocation70_spill] sm:$0xff] }
 0x37c   : > { %v1361_v26 = vadd.s32 128, %v1301_v20  ;;  %v1326_v34 = vcvt.f32.s32 %v1325_v2  ;;  %vm1331_vm14 = vcmp.eq.s32.totalorder %v6651_v52, %v1301_v20  ;;  %1914 = vadd.xlane.f32.xlu1 %v1910_v32 }
 0x37d   : > { %v1335_v27 = vsel %vm1331_vm14, %v9081_v30, 0.0  ;;  %v2437_v30 = vcvt.f32.s32 %v7093_v33  ;;  %v1903_v33 = vcvt.f32.s32 %v7098_v51  ;;  %v9100_v51 = vld [vmem:[#allocation14_spill] sm:$0xff] }
 0x37e   : > { %v1373_v8 = vsel %vm1365_vm3, %v1361_v26, %v797_v46  ;;  %v1329_v47 = vadd.s32 %v1328_v23, %v1326_v34  ;;  %777 = vadd.xlane.f32.xlu0 %v772_v15  ;;  %v9084_v23 = vld [vmem:[#allocation60_spill] sm:$0xff]  ;;  %v1922_v15 = vsel %vm1906_vm2, %v9086_v4, 0.0 }
 0x37f   : > { %v9085_v34 = vld [vmem:[#allocation8_spill] sm:$0xff] }
 0x380   : > { %v1363_v11 = vadd.s32 128, %v1329_v47  ;;  %vm1333_vm4 = vcmp.eq.s32.totalorder %v6651_v52, %v1329_v47  ;;  %v1347_v46 = vsel %vm1331_vm14, %v9085_v34, 0.0  ;;  %v1904_v34 = vshll.u32 %v1903_v33, 16 }
 0x381   : > { %v1337_v18 = vsel %vm1333_vm4, %v9083_v35, 0.0  ;;  %v1349_v47 = vsel %vm1333_vm4, %v9087_v6, 0.0  ;;  %v9097_v6 = vld [vmem:[#allocation29_spill] sm:$0xff] }
 0x382   : > { %v1375_v61 = vsel %vm8634_vm13, %v1363_v11, %v799_v59  ;;  %781 = vadd.xlane.f32.xlu0 %v774_v53  ;;  %v1875_v11 = vcvt.f32.s32 %v7088_v50 }
 0x383   : > { %v1887_v19 = vpop.xlane.xlu1 %1886 }
 0x384   : > { %v1888_v9 = vcvt.f32.s32 %v1887_v19  ;;  %v1876_v16 = vshll.u32 %v1875_v11, 16 }
 0x386   : > { %v1891_v5 = vadd.s32 %v1890_v36, %v1888_v9  ;;  %1340 = vadd.xlane.f32.xlu0 %v1335_v27  ;;  %v2438_v27 = vshll.u32 %v2437_v30, 16 }
 0x388   : > { %v1938_v54 = vadd.s32 256, %v1891_v5  ;;  %vm1908_vm1 = vcmp.eq.s32.totalorder %v6651_v52, %v1891_v5 }
 0x389   : > { %v1912_v26 = vsel %vm1908_vm1, %v9084_v23, 0.0  ;;  %v9094_v23 = vld [vmem:[#allocation6_spill] sm:$0xff] }
 0x38a   : > { %v1950_v2 = vsel %vm1942_vm10, %v1938_v54, %v7152_v12  ;;  %1344 = vadd.xlane.f32.xlu0 %v1337_v18  ;;  %1918 = vadd.xlane.f32.xlu1 %v1912_v26  ;;  %v1924_v12 = vsel %vm1908_vm1, %v9088_v60, 0.0  ;;  %v9092_v54 = vld [vmem:[#allocation67_spill] sm:$0xff]  ;;  %vm9096_vm1 = vcmask 7168  }
 0x38b   : > { %v9093_v18 = vld [vmem:[#allocation11_spill] sm:$0xff] }
 0x38c   : > { %vm9095_vm4 = vcmp.lt.f32.partialorder %v9093_v18, %v9094_v23 }
 0x38e   : > { %1352 = vadd.xlane.f32.xlu0 %v1347_v46  ;;  %1926 = vadd.xlane.f32.xlu1 %v1922_v15 }
 0x392   : > { %1356 = vadd.xlane.f32.xlu0 %v1349_v47  ;;  %1930 = vadd.xlane.f32.xlu1 %v1924_v12 }
 0x399   : > { %v1873_v59 = vpop.xlane.xlu0 %1872 }
 0x39a   : > { %v1874_v53 = vcvt.f32.s32 %v1873_v59  ;;  %v2465_v59 = vcvt.f32.s32 %v7103_v14 }
 0x39c   : > { %v1877_v20 = vadd.s32 %v1876_v16, %v1874_v53  ;;  %v2466_v53 = vshll.u32 %v2465_v59, 16 }
 0x39e   : > { %v1937_v19 = vadd.s32 256, %v1877_v20  ;;  %vm1907_vm14 = vcmp.eq.s32.totalorder %v6651_v52, %v1877_v20 }
 0x39f   : > { %v1911_v17 = vsel %vm1907_vm14, %v9089_v63, 0.0 }
 0x3a0   : > { %v1949_v9 = vsel %vm1941_vm9, %v1937_v19, %v1373_v8  ;;  %1916 = vadd.xlane.f32.xlu0 %v1911_v17 }
 0x3ac   : > { %v2435_v50 = vpop.xlane.xlu1 %2434 }
 0x3ad   : > { %v2436_v5 = vcvt.f32.s32 %v2435_v50  ;;  %v9102_v50 = vld [vmem:[#allocation22_spill] sm:$0xff] }
 0x3af   : > { %v2439_v7 = vadd.s32 %v2438_v27, %v2436_v5  ;;  %v9103_v27 = vld [vmem:[#allocation55_spill] sm:$0xff]  ;;  %v9106_v5 = vld [vmem:[#allocation26_spill] sm:$0xff] }
 0x3b1   : > { %v2512_v32 = vadd.s32 384, %v2439_v7  ;;  %vm2482_vm2 = vcmp.eq.s32.totalorder %v6651_v52, %v2439_v7 }
 0x3b2   : > { %v2486_v35 = vsel %vm2482_vm2, %v9092_v54, 0.0  ;;  %v2498_v14 = vsel %vm2482_vm2, %v9106_v5, 0.0  ;;  %v9107_v54 = vld [vmem:[#allocation35_spill] sm:$0xff] }
 0x3b3   : > { %v2524_v26 = vsel %vm9095_vm4, %v2512_v32, %v7169_v21  ;;  %2490 = vadd.xlane.f32.xlu1 %v2486_v35  ;;  %v9099_v21 = vld [vmem:[#allocation47_spill] sm:$0xff]  ;;  %v2451_v32 = vcvt.f32.s32 %v7109_v49 }
 0x3b4   : > { %2541 = vst.msk [vmem:[%s7125_s11] sm:$0xff] %vm9096_vm1, %v2524_v26  ;;  %v1923_v12 = vsel %vm1907_vm14, %v9099_v21, 0.0  ;;  %vm9105_vm14 = vmmov %vm9096_vm1 }
 0x3b5   : > { %v2452_v33 = vshll.u32 %v2451_v32, 16 }
 0x3bd   : > { %v1901_v8 = vpop.xlane.xlu0 %1900 }
 0x3be   : > { %v1902_v46 = vcvt.f32.s32 %v1901_v8 }
 0x3c0   : > { %v1905_v4 = vadd.s32 %v1904_v34, %v1902_v46 }
 0x3c2   : > { %v1939_v15 = vadd.s32 256, %v1905_v4  ;;  %vm1909_vm13 = vcmp.eq.s32.totalorder %v6651_v52, %v1905_v4  ;;  %v9108_v4 = vld [vmem:[#allocation7_spill] sm:$0xff] }
 0x3c3   : > { %v1913_v47 = vsel %vm1909_vm13, %v9097_v6, 0.0  ;;  %v1925_v11 = vsel %vm1909_vm13, %v9100_v51, 0.0  ;;  %v9110_v6 = vld [vmem:[#allocation31_spill] sm:$0xff]  ;;  %v2479_v51 = vcvt.f32.s32 %v7157_v44  ;;  %v175_v44 = vld [vmem:[%s7304_s15] sm:$0xff] }
 0x3c4   : > { %v1951_v60 = vsel %vm9098_vm6, %v1939_v15, %v1375_v61  ;;  %1920 = vadd.xlane.f32.xlu0 %v1913_v47  ;;  %v9101_v61 = vld [vmem:[#allocation61_spill] sm:$0xff]  ;;  %vm9104_vm6 = vcmp.lt.f32.partialorder %v9102_v50, %v9103_v27  ;;  %v9109_v15 = vld [vmem:[#allocation36_spill] sm:$0xff] }
 0x3c5   : > { %vm9111_vm2 = vcmp.lt.f32.partialorder %v9109_v15, %v9110_v6 }
 0x3c8   : > { %1928 = vadd.xlane.f32.xlu0 %v1923_v12 }
 0x3cc   : > { %1932 = vadd.xlane.f32.xlu0 %v1925_v11 }
 0x3d4   : > { %v2463_v16 = vpop.xlane.xlu1 %2462 }
 0x3d5   : > { %v2464_v19 = vcvt.f32.s32 %v2463_v16  ;;  %v2480_v16 = vshll.u32 %v2479_v51, 16 }
 0x3d7   : > { %v2467_v63 = vadd.s32 %v2466_v53, %v2464_v19  ;;  %v172_v19 = vld [vmem:[%s7296_s14 + $0x10] sm:$0xff] }
 0x3d9   : > { %v2514_v17 = vadd.s32 384, %v2467_v63  ;;  %vm2484_vm4 = vcmp.eq.s32.totalorder %v6651_v52, %v2467_v63 }
 0x3da   : > { %v2488_v30 = vsel %vm2484_vm4, %v9101_v61, 0.0  ;;  %v2500_v35 = vsel %vm2484_vm4, %v9107_v54, 0.0 }
 0x3db   : > { %v2526_v20 = vsel %vm9104_vm6, %v2514_v17, %v1950_v2  ;;  %2494 = vadd.xlane.f32.xlu1 %v2488_v30  ;;  %vm9113_vm6 = vmmov %vm9096_vm1 }
 0x3dc   : > { %2543 = vst.msk [vmem:[%s7125_s11 + $0x10] sm:$0xff] %vm9105_vm14, %v2526_v20  ;;  %v9112_v20 = vld [vmem:[#allocation43_spill] sm:$0xff] }
 0x3df   : > { %2502 = vadd.xlane.f32.xlu1 %v2498_v14 }
 0x3e3   : > { %2506 = vadd.xlane.f32.xlu1 %v2500_v35 }
 0x3e5   : > { %v2449_v26 = vpop.xlane.xlu0 %2448 }
 0x3e6   : > { %v2450_v8 = vcvt.f32.s32 %v2449_v26  ;;  %v9114_v26 = vld [vmem:[#allocation76_spill] sm:$0xff] }
 0x3e8   : > { %v2453_v34 = vadd.s32 %v2452_v33, %v2450_v8  ;;  %v764_v46 = vpop.xlane.xlu1 %763  ;;  %v9115_v8 = vld [vmem:[#allocation75_spill] sm:$0xff] }
 0x3ea   : > { %v2513_v2 = vadd.s32 384, %v2453_v34  ;;  %vm2483_vm13 = vcmp.eq.s32.totalorder %v6651_v52, %v2453_v34 }
 0x3eb   : > { %v2487_v7 = vsel %vm2483_vm13, %v9108_v4, 0.0  ;;  %v2499_v33 = vsel %vm2483_vm13, %v9114_v26, 0.0  ;;  %vm9121_vm13 = vmmov %vm9096_vm1 }
 0x3ec   : > { %v2525_v49 = vsel %vm9111_vm2, %v2513_v2, %v1949_v9  ;;  %2492 = vadd.xlane.f32.xlu0 %v2487_v7  ;;  %v768_v47 = vpop.xlane.xlu1 %767  ;;  %v177_v2 = vld [vmem:[%s7304_s15 + $0x10] sm:$0xff] }
 0x3ed   : > { %2542 = vst.msk [vmem:[%s7125_s11 + $0x8] sm:$0xff] %vm9096_vm1, %v2525_v49  ;;  %v802_v9 = vsel %vm790_vm8, %v768_v47, %v172_v19 }
 0x3f0   : > { %v776_v21 = vpop.xlane.xlu1 %775 }
 0x3f1   : > { %v804_v32 = vsel %vm788_vm7, %v776_v21, %v175_v44 }
 0x3f4   : > { %v780_v12 = vpop.xlane.xlu1 %779 }
 0x3f5   : > { %v806_v4 = vsel %vm790_vm8, %v780_v12, %v177_v2  ;;  %vm9116_vm8 = vcmp.lt.f32.partialorder %v9093_v18, %v9094_v23 }
 0x3f6   : > { %vm9120_vm14 = vmmov %vm9116_vm8 }
 0x3f8   : > { %v1339_v59 = vpop.xlane.xlu1 %1338 }
 0x3fb   : > { %v2477_v11 = vpop.xlane.xlu0 %2476 }
 0x3fc   : > { %v2478_v53 = vcvt.f32.s32 %v2477_v11  ;;  %v1343_v17 = vpop.xlane.xlu1 %1342 }
 0x3fd   : > { %v1378_v30 = vsel %vm1366_vm11, %v1343_v17, %v802_v9 }
 0x3fe   : > { %v2481_v63 = vadd.s32 %v2480_v16, %v2478_v53  ;;  %v170_v16 = vld [vmem:[%s7296_s14] sm:$0xff] }
 0x3ff   : > { %v800_v19 = vsel %vm788_vm7, %v764_v46, %v170_v16  ;;  %vm9118_vm7 = vcmp.lt.f32.partialorder %v9102_v50, %v9103_v27  ;;  %v173_v27 = vld [vmem:[%s7296_s14 + $0x18] sm:$0xff] }
 0x400   : > { %v2515_v61 = vadd.s32 384, %v2481_v63  ;;  %vm2485_vm4 = vcmp.eq.s32.totalorder %v6651_v52, %v2481_v63  ;;  %v1351_v54 = vpop.xlane.xlu1 %1350  ;;  %v1376_v42 = vsel %vm1364_vm5, %v1339_v59, %v800_v19  ;;  %vm9122_vm2 = vmmov %vm9118_vm7 }
 0x401   : > { %v2489_v5 = vsel %vm2485_vm4, %v9112_v20, 0.0  ;;  %v1380_v35 = vsel %vm1364_vm5, %v1351_v54, %v804_v32  ;;  %vm9119_vm5 = vmmov %vm9096_vm1  ;;  %v171_v32 = vld [vmem:[%s7296_s14 + $0x8] sm:$0xff] }
 0x402   : > { %v2527_v14 = vsel %vm2519_vm0, %v2515_v61, %v1951_v60  ;;  %2496 = vadd.xlane.f32.xlu0 %v2489_v5  ;;  %v2501_v60 = vsel %vm2485_vm4, %v9115_v8, 0.0  ;;  %vm9125_vm4 = vcmp.lt.f32.partialorder %v6792_v48, %v6825_v45 }
 0x403   : > { %2544 = vst.msk [vmem:[%s7125_s11 + $0x18] sm:$0xff] %vm9113_vm6, %v2527_v14  ;;  %v766_v51 = vpop.xlane.xlu0 %765  ;;  %vm9126_vm6 = vcmp.lt.f32.partialorder %v6851_v38, %v6847_v55 }
 0x404   : > { %v1355_v7 = vpop.xlane.xlu1 %1354  ;;  %v801_v18 = vsel %vm789_vm12, %v766_v51, %v171_v32 }
 0x405   : > { %v1382_v49 = vsel %vm1366_vm11, %v1355_v7, %v806_v4  ;;  %vm9117_vm11 = vmmov %vm9096_vm1  ;;  %v178_v4 = vld [vmem:[%s7304_s15 + $0x18] sm:$0xff] }
 0x406   : > { %2504 = vadd.xlane.f32.xlu0 %v2499_v33 }
 0x407   : > { %v770_v34 = vpop.xlane.xlu0 %769 }
 0x408   : > { %v803_v54 = vsel %vm9125_vm4, %v770_v34, %v173_v27 }
 0x409   : > { %v1915_v47 = vpop.xlane.xlu1 %1914 }
 0x40a   : > { %2508 = vadd.xlane.f32.xlu0 %v2501_v60  ;;  %v1952_v1 = vsel %vm1940_vm15, %v1915_v47, %v1376_v42 }
 0x40b   : > { %v778_v53 = vpop.xlane.xlu0 %777 }
 0x40f   : > { %v782_v12 = vpop.xlane.xlu0 %781 }
 0x413   : > { %v1341_v56 = vpop.xlane.xlu0 %1340 }
 0x414   : > { %v1377_v22 = vsel %vm1365_vm3, %v1341_v56, %v801_v18 }
 0x417   : > { %v1919_v21 = vpop.xlane.xlu1 %1918  ;;  %v1345_v29 = vpop.xlane.xlu0 %1344 }
 0x418   : > { %v1954_v63 = vsel %vm1942_vm10, %v1919_v21, %v1378_v30  ;;  %v1379_v26 = vsel %vm9126_vm6, %v1345_v29, %v803_v54 }
 0x41b   : > { %v1927_v52 = vpop.xlane.xlu1 %1926  ;;  %v1353_v46 = vpop.xlane.xlu0 %1352 }
 0x41c   : > { %v1956_v61 = vsel %vm1940_vm15, %v1927_v52, %v1380_v35  ;;  %vm9123_vm15 = vmmov %vm9096_vm1  ;;  %v176_v35 = vld [vmem:[%s7304_s15 + $0x8] sm:$0xff] }
 0x41d   : > { %v805_v2 = vsel %vm789_vm12, %v778_v53, %v176_v35  ;;  %vm9131_vm12 = vmmov %vm9096_vm1 }
 0x41e   : > { %v1381_v7 = vsel %vm1365_vm3, %v1353_v46, %v805_v2 }
 0x41f   : > { %v1931_v11 = vpop.xlane.xlu1 %1930  ;;  %v1357_v57 = vpop.xlane.xlu0 %1356 }
 0x420   : > { %v1958_v30 = vsel %vm1942_vm10, %v1931_v11, %v1382_v49  ;;  %vm9124_vm10 = vcmp.lt.f32.partialorder %v9109_v15, %v9110_v6 }
 0x42d   : > { %v1917_v10 = vpop.xlane.xlu0 %1916 }
 0x42e   : > { %v1953_v13 = vsel %vm1941_vm9, %v1917_v10, %v1377_v22 }
 0x440   : > { %v2491_v37 = vpop.xlane.xlu1 %2490 }
 0x441   : > { %v2528_v62 = vsel %vm9116_vm8, %v2491_v37, %v1952_v1  ;;  %vm9127_vm8 = vcmp.lt.f32.partialorder %v6957_v41, %v6863_v43 }
 0x442   : > { %2545 = vst.msk [vmem:[%s7296_s14] sm:$0xff] %vm9117_vm11, %v2528_v62  ;;  %vm9128_vm11 = vmmov %vm9096_vm1 }
 0x443   : > { %vm9133_vm3 = vmmov %vm9127_vm8 }
 0x451   : > { %v1921_v59 = vpop.xlane.xlu0 %1920 }
 0x452   : > { %v1955_v33 = vsel %vm9127_vm8, %v1921_v59, %v1379_v26 }
 0x455   : > { %v1929_v20 = vpop.xlane.xlu0 %1928 }
 0x456   : > { %v1957_v49 = vsel %vm1941_vm9, %v1929_v20, %v1381_v7  ;;  %vm9134_vm9 = vmmov %vm9096_vm1 }
 0x459   : > { %v1933_v39 = vpop.xlane.xlu0 %1932 }
 0x468   : > { %v2495_v9 = vpop.xlane.xlu1 %2494 }
 0x469   : > { %v2530_v17 = vsel %vm9118_vm7, %v2495_v9, %v1954_v63  ;;  %vm9129_vm7 = vmmov %vm9124_vm10 }
 0x46a   : > { %2547 = vst.msk [vmem:[%s7296_s14 + $0x10] sm:$0xff] %vm9119_vm5, %v2530_v17  ;;  %vm9130_vm5 = vmmov %vm9125_vm4 }
 0x46b   : > { %v807_v25 = vsel %vm9130_vm5, %v782_v12, %v178_v4 }
 0x46c   : > { %v2503_v44 = vpop.xlane.xlu1 %2502 }
 0x46d   : > { %v2532_v5 = vsel %vm9120_vm14, %v2503_v44, %v1956_v61  ;;  %vm9132_vm14 = vmmov %vm9126_vm6 }
 0x46e   : > { %2549 = vst.msk [vmem:[%s7304_s15] sm:$0xff] %vm9121_vm13, %v2532_v5  ;;  %v1383_v40 = vsel %vm9132_vm14, %v1357_v57, %v807_v25 }
 0x46f   : > { %v1959_v31 = vsel %vm9133_vm3, %v1933_v39, %v1383_v40 }
 0x470   : > { %v2507_v14 = vpop.xlane.xlu1 %2506 }
 0x471   : > { %v2534_v28 = vsel %vm9122_vm2, %v2507_v14, %v1958_v30 }
 0x472   : > { %2551 = vst.msk [vmem:[%s7304_s15 + $0x10] sm:$0xff] %vm9123_vm15, %v2534_v28 }
 0x479   : > { %v2493_v23 = vpop.xlane.xlu0 %2492 }
 0x47a   : > { %v2529_v50 = vsel %vm9124_vm10, %v2493_v23, %v1953_v13 }
 0x47b   : > { %2546 = vst.msk [vmem:[%s7296_s14 + $0x8] sm:$0xff] %vm9096_vm1, %v2529_v50 }
 0x48f   : > { %v2497_v8 = vpop.xlane.xlu0 %2496 }
 0x490   : > { %v2531_v60 = vsel %vm2519_vm0, %v2497_v8, %v1955_v33 }
 0x491   : > { %2548 = vst.msk [vmem:[%s7296_s14 + $0x18] sm:$0xff] %vm9128_vm11, %v2531_v60 }
 0x493   : > { %v2505_v47 = vpop.xlane.xlu0 %2504  ;;  %151 = sbr.rel (!%p149_p0) target bundleno = 65 (0x41), region = 56 }
 0x494   : > { %v2533_v21 = vsel %vm9129_vm7, %v2505_v47, %v1957_v49 }
 0x495   : > { %2550 = vst.msk [vmem:[%s7304_s15 + $0x8] sm:$0xff] %vm9131_vm12, %v2533_v21 }
 0x497   : > { %v2509_v58 = vpop.xlane.xlu0 %2508 }
 0x498   : > { %v2535_v3 = vsel %vm2519_vm0, %v2509_v58, %v1959_v31  ;;  %v7435_v48 = vld [vmem:[#allocation4 + $0x10] sm:$0xff] (%p149_p0)  ;;  %v7437_v45 = vld [vmem:[#allocation4] sm:$0xff] (%p149_p0)  ;;  %v7443_v55 = vld [vmem:[#allocation4 + $0x18] sm:$0xff] (%p149_p0)  ;;  %vm9135_vm0 = vcmask (%p149_p0), 7168  }
 0x499   : > { %2552 = vst.msk [vmem:[%s7304_s15 + $0x18] sm:$0xff] %vm9134_vm9, %v2535_v3  ;;  %2753 = vrot.lane.b32.xlu1 (%p149_p0), %v7435_v48, %s3487_s13  ;;  %2749 = vrot.lane.b32.xlu0 (%p149_p0), %v7437_v45, %s3487_s13  ;;  %v2557_v38 = vld [vmem:[#allocation4 + $0x8] sm:$0xff] (%p149_p0)  ;;  %v2622_v43 = vsub.f32 (%p149_p0), 1.0, %v7435_v48  ;;  %v7448_v24 = vld [vmem:[#allocation4 + $0x20] sm:$0xff] (%p149_p0)  ;;  %v7450_v0 = vld [vmem:[#allocation4 + $0x38] sm:$0xff] (%p149_p0)  ;;  %v2620_v36 = vsub.f32 (%p149_p0), 1.0, %v7437_v45 }
 0x49a   :  { %v7446_v41 = vld [vmem:[#allocation4 + $0x28] sm:$0xff]  ;;  %v2623_v15 = vsub.f32 1.0, %v7443_v55  ;;  %v2621_v6 = vsub.f32 1.0, %v2557_v38  ;;  %v7454_v51 = vld [vmem:[#allocation4 + $0x30] sm:$0xff]  ;;  %v7458_v34 = vld [vmem:[#allocation4 + $0x40] sm:$0xff]  ;;  %v2624_v16 = vsub.f32 1.0, %v7448_v24 }
 0x49b   :  { %v7456_v52 = vld [vmem:[#allocation4 + $0x48] sm:$0xff]  ;;  %v2625_v11 = vsub.f32 1.0, %v7446_v41  ;;  %v2627_v53 = vsub.f32 1.0, %v7450_v0  ;;  %v7466_v19 = vld [vmem:[#allocation4 + $0x58] sm:$0xff]  ;;  %v7468_v42 = vld [vmem:[#allocation4 + $0x50] sm:$0xff]  ;;  %v2626_v37 = vsub.f32 1.0, %v7454_v51 }
 0x49c   :  { %v7470_v1 = vld [vmem:[#allocation4 + $0x68] sm:$0xff]  ;;  %v2629_v62 = vsub.f32 1.0, %v7456_v52  ;;  %v2628_v12 = vsub.f32 1.0, %v7458_v34  ;;  %v7475_v56 = vld [vmem:[#allocation4 + $0x60] sm:$0xff]  ;;  %v7477_v29 = vld [vmem:[#allocation4 + $0x78] sm:$0xff]  ;;  %v2631_v57 = vsub.f32 1.0, %v7466_v19 }
 0x49d   :  { %2755 = vrot.lane.b32.xlu1 %v7443_v55, %s3487_s13  ;;  %2751 = vrot.lane.b32.xlu0 %v2557_v38, %s3487_s13  ;;  %v7479_v46 = vld [vmem:[#allocation4 + $0x70] sm:$0xff]  ;;  %v2630_v10 = vsub.f32 1.0, %v7468_v42  ;;  %v2633_v59 = vsub.f32 1.0, %v7470_v1  ;;  %v7484_v63 = vld [vmem:[#allocation4 + $0x88] sm:$0xff]  ;;  %v7486_v9 = vld [vmem:[#allocation4 + $0x80] sm:$0xff]  ;;  %v2632_v61 = vsub.f32 1.0, %v7475_v56 }
 0x49e   :  { %v7488_v17 = vld [vmem:[#allocation4 + $0x98] sm:$0xff]  ;;  %v2635_v44 = vsub.f32 1.0, %v7477_v29  ;;  %v2634_v20 = vsub.f32 1.0, %v7479_v46  ;;  %v7493_v5 = vld [vmem:[#allocation4 + $0x90] sm:$0xff]  ;;  %v7495_v30 = vld [vmem:[#allocation4 + $0xa8] sm:$0xff]  ;;  %v2637_v28 = vsub.f32 1.0, %v7484_v63 }
 0x49f   :  { %v7497_v14 = vld [vmem:[#allocation4 + $0xa0] sm:$0xff]  ;;  %v2636_v39 = vsub.f32 1.0, %v7486_v9  ;;  %v2639_v32 = vsub.f32 1.0, %v7488_v17  ;;  %v7506_v18 = vld [vmem:[#allocation4 + $0xb8] sm:$0xff]  ;;  %v7508_v22 = vld [vmem:[#allocation4 + $0xb0] sm:$0xff]  ;;  %v2638_v23 = vsub.f32 1.0, %v7493_v5 }
 0x4a0   :  { %v7510_v13 = vld [vmem:[#allocation4 + $0xc8] sm:$0xff]  ;;  %v2641_v50 = vsub.f32 1.0, %v7495_v30  ;;  %v2640_v27 = vsub.f32 1.0, %v7497_v14  ;;  %v7515_v54 = vld [vmem:[#allocation4 + $0xc0] sm:$0xff]  ;;  %v7517_v35 = vld [vmem:[#allocation4 + $0xd8] sm:$0xff]  ;;  %v2643_v33 = vsub.f32 1.0, %v7506_v18 }
 0x4a1   :  { %2759 = vrot.lane.b32.xlu1 %v7446_v41, %s3487_s13  ;;  %2757 = vrot.lane.b32.xlu0 %v7448_v24, %s3487_s13  ;;  %v7519_v26 = vld [vmem:[#allocation5 + $0x8] sm:$0xff]  ;;  %v2642_v8 = vsub.f32 1.0, %v7508_v22  ;;  %v2645_v60 = vsub.f32 1.0, %v7510_v13  ;;  %v7524_v2 = vld [vmem:[#allocation4 + $0xd0] sm:$0xff]  ;;  %v7527_v7 = vld [vmem:[#allocation5] sm:$0xff]  ;;  %v2644_v21 = vsub.f32 1.0, %v7515_v54 }
 0x4a2   :  { %v2653_v4 = vsub.f32 %v2621_v6, %v7519_v26  ;;  %v7529_v49 = vld [vmem:[#allocation5 + $0x18] sm:$0xff]  ;;  %v7531_v47 = vld [vmem:[#allocation5 + $0x10] sm:$0xff]  ;;  %v7534_v25 = vld [vmem:[#allocation4 + $0xe8] sm:$0xff]  ;;  %v2652_v40 = vsub.f32 %v2620_v36, %v7527_v7 }
 0x4a3   :  { %v2655_v31 = vsub.f32 %v2623_v15, %v7529_v49  ;;  %v2654_v58 = vsub.f32 %v2622_v43, %v7531_v47  ;;  %v7539_v3 = vld [vmem:[#allocation5 + $0x28] sm:$0xff]  ;;  %v7541_v48 = vld [vmem:[#allocation5 + $0x20] sm:$0xff]  ;;  %v7543_v45 = vld [vmem:[#allocation5 + $0x38] sm:$0xff] }
 0x4a4   :  { %v7550_v38 = vld [vmem:[#allocation4 + $0xe0] sm:$0xff]  ;;  %2686 = vst.msk [vmem:[%s8469_s2 + $0x8] sm:$0xff] %vm9135_vm0, %v2653_v4  ;;  %v2657_v43 = vsub.f32 %v2625_v11, %v7539_v3  ;;  %v2656_v41 = vsub.f32 %v2624_v16, %v7541_v48  ;;  %v2659_v24 = vsub.f32 %v2627_v53, %v7543_v45  ;;  %v7559_v36 = vld [vmem:[#allocation5 + $0x30] sm:$0xff]  ;;  %v7566_v55 = vld [vmem:[#allocation4 + $0xf8] sm:$0xff] }
 0x4a5   :  { %2763 = vrot.lane.b32.xlu1 %v7450_v0, %s3487_s13  ;;  %2761 = vrot.lane.b32.xlu0 %v7454_v51, %s3487_s13  ;;  %v7561_v0 = vld [vmem:[#allocation5 + $0x48] sm:$0xff]  ;;  %v7563_v15 = vld [vmem:[#allocation5 + $0x40] sm:$0xff]  ;;  %vm9136_vm13 = vmmov %vm9135_vm0  ;;  %v2658_v11 = vsub.f32 %v2626_v37, %v7559_v36 }
 0x4a6   :  { %2685 = vst.msk [vmem:[%s8469_s2] sm:$0xff] %vm9136_vm13, %v2652_v40  ;;  %vm9137_vm2 = vmmov %vm9135_vm0  ;;  %v2661_v16 = vsub.f32 %v2629_v62, %v7561_v0  ;;  %v2660_v53 = vsub.f32 %v2628_v12, %v7563_v15  ;;  %v7589_v4 = vld [vmem:[#allocation5 + $0x58] sm:$0xff]  ;;  %v7591_v40 = vld [vmem:[#allocation5 + $0x50] sm:$0xff] }
 0x4a7   :  { %2688 = vst.msk [vmem:[%s8469_s2 + $0x18] sm:$0xff] %vm9137_vm2, %v2655_v31  ;;  %vm9138_vm15 = vmmov %vm9135_vm0  ;;  %v7593_v31 = vld [vmem:[#allocation5 + $0x68] sm:$0xff]  ;;  %v7596_v6 = vld [vmem:[#allocation4 + $0xf0] sm:$0xff]  ;;  %v2663_v51 = vsub.f32 %v2631_v57, %v7589_v4  ;;  %v2662_v37 = vsub.f32 %v2630_v10, %v7591_v40 }
 0x4a8   :  { %2687 = vst.msk [vmem:[%s8469_s2 + $0x10] sm:$0xff] %vm9138_vm15, %v2654_v58  ;;  %vm9139_vm10 = vmmov %vm9135_vm0  ;;  %v2665_v62 = vsub.f32 %v2633_v59, %v7593_v31  ;;  %v7619_v12 = vld [vmem:[#allocation5 + $0x60] sm:$0xff]  ;;  %v7651_v58 = vld [vmem:[#allocation5 + $0x98] sm:$0xff] }
 0x4a9   :  { %2690 = vst.msk [vmem:[%s8469_s2 + $0x28] sm:$0xff] %vm9139_vm10, %v2657_v43  ;;  %vm9140_vm1 = vmmov %vm9135_vm0  ;;  %v7621_v43 = vld [vmem:[#allocation5 + $0x78] sm:$0xff]  ;;  %v2664_v57 = vsub.f32 %v2632_v61, %v7619_v12  ;;  %2767 = vrot.lane.b32.xlu1 %v7456_v52, %s3487_s13  ;;  %2765 = vrot.lane.b32.xlu0 %v7458_v34, %s3487_s13  ;;  %v2651_v61 = vsub.f32 1.0, %v7566_v55 }
 0x4aa   :  { %2689 = vst.msk [vmem:[%s8469_s2 + $0x20] sm:$0xff] %vm9140_vm1, %v2656_v41  ;;  %vm9141_vm4 = vmmov %vm9135_vm0  ;;  %v7623_v41 = vld [vmem:[#allocation5 + $0x70] sm:$0xff]  ;;  %v2667_v10 = vsub.f32 %v2635_v44, %v7621_v43  ;;  %v2671_v44 = vsub.f32 %v2639_v32, %v7651_v58 }
 0x4ab   :  { %2692 = vst.msk [vmem:[%s8469_s2 + $0x38] sm:$0xff] %vm9141_vm4, %v2659_v24  ;;  %v2648_v24 = vsub.f32 1.0, %v7550_v38  ;;  %vm9142_vm6 = vmmov %vm9135_vm0  ;;  %v2666_v59 = vsub.f32 %v2634_v20, %v7623_v41  ;;  %v7679_v20 = vld [vmem:[#allocation5 + $0x90] sm:$0xff] }
 0x4ac   :  { %2691 = vst.msk [vmem:[%s8469_s2 + $0x30] sm:$0xff] %vm9142_vm6, %v2658_v11  ;;  %vm9143_vm8 = vmmov %vm9135_vm0  ;;  %v7647_v11 = vld [vmem:[#allocation5 + $0x88] sm:$0xff] }
 0x4ad   :  { %2694 = vst.msk [vmem:[%s8469_s2 + $0x48] sm:$0xff] %vm9143_vm8, %v2661_v16  ;;  %vm9144_vm11 = vmmov %vm9135_vm0  ;;  %v7649_v16 = vld [vmem:[#allocation5 + $0x80] sm:$0xff]  ;;  %v2669_v52 = vsub.f32 %v2637_v28, %v7647_v11  ;;  %v2670_v28 = vsub.f32 %v2638_v23, %v7679_v20  ;;  %2771 = vrot.lane.b32.xlu1 %v7466_v19, %s3487_s13  ;;  %2769 = vrot.lane.b32.xlu0 %v7468_v42, %s3487_s13  ;;  %v9163_v19 = vsub.f32 1.0, %v7534_v25 }
 0x4ae   :  { %2693 = vst.msk [vmem:[%s8469_s2 + $0x40] sm:$0xff] %vm9144_vm11, %v2660_v53  ;;  %vm9145_vm7 = vmmov %vm9135_vm0  ;;  %v2668_v34 = vsub.f32 %v2636_v39, %v7649_v16  ;;  %v7681_v53 = vld [vmem:[#allocation5 + $0xa8] sm:$0xff] }
 0x4af   :  { %2696 = vst.msk [vmem:[%s8469_s2 + $0x58] sm:$0xff] %vm9145_vm7, %v2663_v51  ;;  %vm9146_vm5 = vmmov %vm9135_vm0  ;;  %v7683_v51 = vld [vmem:[#allocation5 + $0xa0] sm:$0xff]  ;;  %v2673_v39 = vsub.f32 %v2641_v50, %v7681_v53 }
 0x4b0   :  { %2695 = vst.msk [vmem:[%s8469_s2 + $0x50] sm:$0xff] %vm9146_vm5, %v2662_v37  ;;  %vm9147_vm12 = vmmov %vm9135_vm0  ;;  %v2650_v37 = vsub.f32 1.0, %v7596_v6  ;;  %v2672_v32 = vsub.f32 %v2640_v27, %v7683_v51 }
 0x4b1   :  { %2698 = vst.msk [vmem:[%s8469_s2 + $0x68] sm:$0xff] %vm9147_vm12, %v2665_v62  ;;  %vm9148_vm14 = vmmov %vm9135_vm0  ;;  %v7707_v62 = vld [vmem:[#allocation5 + $0xb8] sm:$0xff]  ;;  %2775 = vrot.lane.b32.xlu1 %v7470_v1, %s3487_s13  ;;  %2773 = vrot.lane.b32.xlu0 %v7475_v56, %s3487_s13 }
 0x4b2   :  { %2697 = vst.msk [vmem:[%s8469_s2 + $0x60] sm:$0xff] %vm9148_vm14, %v2664_v57  ;;  %vm9149_vm3 = vmmov %vm9135_vm0  ;;  %v7709_v57 = vld [vmem:[#allocation5 + $0xb0] sm:$0xff]  ;;  %v2675_v23 = vsub.f32 %v2643_v33, %v7707_v62 }
 0x4b3   :  { %2700 = vst.msk [vmem:[%s8469_s2 + $0x78] sm:$0xff] %vm9149_vm3, %v2667_v10  ;;  %vm9150_vm9 = vmmov %vm9135_vm0  ;;  %v7711_v10 = vld [vmem:[#allocation5 + $0xc8] sm:$0xff]  ;;  %v2674_v50 = vsub.f32 %v2642_v8, %v7709_v57  ;;  %v9158_v8 = vsub.f32 1.0, %v7517_v35 }
 0x4b4   :  { %2699 = vst.msk [vmem:[%s8469_s2 + $0x70] sm:$0xff] %vm9150_vm9, %v2666_v59  ;;  %9151 = vst [vmem:[#allocation95_spill] sm:$0xff] %v7709_v57  ;;  %v2677_v27 = vsub.f32 %v2645_v60, %v7711_v10  ;;  %v7734_v59 = vld [vmem:[#allocation5 + $0xc0] sm:$0xff]  ;;  %v7765_v57 = vld [vmem:[#allocation5 + $0xf8] sm:$0xff] }
 0x4b5   :  { %9152 = vst [vmem:[#allocation96_spill] sm:$0xff] %v7711_v10  ;;  %2702 = vst.msk [vmem:[%s8469_s2 + $0x88] sm:$0xff] %vm9135_vm0, %v2669_v52  ;;  %v7736_v52 = vld [vmem:[#allocation5 + $0xd8] sm:$0xff]  ;;  %v2676_v33 = vsub.f32 %v2644_v21, %v7734_v59  ;;  %v7761_v10 = vld [vmem:[#allocation5 + $0xe8] sm:$0xff]  ;;  %2779 = vrot.lane.b32.xlu1 %v7477_v29, %s3487_s13  ;;  %2777 = vrot.lane.b32.xlu0 %v7479_v46, %s3487_s13 }
 0x4b6   :  { %vm9153_vm13 = vmmov %vm9135_vm0  ;;  %v2679_v60 = vsub.f32 %v9158_v8, %v7736_v52  ;;  %v2681_v21 = vsub.f32 %v9163_v19, %v7761_v10  ;;  %v7788_v8 = vld [vmem:[#allocation5 + $0xf0] sm:$0xff] }
 0x4b7   :  { %2701 = vst.msk [vmem:[%s8469_s2 + $0x80] sm:$0xff] %vm9153_vm13, %v2668_v34  ;;  %vm9154_vm2 = vmmov %vm9135_vm0  ;;  %v7738_v34 = vld [vmem:[#allocation5 + $0xd0] sm:$0xff] }
 0x4b8   :  { %2704 = vst.msk [vmem:[%s8469_s2 + $0x98] sm:$0xff] %vm9154_vm2, %v2671_v44  ;;  %vm9155_vm15 = vmmov %vm9135_vm0  ;;  %v9159_v44 = vsub.f32 1.0, %v7524_v2 }
 0x4b9   :  { %2703 = vst.msk [vmem:[%s8469_s2 + $0x90] sm:$0xff] %vm9155_vm15, %v2670_v28  ;;  %vm9156_vm10 = vmmov %vm9135_vm0  ;;  %2783 = vrot.lane.b32.xlu1 %v7484_v63, %s3487_s13  ;;  %2781 = vrot.lane.b32.xlu0 %v7486_v9, %s3487_s13 }
 0x4ba   :  { %2706 = vst.msk [vmem:[%s8469_s2 + $0xa8] sm:$0xff] %vm9156_vm10, %v2673_v39  ;;  %vm9157_vm1 = vmmov %vm9135_vm0  ;;  %v2678_v28 = vsub.f32 %v9159_v44, %v7738_v34  ;;  %v7763_v39 = vld [vmem:[#allocation5 + $0xe0] sm:$0xff]  ;;  %vm3006_vm10 = vcmask 23568  }
 0x4bb   :  { %2705 = vst.msk [vmem:[%s8469_s2 + $0xa0] sm:$0xff] %vm9157_vm1, %v2672_v32  ;;  %vm9160_vm4 = vmmov %vm9135_vm0  ;;  %v2680_v42 = vsub.f32 %v2648_v24, %v7763_v39  ;;  %v2683_v32 = vsub.f32 %v2651_v61, %v7765_v57  ;;  %v2682_v24 = vsub.f32 %v2650_v37, %v7788_v8  ;;  %v9171_v1 = vld [vmem:[#allocation95_spill] sm:$0xff] }
 0x4bc   :  { %2708 = vst.msk [vmem:[%s8469_s2 + $0xb8] sm:$0xff] %vm9160_vm4, %v2675_v23  ;;  %vm9161_vm6 = vmmov %vm9135_vm0  ;;  %v9172_v56 = vld [vmem:[#allocation96_spill] sm:$0xff] }
 0x4bd   :  { %2707 = vst.msk [vmem:[%s8469_s2 + $0xb0] sm:$0xff] %vm9161_vm6, %v2674_v50  ;;  %vm9162_vm8 = vmmov %vm9135_vm0  ;;  %2787 = vrot.lane.b32.xlu1 %v7488_v17, %s3487_s13  ;;  %2785 = vrot.lane.b32.xlu0 %v7493_v5, %s3487_s13  ;;  %v3060_v50 = vld [vmem:[#allocation2 + $0xa8] sm:$0xff] }
 0x4be   :  { %2710 = vst.msk [vmem:[%s8469_s2 + $0xc8] sm:$0xff] %vm9162_vm8, %v2677_v27  ;;  %vm9164_vm11 = vmmov %vm9135_vm0  ;;  %v3059_v27 = vld [vmem:[#allocation2 + $0xa0] sm:$0xff] }
 0x4bf   :  { %2709 = vst.msk [vmem:[%s8469_s2 + $0xc0] sm:$0xff] %vm9164_vm11, %v2676_v33  ;;  %vm9165_vm7 = vmmov %vm9135_vm0  ;;  %v3061_v33 = vld [vmem:[#allocation2 + $0xb0] sm:$0xff] }
 0x4c0   :  { %2712 = vst.msk [vmem:[%s8469_s2 + $0xd8] sm:$0xff] %vm9165_vm7, %v2679_v60  ;;  %vm9166_vm5 = vmmov %vm9135_vm0 }
 0x4c1   :  { %2711 = vst.msk [vmem:[%s8469_s2 + $0xd0] sm:$0xff] %vm9166_vm5, %v2678_v28  ;;  %vm9167_vm12 = vmmov %vm9135_vm0  ;;  %2791 = vrot.lane.b32.xlu1 %v7495_v30, %s3487_s13  ;;  %2789 = vrot.lane.b32.xlu0 %v7497_v14, %s3487_s13  ;;  %v3040_v30 = vld [vmem:[#allocation2 + $0x8] sm:$0xff]  ;;  %v3039_v14 = vld [vmem:[#allocation2] sm:$0xff] }
 0x4c2   :  { %2714 = vst.msk [vmem:[%s8469_s2 + $0xe8] sm:$0xff] %vm9167_vm12, %v2681_v21  ;;  %vm9168_vm14 = vmmov %vm9135_vm0  ;;  %v3064_v28 = vld [vmem:[#allocation2 + $0xc8] sm:$0xff] }
 0x4c3   :  { %2713 = vst.msk [vmem:[%s8469_s2 + $0xe0] sm:$0xff] %vm9168_vm14, %v2680_v42  ;;  %vm9169_vm3 = vmmov %vm9135_vm0  ;;  %v3232_v42 = vld [vmem:[#allocation3] sm:$0xff] }
 0x4c4   :  { %2716 = vst.msk [vmem:[%s8469_s2 + $0xf8] sm:$0xff] %vm9169_vm3, %v2683_v32  ;;  %vm9170_vm9 = vmmov %vm9135_vm0  ;;  %vm2845_vm0 = vcmask 15368   ;;  %v3233_v32 = vld [vmem:[#allocation3 + $0x8] sm:$0xff] }
 0x4c5   :  { %2715 = vst.msk [vmem:[%s8469_s2 + $0xf0] sm:$0xff] %vm9170_vm9, %v2682_v24  ;;  %2795 = vrot.lane.b32.xlu1 %v7506_v18, %s3487_s13  ;;  %2793 = vrot.lane.b32.xlu0 %v7508_v22, %s3487_s13  ;;  %v3066_v24 = vld [vmem:[#allocation2 + $0xd8] sm:$0xff]  ;;  %vm9173_vm13 = vmmov %vm9157_vm1 }
 0x4c6   :  { %3264 = vst.msk [vmem:[%s8470_s3] sm:$0xff] %vm9173_vm13, %v3232_v42  ;;  %vm9174_vm2 = vmmov %vm9157_vm1 }
 0x4c7   :  { %3265 = vst.msk [vmem:[%s8470_s3 + $0x8] sm:$0xff] %vm9174_vm2, %v3233_v32  ;;  %vm9175_vm15 = vmmov %vm9157_vm1 }
 0x4c8   :  { %vm9176_vm4 = vmmov %vm9157_vm1 }
 0x4c9   :  { %2799 = vrot.lane.b32.xlu1 %v7510_v13, %s3487_s13  ;;  %2797 = vrot.lane.b32.xlu0 %v7515_v54, %s3487_s13  ;;  %v3042_v13 = vld [vmem:[#allocation2 + $0x18] sm:$0xff]  ;;  %v3041_v54 = vld [vmem:[#allocation2 + $0x10] sm:$0xff]  ;;  %vm9177_vm6 = vmmov %vm9157_vm1 }
 0x4ca   :  { %vm9178_vm8 = vmmov %vm9157_vm1 }
 0x4cb   :  { %vm9179_vm11 = vmmov %vm9157_vm1 }
 0x4cc   :  { %vm9180_vm7 = vmmov %vm9157_vm1 }
 0x4cd   :  { %2803 = vrot.lane.b32.xlu1 %v7517_v35, %s3487_s13  ;;  %2801 = vrot.lane.b32.xlu0 %v7524_v2, %s3487_s13  ;;  %v3044_v2 = vld [vmem:[#allocation2 + $0x28] sm:$0xff]  ;;  %vm9181_vm5 = vmmov %vm9157_vm1 }
 0x4ce   :  { %vm9182_vm12 = vmmov %vm9157_vm1 }
 0x4cf   :  { %vm9183_vm14 = vmmov %vm9157_vm1 }
 0x4d0   :  { %vm9184_vm3 = vmmov %vm9157_vm1 }
 0x4d1   :  { %2807 = vrot.lane.b32.xlu1 %v7534_v25, %s3487_s13  ;;  %2805 = vrot.lane.b32.xlu0 %v7550_v38, %s3487_s13  ;;  %v3046_v25 = vld [vmem:[#allocation2 + $0x38] sm:$0xff]  ;;  %v3047_v38 = vld [vmem:[#allocation2 + $0x40] sm:$0xff]  ;;  %vm9185_vm9 = vmmov %vm9157_vm1 }
 0x4d5   :  { %2811 = vrot.lane.b32.xlu1 %v7566_v55, %s3487_s13  ;;  %2809 = vrot.lane.b32.xlu0 %v7596_v6, %s3487_s13  ;;  %v3048_v55 = vld [vmem:[#allocation2 + $0x48] sm:$0xff]  ;;  %v3049_v6 = vld [vmem:[#allocation2 + $0x50] sm:$0xff] }
 0x4d9   :  { %2912 = vrot.lane.b32.xlu1 %v7519_v26, %s3488_s21  ;;  %2910 = vrot.lane.b32.xlu0 %v7527_v7, %s3488_s21  ;;  %v3043_v7 = vld [vmem:[#allocation2 + $0x20] sm:$0xff] }
 0x4dd   :  { %2916 = vrot.lane.b32.xlu1 %v7529_v49, %s3488_s21  ;;  %2914 = vrot.lane.b32.xlu0 %v7531_v47, %s3488_s21 }
 0x4e1   :  { %2920 = vrot.lane.b32.xlu1 %v7539_v3, %s3488_s21  ;;  %2918 = vrot.lane.b32.xlu0 %v7541_v48, %s3488_s21  ;;  %v3045_v3 = vld [vmem:[#allocation2 + $0x30] sm:$0xff] }
 0x4e5   :  { %2924 = vrot.lane.b32.xlu1 %v7543_v45, %s3488_s21  ;;  %2922 = vrot.lane.b32.xlu0 %v7559_v36, %s3488_s21 }
 0x4e9   :  { %2928 = vrot.lane.b32.xlu1 %v7561_v0, %s3488_s21  ;;  %2926 = vrot.lane.b32.xlu0 %v7563_v15, %s3488_s21  ;;  %v3050_v15 = vld [vmem:[#allocation2 + $0x58] sm:$0xff] }
 0x4ed   :  { %2932 = vrot.lane.b32.xlu1 %v7589_v4, %s3488_s21  ;;  %2930 = vrot.lane.b32.xlu0 %v7591_v40, %s3488_s21 }
 0x4f1   :  { %2936 = vrot.lane.b32.xlu1 %v7593_v31, %s3488_s21  ;;  %2934 = vrot.lane.b32.xlu0 %v7619_v12, %s3488_s21  ;;  %v3052_v31 = vld [vmem:[#allocation2 + $0x68] sm:$0xff] }
 0x4f5   :  { %2940 = vrot.lane.b32.xlu1 %v7621_v43, %s3488_s21  ;;  %2938 = vrot.lane.b32.xlu0 %v7623_v41, %s3488_s21  ;;  %v3054_v41 = vld [vmem:[#allocation2 + $0x78] sm:$0xff] }
 0x4f9   :  { %2944 = vrot.lane.b32.xlu1 %v7647_v11, %s3488_s21  ;;  %2942 = vrot.lane.b32.xlu0 %v7649_v16, %s3488_s21  ;;  %v3053_v11 = vld [vmem:[#allocation2 + $0x70] sm:$0xff] }
 0x4fd   :  { %2948 = vrot.lane.b32.xlu1 %v7651_v58, %s3488_s21  ;;  %2946 = vrot.lane.b32.xlu0 %v7679_v20, %s3488_s21  ;;  %v3051_v58 = vld [vmem:[#allocation2 + $0x60] sm:$0xff]  ;;  %v3056_v20 = vld [vmem:[#allocation2 + $0x88] sm:$0xff] }
 0x501   :  { %2952 = vrot.lane.b32.xlu1 %v7681_v53, %s3488_s21  ;;  %2950 = vrot.lane.b32.xlu0 %v7683_v51, %s3488_s21  ;;  %v3055_v53 = vld [vmem:[#allocation2 + $0x80] sm:$0xff] }
 0x505   :  { %2956 = vrot.lane.b32.xlu1 %v7707_v62, %s3488_s21  ;;  %2954 = vrot.lane.b32.xlu0 %v9171_v1, %s3488_s21  ;;  %v3058_v62 = vld [vmem:[#allocation2 + $0x98] sm:$0xff]  ;;  %v3065_v1 = vld [vmem:[#allocation2 + $0xd0] sm:$0xff] }
 0x509   :  { %2960 = vrot.lane.b32.xlu1 %v9172_v56, %s3488_s21  ;;  %2958 = vrot.lane.b32.xlu0 %v7734_v59, %s3488_s21  ;;  %v3235_v56 = vld [vmem:[#allocation3 + $0x18] sm:$0xff] }
 0x50a   :  { %3267 = vst.msk [vmem:[%s8470_s3 + $0x18] sm:$0xff] %vm9157_vm1, %v3235_v56 }
 0x50b   :  { %v2754_v29 = vpop.permute.xlu1 %2753  ;;  %v2750_v46 = vpop.permute.xlu0 %2749 }
 0x50c   :  { %2848 = vst.msk [vmem:[%s8469_s2 + $0x10] sm:$0xff] %vm2845_vm0, %v2754_v29  ;;  %2846 = vst.msk [vmem:[%s8469_s2] sm:$0xff] %vm2845_vm0, %v2750_v46  ;;  %v3236_v29 = vld [vmem:[#allocation3 + $0x20] sm:$0xff]  ;;  %v3237_v46 = vld [vmem:[#allocation3 + $0x28] sm:$0xff] }
 0x50d   :  { %2964 = vrot.lane.b32.xlu1 %v7736_v52, %s3488_s21  ;;  %2962 = vrot.lane.b32.xlu0 %v7738_v34, %s3488_s21  ;;  %v3062_v34 = vld [vmem:[#allocation2 + $0xb8] sm:$0xff]  ;;  %3268 = vst.msk [vmem:[%s8470_s3 + $0x20] sm:$0xff] %vm9176_vm4, %v3236_v29 }
 0x50e   :  { %3269 = vst.msk [vmem:[%s8470_s3 + $0x28] sm:$0xff] %vm9177_vm6, %v3237_v46 }
 0x50f   :  { %v2756_v63 = vpop.permute.xlu1 %2755  ;;  %v2752_v9 = vpop.permute.xlu0 %2751 }
 0x510   :  { %2849 = vst.msk [vmem:[%s8469_s2 + $0x18] sm:$0xff] %vm2845_vm0, %v2756_v63  ;;  %2847 = vst.msk [vmem:[%s8469_s2 + $0x8] sm:$0xff] %vm2845_vm0, %v2752_v9  ;;  %v3238_v63 = vld [vmem:[#allocation3 + $0x30] sm:$0xff]  ;;  %v3239_v9 = vld [vmem:[#allocation3 + $0x38] sm:$0xff] }
 0x511   :  { %2968 = vrot.lane.b32.xlu1 %v7761_v10, %s3488_s21  ;;  %2966 = vrot.lane.b32.xlu0 %v7763_v39, %s3488_s21  ;;  %v3063_v39 = vld [vmem:[#allocation2 + $0xc0] sm:$0xff]  ;;  %3270 = vst.msk [vmem:[%s8470_s3 + $0x30] sm:$0xff] %vm9178_vm8, %v3238_v63 }
 0x512   :  { %3271 = vst.msk [vmem:[%s8470_s3 + $0x38] sm:$0xff] %vm9179_vm11, %v3239_v9 }
 0x513   :  { %v2760_v17 = vpop.permute.xlu1 %2759  ;;  %v2758_v5 = vpop.permute.xlu0 %2757 }
 0x514   :  { %2851 = vst.msk [vmem:[%s8469_s2 + $0x28] sm:$0xff] %vm2845_vm0, %v2760_v17  ;;  %2850 = vst.msk [vmem:[%s8469_s2 + $0x20] sm:$0xff] %vm2845_vm0, %v2758_v5  ;;  %v3240_v17 = vld [vmem:[#allocation3 + $0x40] sm:$0xff]  ;;  %v3241_v5 = vld [vmem:[#allocation3 + $0x48] sm:$0xff] }
 0x515   :  { %2972 = vrot.lane.b32.xlu1 %v7765_v57, %s3488_s21  ;;  %2970 = vrot.lane.b32.xlu0 %v7788_v8, %s3488_s21  ;;  %v3057_v57 = vld [vmem:[#allocation2 + $0x90] sm:$0xff]  ;;  %3272 = vst.msk [vmem:[%s8470_s3 + $0x40] sm:$0xff] %vm9180_vm7, %v3240_v17 }
 0x516   :  { %v3234_v8 = vld [vmem:[#allocation3 + $0x10] sm:$0xff]  ;;  %3273 = vst.msk [vmem:[%s8470_s3 + $0x48] sm:$0xff] %vm9181_vm5, %v3241_v5 }
 0x517   :  { %v2764_v18 = vpop.permute.xlu1 %2763  ;;  %v2762_v22 = vpop.permute.xlu0 %2761  ;;  %3266 = vst.msk [vmem:[%s8470_s3 + $0x10] sm:$0xff] %vm9175_vm15, %v3234_v8 }
 0x518   :  { %2853 = vst.msk [vmem:[%s8469_s2 + $0x38] sm:$0xff] %vm2845_vm0, %v2764_v18  ;;  %2852 = vst.msk [vmem:[%s8469_s2 + $0x30] sm:$0xff] %vm2845_vm0, %v2762_v22 }
 0x519   :  { %3105 = vrot.lane.b32.xlu1 %v3040_v30, %s3489_s10  ;;  %3103 = vrot.lane.b32.xlu0 %v3039_v14, %s3489_s10  ;;  %v3242_v30 = vld [vmem:[#allocation3 + $0x50] sm:$0xff]  ;;  %v3243_v14 = vld [vmem:[#allocation3 + $0x58] sm:$0xff] }
 0x51a   :  { %3274 = vst.msk [vmem:[%s8470_s3 + $0x50] sm:$0xff] %vm9182_vm12, %v3242_v30 }
 0x51b   :  { %v2768_v35 = vpop.permute.xlu1 %2767  ;;  %v2766_v26 = vpop.permute.xlu0 %2765  ;;  %3275 = vst.msk [vmem:[%s8470_s3 + $0x58] sm:$0xff] %vm9183_vm14, %v3243_v14 }
 0x51c   :  { %2855 = vst.msk [vmem:[%s8469_s2 + $0x48] sm:$0xff] %vm2845_vm0, %v2768_v35  ;;  %2854 = vst.msk [vmem:[%s8469_s2 + $0x40] sm:$0xff] %vm2845_vm0, %v2766_v26  ;;  %v3246_v35 = vld [vmem:[#allocation3 + $0x70] sm:$0xff]  ;;  %v3068_v26 = vld [vmem:[#allocation2 + $0xe8] sm:$0xff] }
 0x51d   :  { %3109 = vrot.lane.b32.xlu1 %v3042_v13, %s3489_s10  ;;  %3107 = vrot.lane.b32.xlu0 %v3041_v54, %s3489_s10  ;;  %v3244_v13 = vld [vmem:[#allocation3 + $0x60] sm:$0xff]  ;;  %v3245_v54 = vld [vmem:[#allocation3 + $0x68] sm:$0xff] }
 0x51e   :  { %3276 = vst.msk [vmem:[%s8470_s3 + $0x60] sm:$0xff] %vm9184_vm3, %v3244_v13 }
 0x51f   :  { %v2772_v49 = vpop.permute.xlu1 %2771  ;;  %v2770_v47 = vpop.permute.xlu0 %2769  ;;  %3277 = vst.msk [vmem:[%s8470_s3 + $0x68] sm:$0xff] %vm9185_vm9, %v3245_v54 }
 0x520   :  { %2857 = vst.msk [vmem:[%s8469_s2 + $0x58] sm:$0xff] %vm2845_vm0, %v2772_v49  ;;  %2856 = vst.msk [vmem:[%s8469_s2 + $0x50] sm:$0xff] %vm2845_vm0, %v2770_v47  ;;  %v3248_v49 = vld [vmem:[#allocation3 + $0x80] sm:$0xff]  ;;  %v3249_v47 = vld [vmem:[#allocation3 + $0x88] sm:$0xff] }
 0x521   :  { %3113 = vrot.lane.b32.xlu1 %v3044_v2, %s3489_s10  ;;  %3111 = vrot.lane.b32.xlu0 %v3043_v7, %s3489_s10  ;;  %v3067_v2 = vld [vmem:[#allocation2 + $0xe0] sm:$0xff]  ;;  %v3247_v7 = vld [vmem:[#allocation3 + $0x78] sm:$0xff] }
 0x523   :  { %v2776_v48 = vpop.permute.xlu1 %2775  ;;  %v2774_v45 = vpop.permute.xlu0 %2773 }
 0x524   :  { %2859 = vst.msk [vmem:[%s8469_s2 + $0x68] sm:$0xff] %vm2845_vm0, %v2776_v48  ;;  %2858 = vst.msk [vmem:[%s8469_s2 + $0x60] sm:$0xff] %vm2845_vm0, %v2774_v45  ;;  %v3252_v48 = vld [vmem:[#allocation3 + $0xa0] sm:$0xff]  ;;  %v3253_v45 = vld [vmem:[#allocation3 + $0xa8] sm:$0xff] }
 0x525   :  { %3117 = vrot.lane.b32.xlu1 %v3046_v25, %s3489_s10  ;;  %3115 = vrot.lane.b32.xlu0 %v3045_v3, %s3489_s10  ;;  %v3250_v25 = vld [vmem:[#allocation3 + $0x90] sm:$0xff]  ;;  %v3251_v3 = vld [vmem:[#allocation3 + $0x98] sm:$0xff] }
 0x527   :  { %v2780_v36 = vpop.permute.xlu1 %2779  ;;  %v2778_v0 = vpop.permute.xlu0 %2777 }
 0x528   :  { %2861 = vst.msk [vmem:[%s8469_s2 + $0x78] sm:$0xff] %vm2845_vm0, %v2780_v36  ;;  %2860 = vst.msk [vmem:[%s8469_s2 + $0x70] sm:$0xff] %vm2845_vm0, %v2778_v0 }
 0x529   :  { %3121 = vrot.lane.b32.xlu1 %v3048_v55, %s3489_s10  ;;  %3119 = vrot.lane.b32.xlu0 %v3047_v38, %s3489_s10  ;;  %v3254_v55 = vld [vmem:[#allocation3 + $0xb0] sm:$0xff]  ;;  %v3255_v38 = vld [vmem:[#allocation3 + $0xb8] sm:$0xff] }
 0x52b   :  { %v2784_v4 = vpop.permute.xlu1 %2783  ;;  %v2782_v40 = vpop.permute.xlu0 %2781 }
 0x52c   :  { %2863 = vst.msk [vmem:[%s8469_s2 + $0x88] sm:$0xff] %vm2845_vm0, %v2784_v4  ;;  %2862 = vst.msk [vmem:[%s8469_s2 + $0x80] sm:$0xff] %vm2845_vm0, %v2782_v40  ;;  %v3258_v4 = vld [vmem:[#allocation3 + $0xd0] sm:$0xff]  ;;  %v3259_v40 = vld [vmem:[#allocation3 + $0xd8] sm:$0xff] }
 0x52d   :  { %3125 = vrot.lane.b32.xlu1 %v3050_v15, %s3489_s10  ;;  %3123 = vrot.lane.b32.xlu0 %v3049_v6, %s3489_s10  ;;  %v3256_v15 = vld [vmem:[#allocation3 + $0xc0] sm:$0xff]  ;;  %v3257_v6 = vld [vmem:[#allocation3 + $0xc8] sm:$0xff] }
 0x52f   :  { %v2788_v12 = vpop.permute.xlu1 %2787  ;;  %v2786_v43 = vpop.permute.xlu0 %2785 }
 0x530   :  { %2865 = vst.msk [vmem:[%s8469_s2 + $0x98] sm:$0xff] %vm2845_vm0, %v2788_v12  ;;  %2864 = vst.msk [vmem:[%s8469_s2 + $0x90] sm:$0xff] %vm2845_vm0, %v2786_v43  ;;  %v3262_v12 = vld [vmem:[#allocation3 + $0xf0] sm:$0xff]  ;;  %v3263_v43 = vld [vmem:[#allocation3 + $0xf8] sm:$0xff] }
 0x531   :  { %3129 = vrot.lane.b32.xlu1 %v3052_v31, %s3489_s10  ;;  %3127 = vrot.lane.b32.xlu0 %v3051_v58, %s3489_s10  ;;  %v3260_v31 = vld [vmem:[#allocation3 + $0xe0] sm:$0xff]  ;;  %v3261_v58 = vld [vmem:[#allocation3 + $0xe8] sm:$0xff] }
 0x533   :  { %v2792_v16 = vpop.permute.xlu1 %2791  ;;  %v2790_v61 = vpop.permute.xlu0 %2789 }
 0x534   :  { %2867 = vst.msk [vmem:[%s8469_s2 + $0xa8] sm:$0xff] %vm2845_vm0, %v2792_v16  ;;  %2866 = vst.msk [vmem:[%s8469_s2 + $0xa0] sm:$0xff] %vm2845_vm0, %v2790_v61 }
 0x535   :  { %3133 = vrot.lane.b32.xlu1 %v3054_v41, %s3489_s10  ;;  %3131 = vrot.lane.b32.xlu0 %v3053_v11, %s3489_s10  ;;  %v3070_v41 = vld [vmem:[#allocation2 + $0xf8] sm:$0xff]  ;;  %v3069_v11 = vld [vmem:[#allocation2 + $0xf0] sm:$0xff] }
 0x537   :  { %v2796_v51 = vpop.permute.xlu1 %2795  ;;  %v2794_v37 = vpop.permute.xlu0 %2793 }
 0x538   :  { %2869 = vst.msk [vmem:[%s8469_s2 + $0xb8] sm:$0xff] %vm2845_vm0, %v2796_v51  ;;  %2868 = vst.msk [vmem:[%s8469_s2 + $0xb0] sm:$0xff] %vm2845_vm0, %v2794_v37 }
 0x539   :  { %3137 = vrot.lane.b32.xlu1 %v3056_v20, %s3489_s10  ;;  %3135 = vrot.lane.b32.xlu0 %v3055_v53, %s3489_s10 }
 0x53b   :  { %v2800_v10 = vpop.permute.xlu1 %2799  ;;  %v2798_v23 = vpop.permute.xlu0 %2797 }
 0x53c   :  { %2871 = vst.msk [vmem:[%s8469_s2 + $0xc8] sm:$0xff] %vm2845_vm0, %v2800_v10  ;;  %2870 = vst.msk [vmem:[%s8469_s2 + $0xc0] sm:$0xff] %vm2845_vm0, %v2798_v23 }
 0x53d   :  { %3141 = vrot.lane.b32.xlu1 %v3058_v62, %s3489_s10  ;;  %3139 = vrot.lane.b32.xlu0 %v3057_v57, %s3489_s10 }
 0x53f   :  { %v2804_v59 = vpop.permute.xlu1 %2803  ;;  %v2802_v52 = vpop.permute.xlu0 %2801 }
 0x540   :  { %2873 = vst.msk [vmem:[%s8469_s2 + $0xd8] sm:$0xff] %vm2845_vm0, %v2804_v59  ;;  %2872 = vst.msk [vmem:[%s8469_s2 + $0xd0] sm:$0xff] %vm2845_vm0, %v2802_v52 }
 0x541   :  { %3145 = vrot.lane.b32.xlu1 %v3060_v50, %s3489_s10  ;;  %3143 = vrot.lane.b32.xlu0 %v3059_v27, %s3489_s10 }
 0x543   :  { %v2808_v60 = vpop.permute.xlu1 %2807  ;;  %v2806_v44 = vpop.permute.xlu0 %2805 }
 0x544   :  { %2875 = vst.msk [vmem:[%s8469_s2 + $0xe8] sm:$0xff] %vm2845_vm0, %v2808_v60  ;;  %2874 = vst.msk [vmem:[%s8469_s2 + $0xe0] sm:$0xff] %vm2845_vm0, %v2806_v44 }
 0x545   :  { %3149 = vrot.lane.b32.xlu1 %v3062_v34, %s3489_s10  ;;  %3147 = vrot.lane.b32.xlu0 %v3061_v33, %s3489_s10 }
 0x547   :  { %v2812_v19 = vpop.permute.xlu1 %2811  ;;  %v2810_v21 = vpop.permute.xlu0 %2809 }
 0x548   :  { %2877 = vst.msk [vmem:[%s8469_s2 + $0xf8] sm:$0xff] %vm2845_vm0, %v2812_v19  ;;  %2876 = vst.msk [vmem:[%s8469_s2 + $0xf0] sm:$0xff] %vm2845_vm0, %v2810_v21 }
 0x549   :  { %3153 = vrot.lane.b32.xlu1 %v3064_v28, %s3489_s10  ;;  %3151 = vrot.lane.b32.xlu0 %v3063_v39, %s3489_s10  ;;  %vm9186_vm0 = vmmov %vm9157_vm1 }
 0x54a   :  { %3278 = vst.msk [vmem:[%s8470_s3 + $0x70] sm:$0xff] %vm9186_vm0, %v3246_v35  ;;  %vm9187_vm13 = vmmov %vm9186_vm0 }
 0x54b   :  { %v2913_v18 = vpop.permute.xlu1 %2912  ;;  %v2911_v22 = vpop.permute.xlu0 %2910  ;;  %3279 = vst.msk [vmem:[%s8470_s3 + $0x78] sm:$0xff] %vm9187_vm13, %v3247_v7  ;;  %vm9188_vm2 = vmmov %vm9186_vm0 }
 0x54c   :  { %3008 = vst.msk [vmem:[%s8469_s2 + $0x8] sm:$0xff] %vm3006_vm10, %v2913_v18  ;;  %3007 = vst.msk [vmem:[%s8469_s2] sm:$0xff] %vm3006_vm10, %v2911_v22 }
 0x54d   :  { %3157 = vrot.lane.b32.xlu1 %v3066_v24, %s3489_s10  ;;  %3155 = vrot.lane.b32.xlu0 %v3065_v1, %s3489_s10  ;;  %3280 = vst.msk [vmem:[%s8470_s3 + $0x80] sm:$0xff] %vm9188_vm2, %v3248_v49  ;;  %vm9189_vm15 = vmmov %vm9186_vm0 }
 0x54e   :  { %3281 = vst.msk [vmem:[%s8470_s3 + $0x88] sm:$0xff] %vm9189_vm15, %v3249_v47  ;;  %vm9190_vm1 = vmmov %vm9186_vm0  ;;  %vm3199_vm15 = vcmask 31768  }
 0x54f   :  { %3282 = vst.msk [vmem:[%s8470_s3 + $0x90] sm:$0xff] %vm9190_vm1, %v3250_v25  ;;  %vm9191_vm4 = vmmov %vm9186_vm0  ;;  %v2917_v36 = vpop.permute.xlu1 %2916  ;;  %v2915_v0 = vpop.permute.xlu0 %2914 }
 0x550   :  { %3283 = vst.msk [vmem:[%s8470_s3 + $0x98] sm:$0xff] %vm9191_vm4, %v3251_v3  ;;  %vm9192_vm6 = vmmov %vm9186_vm0 }
 0x551   :  { %3284 = vst.msk [vmem:[%s8470_s3 + $0xa0] sm:$0xff] %vm9192_vm6, %v3252_v48  ;;  %vm9193_vm8 = vmmov %vm9186_vm0  ;;  %3161 = vrot.lane.b32.xlu1 %v3068_v26, %s3489_s10  ;;  %3159 = vrot.lane.b32.xlu0 %v3067_v2, %s3489_s10 }
 0x552   :  { %3285 = vst.msk [vmem:[%s8470_s3 + $0xa8] sm:$0xff] %vm9193_vm8, %v3253_v45  ;;  %vm9194_vm11 = vmmov %vm9186_vm0 }
 0x553   :  { %3286 = vst.msk [vmem:[%s8470_s3 + $0xb0] sm:$0xff] %vm9194_vm11, %v3254_v55  ;;  %vm9195_vm7 = vmmov %vm9186_vm0  ;;  %v2921_v16 = vpop.permute.xlu1 %2920  ;;  %v2919_v61 = vpop.permute.xlu0 %2918 }
 0x554   :  { %3287 = vst.msk [vmem:[%s8470_s3 + $0xb8] sm:$0xff] %vm9195_vm7, %v3255_v38  ;;  %vm9196_vm5 = vmmov %vm9186_vm0 }
 0x555   :  { %3010 = vst.msk [vmem:[%s8469_s2 + $0x18] sm:$0xff] %vm3006_vm10, %v2917_v36  ;;  %3009 = vst.msk [vmem:[%s8469_s2 + $0x10] sm:$0xff] %vm3006_vm10, %v2915_v0  ;;  %3165 = vrot.lane.b32.xlu1 %v3070_v41, %s3489_s10  ;;  %3163 = vrot.lane.b32.xlu0 %v3069_v11, %s3489_s10 }
 0x556   :  { %3288 = vst.msk [vmem:[%s8470_s3 + $0xc0] sm:$0xff] %vm9196_vm5, %v3256_v15  ;;  %vm9197_vm12 = vmmov %vm9186_vm0 }
 0x557   :  { %3289 = vst.msk [vmem:[%s8470_s3 + $0xc8] sm:$0xff] %vm9197_vm12, %v3257_v6  ;;  %vm9198_vm14 = vmmov %vm9186_vm0  ;;  %v2925_v20 = vpop.permute.xlu1 %2924  ;;  %v2923_v53 = vpop.permute.xlu0 %2922 }
 0x558   :  { %3290 = vst.msk [vmem:[%s8470_s3 + $0xd0] sm:$0xff] %vm9198_vm14, %v3258_v4  ;;  %vm9199_vm3 = vmmov %vm9186_vm0 }
 0x559   :  { %3291 = vst.msk [vmem:[%s8470_s3 + $0xd8] sm:$0xff] %vm9199_vm3, %v3259_v40  ;;  %vm9200_vm9 = vmmov %vm9186_vm0 }
 0x55a   :  { %3292 = vst.msk [vmem:[%s8470_s3 + $0xe0] sm:$0xff] %vm9200_vm9, %v3260_v31  ;;  %vm9201_vm13 = vmmov %vm9186_vm0 }
 0x55b   :  { %3293 = vst.msk [vmem:[%s8470_s3 + $0xe8] sm:$0xff] %vm9186_vm0, %v3261_v58  ;;  %vm9202_vm2 = vmmov %vm9186_vm0  ;;  %v2929_v51 = vpop.permute.xlu1 %2928  ;;  %v2927_v37 = vpop.permute.xlu0 %2926 }
 0x55c   :  { %3294 = vst.msk [vmem:[%s8470_s3 + $0xf0] sm:$0xff] %vm9201_vm13, %v3262_v12 }
 0x55d   :  { %3295 = vst.msk [vmem:[%s8470_s3 + $0xf8] sm:$0xff] %vm9202_vm2, %v3263_v43 }
 0x55e   :  { %3012 = vst.msk [vmem:[%s8469_s2 + $0x28] sm:$0xff] %vm3006_vm10, %v2921_v16  ;;  %3011 = vst.msk [vmem:[%s8469_s2 + $0x20] sm:$0xff] %vm3006_vm10, %v2919_v61 }
 0x55f   :  { %3014 = vst.msk [vmem:[%s8469_s2 + $0x38] sm:$0xff] %vm3006_vm10, %v2925_v20  ;;  %3013 = vst.msk [vmem:[%s8469_s2 + $0x30] sm:$0xff] %vm3006_vm10, %v2923_v53  ;;  %v2933_v62 = vpop.permute.xlu1 %2932  ;;  %v2931_v57 = vpop.permute.xlu0 %2930 }
 0x560   :  { %3016 = vst.msk [vmem:[%s8469_s2 + $0x48] sm:$0xff] %vm3006_vm10, %v2929_v51  ;;  %3015 = vst.msk [vmem:[%s8469_s2 + $0x40] sm:$0xff] %vm3006_vm10, %v2927_v37 }
 0x561   :  { %3018 = vst.msk [vmem:[%s8469_s2 + $0x58] sm:$0xff] %vm3006_vm10, %v2933_v62  ;;  %3017 = vst.msk [vmem:[%s8469_s2 + $0x50] sm:$0xff] %vm3006_vm10, %v2931_v57 }
 0x563   :  { %v2937_v10 = vpop.permute.xlu1 %2936  ;;  %v2935_v23 = vpop.permute.xlu0 %2934 }
 0x564   :  { %3020 = vst.msk [vmem:[%s8469_s2 + $0x68] sm:$0xff] %vm3006_vm10, %v2937_v10  ;;  %3019 = vst.msk [vmem:[%s8469_s2 + $0x60] sm:$0xff] %vm3006_vm10, %v2935_v23 }
 0x567   :  { %v2941_v50 = vpop.permute.xlu1 %2940  ;;  %v2939_v27 = vpop.permute.xlu0 %2938 }
 0x568   :  { %3022 = vst.msk [vmem:[%s8469_s2 + $0x78] sm:$0xff] %vm3006_vm10, %v2941_v50  ;;  %3021 = vst.msk [vmem:[%s8469_s2 + $0x70] sm:$0xff] %vm3006_vm10, %v2939_v27 }
 0x56b   :  { %v2945_v59 = vpop.permute.xlu1 %2944  ;;  %v2943_v52 = vpop.permute.xlu0 %2942 }
 0x56c   :  { %3024 = vst.msk [vmem:[%s8469_s2 + $0x88] sm:$0xff] %vm3006_vm10, %v2945_v59  ;;  %3023 = vst.msk [vmem:[%s8469_s2 + $0x80] sm:$0xff] %vm3006_vm10, %v2943_v52 }
 0x56f   :  { %v2949_v34 = vpop.permute.xlu1 %2948  ;;  %v2947_v33 = vpop.permute.xlu0 %2946 }
 0x570   :  { %3026 = vst.msk [vmem:[%s8469_s2 + $0x98] sm:$0xff] %vm3006_vm10, %v2949_v34  ;;  %3025 = vst.msk [vmem:[%s8469_s2 + $0x90] sm:$0xff] %vm3006_vm10, %v2947_v33 }
 0x573   :  { %v2953_v60 = vpop.permute.xlu1 %2952  ;;  %v2951_v44 = vpop.permute.xlu0 %2950 }
 0x574   :  { %3028 = vst.msk [vmem:[%s8469_s2 + $0xa8] sm:$0xff] %vm3006_vm10, %v2953_v60  ;;  %3027 = vst.msk [vmem:[%s8469_s2 + $0xa0] sm:$0xff] %vm3006_vm10, %v2951_v44 }
 0x577   :  { %v2957_v28 = vpop.permute.xlu1 %2956  ;;  %v2955_v39 = vpop.permute.xlu0 %2954 }
 0x578   :  { %3030 = vst.msk [vmem:[%s8469_s2 + $0xb8] sm:$0xff] %vm3006_vm10, %v2957_v28  ;;  %3029 = vst.msk [vmem:[%s8469_s2 + $0xb0] sm:$0xff] %vm3006_vm10, %v2955_v39 }
 0x57b   :  { %v2961_v19 = vpop.permute.xlu1 %2960  ;;  %v2959_v21 = vpop.permute.xlu0 %2958 }
 0x57c   :  { %3032 = vst.msk [vmem:[%s8469_s2 + $0xc8] sm:$0xff] %vm3006_vm10, %v2961_v19  ;;  %3031 = vst.msk [vmem:[%s8469_s2 + $0xc0] sm:$0xff] %vm3006_vm10, %v2959_v21 }
 0x57f   :  { %v2965_v42 = vpop.permute.xlu1 %2964  ;;  %v2963_v32 = vpop.permute.xlu0 %2962 }
 0x580   :  { %3034 = vst.msk [vmem:[%s8469_s2 + $0xd8] sm:$0xff] %vm3006_vm10, %v2965_v42  ;;  %3033 = vst.msk [vmem:[%s8469_s2 + $0xd0] sm:$0xff] %vm3006_vm10, %v2963_v32 }
 0x583   :  { %v2969_v8 = vpop.permute.xlu1 %2968  ;;  %v2967_v24 = vpop.permute.xlu0 %2966 }
 0x584   :  { %3036 = vst.msk [vmem:[%s8469_s2 + $0xe8] sm:$0xff] %vm3006_vm10, %v2969_v8  ;;  %3035 = vst.msk [vmem:[%s8469_s2 + $0xe0] sm:$0xff] %vm3006_vm10, %v2967_v24 }
 0x587   :  { %v2973_v1 = vpop.permute.xlu1 %2972  ;;  %v2971_v56 = vpop.permute.xlu0 %2970 }
 0x588   :  { %3038 = vst.msk [vmem:[%s8469_s2 + $0xf8] sm:$0xff] %vm3006_vm10, %v2973_v1  ;;  %3037 = vst.msk [vmem:[%s8469_s2 + $0xf0] sm:$0xff] %vm3006_vm10, %v2971_v56 }
 0x58b   :  { %v3106_v29 = vpop.permute.xlu1 %3105  ;;  %v3104_v46 = vpop.permute.xlu0 %3103 }
 0x58c   :  { %3201 = vst.msk [vmem:[%s8469_s2 + $0x8] sm:$0xff] %vm3199_vm15, %v3106_v29  ;;  %3200 = vst.msk [vmem:[%s8469_s2] sm:$0xff] %vm3199_vm15, %v3104_v46 }
 0x58f   :  { %v3110_v63 = vpop.permute.xlu1 %3109  ;;  %v3108_v9 = vpop.permute.xlu0 %3107 }
 0x590   :  { %3203 = vst.msk [vmem:[%s8469_s2 + $0x18] sm:$0xff] %vm3199_vm15, %v3110_v63  ;;  %3202 = vst.msk [vmem:[%s8469_s2 + $0x10] sm:$0xff] %vm3199_vm15, %v3108_v9 }
 0x593   :  { %v3114_v17 = vpop.permute.xlu1 %3113  ;;  %v3112_v5 = vpop.permute.xlu0 %3111 }
 0x594   :  { %3205 = vst.msk [vmem:[%s8469_s2 + $0x28] sm:$0xff] %vm3199_vm15, %v3114_v17  ;;  %3204 = vst.msk [vmem:[%s8469_s2 + $0x20] sm:$0xff] %vm3199_vm15, %v3112_v5 }
 0x597   :  { %v3118_v30 = vpop.permute.xlu1 %3117  ;;  %v3116_v14 = vpop.permute.xlu0 %3115 }
 0x598   :  { %3207 = vst.msk [vmem:[%s8469_s2 + $0x38] sm:$0xff] %vm3199_vm15, %v3118_v30  ;;  %3206 = vst.msk [vmem:[%s8469_s2 + $0x30] sm:$0xff] %vm3199_vm15, %v3116_v14 }
 0x59b   :  { %v3122_v18 = vpop.permute.xlu1 %3121  ;;  %v3120_v22 = vpop.permute.xlu0 %3119 }
 0x59c   :  { %3209 = vst.msk [vmem:[%s8469_s2 + $0x48] sm:$0xff] %vm3199_vm15, %v3122_v18  ;;  %3208 = vst.msk [vmem:[%s8469_s2 + $0x40] sm:$0xff] %vm3199_vm15, %v3120_v22 }
 0x59f   :  { %v3126_v13 = vpop.permute.xlu1 %3125  ;;  %v3124_v54 = vpop.permute.xlu0 %3123 }
 0x5a0   :  { %3211 = vst.msk [vmem:[%s8469_s2 + $0x58] sm:$0xff] %vm3199_vm15, %v3126_v13  ;;  %3210 = vst.msk [vmem:[%s8469_s2 + $0x50] sm:$0xff] %vm3199_vm15, %v3124_v54 }
 0x5a3   :  { %v3130_v35 = vpop.permute.xlu1 %3129  ;;  %v3128_v26 = vpop.permute.xlu0 %3127 }
 0x5a4   :  { %3213 = vst.msk [vmem:[%s8469_s2 + $0x68] sm:$0xff] %vm3199_vm15, %v3130_v35  ;;  %3212 = vst.msk [vmem:[%s8469_s2 + $0x60] sm:$0xff] %vm3199_vm15, %v3128_v26 }
 0x5a7   :  { %v3134_v2 = vpop.permute.xlu1 %3133  ;;  %v3132_v7 = vpop.permute.xlu0 %3131 }
 0x5a8   :  { %3215 = vst.msk [vmem:[%s8469_s2 + $0x78] sm:$0xff] %vm3199_vm15, %v3134_v2  ;;  %3214 = vst.msk [vmem:[%s8469_s2 + $0x70] sm:$0xff] %vm3199_vm15, %v3132_v7 }
 0x5ab   :  { %v3138_v49 = vpop.permute.xlu1 %3137  ;;  %v3136_v47 = vpop.permute.xlu0 %3135 }
 0x5ac   :  { %3217 = vst.msk [vmem:[%s8469_s2 + $0x88] sm:$0xff] %vm3199_vm15, %v3138_v49  ;;  %3216 = vst.msk [vmem:[%s8469_s2 + $0x80] sm:$0xff] %vm3199_vm15, %v3136_v47 }
 0x5af   :  { %v3142_v25 = vpop.permute.xlu1 %3141  ;;  %v3140_v3 = vpop.permute.xlu0 %3139 }
 0x5b0   :  { %3219 = vst.msk [vmem:[%s8469_s2 + $0x98] sm:$0xff] %vm3199_vm15, %v3142_v25  ;;  %3218 = vst.msk [vmem:[%s8469_s2 + $0x90] sm:$0xff] %vm3199_vm15, %v3140_v3 }
 0x5b3   :  { %v3146_v48 = vpop.permute.xlu1 %3145  ;;  %v3144_v45 = vpop.permute.xlu0 %3143 }
 0x5b4   :  { %3221 = vst.msk [vmem:[%s8469_s2 + $0xa8] sm:$0xff] %vm3199_vm15, %v3146_v48  ;;  %3220 = vst.msk [vmem:[%s8469_s2 + $0xa0] sm:$0xff] %vm3199_vm15, %v3144_v45 }
 0x5b7   :  { %v3150_v55 = vpop.permute.xlu1 %3149  ;;  %v3148_v38 = vpop.permute.xlu0 %3147 }
 0x5b8   :  { %3223 = vst.msk [vmem:[%s8469_s2 + $0xb8] sm:$0xff] %vm3199_vm15, %v3150_v55  ;;  %3222 = vst.msk [vmem:[%s8469_s2 + $0xb0] sm:$0xff] %vm3199_vm15, %v3148_v38 }
 0x5bb   :  { %v3154_v36 = vpop.permute.xlu1 %3153  ;;  %v3152_v0 = vpop.permute.xlu0 %3151 }
 0x5bc   :  { %3225 = vst.msk [vmem:[%s8469_s2 + $0xc8] sm:$0xff] %vm3199_vm15, %v3154_v36  ;;  %3224 = vst.msk [vmem:[%s8469_s2 + $0xc0] sm:$0xff] %vm3199_vm15, %v3152_v0 }
 0x5bf   :  { %v3158_v15 = vpop.permute.xlu1 %3157  ;;  %v3156_v6 = vpop.permute.xlu0 %3155 }
 0x5c0   :  { %3227 = vst.msk [vmem:[%s8469_s2 + $0xd8] sm:$0xff] %vm3199_vm15, %v3158_v15  ;;  %3226 = vst.msk [vmem:[%s8469_s2 + $0xd0] sm:$0xff] %vm3199_vm15, %v3156_v6 }
 0x5c3   :  { %v3162_v4 = vpop.permute.xlu1 %3161  ;;  %v3160_v40 = vpop.permute.xlu0 %3159 }
 0x5c4   :  { %3229 = vst.msk [vmem:[%s8469_s2 + $0xe8] sm:$0xff] %vm3199_vm15, %v3162_v4  ;;  %3228 = vst.msk [vmem:[%s8469_s2 + $0xe0] sm:$0xff] %vm3199_vm15, %v3160_v40 }
 0x5c7   :  { %v3166_v31 = vpop.permute.xlu1 %3165  ;;  %v3164_v58 = vpop.permute.xlu0 %3163 }
 0x5c8   :  { %3231 = vst.msk [vmem:[%s8469_s2 + $0xf8] sm:$0xff] %vm3199_vm15, %v3166_v31  ;;  %3230 = vst.msk [vmem:[%s8469_s2 + $0xf0] sm:$0xff] %vm3199_vm15, %v3164_v58 }

</bundles_post_ra>
